<compile_context>
chip_gen: v6e
topology: v6e:2x2x1
jax: 0.10.0
libtpu: 0.0.40
codegen_flags: <defaults>
</compile_context>

<pallas_src>
import functools

import jax
import jax.numpy as jnp
from jax.experimental import pallas as pl
from jax.experimental.pallas import tpu as pltpu

LANE = 128


def _ceil_to(n, m):
    return ((n + m - 1) // m) * m


def _cab_kernel(x_ref, w1_ref, b1_ref, w2_ref, b2_ref,
                wd_ref, bd_ref, wu_ref, bu_ref,
                o_ref,
                xpad_ref, g1_ref, y1pad_ref, g2_ref, y2_ref,
                *, Bt, H, W, Cp, C1p, approx_gelu):
    """Processes Bt images per grid step (all channel dims pre-padded to 128).

    x_ref    : (Bt, H, W, Cp)       bf16 NHWC input block
    w1_ref   : (3, 3*Cp, C1p)       bf16 conv1 weights, K rows = (dx, cin)
    b1_ref   : (1, C1p)             f32
    w2_ref   : (3, 3*C1p, Cp)       bf16 conv2 weights
    b2_ref   : (1, Cp)              f32
    wd_ref   : (Cp, Csp)            bf16 1x1 squeeze conv as a matrix
    bd_ref   : (1, Csp)             f32
    wu_ref   : (Csp, Cp)            bf16 1x1 excite conv as a matrix
    bu_ref   : (1, Cp)              f32
    o_ref    : (Bt, H, W, Cp)       bf16 output block (lane-dense, Cp=128*k)
    xpad_ref : (Bt, H+2, W+2, Cp)   bf16 scratch, spatially padded input
    g1_ref   : (Bt, H+2, W, 3*Cp)   bf16 scratch, dx-gathered input
    y1pad_ref: (Bt, H+2, W+2, C1p)  bf16 scratch, padded GELU(conv1)
    g2_ref   : (Bt, H+2, W, 3*C1p)  bf16 scratch, dx-gathered intermediate
    y2_ref   : (Bt, H*W, Cp)        f32 scratch, conv2 output staging
    """
    f32 = jnp.float32
    HW = H * W
    M = Bt * HW

    # ---- spatial zero-pad in VMEM: clear only the 1-px halo; interior is
    # fully overwritten every step.  (Halo is constant across steps, but
    # scratch is per-core under "parallel" sharding, so gating the clear on
    # program_id==0 would be unsafe on v7x; keep it per-step — it is tiny.) ----
    zr = jnp.zeros((Bt, 1, W + 2, Cp), xpad_ref.dtype)
    zc = jnp.zeros((Bt, H + 2, 1, Cp), xpad_ref.dtype)
    xpad_ref[:, 0:1] = zr
    xpad_ref[:, H + 1:H + 2] = zr
    xpad_ref[:, :, 0:1] = zc
    xpad_ref[:, :, W + 1:W + 2] = zc
    xpad_ref[:, 1:H + 1, 1:W + 1, :] = x_ref[...]

    # ---- conv1 (3x3, pad=1): gather the 3 dx taps onto the lane axis (each
    # tap starts on a 128-lane boundary since Cp % 128 == 0), then one bf16
    # MXU matmul per dy with K = 3*Cp and f32 accumulation ----
    for dx in range(3):
        g1_ref[:, :, :, dx * Cp:(dx + 1) * Cp] = xpad_ref[:, :, dx:dx + W, :]

    acc1 = jnp.dot(g1_ref[:, 0:H].reshape(M, 3 * Cp), w1_ref[0],
                   preferred_element_type=f32)
    for dy in (1, 2):
        acc1 += jnp.dot(g1_ref[:, dy:dy + H].reshape(M, 3 * Cp), w1_ref[dy],
                        preferred_element_type=f32)
    # tanh GELU routes to the EUP slot (erf would be a long VALU polynomial).
    y1 = jax.nn.gelu(acc1 + b1_ref[...], approximate=approx_gelu)

    # ---- spatially padded intermediate (zero halo, bf16) ----
    zr1 = jnp.zeros((Bt, 1, W + 2, C1p), y1pad_ref.dtype)
    zc1 = jnp.zeros((Bt, H + 2, 1, C1p), y1pad_ref.dtype)
    y1pad_ref[:, 0:1] = zr1
    y1pad_ref[:, H + 1:H + 2] = zr1
    y1pad_ref[:, :, 0:1] = zc1
    y1pad_ref[:, :, W + 1:W + 2] = zc1
    y1pad_ref[:, 1:H + 1, 1:W + 1, :] = (
        y1.reshape(Bt, H, W, C1p).astype(y1pad_ref.dtype))

    # ---- conv2 (3x3, pad=1): same width-gather + 3 matmuls, K = 3*C1p ----
    for dx in range(3):
        g2_ref[:, :, :, dx * C1p:(dx + 1) * C1p] = y1pad_ref[:, :, dx:dx + W, :]

    acc2 = jnp.dot(g2_ref[:, 0:H].reshape(M, 3 * C1p), w2_ref[0],
                   preferred_element_type=f32)
    for dy in (1, 2):
        acc2 += jnp.dot(g2_ref[:, dy:dy + H].reshape(M, 3 * C1p), w2_ref[dy],
                        preferred_element_type=f32)

    # Stage conv2 output in VMEM so the attention tail does not keep the whole
    # (M, Cp) f32 block live in vregs.
    y2_ref[...] = (acc2 + b2_ref[...]).reshape(Bt, HW, Cp)

    # ---- channel attention (RCAN): GAP -> 1x1 squeeze -> ReLU -> 1x1 excite
    # -> sigmoid; the 1x1s run as bf16 MXU matmuls with M = Bt ----
    gap = jnp.sum(y2_ref[...], axis=1) * (1.0 / HW)                # (Bt, Cp) f32
    d = jnp.maximum(
        jnp.dot(gap.astype(wd_ref.dtype), wd_ref[...],
                preferred_element_type=f32) + bd_ref[...], 0.0)    # (Bt, Csp)
    u = jax.nn.sigmoid(
        jnp.dot(d.astype(wu_ref.dtype), wu_ref[...],
                preferred_element_type=f32) + bu_ref[...])         # (Bt, Cp)

    # second streaming pass: channel-wise scale, lane-dense bf16 store
    o_ref[...] = (y2_ref[...] * u[:, None, :]).reshape(
        Bt, H, W, Cp).astype(o_ref.dtype)


def _scratch_bytes_per_image(H, W, Cp, C1p):
    bf2, f4 = 2, 4
    xpad = (H + 2) * (W + 2) * Cp * bf2
    g1 = (H + 2) * W * 3 * Cp * bf2
    y1pad = (H + 2) * (W + 2) * C1p * bf2
    g2 = (H + 2) * W * 3 * C1p * bf2
    y2 = H * W * Cp * f4
    io = 2 * (H * W * Cp * bf2) * 2   # double-buffered input + output blocks
    return xpad + g1 + y1pad + g2 + y2 + io


def cab_forward(x_nchw, params, *, batch_tile=None, approx_gelu=True):
    """CAB forward.  x_nchw: (B, C, H, W) float32 -> (B, C, H, W) float32."""
    w1, b1, w2, b2, wd, bd, wu, bu = params
    B, C, H, W = x_nchw.shape
    C1 = w1.shape[-1]
    Cs = wd.shape[-1]

    # 128-pad all channel dims: unmasked lane-dense stores, lane-tile aligned
    # gather offsets, MXU-friendly K/N (extra zero FLOPs are cheap — the
    # kernel is nowhere near MXU-bound).
    Cp = _ceil_to(C, LANE)
    C1p = _ceil_to(C1, LANE)
    Csp = _ceil_to(Cs, LANE)

    per_img = _scratch_bytes_per_image(H, W, Cp, C1p)
    if batch_tile is None:
        # Largest divisor of B fitting a conservative VMEM budget; prefer an
        # even number of grid steps so v7x megacore can split across both TCs.
        divisors = [d for d in range(1, B + 1) if B % d == 0]
        fits = [d for d in divisors if d * per_img <= (20 << 20)] or [1]
        even = [d for d in fits if (B // d) % 2 == 0]
        batch_tile = max(even) if even else max(fits)
    Bt = batch_tile
    assert B % Bt == 0, "batch_tile must divide the batch size"
    grid = (B // Bt,)

    # NCHW -> NHWC + bf16 + channel pad (fuses into one boundary copy)
    x = jnp.transpose(x_nchw, (0, 2, 3, 1)).astype(jnp.bfloat16)
    x = jnp.pad(x, ((0, 0), (0, 0), (0, 0), (0, Cp - C)))

    # conv weights: zero-pad channels, bf16, fold (dx, cin) into the K rows.
    # NOTE: padded weight/bias entries MUST remain exactly zero — correctness
    # of the padded lanes (and of the attention GAP) depends on it.
    w1m = jnp.pad(w1, ((0, 0), (0, 0), (0, Cp - C), (0, C1p - C1)))
    w1m = w1m.astype(jnp.bfloat16).reshape(3, 3 * Cp, C1p)
    b1m = jnp.pad(b1, ((0, 0), (0, C1p - C1)))
    w2m = jnp.pad(w2, ((0, 0), (0, 0), (0, C1p - C1), (0, Cp - C)))
    w2m = w2m.astype(jnp.bfloat16).reshape(3, 3 * C1p, Cp)
    b2m = jnp.pad(b2, ((0, 0), (0, Cp - C)))
    wdm = jnp.pad(wd, ((0, Cp - C), (0, Csp - Cs))).astype(jnp.bfloat16)
    bdm = jnp.pad(bd, ((0, 0), (0, Csp - Cs)))
    wum = jnp.pad(wu, ((0, Csp - Cs), (0, Cp - C))).astype(jnp.bfloat16)
    bum = jnp.pad(bu, ((0, 0), (0, Cp - C)))

    kernel = functools.partial(_cab_kernel, Bt=Bt, H=H, W=W, Cp=Cp, C1p=C1p,
                               approx_gelu=approx_gelu)

    def full(a):
        return pl.BlockSpec(a.shape, lambda b: (0,) * a.ndim)

    weight_bytes = sum(int(a.size) * a.dtype.itemsize
                       for a in (w1m, b1m, w2m, b2m, wdm, bdm, wum, bum))
    vmem_limit = int(min(max(4 * Bt * per_img + 4 * weight_bytes, 16 << 20),
                         48 << 20))

    out = pl.pallas_call(
        kernel,
        out_shape=jax.ShapeDtypeStruct((B, H, W, Cp), jnp.bfloat16),
        grid=grid,
        in_specs=[
            pl.BlockSpec((Bt, H, W, Cp), lambda b: (b, 0, 0, 0)),
            full(w1m), full(b1m), full(w2m), full(b2m),
            full(wdm), full(bdm), full(wum), full(bum),
        ],
        out_specs=pl.BlockSpec((Bt, H, W, Cp), lambda b: (b, 0, 0, 0)),
        scratch_shapes=[
            pltpu.VMEM((Bt, H + 2, W + 2, Cp), jnp.bfloat16),
            pltpu.VMEM((Bt, H + 2, W, 3 * Cp), jnp.bfloat16),
            pltpu.VMEM((Bt, H + 2, W + 2, C1p), jnp.bfloat16),
            pltpu.VMEM((Bt, H + 2, W, 3 * C1p), jnp.bfloat16),
            pltpu.VMEM((Bt, H * W, Cp), jnp.float32),
        ],
        compiler_params=pltpu.CompilerParams(
            dimension_semantics=("parallel",),
            vmem_limit_bytes=vmem_limit),
    )(x, w1m, b1m, w2m, b2m, wdm, bdm, wum, bum)

    # drop channel padding, back to NCHW f32 (fuses with the output transpose)
    return jnp.transpose(out[..., :C], (0, 3, 1, 2)).astype(jnp.float32)


def cab_reference(x_nchw, params):
    """Pure-JAX reference (mirrors the PyTorch module), f32, exact GELU."""
    w1, b1, w2, b2, wd, bd, wu, bu = params
    x = jnp.transpose(x_nchw, (0, 2, 3, 1))
    dn = ('NHWC', 'HWIO', 'NHWC')
    y1 = jax.lax.conv_general_dilated(x, w1, (1, 1), 'SAME',
                                      dimension_numbers=dn) + b1
    y1 = jax.nn.gelu(y1, approximate=False)
    y2 = jax.lax.conv_general_dilated(y1, w2, (1, 1), 'SAME',
                                      dimension_numbers=dn) + b2
    gap = jnp.mean(y2, axis=(1, 2))                       # (B, C)
    d = jnp.maximum(gap @ wd + bd, 0.0)
    u = jax.nn.sigmoid(d @ wu + bu)                       # (B, C)
    out = y2 * u[:, None, None, :]
    return jnp.transpose(out, (0, 3, 1, 2))


def make_params(key, num_feat, compress_ratio, squeeze_factor):
    c1 = num_feat // compress_ratio
    cs = num_feat // squeeze_factor
    ks = jax.random.split(key, 8)
    s = 0.05
    w1 = s * jax.random.normal(ks[0], (3, 3, num_feat, c1), jnp.float32)   # HWIO
    b1 = s * jax.random.normal(ks[1], (1, c1), jnp.float32)
    w2 = s * jax.random.normal(ks[2], (3, 3, c1, num_feat), jnp.float32)
    b2 = s * jax.random.normal(ks[3], (1, num_feat), jnp.float32)
    wd = s * jax.random.normal(ks[4], (num_feat, cs), jnp.float32)         # 1x1 conv as matrix
    bd = s * jax.random.normal(ks[5], (1, cs), jnp.float32)
    wu = s * jax.random.normal(ks[6], (cs, num_feat), jnp.float32)
    bu = s * jax.random.normal(ks[7], (1, num_feat), jnp.float32)
    return (w1, b1, w2, b2, wd, bd, wu, bu)


if __name__ == "__main__":
    B, C, H, W = 2, 60, 16, 16            # num_feat=60, compress_ratio=3, squeeze_factor=30
    compress_ratio, squeeze_factor = 3, 30

    key = jax.random.PRNGKey(0)
    kx, kp = jax.random.split(key)
    x = jax.random.normal(kx, (B, C, H, W), jnp.float32)
    params = make_params(kp, C, compress_ratio, squeeze_factor)

    out = jax.jit(cab_forward)(x, params)
    out = jax.block_until_ready(out)

    ref = cab_reference(x, params)
    assert out.shape == (B, C, H, W)
    err = jnp.max(jnp.abs(out - ref))
    # bf16 inputs/weights/output + tanh GELU vs the f32/erf reference:
    # tolerance widened slightly relative to a pure-f32 comparison.
    assert jnp.allclose(out, ref, rtol=3e-2, atol=3e-2), f"max err {err}"

    print("KERNEL_OK")
</pallas_src>

<mosaic_0001>
module attributes {stable_mosaic.version = 11 : i64} {
  func.func @_cab_kernel(%arg0: i32, %arg1: memref<1x16x16x128xbf16, #tpu.memory_space<vmem>>, %arg2: memref<3x384x128xbf16, #tpu.memory_space<vmem>>, %arg3: memref<1x128xf32, #tpu.memory_space<vmem>>, %arg4: memref<3x384x128xbf16, #tpu.memory_space<vmem>>, %arg5: memref<1x128xf32, #tpu.memory_space<vmem>>, %arg6: memref<128x128xbf16, #tpu.memory_space<vmem>>, %arg7: memref<1x128xf32, #tpu.memory_space<vmem>>, %arg8: memref<128x128xbf16, #tpu.memory_space<vmem>>, %arg9: memref<1x128xf32, #tpu.memory_space<vmem>>, %arg10: memref<1x16x16x128xbf16, #tpu.memory_space<vmem>>, %arg11: memref<1x18x18x128xbf16, #tpu.memory_space<vmem>>, %arg12: memref<1x18x16x384xbf16, #tpu.memory_space<vmem>>, %arg13: memref<1x18x18x128xbf16, #tpu.memory_space<vmem>>, %arg14: memref<1x18x16x384xbf16, #tpu.memory_space<vmem>>, %arg15: memref<1x256x128xf32, #tpu.memory_space<vmem>>) attributes {dimension_semantics = [#tpu.dimension_semantics<parallel>], iteration_bounds = array<i64: 2>, scalar_prefetch = 0 : i64, scratch_operands = 5 : i64, tpu.core_type = #tpu.core_type<tc>, window_params = [{transform_indices = @transform_0, window_bounds = array<i64: 1, 16, 16, 128>}, {pipeline_mode = #tpu.pipeline_mode<synchronous>, transform_indices = @transform_1, window_bounds = array<i64: 3, 384, 128>}, {pipeline_mode = #tpu.pipeline_mode<synchronous>, transform_indices = @transform_2, window_bounds = array<i64: 1, 128>}, {pipeline_mode = #tpu.pipeline_mode<synchronous>, transform_indices = @transform_3, window_bounds = array<i64: 3, 384, 128>}, {pipeline_mode = #tpu.pipeline_mode<synchronous>, transform_indices = @transform_4, window_bounds = array<i64: 1, 128>}, {pipeline_mode = #tpu.pipeline_mode<synchronous>, transform_indices = @transform_5, window_bounds = array<i64: 128, 128>}, {pipeline_mode = #tpu.pipeline_mode<synchronous>, transform_indices = @transform_6, window_bounds = array<i64: 1, 128>}, {pipeline_mode = #tpu.pipeline_mode<synchronous>, transform_indices = @transform_7, window_bounds = array<i64: 128, 128>}, {pipeline_mode = #tpu.pipeline_mode<synchronous>, transform_indices = @transform_8, window_bounds = array<i64: 1, 128>}, {transform_indices = @transform_9, window_bounds = array<i64: 1, 16, 16, 128>}]} {
    %cst = arith.constant 0.000000e+00 : bf16
    %0 = vector.broadcast %cst : bf16 to vector<1x1x18x128xbf16>
    %cst_0 = arith.constant 0.000000e+00 : bf16
    %1 = vector.broadcast %cst_0 : bf16 to vector<1x18x1x128xbf16>
    %c0 = arith.constant 0 : index
    %c0_1 = arith.constant 0 : index
    %c0_2 = arith.constant 0 : index
    %c0_3 = arith.constant 0 : index
    %2 = vector.load %arg11[%c0, %c0_1, %c0_2, %c0_3] : memref<1x18x18x128xbf16, #tpu.memory_space<vmem>>, vector<1x1x18x128xbf16>
    tpu.vector_store %arg11[%c0, %c0_1, %c0_2, %c0_3], %0 {strides = array<i32>} : memref<1x18x18x128xbf16, #tpu.memory_space<vmem>>, vector<1x1x18x128xbf16>,
    %c0_4 = arith.constant 0 : index
    %c17 = arith.constant 17 : index
    %c0_5 = arith.constant 0 : index
    %c0_6 = arith.constant 0 : index
    %3 = vector.load %arg11[%c0_4, %c17, %c0_5, %c0_6] : memref<1x18x18x128xbf16, #tpu.memory_space<vmem>>, vector<1x1x18x128xbf16>
    tpu.vector_store %arg11[%c0_4, %c17, %c0_5, %c0_6], %0 {strides = array<i32>} : memref<1x18x18x128xbf16, #tpu.memory_space<vmem>>, vector<1x1x18x128xbf16>,
    %c0_7 = arith.constant 0 : index
    %c0_8 = arith.constant 0 : index
    %c0_9 = arith.constant 0 : index
    %c0_10 = arith.constant 0 : index
    %4 = vector.load %arg11[%c0_7, %c0_8, %c0_9, %c0_10] : memref<1x18x18x128xbf16, #tpu.memory_space<vmem>>, vector<1x18x1x128xbf16>
    tpu.vector_store %arg11[%c0_7, %c0_8, %c0_9, %c0_10], %1 {strides = array<i32>} : memref<1x18x18x128xbf16, #tpu.memory_space<vmem>>, vector<1x18x1x128xbf16>,
    %c0_11 = arith.constant 0 : index
    %c0_12 = arith.constant 0 : index
    %c17_13 = arith.constant 17 : index
    %c0_14 = arith.constant 0 : index
    %5 = vector.load %arg11[%c0_11, %c0_12, %c17_13, %c0_14] : memref<1x18x18x128xbf16, #tpu.memory_space<vmem>>, vector<1x18x1x128xbf16>
    tpu.vector_store %arg11[%c0_11, %c0_12, %c17_13, %c0_14], %1 {strides = array<i32>} : memref<1x18x18x128xbf16, #tpu.memory_space<vmem>>, vector<1x18x1x128xbf16>,
    %c0_15 = arith.constant 0 : index
    %c0_16 = arith.constant 0 : index
    %c0_17 = arith.constant 0 : index
    %c0_18 = arith.constant 0 : index
    %6 = vector.load %arg1[%c0_15, %c0_16, %c0_17, %c0_18] : memref<1x16x16x128xbf16, #tpu.memory_space<vmem>>, vector<1x16x16x128xbf16>
    %c0_19 = arith.constant 0 : index
    %c1 = arith.constant 1 : index
    %c1_20 = arith.constant 1 : index
    %c0_21 = arith.constant 0 : index
    %7 = vector.load %arg11[%c0_19, %c1, %c1_20, %c0_21] : memref<1x18x18x128xbf16, #tpu.memory_space<vmem>>, vector<1x16x16x128xbf16>
    tpu.vector_store %arg11[%c0_19, %c1, %c1_20, %c0_21], %6 {strides = array<i32>} : memref<1x18x18x128xbf16, #tpu.memory_space<vmem>>, vector<1x16x16x128xbf16>,
    %c0_22 = arith.constant 0 : index
    %c0_23 = arith.constant 0 : index
    %c0_24 = arith.constant 0 : index
    %c0_25 = arith.constant 0 : index
    %8 = vector.load %arg11[%c0_22, %c0_23, %c0_24, %c0_25] : memref<1x18x18x128xbf16, #tpu.memory_space<vmem>>, vector<1x18x16x128xbf16>
    %c0_26 = arith.constant 0 : index
    %c0_27 = arith.constant 0 : index
    %c0_28 = arith.constant 0 : index
    %c0_29 = arith.constant 0 : index
    %9 = vector.load %arg12[%c0_26, %c0_27, %c0_28, %c0_29] : memref<1x18x16x384xbf16, #tpu.memory_space<vmem>>, vector<1x18x16x128xbf16>
    tpu.vector_store %arg12[%c0_26, %c0_27, %c0_28, %c0_29], %8 {strides = array<i32>} : memref<1x18x16x384xbf16, #tpu.memory_space<vmem>>, vector<1x18x16x128xbf16>,
    %c0_30 = arith.constant 0 : index
    %c0_31 = arith.constant 0 : index
    %c1_32 = arith.constant 1 : index
    %c0_33 = arith.constant 0 : index
    %10 = vector.load %arg11[%c0_30, %c0_31, %c1_32, %c0_33] : memref<1x18x18x128xbf16, #tpu.memory_space<vmem>>, vector<1x18x16x128xbf16>
    %c0_34 = arith.constant 0 : index
    %c0_35 = arith.constant 0 : index
    %c0_36 = arith.constant 0 : index
    %c128 = arith.constant 128 : index
    %11 = vector.load %arg12[%c0_34, %c0_35, %c0_36, %c128] : memref<1x18x16x384xbf16, #tpu.memory_space<vmem>>, vector<1x18x16x128xbf16>
    tpu.vector_store %arg12[%c0_34, %c0_35, %c0_36, %c128], %10 {strides = array<i32>} : memref<1x18x16x384xbf16, #tpu.memory_space<vmem>>, vector<1x18x16x128xbf16>,
    %c0_37 = arith.constant 0 : index
    %c0_38 = arith.constant 0 : index
    %c2 = arith.constant 2 : index
    %c0_39 = arith.constant 0 : index
    %12 = vector.load %arg11[%c0_37, %c0_38, %c2, %c0_39] : memref<1x18x18x128xbf16, #tpu.memory_space<vmem>>, vector<1x18x16x128xbf16>
    %c0_40 = arith.constant 0 : index
    %c0_41 = arith.constant 0 : index
    %c0_42 = arith.constant 0 : index
    %c256 = arith.constant 256 : index
    %13 = vector.load %arg12[%c0_40, %c0_41, %c0_42, %c256] : memref<1x18x16x384xbf16, #tpu.memory_space<vmem>>, vector<1x18x16x128xbf16>
    tpu.vector_store %arg12[%c0_40, %c0_41, %c0_42, %c256], %12 {strides = array<i32>} : memref<1x18x16x384xbf16, #tpu.memory_space<vmem>>, vector<1x18x16x128xbf16>,
    %c0_43 = arith.constant 0 : index
    %c0_44 = arith.constant 0 : index
    %c0_45 = arith.constant 0 : index
    %c0_46 = arith.constant 0 : index
    %14 = vector.load %arg12[%c0_43, %c0_44, %c0_45, %c0_46] : memref<1x18x16x384xbf16, #tpu.memory_space<vmem>>, vector<1x16x16x384xbf16>
    %15 = vector.shape_cast %14 : vector<1x16x16x384xbf16> to vector<256x384xbf16>
    %c0_47 = arith.constant 0 : index
    %c0_48 = arith.constant 0 : index
    %c0_49 = arith.constant 0 : index
    %16 = vector.load %arg2[%c0_47, %c0_48, %c0_49] : memref<3x384x128xbf16, #tpu.memory_space<vmem>>, vector<1x384x128xbf16>
    %17 = vector.shape_cast %16 : vector<1x384x128xbf16> to vector<384x128xbf16>
    %cst_50 = arith.constant dense<0.000000e+00> : vector<256x128xf32>
    %18 = tpu.matmul %15, %17, %cst_50 {dimension_numbers = #tpu.dot_dimension_numbers<[1], [0], [0], [1], [0, 0, 1, 1], [], []>} : vector<256x384xbf16>, vector<384x128xbf16>, vector<256x128xf32> -> vector<256x128xf32>
    %c0_51 = arith.constant 0 : index
    %c1_52 = arith.constant 1 : index
    %c0_53 = arith.constant 0 : index
    %c0_54 = arith.constant 0 : index
    %19 = vector.load %arg12[%c0_51, %c1_52, %c0_53, %c0_54] : memref<1x18x16x384xbf16, #tpu.memory_space<vmem>>, vector<1x16x16x384xbf16>
    %20 = vector.shape_cast %19 : vector<1x16x16x384xbf16> to vector<256x384xbf16>
    %c1_55 = arith.constant 1 : index
    %c0_56 = arith.constant 0 : index
    %c0_57 = arith.constant 0 : index
    %21 = vector.load %arg2[%c1_55, %c0_56, %c0_57] : memref<3x384x128xbf16, #tpu.memory_space<vmem>>, vector<1x384x128xbf16>
    %22 = vector.shape_cast %21 : vector<1x384x128xbf16> to vector<384x128xbf16>
    %cst_58 = arith.constant dense<0.000000e+00> : vector<256x128xf32>
    %23 = tpu.matmul %20, %22, %cst_58 {dimension_numbers = #tpu.dot_dimension_numbers<[1], [0], [0], [1], [0, 0, 1, 1], [], []>} : vector<256x384xbf16>, vector<384x128xbf16>, vector<256x128xf32> -> vector<256x128xf32>
    %24 = arith.addf %18, %23 : vector<256x128xf32>
    %c0_59 = arith.constant 0 : index
    %c2_60 = arith.constant 2 : index
    %c0_61 = arith.constant 0 : index
    %c0_62 = arith.constant 0 : index
    %25 = vector.load %arg12[%c0_59, %c2_60, %c0_61, %c0_62] : memref<1x18x16x384xbf16, #tpu.memory_space<vmem>>, vector<1x16x16x384xbf16>
    %26 = vector.shape_cast %25 : vector<1x16x16x384xbf16> to vector<256x384xbf16>
    %c2_63 = arith.constant 2 : index
    %c0_64 = arith.constant 0 : index
    %c0_65 = arith.constant 0 : index
    %27 = vector.load %arg2[%c2_63, %c0_64, %c0_65] : memref<3x384x128xbf16, #tpu.memory_space<vmem>>, vector<1x384x128xbf16>
    %28 = vector.shape_cast %27 : vector<1x384x128xbf16> to vector<384x128xbf16>
    %cst_66 = arith.constant dense<0.000000e+00> : vector<256x128xf32>
    %29 = tpu.matmul %26, %28, %cst_66 {dimension_numbers = #tpu.dot_dimension_numbers<[1], [0], [0], [1], [0, 0, 1, 1], [], []>} : vector<256x384xbf16>, vector<384x128xbf16>, vector<256x128xf32> -> vector<256x128xf32>
    %30 = arith.addf %24, %29 : vector<256x128xf32>
    %c0_67 = arith.constant 0 : index
    %c0_68 = arith.constant 0 : index
    %31 = vector.load %arg3[%c0_67, %c0_68] : memref<1x128xf32, #tpu.memory_space<vmem>>, vector<1x128xf32>
    %32 = vector.broadcast %31 : vector<1x128xf32> to vector<256x128xf32>
    %33 = arith.addf %30, %32 : vector<256x128xf32>
    %34 = arith.mulf %33, %33 : vector<256x128xf32>
    %35 = arith.mulf %33, %34 : vector<256x128xf32>
    %cst_69 = arith.constant 4.471500e-02 : f32
    %36 = vector.broadcast %cst_69 : f32 to vector<256x128xf32>
    %37 = arith.mulf %36, %35 : vector<256x128xf32>
    %38 = arith.addf %33, %37 : vector<256x128xf32>
    %cst_70 = arith.constant 0.797884583 : f32
    %39 = vector.broadcast %cst_70 : f32 to vector<256x128xf32>
    %40 = arith.mulf %39, %38 : vector<256x128xf32>
    %41 = math.tanh %40 : vector<256x128xf32>
    %cst_71 = arith.constant 1.000000e+00 : f32
    %42 = vector.broadcast %cst_71 : f32 to vector<256x128xf32>
    %43 = arith.addf %42, %41 : vector<256x128xf32>
    %cst_72 = arith.constant 5.000000e-01 : f32
    %44 = vector.broadcast %cst_72 : f32 to vector<256x128xf32>
    %45 = arith.mulf %44, %43 : vector<256x128xf32>
    %46 = arith.mulf %33, %45 : vector<256x128xf32>
    %cst_73 = arith.constant 0.000000e+00 : bf16
    %47 = vector.broadcast %cst_73 : bf16 to vector<1x1x18x128xbf16>
    %cst_74 = arith.constant 0.000000e+00 : bf16
    %48 = vector.broadcast %cst_74 : bf16 to vector<1x18x1x128xbf16>
    %c0_75 = arith.constant 0 : index
    %c0_76 = arith.constant 0 : index
    %c0_77 = arith.constant 0 : index
    %c0_78 = arith.constant 0 : index
    %49 = vector.load %arg13[%c0_75, %c0_76, %c0_77, %c0_78] : memref<1x18x18x128xbf16, #tpu.memory_space<vmem>>, vector<1x1x18x128xbf16>
    tpu.vector_store %arg13[%c0_75, %c0_76, %c0_77, %c0_78], %47 {strides = array<i32>} : memref<1x18x18x128xbf16, #tpu.memory_space<vmem>>, vector<1x1x18x128xbf16>,
    %c0_79 = arith.constant 0 : index
    %c17_80 = arith.constant 17 : index
    %c0_81 = arith.constant 0 : index
    %c0_82 = arith.constant 0 : index
    %50 = vector.load %arg13[%c0_79, %c17_80, %c0_81, %c0_82] : memref<1x18x18x128xbf16, #tpu.memory_space<vmem>>, vector<1x1x18x128xbf16>
    tpu.vector_store %arg13[%c0_79, %c17_80, %c0_81, %c0_82], %47 {strides = array<i32>} : memref<1x18x18x128xbf16, #tpu.memory_space<vmem>>, vector<1x1x18x128xbf16>,
    %c0_83 = arith.constant 0 : index
    %c0_84 = arith.constant 0 : index
    %c0_85 = arith.constant 0 : index
    %c0_86 = arith.constant 0 : index
    %51 = vector.load %arg13[%c0_83, %c0_84, %c0_85, %c0_86] : memref<1x18x18x128xbf16, #tpu.memory_space<vmem>>, vector<1x18x1x128xbf16>
    tpu.vector_store %arg13[%c0_83, %c0_84, %c0_85, %c0_86], %48 {strides = array<i32>} : memref<1x18x18x128xbf16, #tpu.memory_space<vmem>>, vector<1x18x1x128xbf16>,
    %c0_87 = arith.constant 0 : index
    %c0_88 = arith.constant 0 : index
    %c17_89 = arith.constant 17 : index
    %c0_90 = arith.constant 0 : index
    %52 = vector.load %arg13[%c0_87, %c0_88, %c17_89, %c0_90] : memref<1x18x18x128xbf16, #tpu.memory_space<vmem>>, vector<1x18x1x128xbf16>
    tpu.vector_store %arg13[%c0_87, %c0_88, %c17_89, %c0_90], %48 {strides = array<i32>} : memref<1x18x18x128xbf16, #tpu.memory_space<vmem>>, vector<1x18x1x128xbf16>,
    %53 = vector.shape_cast %46 : vector<256x128xf32> to vector<1x16x16x128xf32>
    %54 = arith.truncf %53 : vector<1x16x16x128xf32> to vector<1x16x16x128xbf16>
    %c0_91 = arith.constant 0 : index
    %c1_92 = arith.constant 1 : index
    %c1_93 = arith.constant 1 : index
    %c0_94 = arith.constant 0 : index
    %55 = vector.load %arg13[%c0_91, %c1_92, %c1_93, %c0_94] : memref<1x18x18x128xbf16, #tpu.memory_space<vmem>>, vector<1x16x16x128xbf16>
    tpu.vector_store %arg13[%c0_91, %c1_92, %c1_93, %c0_94], %54 {strides = array<i32>} : memref<1x18x18x128xbf16, #tpu.memory_space<vmem>>, vector<1x16x16x128xbf16>,
    %c0_95 = arith.constant 0 : index
    %c0_96 = arith.constant 0 : index
    %c0_97 = arith.constant 0 : index
    %c0_98 = arith.constant 0 : index
    %56 = vector.load %arg13[%c0_95, %c0_96, %c0_97, %c0_98] : memref<1x18x18x128xbf16, #tpu.memory_space<vmem>>, vector<1x18x16x128xbf16>
    %c0_99 = arith.constant 0 : index
    %c0_100 = arith.constant 0 : index
    %c0_101 = arith.constant 0 : index
    %c0_102 = arith.constant 0 : index
    %57 = vector.load %arg14[%c0_99, %c0_100, %c0_101, %c0_102] : memref<1x18x16x384xbf16, #tpu.memory_space<vmem>>, vector<1x18x16x128xbf16>
    tpu.vector_store %arg14[%c0_99, %c0_100, %c0_101, %c0_102], %56 {strides = array<i32>} : memref<1x18x16x384xbf16, #tpu.memory_space<vmem>>, vector<1x18x16x128xbf16>,
    %c0_103 = arith.constant 0 : index
    %c0_104 = arith.constant 0 : index
    %c1_105 = arith.constant 1 : index
    %c0_106 = arith.constant 0 : index
    %58 = vector.load %arg13[%c0_103, %c0_104, %c1_105, %c0_106] : memref<1x18x18x128xbf16, #tpu.memory_space<vmem>>, vector<1x18x16x128xbf16>
    %c0_107 = arith.constant 0 : index
    %c0_108 = arith.constant 0 : index
    %c0_109 = arith.constant 0 : index
    %c128_110 = arith.constant 128 : index
    %59 = vector.load %arg14[%c0_107, %c0_108, %c0_109, %c128_110] : memref<1x18x16x384xbf16, #tpu.memory_space<vmem>>, vector<1x18x16x128xbf16>
    tpu.vector_store %arg14[%c0_107, %c0_108, %c0_109, %c128_110], %58 {strides = array<i32>} : memref<1x18x16x384xbf16, #tpu.memory_space<vmem>>, vector<1x18x16x128xbf16>,
    %c0_111 = arith.constant 0 : index
    %c0_112 = arith.constant 0 : index
    %c2_113 = arith.constant 2 : index
    %c0_114 = arith.constant 0 : index
    %60 = vector.load %arg13[%c0_111, %c0_112, %c2_113, %c0_114] : memref<1x18x18x128xbf16, #tpu.memory_space<vmem>>, vector<1x18x16x128xbf16>
    %c0_115 = arith.constant 0 : index
    %c0_116 = arith.constant 0 : index
    %c0_117 = arith.constant 0 : index
    %c256_118 = arith.constant 256 : index
    %61 = vector.load %arg14[%c0_115, %c0_116, %c0_117, %c256_118] : memref<1x18x16x384xbf16, #tpu.memory_space<vmem>>, vector<1x18x16x128xbf16>
    tpu.vector_store %arg14[%c0_115, %c0_116, %c0_117, %c256_118], %60 {strides = array<i32>} : memref<1x18x16x384xbf16, #tpu.memory_space<vmem>>, vector<1x18x16x128xbf16>,
    %c0_119 = arith.constant 0 : index
    %c0_120 = arith.constant 0 : index
    %c0_121 = arith.constant 0 : index
    %c0_122 = arith.constant 0 : index
    %62 = vector.load %arg14[%c0_119, %c0_120, %c0_121, %c0_122] : memref<1x18x16x384xbf16, #tpu.memory_space<vmem>>, vector<1x16x16x384xbf16>
    %63 = vector.shape_cast %62 : vector<1x16x16x384xbf16> to vector<256x384xbf16>
    %c0_123 = arith.constant 0 : index
    %c0_124 = arith.constant 0 : index
    %c0_125 = arith.constant 0 : index
    %64 = vector.load %arg4[%c0_123, %c0_124, %c0_125] : memref<3x384x128xbf16, #tpu.memory_space<vmem>>, vector<1x384x128xbf16>
    %65 = vector.shape_cast %64 : vector<1x384x128xbf16> to vector<384x128xbf16>
    %cst_126 = arith.constant dense<0.000000e+00> : vector<256x128xf32>
    %66 = tpu.matmul %63, %65, %cst_126 {dimension_numbers = #tpu.dot_dimension_numbers<[1], [0], [0], [1], [0, 0, 1, 1], [], []>} : vector<256x384xbf16>, vector<384x128xbf16>, vector<256x128xf32> -> vector<256x128xf32>
    %c0_127 = arith.constant 0 : index
    %c1_128 = arith.constant 1 : index
    %c0_129 = arith.constant 0 : index
    %c0_130 = arith.constant 0 : index
    %67 = vector.load %arg14[%c0_127, %c1_128, %c0_129, %c0_130] : memref<1x18x16x384xbf16, #tpu.memory_space<vmem>>, vector<1x16x16x384xbf16>
    %68 = vector.shape_cast %67 : vector<1x16x16x384xbf16> to vector<256x384xbf16>
    %c1_131 = arith.constant 1 : index
    %c0_132 = arith.constant 0 : index
    %c0_133 = arith.constant 0 : index
    %69 = vector.load %arg4[%c1_131, %c0_132, %c0_133] : memref<3x384x128xbf16, #tpu.memory_space<vmem>>, vector<1x384x128xbf16>
    %70 = vector.shape_cast %69 : vector<1x384x128xbf16> to vector<384x128xbf16>
    %cst_134 = arith.constant dense<0.000000e+00> : vector<256x128xf32>
    %71 = tpu.matmul %68, %70, %cst_134 {dimension_numbers = #tpu.dot_dimension_numbers<[1], [0], [0], [1], [0, 0, 1, 1], [], []>} : vector<256x384xbf16>, vector<384x128xbf16>, vector<256x128xf32> -> vector<256x128xf32>
    %72 = arith.addf %66, %71 : vector<256x128xf32>
    %c0_135 = arith.constant 0 : index
    %c2_136 = arith.constant 2 : index
    %c0_137 = arith.constant 0 : index
    %c0_138 = arith.constant 0 : index
    %73 = vector.load %arg14[%c0_135, %c2_136, %c0_137, %c0_138] : memref<1x18x16x384xbf16, #tpu.memory_space<vmem>>, vector<1x16x16x384xbf16>
    %74 = vector.shape_cast %73 : vector<1x16x16x384xbf16> to vector<256x384xbf16>
    %c2_139 = arith.constant 2 : index
    %c0_140 = arith.constant 0 : index
    %c0_141 = arith.constant 0 : index
    %75 = vector.load %arg4[%c2_139, %c0_140, %c0_141] : memref<3x384x128xbf16, #tpu.memory_space<vmem>>, vector<1x384x128xbf16>
    %76 = vector.shape_cast %75 : vector<1x384x128xbf16> to vector<384x128xbf16>
    %cst_142 = arith.constant dense<0.000000e+00> : vector<256x128xf32>
    %77 = tpu.matmul %74, %76, %cst_142 {dimension_numbers = #tpu.dot_dimension_numbers<[1], [0], [0], [1], [0, 0, 1, 1], [], []>} : vector<256x384xbf16>, vector<384x128xbf16>, vector<256x128xf32> -> vector<256x128xf32>
    %78 = arith.addf %72, %77 : vector<256x128xf32>
    %c0_143 = arith.constant 0 : index
    %c0_144 = arith.constant 0 : index
    %79 = vector.load %arg5[%c0_143, %c0_144] : memref<1x128xf32, #tpu.memory_space<vmem>>, vector<1x128xf32>
    %80 = vector.broadcast %79 : vector<1x128xf32> to vector<256x128xf32>
    %81 = arith.addf %78, %80 : vector<256x128xf32>
    %82 = vector.shape_cast %81 : vector<256x128xf32> to vector<1x256x128xf32>
    %c0_145 = arith.constant 0 : index
    %c0_146 = arith.constant 0 : index
    %c0_147 = arith.constant 0 : index
    %83 = vector.load %arg15[%c0_145, %c0_146, %c0_147] : memref<1x256x128xf32, #tpu.memory_space<vmem>>, vector<1x256x128xf32>
    tpu.vector_store %arg15[%c0_145, %c0_146, %c0_147], %82 {strides = array<i32>} : memref<1x256x128xf32, #tpu.memory_space<vmem>>, vector<1x256x128xf32>,
    %c0_148 = arith.constant 0 : index
    %c0_149 = arith.constant 0 : index
    %c0_150 = arith.constant 0 : index
    %84 = vector.load %arg15[%c0_148, %c0_149, %c0_150] : memref<1x256x128xf32, #tpu.memory_space<vmem>>, vector<1x256x128xf32>
    %cst_151 = arith.constant dense<0.000000e+00> : vector<1x128xf32>
    %85 = vector.multi_reduction <add>, %84, %cst_151 [1] : vector<1x256x128xf32> to vector<1x128xf32>
    %cst_152 = arith.constant 3.906250e-03 : f32
    %86 = vector.broadcast %cst_152 : f32 to vector<1x128xf32>
    %87 = arith.mulf %85, %86 : vector<1x128xf32>
    %88 = arith.truncf %87 : vector<1x128xf32> to vector<1x128xbf16>
    %c0_153 = arith.constant 0 : index
    %c0_154 = arith.constant 0 : index
    %89 = vector.load %arg6[%c0_153, %c0_154] : memref<128x128xbf16, #tpu.memory_space<vmem>>, vector<128x128xbf16>
    %cst_155 = arith.constant dense<0.000000e+00> : vector<1x128xf32>
    %90 = tpu.matmul %88, %89, %cst_155 {dimension_numbers = #tpu.dot_dimension_numbers<[1], [0], [0], [1], [0, 0, 1, 1], [], []>} : vector<1x128xbf16>, vector<128x128xbf16>, vector<1x128xf32> -> vector<1x128xf32>
    %c0_156 = arith.constant 0 : index
    %c0_157 = arith.constant 0 : index
    %91 = vector.load %arg7[%c0_156, %c0_157] : memref<1x128xf32, #tpu.memory_space<vmem>>, vector<1x128xf32>
    %92 = arith.addf %90, %91 : vector<1x128xf32>
    %cst_158 = arith.constant 0.000000e+00 : f32
    %93 = vector.broadcast %cst_158 : f32 to vector<1x128xf32>
    %94 = arith.maximumf %92, %93 : vector<1x128xf32>
    %95 = arith.truncf %94 : vector<1x128xf32> to vector<1x128xbf16>
    %c0_159 = arith.constant 0 : index
    %c0_160 = arith.constant 0 : index
    %96 = vector.load %arg8[%c0_159, %c0_160] : memref<128x128xbf16, #tpu.memory_space<vmem>>, vector<128x128xbf16>
    %cst_161 = arith.constant dense<0.000000e+00> : vector<1x128xf32>
    %97 = tpu.matmul %95, %96, %cst_161 {dimension_numbers = #tpu.dot_dimension_numbers<[1], [0], [0], [1], [0, 0, 1, 1], [], []>} : vector<1x128xbf16>, vector<128x128xbf16>, vector<1x128xf32> -> vector<1x128xf32>
    %c0_162 = arith.constant 0 : index
    %c0_163 = arith.constant 0 : index
    %98 = vector.load %arg9[%c0_162, %c0_163] : memref<1x128xf32, #tpu.memory_space<vmem>>, vector<1x128xf32>
    %99 = arith.addf %97, %98 : vector<1x128xf32>
    %100 = arith.negf %99 : vector<1x128xf32>
    %101 = math.exp %100 : vector<1x128xf32>
    %cst_164 = arith.constant 1.000000e+00 : f32
    %102 = vector.broadcast %cst_164 : f32 to vector<1x128xf32>
    %103 = arith.addf %102, %101 : vector<1x128xf32>
    %104 = arith.divf %102, %103 : vector<1x128xf32>
    %c0_165 = arith.constant 0 : index
    %c0_166 = arith.constant 0 : index
    %c0_167 = arith.constant 0 : index
    %105 = vector.load %arg15[%c0_165, %c0_166, %c0_167] : memref<1x256x128xf32, #tpu.memory_space<vmem>>, vector<1x256x128xf32>
    %106 = vector.shape_cast %104 : vector<1x128xf32> to vector<1x1x128xf32>
    %107 = vector.broadcast %106 : vector<1x1x128xf32> to vector<1x256x128xf32>
    %108 = arith.mulf %105, %107 : vector<1x256x128xf32>
    %109 = vector.shape_cast %108 : vector<1x256x128xf32> to vector<1x16x16x128xf32>
    %110 = arith.truncf %109 : vector<1x16x16x128xf32> to vector<1x16x16x128xbf16>
    %c0_168 = arith.constant 0 : index
    %c0_169 = arith.constant 0 : index
    %c0_170 = arith.constant 0 : index
    %c0_171 = arith.constant 0 : index
    %111 = vector.load %arg10[%c0_168, %c0_169, %c0_170, %c0_171] : memref<1x16x16x128xbf16, #tpu.memory_space<vmem>>, vector<1x16x16x128xbf16>
    tpu.vector_store %arg10[%c0_168, %c0_169, %c0_170, %c0_171], %110 {strides = array<i32>} : memref<1x16x16x128xbf16, #tpu.memory_space<vmem>>, vector<1x16x16x128xbf16>,
    return
  }
  func.func @transform_0(%arg0: i32) -> (i32, i32, i32, i32) {
    %c0_i32 = arith.constant 0 : i32
    %c0_i32_0 = arith.constant 0 : i32
    %c0_i32_1 = arith.constant 0 : i32
    %c0_i32_2 = arith.constant 0 : i32
    return %arg0, %c0_i32, %c0_i32_0, %c0_i32_1 : i32, i32, i32, i32
  }
  func.func @transform_1(%arg0: i32) -> (i32, i32, i32) {
    %c0_i32 = arith.constant 0 : i32
    %c0_i32_0 = arith.constant 0 : i32
    %c0_i32_1 = arith.constant 0 : i32
    %c0_i32_2 = arith.constant 0 : i32
    return %c0_i32, %c0_i32_0, %c0_i32_1 : i32, i32, i32
  }
  func.func @transform_2(%arg0: i32) -> (i32, i32) {
    %c0_i32 = arith.constant 0 : i32
    %c0_i32_0 = arith.constant 0 : i32
    %c0_i32_1 = arith.constant 0 : i32
    return %c0_i32, %c0_i32_0 : i32, i32
  }
  func.func @transform_3(%arg0: i32) -> (i32, i32, i32) {
    %c0_i32 = arith.constant 0 : i32
    %c0_i32_0 = arith.constant 0 : i32
    %c0_i32_1 = arith.constant 0 : i32
    %c0_i32_2 = arith.constant 0 : i32
    return %c0_i32, %c0_i32_0, %c0_i32_1 : i32, i32, i32
  }
  func.func @transform_4(%arg0: i32) -> (i32, i32) {
    %c0_i32 = arith.constant 0 : i32
    %c0_i32_0 = arith.constant 0 : i32
    %c0_i32_1 = arith.constant 0 : i32
    return %c0_i32, %c0_i32_0 : i32, i32
  }
  func.func @transform_5(%arg0: i32) -> (i32, i32) {
    %c0_i32 = arith.constant 0 : i32
    %c0_i32_0 = arith.constant 0 : i32
    %c0_i32_1 = arith.constant 0 : i32
    return %c0_i32, %c0_i32_0 : i32, i32
  }
  func.func @transform_6(%arg0: i32) -> (i32, i32) {
    %c0_i32 = arith.constant 0 : i32
    %c0_i32_0 = arith.constant 0 : i32
    %c0_i32_1 = arith.constant 0 : i32
    return %c0_i32, %c0_i32_0 : i32, i32
  }
  func.func @transform_7(%arg0: i32) -> (i32, i32) {
    %c0_i32 = arith.constant 0 : i32
    %c0_i32_0 = arith.constant 0 : i32
    %c0_i32_1 = arith.constant 0 : i32
    return %c0_i32, %c0_i32_0 : i32, i32
  }
  func.func @transform_8(%arg0: i32) -> (i32, i32) {
    %c0_i32 = arith.constant 0 : i32
    %c0_i32_0 = arith.constant 0 : i32
    %c0_i32_1 = arith.constant 0 : i32
    return %c0_i32, %c0_i32_0 : i32, i32
  }
  func.func @transform_9(%arg0: i32) -> (i32, i32, i32, i32) {
    %c0_i32 = arith.constant 0 : i32
    %c0_i32_0 = arith.constant 0 : i32
    %c0_i32_1 = arith.constant 0 : i32
    %c0_i32_2 = arith.constant 0 : i32
    return %arg0, %c0_i32, %c0_i32_0, %c0_i32_1 : i32, i32, i32, i32
  }
}

</mosaic_0001>

<bundles_post_ra>
// kernel: cab_forward.1
= control target key start
LH: loop header
LB: loop body
LE: loop exit
PB: predicated region body
PF: predicated region fallthrough
CT: control target
= control target key end

     0   :  { %s12148_s30 = smov 0   ;;  %s14984_s0 = inlined_call_operand.vmem [shape: bf16[2,16,16,128], index: 0, kind: input, shape index: {}]   ;;  %s14985_s1 = inlined_call_operand.vmem [shape: bf16[3,384,128], index: 1, kind: input, shape index: {}]   ;;  %s14986_s2 = inlined_call_operand.vmem [shape: f32[1,128], index: 2, kind: input, shape index: {}]   ;;  %s14987_s3 = inlined_call_operand.vmem [shape: bf16[3,384,128], index: 3, kind: input, shape index: {}]   ;;  %s14988_s4 = inlined_call_operand.vmem [shape: f32[1,128], index: 4, kind: input, shape index: {}]   ;;  %s14989_s5 = inlined_call_operand.vmem [shape: bf16[128,128], index: 5, kind: input, shape index: {}]   ;;  %s14990_s6 = inlined_call_operand.vmem [shape: f32[1,128], index: 6, kind: input, shape index: {}]   ;;  %s14991_s7 = inlined_call_operand.vmem [shape: bf16[128,128], index: 7, kind: input, shape index: {}]   ;;  %s14992_s8 = inlined_call_operand.vmem [shape: f32[1,128], index: 8, kind: input, shape index: {}]   ;;  %s14993_s9 = inlined_call_operand.vmem [shape: bf16[2,16,16,128], index: 9, kind: output, shape index: {}]  }
   0x1 LB: > { %s9459_s10 = sadd.s32 4294967295, %s12093_s30   ;;  %p9463_p0 = scmp.ge.s32.totalorder %s12093_s30, 1  ;;  %s12093_s30 = sphi %s12148_s30, %s19_s30  }
   0x2   : > { %p287_p1 = scmp.lt.s32.totalorder %s12093_s30, 3 }
   0x4   : > { %p288_p2 = pnand %p9463_p0, %p287_p1 }
   0x6   : > { %291 = sbr.rel (%p288_p2) target bundleno = 1730 (0x6c2), region = 56 }
   0xb   : > { %v11547_v0 = vld [vmem:[%s14985_s1 + $0x178] sm:$0xff]   ;;  %v11550_v3 = vld [vmem:[%s14985_s1 + $0x170] sm:$0xff]   ;;  %v11553_v6 = vld [vmem:[%s14985_s1 + $0x168] sm:$0xff]   ;;  %p323_p3 = scmp.lt.s32.totalorder %s9459_s10, 1  ;;  %vm341_vm0 = vcmask 1040384   ;;  %vm809_vm1 = vcmask 1043456  }
   0xc   : > { %v11548_v1 = vld [vmem:[%s14985_s1 + $0x138] sm:$0xff]   ;;  %11208 = vmatprep.subr.bf16.mxu1 %v11547_v0  ;;  %v11551_v4 = vld [vmem:[%s14985_s1 + $0x130] sm:$0xff]   ;;  %v11554_v7 = vld [vmem:[%s14985_s1 + $0x128] sm:$0xff]   ;;  %vm342_vm2 = vsmask.f32 256  ;;  %v15008_v43 = vmov 0 }
   0xd   : > { %v11549_v2 = vld [vmem:[%s14985_s1 + $0xf8] sm:$0xff]   ;;  %11209 = vmatpush3.bf16.msra.mxu1 %v11547_v0  ;;  %10374 = vmatprep.subr.bf16.mxu0 %v11548_v1  ;;  %v11552_v5 = vld [vmem:[%s14985_s1 + $0xf0] sm:$0xff]   ;;  %v11555_v8 = vld [vmem:[%s14985_s1 + $0xe8] sm:$0xff]   ;;  %s15056_s10 = smov (!%p323_p3, %s9459_s10), 1  ;;  %vm398_vm3 = vsmask.f32 7938 }
   0xe   : > { %10375 = vmatpush3.bf16.msra.mxu0 %v11549_v2  ;;  %11210 = vmatprep.subr.bf16.mxu1 %v11550_v3  ;;  %v11556_v9 = vld [vmem:[%s14985_s1 + $0x160] sm:$0xff]   ;;  %v11559_v12 = vld [vmem:[%s14985_s1 + $0x158] sm:$0xff]   ;;  %v11562_v15 = vld [vmem:[%s14985_s1 + $0x150] sm:$0xff]   ;;  %s10213_s26 = sshll.u32 %s15056_s10, 7  ;;  %vm486_vm5 = vsmask.f32 4368 }
   0xf   : > { %10376 = vmatprep.subr.bf16.mxu0 %v11551_v4  ;;  %v11557_v10 = vld [vmem:[%s14985_s1 + $0x120] sm:$0xff]   ;;  %v11560_v13 = vld [vmem:[%s14985_s1 + $0x118] sm:$0xff]   ;;  %v11563_v16 = vld [vmem:[%s14985_s1 + $0x110] sm:$0xff]   ;;  %s12228_s16 = scalar_lea.vmem %s14984_s0, %s10213_s26  ;;  %v15011_v54 = vmov 0  ;;  %vm1664_vm9 = vcmask 1042432   ;;  %vm1665_vm12 = vcmask 1046532   ;;  %s14959_s13 = scalar_lea.vmem %s14993_s9, %s10213_s26 }
  0x10   : > { %v11558_v11 = vld [vmem:[%s14985_s1 + $0xe0] sm:$0xff]   ;;  %v11561_v14 = vld [vmem:[%s14985_s1 + $0xd8] sm:$0xff]   ;;  %v11564_v17 = vld [vmem:[%s14985_s1 + $0xd0] sm:$0xff]   ;;  %vm1049_vm10 = vsmask.f32 3328  ;;  %vm12097_vm15 = vmmov 0  }
  0x11   : > { %11211 = vmatpush3.bf16.msra.mxu1 %v11550_v3  ;;  %v11565_v18 = vld [vmem:[%s14985_s1 + $0x148] sm:$0xff]   ;;  %v11568_v21 = vld [vmem:[%s14985_s1 + $0x140] sm:$0xff]   ;;  %vm12238_vm4 = vmand %vm341_vm0, %vm342_vm2  ;;  %vm1050_vm11 = vsmask.f32 7440 }
  0x12   : > { %10377 = vmatpush3.bf16.msra.mxu0 %v11552_v5  ;;  %11212 = vmatprep.subr.bf16.mxu1 %v11553_v6  ;;  %v11566_v19 = vld [vmem:[%s14985_s1 + $0x108] sm:$0xff]   ;;  %v403_v24 = vld [vmem:[#allocation2 + $0x14] sm:$0x1]  ;;  %v454_v25 = vld [vmem:[%s12228_s16] sm:$0xf] }
  0x13   : > { %10378 = vmatprep.subr.bf16.mxu0 %v11554_v7  ;;  %v11567_v20 = vld [vmem:[%s14985_s1 + $0xc8] sm:$0xff]   ;;  %v11569_v26 = vld [vmem:[%s14985_s1 + $0x100] sm:$0xff]   ;;  %vm12250_vm6 = vmand %vm341_vm0, %vm398_vm3  ;;  %v489_v30 = vshrl.u32 %v454_v25, 16  ;;  %v492_v31 = vshll.u32 %v454_v25, 16 }
  0x14   : > { %v347_v22 = vld [vmem:[#allocation2 + $0xc] sm:$0x1]  ;;  %v455_v29 = vld [vmem:[%s12228_s16 + $0x4] sm:$0xf]  ;;  %v404_v32 = vsel %vm12250_vm6, 0, %v403_v24  ;;  %v12263_v38 = vld [vmem:[%s14985_s1 + $0xb8] sm:$0xff]  }
  0x15   : > { %11213 = vmatpush3.bf16.msra.mxu1 %v11553_v6  ;;  %v348_v27 = vsel %vm12238_vm4, 0, %v347_v22  ;;  %v497_v33 = vshrl.u32 %v455_v29, 16  ;;  %v500_v34 = vshll.u32 %v455_v29, 16  ;;  %v11571_v35 = vld [vmem:[%s14985_s1 + $0xc0] sm:$0xff]   ;;  %405 = vst [vmem:[#allocation2 + $0x14] sm:$0x1] %v404_v32  ;;  %vm12270_vm7 = vmor %vm342_vm2, %vm486_vm5 }
  0x16   : > { %10379 = vmatpush3.bf16.msra.mxu0 %v11555_v8  ;;  %11214 = vmatprep.subr.bf16.mxu1 %v11556_v9  ;;  %349 = vst [vmem:[#allocation2 + $0xc] sm:$0x1] %v348_v27  ;;  %v491_v36 = vrot.slane %v489_v30, 7  ;;  %v350_v37 = vld [vmem:[#allocation2 + $0x18] sm:$0x1]  ;;  %v15009_v43 = vsel %vm12270_vm7, 4294967295, %v15008_v43  ;;  %vm12282_vm8 = vmand %vm809_vm1, %vm398_vm3 }
  0x17   : > { %10380 = vmatprep.subr.bf16.mxu0 %v11557_v10  ;;  %v499_v39 = vrot.slane %v497_v33, 7  ;;  %v351_v40 = vsel %vm12238_vm4, 0, %v350_v37  ;;  %v406_v41 = vld [vmem:[#allocation2 + $0x20] sm:$0x1]  ;;  %v456_v42 = vld [vmem:[%s12228_s16 + $0x8] sm:$0xf]  ;;  %vm12315_vm13 = vmor %vm1664_vm9, %vm1665_vm12 }
  0x18   : > { %15010 = vst [vmem:[#allocation7_spill] sm:$0xff] %v15009_v43  ;;  %v495_v44 = vrot.slane %v491_v36, 4  ;;  %352 = vst [vmem:[#allocation2 + $0x18] sm:$0x1] %v351_v40  ;;  %v407_v45 = vsel %vm12250_vm6, 0, %v406_v41  ;;  %v506_v47 = vshrl.u32 %v456_v42, 16  ;;  %v494_v49 = vor.u32 %v492_v31, %v491_v36 }
  0x19   : > { %11215 = vmatpush3.bf16.msra.mxu1 %v11556_v9  ;;  %v457_v46 = vld [vmem:[%s12228_s16 + $0xc] sm:$0xf]  ;;  %v11577_v48 = vld [vmem:[%s14985_s1 + $0x78] sm:$0xff]   ;;  %v502_v50 = vor.u32 %v500_v34, %v499_v39  ;;  %408 = vst [vmem:[#allocation2 + $0x20] sm:$0x1] %v407_v45  ;;  %v509_v51 = vshll.u32 %v456_v42, 16  ;;  %vm12331_vm14 = vmor %vm1049_vm10, %vm1050_vm11 }
  0x1a   : > { %10381 = vmatpush3.bf16.msra.mxu0 %v11558_v11  ;;  %11216 = vmatprep.subr.bf16.mxu1 %v11559_v12  ;;  %v514_v52 = vshrl.u32 %v457_v46, 16  ;;  %v504_v53 = vrot.slane %v499_v39, 4  ;;  %v15012_v54 = vsel %vm12282_vm8, 4294967295, %v15011_v54  ;;  %v508_v55 = vrot.slane %v506_v47, 7  ;;  %v353_v3 = vld [vmem:[#allocation2 + $0x24] sm:$0x1] }
  0x1b   : > { %10382 = vmatprep.subr.bf16.mxu0 %v11560_v13  ;;  %15013 = vst [vmem:[#allocation8_spill] sm:$0xff] %v15012_v54  ;;  %v517_v56 = vshll.u32 %v457_v46, 16  ;;  %v503_v57 = vsel %vm12270_vm7, %v495_v44, %v502_v50  ;;  %v409_v4 = vld [vmem:[#allocation2 + $0x2c] sm:$0x1]  ;;  %v354_v7 = vsel %vm12238_vm4, 0, %v353_v3 }
  0x1c   : > { %v516_v58 = vrot.slane %v514_v52, 7  ;;  %814 = vst [vmem:[#allocation2 + $0x10] sm:$0xf] %v503_v57  ;;  %v511_v60 = vor.u32 %v509_v51, %v508_v55  ;;  %v512_v61 = vrot.slane %v508_v55, 4  ;;  %v815_v63 = vld [vmem:[#allocation2 + $0x14] sm:$0x1] }
  0x1d   : > { %11217 = vmatpush3.bf16.msra.mxu1 %v11559_v12  ;;  %v811_v59 = vld [vmem:[#allocation2 + $0xc] sm:$0xf]  ;;  %v816_v2 = vsel %vm12238_vm4, %v504_v53, %v815_v63  ;;  %v410_v8 = vsel %vm12250_vm6, 0, %v409_v4  ;;  %v458_v9 = vld [vmem:[%s12228_s16 + $0x10] sm:$0xf] }
  0x1e   : > { %10383 = vmatpush3.bf16.msra.mxu0 %v11561_v14  ;;  %11218 = vmatprep.subr.bf16.mxu1 %v11562_v15  ;;  %v812_v62 = vsel %vm12282_vm8, %v494_v49, %v811_v59  ;;  %v519_v0 = vor.u32 %v517_v56, %v516_v58  ;;  %v521_v1 = vrot.slane %v516_v58, 4  ;;  %817 = vst [vmem:[#allocation2 + $0x14] sm:$0x1] %v816_v2  ;;  %355 = vst [vmem:[#allocation2 + $0x24] sm:$0x1] %v354_v7 }
  0x1f   : > { %10384 = vmatprep.subr.bf16.mxu0 %v11563_v16  ;;  %813 = vst [vmem:[#allocation2 + $0xc] sm:$0xf] %v812_v62  ;;  %v818_v6 = vld [vmem:[#allocation2 + $0x18] sm:$0xf]  ;;  %411 = vst [vmem:[#allocation2 + $0x2c] sm:$0x1] %v410_v8 }
  0x20   : > { %v520_v5 = vsel %vm12270_vm7, %v512_v61, %v519_v0  ;;  %v819_v10 = vsel %vm12282_vm8, %v511_v60, %v818_v6  ;;  %v822_v11 = vld [vmem:[#allocation2 + $0x20] sm:$0x1]  ;;  %v12303_v12 = vld [vmem:[%s12228_s16 + $0x14] sm:$0xf]  ;;  %v523_v13 = vshrl.u32 %v458_v9, 16 }
  0x21   : > { %11219 = vmatpush3.bf16.msra.mxu1 %v11562_v15  ;;  %821 = vst [vmem:[#allocation2 + $0x1c] sm:$0xf] %v520_v5  ;;  %820 = vst [vmem:[#allocation2 + $0x18] sm:$0xf] %v819_v10  ;;  %v823_v14 = vsel %vm12238_vm4, %v521_v1, %v822_v11  ;;  %v526_v15 = vshll.u32 %v458_v9, 16  ;;  %v15017_v1 = vmov 0 }
  0x22   : > { %10385 = vmatpush3.bf16.msra.mxu0 %v11564_v17  ;;  %11220 = vmatprep.subr.bf16.mxu1 %v11565_v18  ;;  %v356_v16 = vld [vmem:[#allocation2 + $0x30] sm:$0x1]  ;;  %v412_v17 = vld [vmem:[#allocation2 + $0x38] sm:$0x1]  ;;  %824 = vst [vmem:[#allocation2 + $0x20] sm:$0x1] %v823_v14 }
  0x23   : > { %10386 = vmatprep.subr.bf16.mxu0 %v11566_v19  ;;  %v534_v19 = vshll.u32 %v12303_v12, 16  ;;  %v1560_v22 = vld [vmem:[#allocation2 + $0x10] sm:$0xf]  ;;  %v12319_v31 = vrot.slane %v523_v13, 7  ;;  %v460_v47 = vld [vmem:[%s12228_s16 + $0x18] sm:$0xf] }
  0x24   : > { %v926_v24 = vld [vmem:[#allocation2 + $0x10] sm:$0xf]  ;;  %v1676_v27 = vrot.slane %v1560_v22, 5  ;;  %v15018_v1 = vsel %vm12331_vm14, 4294967295, %v15017_v1  ;;  %v461_v5 = vld [vmem:[%s12228_s16 + $0x1c] sm:$0xf] }
  0x25   : > { %11221 = vmatpush3.bf16.msra.mxu1 %v11565_v18  ;;  %v531_v18 = vshrl.u32 %v12303_v12, 16  ;;  %v999_v25 = vld [vmem:[#allocation2 + $0x10] sm:$0xf]  ;;  %962 = vst [vmem:[#allocation3 + $0x24] sm:$0xf] %v926_v24  ;;  %v528_v40 = vor.u32 %v526_v15, %v12319_v31  ;;  %15019 = vst [vmem:[#allocation10_spill] sm:$0xff] %v15018_v1 }
  0x26   : > { %10387 = vmatpush3.bf16.msra.mxu0 %v11567_v20  ;;  %11222 = vmatprep.subr.bf16.mxu1 %v11568_v21  ;;  %v357_v20 = vsel %vm12238_vm4, 0, %v356_v16  ;;  %v1086_v29 = vshll.u32 %v999_v25, 16  ;;  %v1090_v30 = vshrl.u32 %v999_v25, 16  ;;  %v1559_v32 = vld [vmem:[#allocation2 + $0xc] sm:$0xe]  ;;  %v1678_v37 = vrot.slane %v1676_v27, 4 }
  0x27   : > { %10388 = vmatprep.subr.bf16.mxu0 %v11569_v26  ;;  %358 = vst [vmem:[#allocation2 + $0x30] sm:$0x1] %v357_v20  ;;  %v15014_v26 = vmov 0  ;;  %v925_v33 = vld [vmem:[#allocation2 + $0xc] sm:$0xf]  ;;  %v9469_v36 = vrot.slane %v1559_v32, 9 }
  0x28   : > { %v15015_v26 = vsel %vm12315_vm13, 4294967295, %v15014_v26  ;;  %v998_v34 = vld [vmem:[#allocation2 + $0xc] sm:$0xf]  ;;  %961 = vst [vmem:[#allocation3 + $0x18] sm:$0xf] %v925_v33  ;;  %v1088_v46 = vrot.slane %v1086_v29, 5 }
  0x29   : > { %11223 = vmatpush3.bf16.msra.mxu1 %v11568_v21  ;;  %v413_v21 = vsel %vm12250_vm6, 0, %v412_v17  ;;  %15016 = vst [vmem:[#allocation9_spill] sm:$0xff] %v15015_v26  ;;  %v1000_v39 = vld [vmem:[#allocation2 + $0x14] sm:$0x1]  ;;  %v1563_v42 = vld [vmem:[#allocation2 + $0x1c] sm:$0xf] }
  0x2a   : > { %10389 = vmatpush3.bf16.msra.mxu0 %v11571_v35  ;;  %10510 = vmatprep.subr.bf16.mxu1 %v11577_v48  ;;  %414 = vst [vmem:[#allocation2 + $0x38] sm:$0x1] %v413_v21  ;;  %v1561_v35 = vld [vmem:[#allocation2 + $0x14] sm:$0x1]  ;;  %v1077_v44 = vshrl.u32 %v998_v34, 16  ;;  %v1080_v45 = vshll.u32 %v998_v34, 16  ;;  %v1677_v48 = vsel %vm12315_vm13, %v9469_v36, %v1676_v27 }
  0x2b   : > { %11256 = vmatprep.subr.bf16.mxu0 %v12263_v38  ;;  %v1679_v41 = vrot.slane %v1561_v35, 5  ;;  %v1562_v49 = vld [vmem:[#allocation2 + $0x18] sm:$0xe]  ;;  %v1683_v50 = vrot.slane %v1563_v42, 5  ;;  %v1092_v51 = vrot.slane %v1090_v30, 4  ;;  %v1096_v52 = vshll.u32 %v1000_v39, 16 }
  0x2c   : > { %1831 = vst [vmem:[#allocation3 + $0x20] sm:$0xf] %v1677_v48  ;;  %v1564_v55 = vld [vmem:[#allocation2 + $0x20] sm:$0x1]  ;;  %v9470_v56 = vrot.slane %v1562_v49, 9  ;;  %v1079_v57 = vrot.slane %v1077_v44, 4 }
  0x2d   : > { %v1680_v53 = vsel %vm12315_vm13, %v1678_v37, %v1679_v41  ;;  %v1082_v58 = vrot.slane %v1080_v45, 5  ;;  %v1685_v59 = vrot.slane %v1683_v50, 4  ;;  %v1686_v60 = vrot.slane %v1564_v55, 5  ;;  %v825_v63 = vld [vmem:[#allocation2 + $0x24] sm:$0xf]  ;;  %v11578_v39 = vld [vmem:[%s14985_s1 + $0x38] sm:$0xff]  }
  0x2e   : > { %1832 = vst [vmem:[#allocation3 + $0x2c] sm:$0xf] %v1680_v53  ;;  %v1093_v61 = vor.u32 %v1092_v51, %v1088_v46  ;;  %v1098_v62 = vrot.slane %v1096_v52, 5  ;;  %v1684_v0 = vsel %vm12315_vm13, %v9470_v56, %v1683_v50  ;;  %v529_v3 = vrot.slane %v12319_v31, 4  ;;  %v829_v9 = vld [vmem:[#allocation2 + $0x2c] sm:$0x1] }
  0x2f   : > { %v1083_v2 = vor.u32 %v1082_v58, %v1079_v57  ;;  %v533_v4 = vrot.slane %v531_v18, 7  ;;  %v1687_v6 = vsel %vm12315_vm13, %v1685_v59, %v1686_v60  ;;  %1833 = vst [vmem:[#allocation3 + $0x38] sm:$0xf] %v1684_v0  ;;  %v826_v8 = vsel %vm12282_vm8, %v528_v40, %v825_v63  ;;  %v927_v11 = vld [vmem:[#allocation2 + $0x18] sm:$0xf]  ;;  %v11584_v50 = vld [vmem:[%s14985_s1 + $0x70] sm:$0xff]  }
  0x30   : > { %v1094_v7 = vrot.slane %v1093_v61, 4  ;;  %v540_v10 = vshrl.u32 %v460_v47, 16  ;;  %1834 = vst [vmem:[#allocation3 + $0x44] sm:$0xf] %v1687_v6  ;;  %827 = vst [vmem:[#allocation2 + $0x24] sm:$0xf] %v826_v8 }
  0x31   : > { %v1084_v12 = vrot.slane %v1083_v2, 4  ;;  %v536_v13 = vor.u32 %v534_v19, %v533_v4  ;;  %v538_v14 = vrot.slane %v533_v4, 4  ;;  %v543_v15 = vshll.u32 %v460_v47, 16  ;;  %v832_v16 = vld [vmem:[#allocation2 + $0x30] sm:$0xf]  ;;  %v11592_v0 = vld [vmem:[%s14985_s1 + $0x68] sm:$0xff]  }
  0x32   : > { %v928_v17 = vld [vmem:[#allocation2 + $0x1c] sm:$0xf]  ;;  %963 = vst [vmem:[#allocation3 + $0x30] sm:$0xf] %v927_v11  ;;  %v1099_v18 = vsel %vm12331_vm14, %v1094_v7, %v1098_v62  ;;  %v542_v20 = vrot.slane %v540_v10, 7  ;;  %v548_v21 = vshrl.u32 %v461_v5, 16 }
  0x33   : > { %v551_v22 = vshll.u32 %v461_v5, 16  ;;  %964 = vst [vmem:[#allocation3 + $0x3c] sm:$0xf] %v928_v17  ;;  %v1001_v24 = vld [vmem:[#allocation2 + $0x18] sm:$0xf]  ;;  %v1089_v25 = vsel %vm12331_vm14, %v1084_v12, %v1088_v46  ;;  %v537_v19 = vsel %vm12270_vm7, %v529_v3, %v536_v13  ;;  %v830_v27 = vsel %vm12238_vm4, %v538_v14, %v829_v9  ;;  %v11585_v60 = vld [vmem:[%s14985_s1 + $0x30] sm:$0xff]  }
  0x34   : > { %1523 = vst [vmem:[#allocation3 + $0x28] sm:$0xf] %v1099_v18  ;;  %v836_v29 = vld [vmem:[#allocation2 + $0x38] sm:$0x1]  ;;  %v1002_v30 = vld [vmem:[#allocation2 + $0x1c] sm:$0xf]  ;;  %v545_v33 = vor.u32 %v543_v15, %v542_v20 }
  0x35   : > { %v1003_v31 = vld [vmem:[#allocation2 + $0x20] sm:$0x1]  ;;  %v1101_v32 = vshrl.u32 %v1001_v24, 16  ;;  %1522 = vst [vmem:[#allocation3 + $0x1c] sm:$0xf] %v1089_v25  ;;  %v546_v34 = vrot.slane %v542_v20, 4 }
  0x36   : > { %828 = vst [vmem:[#allocation2 + $0x28] sm:$0xf] %v537_v19  ;;  %831 = vst [vmem:[#allocation2 + $0x2c] sm:$0x1] %v830_v27  ;;  %v550_v35 = vrot.slane %v548_v21, 7  ;;  %v1104_v36 = vshll.u32 %v1001_v24, 16  ;;  %v833_v45 = vsel %vm12282_vm8, %v545_v33, %v832_v16 }
  0x37   : > { %v11570_v37 = vld [vmem:[#allocation3 + $0x20] ss:$12 sps:$4 sm:$0xff]   ;;  %v1103_v40 = vrot.slane %v1101_v32, 4  ;;  %v1110_v41 = vshll.u32 %v1002_v30, 16  ;;  %834 = vst [vmem:[#allocation2 + $0x30] sm:$0xf] %v833_v45 }
  0x38   : > { %v553_v42 = vor.u32 %v551_v22, %v550_v35  ;;  %v555_v44 = vrot.slane %v550_v35, 4  ;;  %v1106_v46 = vrot.slane %v1104_v36, 5  ;;  %11224 = vmatprep.mubr.bf16.mxu1 %v11570_v37  ;;  %v1114_v48 = vshrl.u32 %v1002_v30, 16  ;;  %v11572_v51 = vld [vmem:[#allocation3 + $0x38] ss:$12 sps:$4 sm:$0xff]   ;;  %v11593_v15 = vld [vmem:[%s14985_s1 + $0x28] sm:$0xff]  }
  0x39   : > { %v1112_v47 = vrot.slane %v1110_v41, 5  ;;  %v1120_v49 = vshll.u32 %v1003_v31, 16  ;;  %v1565_v52 = vld [vmem:[#allocation2 + $0x24] sm:$0xe]  ;;  %11225 = vmatmul.mubr.bf16.vlgmr.msra.gmra.mxu1 %v11572_v51  ;;  %v359_v62 = vld [vmem:[#allocation2 + $0x3c] sm:$0x1] }
  0x3a   : > { %v554_v53 = vsel %vm12270_vm7, %v546_v34, %v553_v42  ;;  %v837_v55 = vsel %vm12238_vm4, %v555_v44, %v836_v29  ;;  %v1107_v56 = vor.u32 %v1106_v46, %v1103_v40  ;;  %v9471_v57 = vrot.slane %v1565_v52, 9  ;;  %v12367_v63 = vld [vmem:[%s14985_s1 + $0xb0] sm:$0xff]   ;;  %10511 = vmatpush3.bf16.msra.mxu1 %v11578_v39  ;;  %v415_v9 = vld [vmem:[#allocation2 + $0x44] sm:$0x1]  ;;  %v462_v14 = vld [vmem:[%s12228_s16 + $0x20] sm:$0xf] }
  0x3b   : > { %835 = vst [vmem:[#allocation2 + $0x34] sm:$0xf] %v554_v53  ;;  %838 = vst [vmem:[#allocation2 + $0x38] sm:$0x1] %v837_v55  ;;  %v1116_v58 = vrot.slane %v1114_v48, 4  ;;  %v1122_v59 = vrot.slane %v1120_v49, 5  ;;  %10512 = vmatprep.subr.bf16.mxu1 %v11584_v50 }
  0x3c   : > { %v1108_v61 = vrot.slane %v1107_v56, 4  ;;  %v11573_v2 = vld [vmem:[#allocation3 + $0x18] ss:$12 sps:$4 sm:$0xff]   ;;  %v11575_v3 = vld [vmem:[#allocation3 + $0x1c] ss:$12 sps:$4 sm:$0xff]   ;;  %v360_v5 = vsel %vm12238_vm4, 0, %v359_v62 }
  0x3d   : > { %v1117_v4 = vor.u32 %v1116_v58, %v1112_v47  ;;  %v1566_v6 = vld [vmem:[#allocation2 + $0x28] sm:$0xf]  ;;  %v1567_v7 = vld [vmem:[#allocation2 + $0x2c] sm:$0x1]  ;;  %361 = vst [vmem:[#allocation2 + $0x3c] sm:$0x1] %v360_v5  ;;  %2523 = vmatprep.mubr.bf16.mxu0 %v11575_v3 }
  0x3e   : > { %v1113_v8 = vsel %vm12331_vm14, %v1108_v61, %v1112_v47  ;;  %v1690_v10 = vrot.slane %v1566_v6, 5  ;;  %v1693_v11 = vrot.slane %v1567_v7, 5  ;;  %v416_v13 = vsel %vm12250_vm6, 0, %v415_v9  ;;  %2524 = vmatmul.mubr.bf16.vlgmr.msra.gmra.mxu0 %v11573_v2  ;;  %v1568_v16 = vld [vmem:[#allocation2 + $0x30] sm:$0xe]  ;;  %v11599_v21 = vld [vmem:[%s14985_s1 + $0x60] sm:$0xff]   ;;  %10513 = vmatpush3.bf16.msra.mxu1 %v11585_v60 }
  0x3f   : > { %v1118_v12 = vrot.slane %v1117_v4, 4  ;;  %1524 = vst [vmem:[#allocation3 + $0x34] sm:$0xf] %v1113_v8  ;;  %417 = vst [vmem:[#allocation2 + $0x44] sm:$0x1] %v416_v13  ;;  %v557_v18 = vshrl.u32 %v462_v14, 16  ;;  %11257 = vmatpush3.bf16.msra.mxu0 %v12263_v38  ;;  %10514 = vmatprep.subr.bf16.mxu1 %v11592_v0 }
  0x40   : > { %v463_v17 = vld [vmem:[%s12228_s16 + $0x24] sm:$0xf]  ;;  %v560_v20 = vshll.u32 %v462_v14, 16  ;;  %v12389_v22 = vld [vmem:[%s14985_s1 + $0xa8] sm:$0xff]   ;;  %v1691_v24 = vsel %vm12315_vm13, %v9471_v57, %v1690_v10  ;;  %v1692_v25 = vrot.slane %v1690_v10, 4  ;;  %v9472_v19 = vrot.slane %v1568_v16, 9  ;;  %11258 = vmatprep.subr.bf16.mxu0 %v12367_v63 }
  0x41   : > { %v1123_v27 = vsel %vm12331_vm14, %v1118_v12, %v1122_v59  ;;  %v362_v29 = vld [vmem:[#allocation2 + $0x48] sm:$0x1]  ;;  %v418_v30 = vld [vmem:[#allocation2 + $0x50] sm:$0x1]  ;;  %1835 = vst [vmem:[#allocation3 + $0x50] sm:$0xf] %v1691_v24 }
  0x42   : > { %v1569_v31 = vld [vmem:[#allocation2 + $0x34] sm:$0xf]  ;;  %v1570_v32 = vld [vmem:[#allocation2 + $0x38] sm:$0x1]  ;;  %1525 = vst [vmem:[#allocation3 + $0x40] sm:$0xf] %v1123_v27  ;;  %v1694_v38 = vsel %vm12315_vm13, %v1692_v25, %v1693_v11  ;;  %10515 = vmatpush3.bf16.msra.mxu1 %v11593_v15 }
  0x43   : > { %v559_v33 = vrot.slane %v557_v18, 7  ;;  %v565_v34 = vshrl.u32 %v463_v17, 16  ;;  %v1697_v35 = vrot.slane %v1569_v31, 5  ;;  %v1700_v36 = vrot.slane %v1570_v32, 5  ;;  %v464_v39 = vld [vmem:[%s12228_s16 + $0x28] sm:$0xf]  ;;  %11259 = vmatpush3.bf16.msra.mxu0 %v12367_v63  ;;  %10516 = vmatprep.subr.bf16.mxu1 %v11599_v21 }
  0x44   : > { %v568_v37 = vshll.u32 %v463_v17, 16  ;;  %v11600_v40 = vld [vmem:[%s14985_s1 + $0x20] sm:$0xff]   ;;  %1836 = vst [vmem:[#allocation3 + $0x5c] sm:$0xf] %v1694_v38  ;;  %v363_v45 = vsel %vm12238_vm4, 0, %v362_v29  ;;  %v11607_v47 = vld [vmem:[%s14985_s1 + $0x58] sm:$0xff]   ;;  %11260 = vmatprep.subr.bf16.mxu0 %v12389_v22 }
  0x45   : > { %v562_v41 = vor.u32 %v560_v20, %v559_v33  ;;  %v563_v42 = vrot.slane %v559_v33, 4  ;;  %v567_v44 = vrot.slane %v565_v34, 7  ;;  %v465_v46 = vld [vmem:[%s12228_s16 + $0x2c] sm:$0xf]  ;;  %v12412_v48 = vld [vmem:[%s14985_s1 + $0xa0] sm:$0xff]   ;;  %v1698_v49 = vsel %vm12315_vm13, %v9472_v19, %v1697_v35  ;;  %v11608_v2 = vld [vmem:[%s14985_s1 + $0x18] sm:$0xff]  }
  0x46   : > { %v1699_v50 = vrot.slane %v1697_v35, 4  ;;  %v839_v51 = vld [vmem:[#allocation2 + $0x3c] sm:$0xf]  ;;  %364 = vst [vmem:[#allocation2 + $0x48] sm:$0x1] %v363_v45  ;;  %v419_v52 = vsel %vm12250_vm6, 0, %v418_v30  ;;  %10517 = vmatpush3.bf16.msra.mxu1 %v11600_v40 }
  0x47   : > { %v574_v53 = vshrl.u32 %v464_v39, 16  ;;  %1837 = vst [vmem:[#allocation3 + $0x68] sm:$0xf] %v1698_v49  ;;  %v570_v55 = vor.u32 %v568_v37, %v567_v44  ;;  %v572_v56 = vrot.slane %v567_v44, 4  ;;  %v840_v57 = vsel %vm12282_vm8, %v562_v41, %v839_v51  ;;  %420 = vst [vmem:[#allocation2 + $0x50] sm:$0x1] %v419_v52  ;;  %11261 = vmatpush3.bf16.msra.mxu0 %v12389_v22 }
  0x48   : > { %v577_v58 = vshll.u32 %v464_v39, 16  ;;  %v929_v59 = vld [vmem:[#allocation2 + $0x24] sm:$0xf]  ;;  %v1701_v60 = vsel %vm12315_vm13, %v1699_v50, %v1700_v36  ;;  %841 = vst [vmem:[#allocation2 + $0x3c] sm:$0xf] %v840_v57  ;;  %v582_v63 = vshrl.u32 %v465_v46, 16  ;;  %10518 = vmatprep.subr.bf16.mxu1 %v11607_v47  ;;  %11262 = vmatprep.subr.bf16.mxu0 %v12412_v48 }
  0x49   : > { %v843_v61 = vld [vmem:[#allocation2 + $0x44] sm:$0x1]  ;;  %v576_v62 = vrot.slane %v574_v53, 7  ;;  %v585_v0 = vshll.u32 %v465_v46, 16  ;;  %965 = vst [vmem:[#allocation3 + $0x48] sm:$0xf] %v929_v59  ;;  %v571_v3 = vsel %vm12270_vm7, %v563_v42, %v570_v55 }
  0x4a   : > { %1838 = vst [vmem:[#allocation3 + $0x74] sm:$0xf] %v1701_v60  ;;  %v844_v4 = vsel %vm12238_vm4, %v572_v56, %v843_v61  ;;  %v930_v5 = vld [vmem:[#allocation2 + $0x28] sm:$0xf]  ;;  %v1004_v6 = vld [vmem:[#allocation2 + $0x24] sm:$0xf]  ;;  %10519 = vmatpush3.bf16.msra.mxu1 %v11608_v2 }
  0x4b   : > { %v1005_v7 = vld [vmem:[#allocation2 + $0x28] sm:$0xf]  ;;  %v11614_v8 = vld [vmem:[%s14985_s1 + $0x50] sm:$0xff]   ;;  %v11581_v9 = vld [vmem:[#allocation3 + $0x34] ss:$12 sps:$4 sm:$0xff]   ;;  %v579_v10 = vor.u32 %v577_v58, %v576_v62  ;;  %v580_v11 = vrot.slane %v576_v62, 4  ;;  %11263 = vmatpush3.bf16.msra.mxu0 %v12412_v48 }
  0x4c   : > { %842 = vst [vmem:[#allocation2 + $0x40] sm:$0xf] %v571_v3  ;;  %845 = vst [vmem:[#allocation2 + $0x44] sm:$0x1] %v844_v4  ;;  %v11583_v12 = vld [vmem:[#allocation3 + $0x30] ss:$12 sps:$4 sm:$0xff]   ;;  %2531 = vmatprep.mubr.bf16.mxu0 %v11581_v9  ;;  %10520 = vmatprep.subr.bf16.mxu1 %v11614_v8 }
  0x4d   : > { %966 = vst [vmem:[#allocation3 + $0x54] sm:$0xf] %v930_v5  ;;  %v584_v13 = vrot.slane %v582_v63, 7  ;;  %v1006_v14 = vld [vmem:[#allocation2 + $0x2c] sm:$0x1]  ;;  %v1125_v15 = vshrl.u32 %v1004_v6, 16  ;;  %2532 = vmatmul.mubr.bf16.gmra.mxu0 %v11583_v12 }
  0x4e   : > { %v11579_v16 = vld [vmem:[#allocation3 + $0x50] ss:$12 sps:$4 sm:$0xff]   ;;  %v1128_v17 = vshll.u32 %v1004_v6, 16  ;;  %v1134_v18 = vshll.u32 %v1005_v7, 16  ;;  %v1138_v19 = vshrl.u32 %v1005_v7, 16  ;;  %v1144_v35 = vshll.u32 %v1006_v14, 16 }
  0x4f   : > { %v587_v20 = vor.u32 %v585_v0, %v584_v13  ;;  %v589_v21 = vrot.slane %v584_v13, 4  ;;  %v846_v24 = vld [vmem:[#allocation2 + $0x48] sm:$0xf]  ;;  %v1127_v25 = vrot.slane %v1125_v15, 4  ;;  %v11615_v22 = vld [vmem:[%s14985_s1 + $0x10] sm:$0xff]   ;;  %11228 = vmatprep.mubr.bf16.mxu1 %v11579_v16  ;;  %v12095_v50 = vmov 0  }
  0x50   : > { %v847_v27 = vsel %vm12282_vm8, %v579_v10, %v846_v24  ;;  %v850_v29 = vld [vmem:[#allocation2 + $0x50] sm:$0x1]  ;;  %v1130_v30 = vrot.slane %v1128_v17, 5  ;;  %v1136_v31 = vrot.slane %v1134_v18, 5  ;;  %v1571_v32 = vld [vmem:[#allocation2 + $0x3c] sm:$0xe]  ;;  %10521 = vmatpush3.bf16.msra.mxu1 %v11615_v22 }
  0x51   : > { %v588_v33 = vsel %vm12270_vm7, %v580_v11, %v587_v20  ;;  %848 = vst [vmem:[#allocation2 + $0x48] sm:$0xf] %v847_v27  ;;  %v851_v34 = vsel %vm12238_vm4, %v589_v21, %v850_v29  ;;  %v1140_v38 = vrot.slane %v1138_v19, 4  ;;  %v11580_v36 = vld [vmem:[#allocation3 + $0x68] ss:$12 sps:$4 sm:$0xff]   ;;  %v9473_v37 = vrot.slane %v1571_v32, 9 }
  0x52   : > { %849 = vst [vmem:[#allocation2 + $0x4c] sm:$0xf] %v588_v33  ;;  %852 = vst [vmem:[#allocation2 + $0x50] sm:$0x1] %v851_v34  ;;  %v1131_v39 = vor.u32 %v1130_v30, %v1127_v25  ;;  %v11622_v40 = vld [vmem:[%s14985_s1 + $0x48] sm:$0xff]   ;;  %v1146_v45 = vrot.slane %v1144_v35, 5  ;;  %11229 = vmatmul.mubr.bf16.gmra.mxu1 %v11580_v36 }
  0x53   : > { %v1572_v41 = vld [vmem:[#allocation2 + $0x40] sm:$0xf]  ;;  %v1573_v42 = vld [vmem:[#allocation2 + $0x44] sm:$0x1]  ;;  %v1141_v44 = vor.u32 %v1140_v38, %v1136_v31  ;;  %334 = vst [vmem:[#allocation2] sm:$0xf] %v12095_v50  ;;  %10522 = vmatprep.subr.bf16.mxu1 %v11622_v40 }
  0x54   : > { %v1704_v46 = vrot.slane %v1572_v41, 5  ;;  %v1707_v47 = vrot.slane %v1573_v42, 5  ;;  %v1132_v49 = vrot.slane %v1131_v39, 4  ;;  %335 = vst [vmem:[#allocation2 + $0x4] sm:$0xf] %v12095_v50  ;;  %v11623_v51 = vld [vmem:[%s14985_s1 + $0x8] sm:$0xff]  }
  0x55   : > { %336 = vst [vmem:[#allocation2 + $0x8] sm:$0x1] %v12095_v50  ;;  %338 = vst [vmem:[#allocation2 + $0xcc] sm:$0xf] %v12095_v50  ;;  %v1142_v48 = vrot.slane %v1141_v44, 4  ;;  %v11629_v56 = vld [vmem:[%s14985_s1 + $0x40] sm:$0xff]   ;;  %10523 = vmatpush3.bf16.msra.mxu1 %v11623_v51 }
  0x56   : > { %339 = vst [vmem:[#allocation2 + $0xd0] sm:$0xf] %v12095_v50  ;;  %340 = vst [vmem:[#allocation2 + $0xd4] sm:$0x1] %v12095_v50  ;;  %v1705_v52 = vsel %vm12315_vm13, %v9473_v37, %v1704_v46  ;;  %v1706_v53 = vrot.slane %v1704_v46, 4  ;;  %v1137_v55 = vsel %vm12331_vm14, %v1132_v49, %v1136_v31  ;;  %v11630_v61 = vld [vmem:[%s14985_s1] sm:$0xff]   ;;  %10524 = vmatprep.subr.bf16.mxu1 %v11629_v56 }
  0x57   : > { %4730 = vst [vmem:[#allocation4] sm:$0xf] %v12095_v50  ;;  %4731 = vst [vmem:[#allocation4 + $0x4] sm:$0xf] %v12095_v50  ;;  %v1147_v57 = vsel %vm12331_vm14, %v1142_v48, %v1146_v45  ;;  %v365_v58 = vld [vmem:[#allocation2 + $0x54] sm:$0x1] }
  0x58   : > { %4732 = vst [vmem:[#allocation4 + $0x8] sm:$0x1] %v12095_v50  ;;  %4734 = vst [vmem:[#allocation4 + $0xcc] sm:$0xf] %v12095_v50  ;;  %v421_v59 = vld [vmem:[#allocation2 + $0x5c] sm:$0x1]  ;;  %v1708_v62 = vsel %vm12315_vm13, %v1706_v53, %v1707_v47 }
  0x59   : > { %4735 = vst [vmem:[#allocation4 + $0xd0] sm:$0xf] %v12095_v50  ;;  %4736 = vst [vmem:[#allocation4 + $0xd4] sm:$0x1] %v12095_v50  ;;  %v466_v60 = vld [vmem:[%s12228_s16 + $0x30] sm:$0xf]  ;;  %10525 = vmatpush3.bf16.msra.mxu1 %v11630_v61 }
  0x5a   : > { %1839 = vst [vmem:[#allocation3 + $0x80] sm:$0xf] %v1705_v52  ;;  %1526 = vst [vmem:[#allocation3 + $0x4c] sm:$0xf] %v1137_v55  ;;  %v1574_v63 = vld [vmem:[#allocation2 + $0x48] sm:$0xe] }
  0x5b   : > { %1527 = vst [vmem:[#allocation3 + $0x58] sm:$0xf] %v1147_v57  ;;  %v366_v0 = vsel %vm12238_vm4, 0, %v365_v58  ;;  %v422_v2 = vsel %vm12250_vm6, 0, %v421_v59  ;;  %v467_v3 = vld [vmem:[%s12228_s16 + $0x34] sm:$0xf] }
  0x5c   : > { %1840 = vst [vmem:[#allocation3 + $0x8c] sm:$0xf] %v1708_v62  ;;  %v1575_v4 = vld [vmem:[#allocation2 + $0x4c] sm:$0xf]  ;;  %v1576_v5 = vld [vmem:[#allocation2 + $0x50] sm:$0x1] }
  0x5d   : > { %v9474_v6 = vrot.slane %v1574_v63, 9  ;;  %367 = vst [vmem:[#allocation2 + $0x54] sm:$0x1] %v366_v0  ;;  %423 = vst [vmem:[#allocation2 + $0x5c] sm:$0x1] %v422_v2  ;;  %v591_v7 = vshrl.u32 %v466_v60, 16 }
  0x5e   : > { %v1711_v8 = vrot.slane %v1575_v4, 5  ;;  %v1714_v9 = vrot.slane %v1576_v5, 5  ;;  %v594_v10 = vshll.u32 %v466_v60, 16  ;;  %v599_v11 = vshrl.u32 %v467_v3, 16  ;;  %v368_v12 = vld [vmem:[#allocation2 + $0x60] sm:$0x1] }
  0x5f   : > { %v593_v13 = vrot.slane %v591_v7, 7  ;;  %v602_v14 = vshll.u32 %v467_v3, 16  ;;  %v369_v15 = vsel %vm12238_vm4, 0, %v368_v12  ;;  %v424_v16 = vld [vmem:[#allocation2 + $0x68] sm:$0x1]  ;;  %v11636_v17 = vld [vmem:[%s14985_s1 + $0x98] sm:$0xff]  }
  0x60   : > { %v1712_v18 = vsel %vm12315_vm13, %v9474_v6, %v1711_v8  ;;  %v1713_v20 = vrot.slane %v1711_v8, 4  ;;  %v601_v21 = vrot.slane %v599_v11, 7  ;;  %370 = vst [vmem:[#allocation2 + $0x60] sm:$0x1] %v369_v15  ;;  %v425_v24 = vsel %vm12250_vm6, 0, %v424_v16  ;;  %v11638_v19 = vld [vmem:[%s14985_s1 + $0x238] sm:$0xff]   ;;  %11264 = vmatprep.subr.bf16.mxu0 %v11636_v17 }
  0x61   : > { %v468_v25 = vld [vmem:[%s12228_s16 + $0x38] sm:$0xf]  ;;  %1841 = vst [vmem:[#allocation3 + $0x98] sm:$0xf] %v1712_v18  ;;  %v596_v22 = vor.u32 %v594_v10, %v593_v13  ;;  %v597_v27 = vrot.slane %v593_v13, 4  ;;  %11265 = vmatpush3.bf16.msra.mxu0 %v11636_v17  ;;  %11304 = vmatprep.subr.bf16.mxu1 %v11638_v19 }
  0x62   : > { %426 = vst [vmem:[#allocation2 + $0x68] sm:$0x1] %v425_v24  ;;  %v469_v29 = vld [vmem:[%s12228_s16 + $0x3c] sm:$0xf]  ;;  %v608_v30 = vshrl.u32 %v468_v25, 16  ;;  %v611_v31 = vshll.u32 %v468_v25, 16  ;;  %v1715_v32 = vsel %vm12315_vm13, %v1713_v20, %v1714_v9  ;;  %v604_v33 = vor.u32 %v602_v14, %v601_v21 }
  0x63   : > { %v606_v34 = vrot.slane %v601_v21, 4  ;;  %v616_v38 = vshrl.u32 %v469_v29, 16  ;;  %1842 = vst [vmem:[#allocation3 + $0xa4] sm:$0xf] %v1715_v32  ;;  %v11588_v35 = vld [vmem:[#allocation3 + $0x4c] ss:$12 sps:$4 sm:$0xff]  }
  0x64   : > { %v11591_v36 = vld [vmem:[#allocation3 + $0x48] ss:$12 sps:$4 sm:$0xff]   ;;  %v610_v37 = vrot.slane %v608_v30, 7  ;;  %v11586_v39 = vld [vmem:[#allocation3 + $0x80] ss:$12 sps:$4 sm:$0xff]   ;;  %v605_v40 = vsel %vm12270_vm7, %v597_v27, %v604_v33  ;;  %2539 = vmatprep.mubr.bf16.mxu0 %v11588_v35  ;;  %v619_v48 = vshll.u32 %v469_v29, 16 }
  0x65   : > { %v853_v41 = vld [vmem:[#allocation2 + $0x54] sm:$0xf]  ;;  %856 = vst [vmem:[#allocation2 + $0x58] sm:$0xf] %v605_v40  ;;  %v857_v44 = vld [vmem:[#allocation2 + $0x5c] sm:$0x1]  ;;  %11232 = vmatprep.mubr.bf16.mxu1 %v11586_v39  ;;  %2540 = vmatmul.mubr.bf16.gmra.mxu0 %v11591_v36 }
  0x66   : > { %v854_v42 = vsel %vm12282_vm8, %v596_v22, %v853_v41  ;;  %v613_v45 = vor.u32 %v611_v31, %v610_v37  ;;  %v614_v46 = vrot.slane %v610_v37, 4  ;;  %v618_v47 = vrot.slane %v616_v38, 7  ;;  %v931_v49 = vld [vmem:[#allocation2 + $0x30] sm:$0xf]  ;;  %v932_v51 = vld [vmem:[#allocation2 + $0x34] sm:$0xf] }
  0x67   : > { %855 = vst [vmem:[#allocation2 + $0x54] sm:$0xf] %v854_v42  ;;  %v858_v50 = vsel %vm12238_vm4, %v606_v34, %v857_v44  ;;  %967 = vst [vmem:[#allocation3 + $0x60] sm:$0xf] %v931_v49  ;;  %v1007_v52 = vld [vmem:[#allocation2 + $0x30] sm:$0xf] }
  0x68   : > { %859 = vst [vmem:[#allocation2 + $0x5c] sm:$0x1] %v858_v50  ;;  %v623_v53 = vrot.slane %v618_v47, 4  ;;  %v860_v55 = vld [vmem:[#allocation2 + $0x60] sm:$0xf]  ;;  %v1149_v57 = vshrl.u32 %v1007_v52, 16  ;;  %v621_v58 = vor.u32 %v619_v48, %v618_v47 }
  0x69   : > { %968 = vst [vmem:[#allocation3 + $0x6c] sm:$0xf] %v932_v51  ;;  %v1008_v56 = vld [vmem:[#allocation2 + $0x34] sm:$0xf]  ;;  %v861_v59 = vsel %vm12282_vm8, %v613_v45, %v860_v55  ;;  %v864_v60 = vld [vmem:[#allocation2 + $0x68] sm:$0x1] }
  0x6a   : > { %v1009_v61 = vld [vmem:[#allocation2 + $0x38] sm:$0x1]  ;;  %862 = vst [vmem:[#allocation2 + $0x60] sm:$0xf] %v861_v59  ;;  %v865_v62 = vsel %vm12238_vm4, %v623_v53, %v864_v60  ;;  %v1151_v63 = vrot.slane %v1149_v57, 4  ;;  %v1152_v0 = vshll.u32 %v1007_v52, 16  ;;  %v622_v4 = vsel %vm12270_vm7, %v614_v46, %v621_v58 }
  0x6b   : > { %v1158_v2 = vshll.u32 %v1008_v56, 16  ;;  %v11587_v3 = vld [vmem:[#allocation3 + $0x98] ss:$12 sps:$4 sm:$0xff]   ;;  %866 = vst [vmem:[#allocation2 + $0x68] sm:$0x1] %v865_v62  ;;  %v1162_v5 = vshrl.u32 %v1008_v56, 16 }
  0x6c   : > { %v1168_v6 = vshll.u32 %v1009_v61, 16  ;;  %863 = vst [vmem:[#allocation2 + $0x64] sm:$0xf] %v622_v4  ;;  %v1154_v7 = vrot.slane %v1152_v0, 5  ;;  %11233 = vmatmul.mubr.bf16.gmra.mxu1 %v11587_v3  ;;  %v1578_v9 = vld [vmem:[#allocation2 + $0x58] sm:$0xf] }
  0x6d   : > { %v1160_v8 = vrot.slane %v1158_v2, 5  ;;  %v1164_v10 = vrot.slane %v1162_v5, 4  ;;  %v1718_v12 = vrot.slane %v1578_v9, 5  ;;  %v371_v15 = vld [vmem:[#allocation2 + $0x6c] sm:$0x1]  ;;  %v11650_v45 = vld [vmem:[%s14985_s1 + $0x90] sm:$0xff]  }
  0x6e   : > { %v1577_v11 = vld [vmem:[#allocation2 + $0x54] sm:$0xe]  ;;  %v1155_v13 = vor.u32 %v1154_v7, %v1151_v63  ;;  %v1170_v14 = vrot.slane %v1168_v6, 5  ;;  %v372_v20 = vsel %vm12238_vm4, 0, %v371_v15  ;;  %v427_v21 = vld [vmem:[#allocation2 + $0x74] sm:$0x1]  ;;  %11266 = vmatprep.subr.bf16.mxu0 %v11650_v45 }
  0x6f   : > { %v1579_v16 = vld [vmem:[#allocation2 + $0x5c] sm:$0x1]  ;;  %v9475_v17 = vrot.slane %v1577_v11, 9  ;;  %v1165_v18 = vor.u32 %v1164_v10, %v1160_v8  ;;  %v1720_v24 = vrot.slane %v1718_v12, 4  ;;  %373 = vst [vmem:[#allocation2 + $0x6c] sm:$0x1] %v372_v20  ;;  %11267 = vmatpush3.bf16.msra.mxu0 %v11650_v45 }
  0x70   : > { %v1721_v25 = vrot.slane %v1579_v16, 5  ;;  %v1156_v19 = vrot.slane %v1155_v13, 4  ;;  %v428_v22 = vsel %vm12250_vm6, 0, %v427_v21  ;;  %v470_v27 = vld [vmem:[%s12228_s16 + $0x40] sm:$0xf] }
  0x71   : > { %v1719_v29 = vsel %vm12315_vm13, %v9475_v17, %v1718_v12  ;;  %v1580_v30 = vld [vmem:[#allocation2 + $0x60] sm:$0xe]  ;;  %v1166_v31 = vrot.slane %v1165_v18, 4  ;;  %429 = vst [vmem:[#allocation2 + $0x74] sm:$0x1] %v428_v22  ;;  %v625_v33 = vshrl.u32 %v470_v27, 16 }
  0x72   : > { %v471_v32 = vld [vmem:[%s12228_s16 + $0x44] sm:$0xf]  ;;  %v1722_v34 = vsel %vm12315_vm13, %v1720_v24, %v1721_v25  ;;  %1843 = vst [vmem:[#allocation3 + $0xb0] sm:$0xf] %v1719_v29  ;;  %v1582_v38 = vld [vmem:[#allocation2 + $0x68] sm:$0x1]  ;;  %v1161_v36 = vsel %vm12331_vm14, %v1156_v19, %v1160_v8 }
  0x73   : > { %v9476_v35 = vrot.slane %v1580_v30, 9  ;;  %v628_v37 = vshll.u32 %v470_v27, 16  ;;  %v374_v39 = vld [vmem:[#allocation2 + $0x78] sm:$0x1]  ;;  %1844 = vst [vmem:[#allocation3 + $0xbc] sm:$0xf] %v1722_v34  ;;  %v1171_v41 = vsel %vm12331_vm14, %v1166_v31, %v1170_v14 }
  0x74   : > { %v1581_v40 = vld [vmem:[#allocation2 + $0x64] sm:$0xf]  ;;  %1528 = vst [vmem:[#allocation3 + $0x64] sm:$0xf] %v1161_v36  ;;  %v627_v42 = vrot.slane %v625_v33, 7  ;;  %v633_v44 = vshrl.u32 %v471_v32, 16 }
  0x75   : > { %v1725_v46 = vrot.slane %v1581_v40, 5  ;;  %v1728_v47 = vrot.slane %v1582_v38, 5  ;;  %1529 = vst [vmem:[#allocation3 + $0x70] sm:$0xf] %v1171_v41  ;;  %v636_v49 = vshll.u32 %v471_v32, 16  ;;  %v375_v50 = vsel %vm12238_vm4, 0, %v374_v39 }
  0x76   : > { %v430_v48 = vld [vmem:[#allocation2 + $0x80] sm:$0x1]  ;;  %v630_v51 = vor.u32 %v628_v37, %v627_v42  ;;  %v631_v52 = vrot.slane %v627_v42, 4  ;;  %v635_v53 = vrot.slane %v633_v44, 7  ;;  %376 = vst [vmem:[#allocation2 + $0x78] sm:$0x1] %v375_v50 }
  0x77   : > { %v431_v55 = vsel %vm12250_vm6, 0, %v430_v48  ;;  %v472_v56 = vld [vmem:[%s12228_s16 + $0x48] sm:$0xf]  ;;  %v1726_v57 = vsel %vm12315_vm13, %v9476_v35, %v1725_v46  ;;  %v1727_v58 = vrot.slane %v1725_v46, 4  ;;  %v473_v59 = vld [vmem:[%s12228_s16 + $0x4c] sm:$0xf] }
  0x78   : > { %432 = vst [vmem:[#allocation2 + $0x80] sm:$0x1] %v431_v55  ;;  %v642_v60 = vshrl.u32 %v472_v56, 16  ;;  %v645_v61 = vshll.u32 %v472_v56, 16  ;;  %1845 = vst [vmem:[#allocation3 + $0xc8] sm:$0xf] %v1726_v57  ;;  %v638_v62 = vor.u32 %v636_v49, %v635_v53 }
  0x79   : > { %v640_v63 = vrot.slane %v635_v53, 4  ;;  %v867_v0 = vld [vmem:[#allocation2 + $0x6c] sm:$0xf]  ;;  %v650_v2 = vshrl.u32 %v473_v59, 16  ;;  %v653_v3 = vshll.u32 %v473_v59, 16  ;;  %v1729_v4 = vsel %vm12315_vm13, %v1727_v58, %v1728_v47 }
  0x7a   : > { %v868_v5 = vsel %vm12282_vm8, %v630_v51, %v867_v0  ;;  %v871_v6 = vld [vmem:[#allocation2 + $0x74] sm:$0x1]  ;;  %v644_v7 = vrot.slane %v642_v60, 7  ;;  %v933_v8 = vld [vmem:[#allocation2 + $0x3c] sm:$0xf]  ;;  %v639_v9 = vsel %vm12270_vm7, %v631_v52, %v638_v62  ;;  %v11664_v56 = vld [vmem:[%s14985_s1 + $0x88] sm:$0xff]  }
  0x7b   : > { %1846 = vst [vmem:[#allocation3 + $0xd4] sm:$0xf] %v1729_v4  ;;  %869 = vst [vmem:[#allocation2 + $0x6c] sm:$0xf] %v868_v5  ;;  %v872_v10 = vsel %vm12238_vm4, %v640_v63, %v871_v6  ;;  %v652_v11 = vrot.slane %v650_v2, 7  ;;  %11268 = vmatprep.subr.bf16.mxu0 %v11664_v56 }
  0x7c   : > { %v934_v12 = vld [vmem:[#allocation2 + $0x40] sm:$0xf]  ;;  %969 = vst [vmem:[#allocation3 + $0x78] sm:$0xf] %v933_v8  ;;  %v11594_v13 = vld [vmem:[#allocation3 + $0xb0] ss:$12 sps:$4 sm:$0xff]   ;;  %v647_v14 = vor.u32 %v645_v61, %v644_v7  ;;  %11269 = vmatpush3.bf16.msra.mxu0 %v11664_v56 }
  0x7d   : > { %870 = vst [vmem:[#allocation2 + $0x70] sm:$0xf] %v639_v9  ;;  %873 = vst [vmem:[#allocation2 + $0x74] sm:$0x1] %v872_v10  ;;  %v648_v15 = vrot.slane %v644_v7, 4  ;;  %v655_v18 = vor.u32 %v653_v3, %v652_v11  ;;  %v657_v20 = vrot.slane %v652_v11, 4  ;;  %11236 = vmatprep.mubr.bf16.mxu1 %v11594_v13 }
  0x7e   : > { %970 = vst [vmem:[#allocation3 + $0x84] sm:$0xf] %v934_v12  ;;  %v11596_v16 = vld [vmem:[#allocation3 + $0x64] ss:$12 sps:$4 sm:$0xff]   ;;  %v11598_v17 = vld [vmem:[#allocation3 + $0x60] ss:$12 sps:$4 sm:$0xff]  }
  0x7f   : > { %v874_v21 = vld [vmem:[#allocation2 + $0x78] sm:$0xf]  ;;  %v1010_v24 = vld [vmem:[#allocation2 + $0x3c] sm:$0xf]  ;;  %v1011_v25 = vld [vmem:[#allocation2 + $0x40] sm:$0xf]  ;;  %2547 = vmatprep.mubr.bf16.mxu0 %v11596_v16  ;;  %v656_v19 = vsel %vm12270_vm7, %v648_v15, %v655_v18 }
  0x80   : > { %v875_v22 = vsel %vm12282_vm8, %v647_v14, %v874_v21  ;;  %v878_v27 = vld [vmem:[#allocation2 + $0x80] sm:$0x1]  ;;  %v1012_v29 = vld [vmem:[#allocation2 + $0x44] sm:$0x1]  ;;  %v1173_v30 = vshrl.u32 %v1010_v24, 16  ;;  %v1176_v31 = vshll.u32 %v1010_v24, 16  ;;  %2548 = vmatmul.mubr.bf16.gmra.mxu0 %v11598_v17 }
  0x81   : > { %876 = vst [vmem:[#allocation2 + $0x78] sm:$0xf] %v875_v22  ;;  %877 = vst [vmem:[#allocation2 + $0x7c] sm:$0xf] %v656_v19  ;;  %v879_v32 = vsel %vm12238_vm4, %v657_v20, %v878_v27  ;;  %v1182_v33 = vshll.u32 %v1011_v25, 16  ;;  %v1186_v34 = vshrl.u32 %v1011_v25, 16 }
  0x82   : > { %v1192_v38 = vshll.u32 %v1012_v29, 16  ;;  %880 = vst [vmem:[#allocation2 + $0x80] sm:$0x1] %v879_v32  ;;  %v1175_v35 = vrot.slane %v1173_v30, 4  ;;  %v1178_v36 = vrot.slane %v1176_v31, 5 }
  0x83   : > { %v11595_v37 = vld [vmem:[#allocation3 + $0xc8] ss:$12 sps:$4 sm:$0xff]   ;;  %v1184_v45 = vrot.slane %v1182_v33, 5  ;;  %v1188_v49 = vrot.slane %v1186_v34, 4  ;;  %v377_v55 = vld [vmem:[#allocation2 + $0x84] sm:$0x1] }
  0x84   : > { %v1583_v39 = vld [vmem:[#allocation2 + $0x6c] sm:$0xe]  ;;  %v1584_v40 = vld [vmem:[#allocation2 + $0x70] sm:$0xf]  ;;  %v1585_v41 = vld [vmem:[#allocation2 + $0x74] sm:$0x1]  ;;  %v1179_v44 = vor.u32 %v1178_v36, %v1175_v35  ;;  %11237 = vmatmul.mubr.bf16.gmra.mxu1 %v11595_v37 }
  0x85   : > { %v9477_v42 = vrot.slane %v1583_v39, 9  ;;  %v1732_v46 = vrot.slane %v1584_v40, 5  ;;  %v1735_v47 = vrot.slane %v1585_v41, 5  ;;  %v1194_v50 = vrot.slane %v1192_v38, 5  ;;  %v433_v4 = vld [vmem:[#allocation2 + $0x8c] sm:$0x1] }
  0x86   : > { %v1180_v48 = vrot.slane %v1179_v44, 4  ;;  %v1189_v53 = vor.u32 %v1188_v49, %v1184_v45  ;;  %v378_v60 = vsel %vm12238_vm4, 0, %v377_v55  ;;  %v474_v5 = vld [vmem:[%s12228_s16 + $0x50] sm:$0xf]  ;;  %v434_v9 = vsel %vm12250_vm6, 0, %v433_v4 }
  0x87   : > { %v1733_v51 = vsel %vm12315_vm13, %v9477_v42, %v1732_v46  ;;  %v1734_v52 = vrot.slane %v1732_v46, 4  ;;  %379 = vst [vmem:[#allocation2 + $0x84] sm:$0x1] %v378_v60  ;;  %v475_v10 = vld [vmem:[%s12228_s16 + $0x54] sm:$0xf]  ;;  %v659_v12 = vshrl.u32 %v474_v5, 16 }
  0x88   : > { %1847 = vst [vmem:[#allocation3 + $0xe0] sm:$0xf] %v1733_v51  ;;  %v1586_v57 = vld [vmem:[#allocation2 + $0x78] sm:$0xe]  ;;  %v1587_v58 = vld [vmem:[#allocation2 + $0x7c] sm:$0xf]  ;;  %v1185_v59 = vsel %vm12331_vm14, %v1180_v48, %v1184_v45 }
  0x89   : > { %v1736_v61 = vsel %vm12315_vm13, %v1734_v52, %v1735_v47  ;;  %v1588_v62 = vld [vmem:[#allocation2 + $0x80] sm:$0x1]  ;;  %v9478_v63 = vrot.slane %v1586_v57, 9  ;;  %v1739_v0 = vrot.slane %v1587_v58, 5  ;;  %v1190_v2 = vrot.slane %v1189_v53, 4 }
  0x8a   : > { %1530 = vst [vmem:[#allocation3 + $0x7c] sm:$0xf] %v1185_v59  ;;  %1848 = vst [vmem:[#allocation3 + $0xec] sm:$0xf] %v1736_v61  ;;  %v1742_v3 = vrot.slane %v1588_v62, 5  ;;  %v662_v13 = vshll.u32 %v474_v5, 16 }
  0x8b   : > { %v1740_v6 = vsel %vm12315_vm13, %v9478_v63, %v1739_v0  ;;  %v1741_v7 = vrot.slane %v1739_v0, 4  ;;  %v1195_v8 = vsel %vm12331_vm14, %v1190_v2, %v1194_v50  ;;  %v380_v11 = vld [vmem:[#allocation2 + $0x90] sm:$0x1]  ;;  %435 = vst [vmem:[#allocation2 + $0x8c] sm:$0x1] %v434_v9  ;;  %v667_v14 = vshrl.u32 %v475_v10, 16 }
  0x8c   : > { %1849 = vst [vmem:[#allocation3 + $0xf8] sm:$0xf] %v1740_v6  ;;  %1531 = vst [vmem:[#allocation3 + $0x88] sm:$0xf] %v1195_v8  ;;  %v670_v15 = vshll.u32 %v475_v10, 16  ;;  %v381_v18 = vsel %vm12238_vm4, 0, %v380_v11 }
  0x8d   : > { %v436_v16 = vld [vmem:[#allocation2 + $0x98] sm:$0x1]  ;;  %v1743_v17 = vsel %vm12315_vm13, %v1741_v7, %v1742_v3  ;;  %v477_v24 = vld [vmem:[%s12228_s16 + $0x5c] sm:$0xf]  ;;  %v661_v25 = vrot.slane %v659_v12, 7  ;;  %v669_v19 = vrot.slane %v667_v14, 7 }
  0x8e   : > { %v437_v20 = vsel %vm12250_vm6, 0, %v436_v16  ;;  %v476_v21 = vld [vmem:[%s12228_s16 + $0x58] sm:$0xf]  ;;  %1850 = vst [vmem:[#allocation3 + $0x104] sm:$0xf] %v1743_v17  ;;  %v684_v30 = vshrl.u32 %v477_v24, 16 }
  0x8f   : > { %382 = vst [vmem:[#allocation2 + $0x90] sm:$0x1] %v381_v18  ;;  %438 = vst [vmem:[#allocation2 + $0x98] sm:$0x1] %v437_v20  ;;  %v676_v22 = vshrl.u32 %v476_v21, 16  ;;  %v679_v27 = vshll.u32 %v476_v21, 16  ;;  %v664_v33 = vor.u32 %v662_v13, %v661_v25  ;;  %v672_v38 = vor.u32 %v670_v15, %v669_v19 }
  0x90   : > { %v935_v29 = vld [vmem:[#allocation2 + $0x48] sm:$0xf]  ;;  %v687_v31 = vshll.u32 %v477_v24, 16  ;;  %v936_v32 = vld [vmem:[#allocation2 + $0x4c] sm:$0xf]  ;;  %v665_v34 = vrot.slane %v661_v25, 4 }
  0x91   : > { %971 = vst [vmem:[#allocation3 + $0x90] sm:$0xf] %v935_v29  ;;  %v674_v35 = vrot.slane %v669_v19, 4  ;;  %v881_v36 = vld [vmem:[#allocation2 + $0x84] sm:$0xf]  ;;  %v678_v39 = vrot.slane %v676_v22, 7 }
  0x92   : > { %972 = vst [vmem:[#allocation3 + $0x9c] sm:$0xf] %v936_v32  ;;  %v11601_v37 = vld [vmem:[#allocation3 + $0xe0] ss:$12 sps:$4 sm:$0xff]   ;;  %v686_v40 = vrot.slane %v684_v30, 7  ;;  %v673_v41 = vsel %vm12270_vm7, %v665_v34, %v672_v38  ;;  %v882_v42 = vsel %vm12282_vm8, %v664_v33, %v881_v36 }
  0x93   : > { %v1013_v44 = vld [vmem:[#allocation2 + $0x48] sm:$0xf]  ;;  %v1014_v45 = vld [vmem:[#allocation2 + $0x4c] sm:$0xf]  ;;  %v1015_v46 = vld [vmem:[#allocation2 + $0x50] sm:$0x1]  ;;  %11240 = vmatprep.mubr.bf16.mxu1 %v11601_v37  ;;  %v681_v49 = vor.u32 %v679_v27, %v678_v39 }
  0x94   : > { %v11603_v47 = vld [vmem:[#allocation3 + $0x7c] ss:$12 sps:$4 sm:$0xff]   ;;  %883 = vst [vmem:[#allocation2 + $0x84] sm:$0xf] %v882_v42  ;;  %884 = vst [vmem:[#allocation2 + $0x88] sm:$0xf] %v673_v41  ;;  %v689_v48 = vor.u32 %v687_v31, %v686_v40 }
  0x95   : > { %v682_v50 = vrot.slane %v678_v39, 4  ;;  %v11606_v51 = vld [vmem:[#allocation3 + $0x78] ss:$12 sps:$4 sm:$0xff]   ;;  %v885_v52 = vld [vmem:[#allocation2 + $0x8c] sm:$0x1]  ;;  %v691_v53 = vrot.slane %v686_v40, 4  ;;  %2555 = vmatprep.mubr.bf16.mxu0 %v11603_v47 }
  0x96   : > { %v1197_v55 = vshrl.u32 %v1013_v44, 16  ;;  %v11602_v56 = vld [vmem:[#allocation3 + $0xf8] ss:$12 sps:$4 sm:$0xff]   ;;  %v886_v57 = vsel %vm12238_vm4, %v674_v35, %v885_v52  ;;  %2556 = vmatmul.mubr.bf16.gmra.mxu0 %v11606_v51  ;;  %v892_v61 = vld [vmem:[#allocation2 + $0x98] sm:$0x1]  ;;  %v1200_v63 = vshll.u32 %v1013_v44, 16 }
  0x97   : > { %v690_v58 = vsel %vm12270_vm7, %v682_v50, %v689_v48  ;;  %v888_v59 = vld [vmem:[#allocation2 + $0x90] sm:$0xf]  ;;  %887 = vst [vmem:[#allocation2 + $0x8c] sm:$0x1] %v886_v57  ;;  %v1206_v0 = vshll.u32 %v1014_v45, 16  ;;  %11241 = vmatmul.mubr.bf16.gmra.mxu1 %v11602_v56  ;;  %v893_v2 = vsel %vm12238_vm4, %v691_v53, %v892_v61  ;;  %v1210_v3 = vshrl.u32 %v1014_v45, 16 }
  0x98   : > { %v889_v60 = vsel %vm12282_vm8, %v681_v49, %v888_v59  ;;  %891 = vst [vmem:[#allocation2 + $0x94] sm:$0xf] %v690_v58  ;;  %v1199_v62 = vrot.slane %v1197_v55, 4  ;;  %v1216_v4 = vshll.u32 %v1015_v46, 16  ;;  %894 = vst [vmem:[#allocation2 + $0x98] sm:$0x1] %v893_v2 }
  0x99   : > { %890 = vst [vmem:[#allocation2 + $0x90] sm:$0xf] %v889_v60  ;;  %v1202_v5 = vrot.slane %v1200_v63, 5  ;;  %v1208_v6 = vrot.slane %v1206_v0, 5  ;;  %v1212_v7 = vrot.slane %v1210_v3, 4  ;;  %v11678_v39 = vld [vmem:[%s14985_s1 + $0x80] sm:$0xff]  }
  0x9a   : > { %v1218_v8 = vrot.slane %v1216_v4, 5  ;;  %v383_v9 = vld [vmem:[#allocation2 + $0x9c] sm:$0x1]  ;;  %v439_v10 = vld [vmem:[#allocation2 + $0xa4] sm:$0x1]  ;;  %11270 = vmatprep.subr.bf16.mxu0 %v11678_v39 }
  0x9b   : > { %v1589_v11 = vld [vmem:[#allocation2 + $0x84] sm:$0xe]  ;;  %v1590_v12 = vld [vmem:[#allocation2 + $0x88] sm:$0xf]  ;;  %v1203_v13 = vor.u32 %v1202_v5, %v1199_v62  ;;  %v384_v14 = vsel %vm12238_vm4, 0, %v383_v9  ;;  %v440_v15 = vsel %vm12250_vm6, 0, %v439_v10  ;;  %v1213_v18 = vor.u32 %v1212_v7, %v1208_v6  ;;  %11271 = vmatpush3.bf16.msra.mxu0 %v11678_v39 }
  0x9c   : > { %v9479_v16 = vrot.slane %v1589_v11, 9  ;;  %v1746_v17 = vrot.slane %v1590_v12, 5  ;;  %385 = vst [vmem:[#allocation2 + $0x9c] sm:$0x1] %v384_v14  ;;  %441 = vst [vmem:[#allocation2 + $0xa4] sm:$0x1] %v440_v15 }
  0x9d   : > { %v478_v20 = vld [vmem:[%s12228_s16 + $0x60] sm:$0xf]  ;;  %v479_v21 = vld [vmem:[%s12228_s16 + $0x64] sm:$0xf]  ;;  %v1204_v24 = vrot.slane %v1203_v13, 4  ;;  %v1214_v32 = vrot.slane %v1213_v18, 4 }
  0x9e   : > { %v693_v25 = vshrl.u32 %v478_v20, 16  ;;  %v696_v19 = vshll.u32 %v478_v20, 16  ;;  %v701_v22 = vshrl.u32 %v479_v21, 16  ;;  %v1591_v27 = vld [vmem:[#allocation2 + $0x8c] sm:$0x1]  ;;  %v1747_v29 = vsel %vm12315_vm13, %v9479_v16, %v1746_v17  ;;  %v11685_v7 = vld [vmem:[%s14985_s1 + $0x1f8] sm:$0xff]  }
  0x9f   : > { %v1748_v30 = vrot.slane %v1746_v17, 4  ;;  %v1593_v31 = vld [vmem:[#allocation2 + $0x94] sm:$0xf]  ;;  %v386_v33 = vld [vmem:[#allocation2 + $0xa8] sm:$0x1]  ;;  %v1749_v34 = vrot.slane %v1591_v27, 5  ;;  %v1209_v36 = vsel %vm12331_vm14, %v1204_v24, %v1208_v6  ;;  %v1219_v42 = vsel %vm12331_vm14, %v1214_v32, %v1218_v8  ;;  %10646 = vmatprep.subr.bf16.mxu0 %v11685_v7 }
  0xa0   : > { %1851 = vst [vmem:[#allocation3 + $0x110] sm:$0xf] %v1747_v29  ;;  %v1592_v38 = vld [vmem:[#allocation2 + $0x90] sm:$0xe]  ;;  %v1753_v35 = vrot.slane %v1593_v31, 5  ;;  %v695_v37 = vrot.slane %v693_v25, 7 }
  0xa1   : > { %v1594_v40 = vld [vmem:[#allocation2 + $0x98] sm:$0x1]  ;;  %v9480_v41 = vrot.slane %v1592_v38, 9  ;;  %1532 = vst [vmem:[#allocation3 + $0x94] sm:$0xf] %v1209_v36  ;;  %v703_v44 = vrot.slane %v701_v22, 7  ;;  %v1750_v46 = vsel %vm12315_vm13, %v1748_v30, %v1749_v34 }
  0xa2   : > { %v704_v45 = vshll.u32 %v479_v21, 16  ;;  %v1755_v47 = vrot.slane %v1753_v35, 4  ;;  %v1756_v49 = vrot.slane %v1594_v40, 5  ;;  %1533 = vst [vmem:[#allocation3 + $0xa0] sm:$0xf] %v1219_v42  ;;  %v698_v50 = vor.u32 %v696_v19, %v695_v37 }
  0xa3   : > { %v442_v48 = vld [vmem:[#allocation2 + $0xb0] sm:$0x1]  ;;  %v480_v51 = vld [vmem:[%s12228_s16 + $0x68] sm:$0xf]  ;;  %1852 = vst [vmem:[#allocation3 + $0x11c] sm:$0xf] %v1750_v46  ;;  %v1754_v52 = vsel %vm12315_vm13, %v9480_v41, %v1753_v35 }
  0xa4   : > { %v699_v53 = vrot.slane %v695_v37, 4  ;;  %v706_v55 = vor.u32 %v704_v45, %v703_v44  ;;  %v708_v56 = vrot.slane %v703_v44, 4  ;;  %v481_v57 = vld [vmem:[%s12228_s16 + $0x6c] sm:$0xf]  ;;  %v937_v58 = vld [vmem:[#allocation2 + $0x54] sm:$0xf]  ;;  %v1757_v59 = vsel %vm12315_vm13, %v1755_v47, %v1756_v49 }
  0xa5   : > { %1853 = vst [vmem:[#allocation3 + $0x128] sm:$0xf] %v1754_v52  ;;  %v895_v60 = vld [vmem:[#allocation2 + $0x9c] sm:$0xf]  ;;  %v899_v61 = vld [vmem:[#allocation2 + $0xa4] sm:$0x1] }
  0xa6   : > { %v387_v62 = vsel %vm12238_vm4, 0, %v386_v33  ;;  %v443_v63 = vsel %vm12250_vm6, 0, %v442_v48  ;;  %973 = vst [vmem:[#allocation3 + $0xa8] sm:$0xf] %v937_v58  ;;  %1854 = vst [vmem:[#allocation3 + $0x134] sm:$0xf] %v1757_v59  ;;  %v707_v0 = vsel %vm12270_vm7, %v699_v53, %v706_v55  ;;  %v896_v2 = vsel %vm12282_vm8, %v698_v50, %v895_v60 }
  0xa7   : > { %v900_v3 = vsel %vm12238_vm4, %v708_v56, %v899_v61  ;;  %388 = vst [vmem:[#allocation2 + $0xa8] sm:$0x1] %v387_v62  ;;  %444 = vst [vmem:[#allocation2 + $0xb0] sm:$0x1] %v443_v63  ;;  %v710_v4 = vshrl.u32 %v480_v51, 16  ;;  %v713_v8 = vshll.u32 %v480_v51, 16 }
  0xa8   : > { %v938_v5 = vld [vmem:[#allocation2 + $0x58] sm:$0xf]  ;;  %v1016_v6 = vld [vmem:[#allocation2 + $0x54] sm:$0xf]  ;;  %897 = vst [vmem:[#allocation2 + $0x9c] sm:$0xf] %v896_v2 }
  0xa9   : > { %898 = vst [vmem:[#allocation2 + $0xa0] sm:$0xf] %v707_v0  ;;  %901 = vst [vmem:[#allocation2 + $0xa4] sm:$0x1] %v900_v3  ;;  %v718_v9 = vshrl.u32 %v481_v57, 16  ;;  %v721_v10 = vshll.u32 %v481_v57, 16 }
  0xaa   : > { %974 = vst [vmem:[#allocation3 + $0xb4] sm:$0xf] %v938_v5  ;;  %v1017_v11 = vld [vmem:[#allocation2 + $0x58] sm:$0xf]  ;;  %v1221_v12 = vshrl.u32 %v1016_v6, 16  ;;  %v712_v13 = vrot.slane %v710_v4, 7 }
  0xab   : > { %v1018_v14 = vld [vmem:[#allocation2 + $0x5c] sm:$0x1]  ;;  %v1224_v15 = vshll.u32 %v1016_v6, 16  ;;  %v720_v16 = vrot.slane %v718_v9, 7  ;;  %v1230_v18 = vshll.u32 %v1017_v11, 16  ;;  %v1234_v20 = vshrl.u32 %v1017_v11, 16 }
  0xac   : > { %v1223_v17 = vrot.slane %v1221_v12, 4  ;;  %v11611_v21 = vld [vmem:[#allocation3 + $0x94] ss:$12 sps:$4 sm:$0xff]   ;;  %v11613_v24 = vld [vmem:[#allocation3 + $0x90] ss:$12 sps:$4 sm:$0xff]   ;;  %v715_v25 = vor.u32 %v713_v8, %v712_v13  ;;  %v716_v19 = vrot.slane %v712_v13, 4 }
  0xad   : > { %v11609_v22 = vld [vmem:[#allocation3 + $0x110] ss:$12 sps:$4 sm:$0xff]   ;;  %v723_v27 = vor.u32 %v721_v10, %v720_v16  ;;  %v725_v29 = vrot.slane %v720_v16, 4  ;;  %v1226_v30 = vrot.slane %v1224_v15, 5  ;;  %2563 = vmatprep.mubr.bf16.mxu0 %v11611_v21  ;;  %v1232_v31 = vrot.slane %v1230_v18, 5 }
  0xae   : > { %v1236_v32 = vrot.slane %v1234_v20, 4  ;;  %v1240_v33 = vshll.u32 %v1018_v14, 16  ;;  %11244 = vmatprep.mubr.bf16.mxu1 %v11609_v22  ;;  %v11610_v34 = vld [vmem:[#allocation3 + $0x128] ss:$12 sps:$4 sm:$0xff]   ;;  %2564 = vmatmul.mubr.bf16.gmra.mxu0 %v11613_v24  ;;  %v902_v35 = vld [vmem:[#allocation2 + $0xa8] sm:$0xf] }
  0xaf   : > { %v724_v38 = vsel %vm12270_vm7, %v716_v19, %v723_v27  ;;  %v1227_v36 = vor.u32 %v1226_v30, %v1223_v17  ;;  %v1595_v37 = vld [vmem:[#allocation2 + $0x9c] sm:$0xe]  ;;  %v903_v41 = vsel %vm12282_vm8, %v715_v25, %v902_v35  ;;  %11245 = vmatmul.mubr.bf16.gmra.mxu1 %v11610_v34  ;;  %v906_v47 = vld [vmem:[#allocation2 + $0xb0] sm:$0x1]  ;;  %v389_v57 = vld [vmem:[#allocation2 + $0xb4] sm:$0x1] }
  0xb0   : > { %v1596_v39 = vld [vmem:[#allocation2 + $0xa0] sm:$0xf]  ;;  %v1597_v40 = vld [vmem:[#allocation2 + $0xa4] sm:$0x1]  ;;  %905 = vst [vmem:[#allocation2 + $0xac] sm:$0xf] %v724_v38  ;;  %v1237_v42 = vor.u32 %v1236_v32, %v1232_v31  ;;  %v907_v50 = vsel %vm12238_vm4, %v725_v29, %v906_v47 }
  0xb1   : > { %v9481_v44 = vrot.slane %v1595_v37, 9  ;;  %v1760_v45 = vrot.slane %v1596_v39, 5  ;;  %v1763_v46 = vrot.slane %v1597_v40, 5  ;;  %904 = vst [vmem:[#allocation2 + $0xa8] sm:$0xf] %v903_v41  ;;  %v1228_v49 = vrot.slane %v1227_v36, 4 }
  0xb2   : > { %v1238_v48 = vrot.slane %v1237_v42, 4  ;;  %v1242_v51 = vrot.slane %v1240_v33, 5  ;;  %908 = vst [vmem:[#allocation2 + $0xb0] sm:$0x1] %v907_v50  ;;  %v390_v59 = vsel %vm12238_vm4, 0, %v389_v57 }
  0xb3   : > { %v1761_v52 = vsel %vm12315_vm13, %v9481_v44, %v1760_v45  ;;  %v1762_v53 = vrot.slane %v1760_v45, 4  ;;  %v1233_v55 = vsel %vm12331_vm14, %v1228_v49, %v1232_v31  ;;  %v445_v60 = vld [vmem:[#allocation2 + $0xbc] sm:$0x1]  ;;  %v482_v61 = vld [vmem:[%s12228_s16 + $0x70] sm:$0xf] }
  0xb4   : > { %1855 = vst [vmem:[#allocation3 + $0x140] sm:$0xf] %v1761_v52  ;;  %v1243_v56 = vsel %vm12331_vm14, %v1238_v48, %v1242_v51  ;;  %1534 = vst [vmem:[#allocation3 + $0xac] sm:$0xf] %v1233_v55  ;;  %v446_v62 = vsel %vm12250_vm6, 0, %v445_v60  ;;  %v727_v0 = vshrl.u32 %v482_v61, 16 }
  0xb5   : > { %v1764_v58 = vsel %vm12315_vm13, %v1762_v53, %v1763_v46  ;;  %1535 = vst [vmem:[#allocation3 + $0xb8] sm:$0xf] %v1243_v56  ;;  %391 = vst [vmem:[#allocation2 + $0xb4] sm:$0x1] %v390_v59  ;;  %v483_v63 = vld [vmem:[%s12228_s16 + $0x74] sm:$0xf] }
  0xb6   : > { %1856 = vst [vmem:[#allocation3 + $0x14c] sm:$0xf] %v1764_v58  ;;  %v730_v2 = vshll.u32 %v482_v61, 16  ;;  %447 = vst [vmem:[#allocation2 + $0xbc] sm:$0x1] %v446_v62  ;;  %v735_v4 = vshrl.u32 %v483_v63, 16 }
  0xb7   : > { %v1599_v3 = vld [vmem:[#allocation2 + $0xac] sm:$0xf]  ;;  %v738_v5 = vshll.u32 %v483_v63, 16  ;;  %v392_v6 = vld [vmem:[#allocation2 + $0xc0] sm:$0x1]  ;;  %v729_v9 = vrot.slane %v727_v0, 7 }
  0xb8   : > { %v1598_v7 = vld [vmem:[#allocation2 + $0xa8] sm:$0xe]  ;;  %v1767_v8 = vrot.slane %v1599_v3, 5  ;;  %v393_v10 = vsel %vm12238_vm4, 0, %v392_v6  ;;  %v737_v12 = vrot.slane %v735_v4, 7 }
  0xb9   : > { %v9482_v11 = vrot.slane %v1598_v7, 9  ;;  %394 = vst [vmem:[#allocation2 + $0xc0] sm:$0x1] %v393_v10  ;;  %v448_v13 = vld [vmem:[#allocation2 + $0xc8] sm:$0x1]  ;;  %v732_v17 = vor.u32 %v730_v2, %v729_v9  ;;  %v733_v18 = vrot.slane %v729_v9, 4 }
  0xba   : > { %v484_v14 = vld [vmem:[%s12228_s16 + $0x78] sm:$0xf]  ;;  %v1600_v15 = vld [vmem:[#allocation2 + $0xb0] sm:$0x1]  ;;  %v1769_v16 = vrot.slane %v1767_v8, 4  ;;  %v449_v20 = vsel %vm12250_vm6, 0, %v448_v13  ;;  %v740_v25 = vor.u32 %v738_v5, %v737_v12 }
  0xbb   : > { %v1768_v21 = vsel %vm12315_vm13, %v9482_v11, %v1767_v8  ;;  %v1770_v24 = vrot.slane %v1600_v15, 5  ;;  %v742_v19 = vrot.slane %v737_v12, 4  ;;  %450 = vst [vmem:[#allocation2 + $0xc8] sm:$0x1] %v449_v20  ;;  %v11621_v27 = vld [vmem:[#allocation3 + $0xa8] ss:$12 sps:$4 sm:$0xff]  }
  0xbc   : > { %1857 = vst [vmem:[#allocation3 + $0x158] sm:$0xf] %v1768_v21  ;;  %v11618_v22 = vld [vmem:[#allocation3 + $0xac] ss:$12 sps:$4 sm:$0xff]   ;;  %v744_v29 = vshrl.u32 %v484_v14, 16  ;;  %v741_v32 = vsel %vm12270_vm7, %v733_v18, %v740_v25  ;;  %v747_v37 = vshll.u32 %v484_v14, 16 }
  0xbd   : > { %v11616_v30 = vld [vmem:[#allocation3 + $0x140] ss:$12 sps:$4 sm:$0xff]   ;;  %v1771_v31 = vsel %vm12315_vm13, %v1769_v16, %v1770_v24  ;;  %v909_v33 = vld [vmem:[#allocation2 + $0xb4] sm:$0xf]  ;;  %2571 = vmatprep.mubr.bf16.mxu0 %v11618_v22  ;;  %912 = vst [vmem:[#allocation2 + $0xb8] sm:$0xf] %v741_v32 }
  0xbe   : > { %1858 = vst [vmem:[#allocation3 + $0x164] sm:$0xf] %v1771_v31  ;;  %v910_v34 = vsel %vm12282_vm8, %v732_v17, %v909_v33  ;;  %v913_v38 = vld [vmem:[#allocation2 + $0xbc] sm:$0x1]  ;;  %v746_v36 = vrot.slane %v744_v29, 7  ;;  %11248 = vmatprep.mubr.bf16.mxu1 %v11616_v30  ;;  %2572 = vmatmul.mubr.bf16.gmra.mxu0 %v11621_v27 }
  0xbf   : > { %v485_v35 = vld [vmem:[%s12228_s16 + $0x7c] sm:$0xf]  ;;  %911 = vst [vmem:[#allocation2 + $0xb4] sm:$0xf] %v910_v34  ;;  %v914_v39 = vsel %vm12238_vm4, %v742_v19, %v913_v38  ;;  %v939_v42 = vld [vmem:[#allocation2 + $0x60] sm:$0xf] }
  0xc0   : > { %v752_v40 = vshrl.u32 %v485_v35, 16  ;;  %v755_v41 = vshll.u32 %v485_v35, 16  ;;  %v940_v44 = vld [vmem:[#allocation2 + $0x64] sm:$0xf]  ;;  %915 = vst [vmem:[#allocation2 + $0xbc] sm:$0x1] %v914_v39  ;;  %v749_v45 = vor.u32 %v747_v37, %v746_v36 }
  0xc1   : > { %v750_v46 = vrot.slane %v746_v36, 4  ;;  %v916_v47 = vld [vmem:[#allocation2 + $0xc0] sm:$0xf]  ;;  %975 = vst [vmem:[#allocation3 + $0xc0] sm:$0xf] %v939_v42 }
  0xc2   : > { %976 = vst [vmem:[#allocation3 + $0xcc] sm:$0xf] %v940_v44  ;;  %v1019_v49 = vld [vmem:[#allocation2 + $0x60] sm:$0xf]  ;;  %v754_v50 = vrot.slane %v752_v40, 7  ;;  %v917_v53 = vsel %vm12282_vm8, %v749_v45, %v916_v47 }
  0xc3   : > { %v1020_v48 = vld [vmem:[#allocation2 + $0x64] sm:$0xf]  ;;  %v1021_v51 = vld [vmem:[#allocation2 + $0x68] sm:$0x1]  ;;  %v1245_v52 = vshrl.u32 %v1019_v49, 16  ;;  %v1248_v56 = vshll.u32 %v1019_v49, 16 }
  0xc4   : > { %v920_v55 = vld [vmem:[#allocation2 + $0xc8] sm:$0x1]  ;;  %v1254_v57 = vshll.u32 %v1020_v48, 16  ;;  %v1258_v58 = vshrl.u32 %v1020_v48, 16  ;;  %v757_v59 = vor.u32 %v755_v41, %v754_v50  ;;  %v759_v60 = vrot.slane %v754_v50, 4 }
  0xc5   : > { %918 = vst [vmem:[#allocation2 + $0xc0] sm:$0xf] %v917_v53  ;;  %v1247_v61 = vrot.slane %v1245_v52, 4  ;;  %v1264_v62 = vshll.u32 %v1021_v51, 16  ;;  %v1250_v63 = vrot.slane %v1248_v56, 5 }
  0xc6   : > { %v1256_v0 = vrot.slane %v1254_v57, 5  ;;  %v1260_v2 = vrot.slane %v1258_v58, 4  ;;  %v11617_v3 = vld [vmem:[#allocation3 + $0x158] ss:$12 sps:$4 sm:$0xff]   ;;  %v1602_v4 = vld [vmem:[#allocation2 + $0xb8] sm:$0xf]  ;;  %v758_v5 = vsel %vm12270_vm7, %v750_v46, %v757_v59  ;;  %v921_v6 = vsel %vm12238_vm4, %v759_v60, %v920_v55 }
  0xc7   : > { %v1601_v7 = vld [vmem:[#allocation2 + $0xb4] sm:$0xe]  ;;  %v1774_v8 = vrot.slane %v1602_v4, 5  ;;  %919 = vst [vmem:[#allocation2 + $0xc4] sm:$0xf] %v758_v5  ;;  %v1251_v9 = vor.u32 %v1250_v63, %v1247_v61  ;;  %v1266_v11 = vrot.slane %v1264_v62, 5  ;;  %11249 = vmatmul.mubr.bf16.gmra.mxu1 %v11617_v3 }
  0xc8   : > { %922 = vst [vmem:[#allocation2 + $0xc8] sm:$0x1] %v921_v6  ;;  %v1261_v10 = vor.u32 %v1260_v2, %v1256_v0  ;;  %v1603_v12 = vld [vmem:[#allocation2 + $0xbc] sm:$0x1]  ;;  %v9483_v13 = vrot.slane %v1601_v7, 9 }
  0xc9   : > { %v1776_v14 = vrot.slane %v1774_v8, 4  ;;  %v1777_v15 = vrot.slane %v1603_v12, 5  ;;  %v1252_v16 = vrot.slane %v1251_v9, 4  ;;  %v344_v20 = vld [vmem:[#allocation2] sm:$0x1] }
  0xca   : > { %v1262_v17 = vrot.slane %v1261_v10, 4  ;;  %v1775_v18 = vsel %vm12315_vm13, %v9483_v13, %v1774_v8  ;;  %v400_v21 = vld [vmem:[#allocation2 + $0x8] sm:$0x1]  ;;  %v924_v24 = vld [vmem:[#allocation2 + $0x4] sm:$0xf]  ;;  %v345_v29 = vsel %vm12238_vm4, 0, %v344_v20 }
  0xcb   : > { %v1778_v25 = vsel %vm12315_vm13, %v1776_v14, %v1777_v15  ;;  %1859 = vst [vmem:[#allocation3 + $0x170] sm:$0xf] %v1775_v18  ;;  %v1257_v22 = vsel %vm12331_vm14, %v1252_v16, %v1256_v0  ;;  %960 = vst [vmem:[#allocation3 + $0xc] sm:$0xf] %v924_v24  ;;  %v996_v30 = vld [vmem:[#allocation2 + $0x4] sm:$0xf] }
  0xcc   : > { %v1604_v19 = vld [vmem:[#allocation2 + $0xc0] sm:$0xe]  ;;  %v1267_v27 = vsel %vm12331_vm14, %v1262_v17, %v1266_v11  ;;  %1860 = vst [vmem:[#allocation3 + $0x17c] sm:$0xf] %v1778_v25  ;;  %1536 = vst [vmem:[#allocation3 + $0xc4] sm:$0xf] %v1257_v22 }
  0xcd   : > { %v9484_v31 = vrot.slane %v1604_v19, 9  ;;  %1537 = vst [vmem:[#allocation3 + $0xd0] sm:$0xf] %v1267_v27  ;;  %346 = vst [vmem:[#allocation2] sm:$0x1] %v345_v29  ;;  %v401_v32 = vsel %vm12250_vm6, 0, %v400_v21 }
  0xce   : > { %v1062_v33 = vshll.u32 %v996_v30, 16  ;;  %v1066_v34 = vshrl.u32 %v996_v30, 16  ;;  %v941_v38 = vld [vmem:[#allocation2 + $0x6c] sm:$0xf]  ;;  %402 = vst [vmem:[#allocation2 + $0x8] sm:$0x1] %v401_v32 }
  0xcf   : > { %v942_v35 = vld [vmem:[#allocation2 + $0x70] sm:$0xf]  ;;  %977 = vst [vmem:[#allocation3 + $0xd8] sm:$0xf] %v941_v38  ;;  %v1022_v36 = vld [vmem:[#allocation2 + $0x6c] sm:$0xf] }
  0xd0   : > { %v1023_v37 = vld [vmem:[#allocation2 + $0x70] sm:$0xf]  ;;  %v1605_v39 = vld [vmem:[#allocation2 + $0xc4] sm:$0xf]  ;;  %v1606_v40 = vld [vmem:[#allocation2 + $0xc8] sm:$0x1] }
  0xd1   : > { %v12668_v41 = vrot.slane %v1062_v33, 5  ;;  %v1068_v42 = vrot.slane %v1066_v34, 4  ;;  %978 = vst [vmem:[#allocation3 + $0xe4] sm:$0xf] %v942_v35  ;;  %v1781_v44 = vrot.slane %v1605_v39, 5  ;;  %v1784_v45 = vrot.slane %v1606_v40, 5 }
  0xd2   : > { %v1024_v46 = vld [vmem:[#allocation2 + $0x74] sm:$0x1]  ;;  %v1269_v47 = vshrl.u32 %v1022_v36, 16  ;;  %v1272_v49 = vshll.u32 %v1022_v36, 16  ;;  %v1278_v48 = vshll.u32 %v1023_v37, 16  ;;  %v1282_v51 = vshrl.u32 %v1023_v37, 16 }
  0xd3   : > { %v1069_v50 = vor.u32 %v1068_v42, %v12668_v41  ;;  %v1288_v52 = vshll.u32 %v1024_v46, 16  ;;  %v1782_v53 = vsel %vm12315_vm13, %v9484_v31, %v1781_v44  ;;  %v1783_v55 = vrot.slane %v1781_v44, 4  ;;  %v11624_v60 = vld [vmem:[#allocation3 + $0x170] ss:$12 sps:$4 sm:$0xff]   ;;  %v12677_v2 = vld [vmem:[#allocation3 + $0xc0] ss:$12 sps:$4 sm:$0xff]  }
  0xd4   : > { %v1271_v56 = vrot.slane %v1269_v47, 4  ;;  %v1274_v57 = vrot.slane %v1272_v49, 5  ;;  %1861 = vst [vmem:[#allocation3 + $0x188] sm:$0xf] %v1782_v53  ;;  %v1280_v58 = vrot.slane %v1278_v48, 5  ;;  %v1284_v59 = vrot.slane %v1282_v51, 4  ;;  %11252 = vmatprep.mubr.bf16.mxu1 %v11624_v60 }
  0xd5   : > { %v1785_v61 = vsel %vm12315_vm13, %v1783_v55, %v1784_v45  ;;  %v1070_v62 = vrot.slane %v1069_v50, 4  ;;  %v12675_v0 = vld [vmem:[#allocation3 + $0xc4] ss:$12 sps:$4 sm:$0xff]   ;;  %v1290_v4 = vrot.slane %v1288_v52, 5  ;;  %v923_v5 = vld [vmem:[#allocation2] sm:$0xf] }
  0xd6   : > { %v1275_v63 = vor.u32 %v1274_v57, %v1271_v56  ;;  %1862 = vst [vmem:[#allocation3 + $0x194] sm:$0xf] %v1785_v61  ;;  %v1285_v3 = vor.u32 %v1284_v59, %v1280_v58  ;;  %v995_v6 = vld [vmem:[#allocation2] sm:$0xf]  ;;  %v997_v7 = vld [vmem:[#allocation2 + $0x8] sm:$0x1]  ;;  %2579 = vmatprep.mubr.bf16.mxu0 %v12675_v0 }
  0xd7   : > { %959 = vst [vmem:[#allocation3] sm:$0xf] %v923_v5  ;;  %v1053_v8 = vshrl.u32 %v995_v6, 16  ;;  %v1056_v9 = vshll.u32 %v995_v6, 16  ;;  %v1072_v10 = vshll.u32 %v997_v7, 16  ;;  %2580 = vmatmul.mubr.bf16.gmra.mxu0 %v12677_v2  ;;  %v11652_v7 = vld [vmem:[%s14985_s1 + $0x230] sm:$0xff]  }
  0xd8   : > { %v1276_v11 = vrot.slane %v1275_v63, 4  ;;  %v1286_v12 = vrot.slane %v1285_v3, 4  ;;  %v943_v18 = vld [vmem:[#allocation2 + $0x78] sm:$0xf]  ;;  %v944_v20 = vld [vmem:[#allocation2 + $0x7c] sm:$0xf] }
  0xd9   : > { %v1055_v13 = vrot.slane %v1053_v8, 4  ;;  %v1058_v14 = vrot.slane %v1056_v9, 5  ;;  %v1074_v15 = vrot.slane %v1072_v10, 5  ;;  %979 = vst [vmem:[#allocation3 + $0xf0] sm:$0xf] %v943_v18 }
  0xda   : > { %v1281_v16 = vsel %vm12331_vm14, %v1276_v11, %v1280_v58  ;;  %v1291_v17 = vsel %vm12331_vm14, %v1286_v12, %v1290_v4  ;;  %980 = vst [vmem:[#allocation3 + $0xfc] sm:$0xf] %v944_v20  ;;  %v1025_v25 = vld [vmem:[#allocation2 + $0x78] sm:$0xf]  ;;  %v1026_v19 = vld [vmem:[#allocation2 + $0x7c] sm:$0xf] }
  0xdb   : > { %1538 = vst [vmem:[#allocation3 + $0xdc] sm:$0xf] %v1281_v16  ;;  %v1059_v21 = vor.u32 %v1058_v14, %v1055_v13  ;;  %v1075_v24 = vsel %vm12331_vm14, %v1070_v62, %v1074_v15  ;;  %1539 = vst [vmem:[#allocation3 + $0xe8] sm:$0xf] %v1291_v17  ;;  %v1027_v22 = vld [vmem:[#allocation2 + $0x80] sm:$0x1] }
  0xdc   : > { %1521 = vst [vmem:[#allocation3 + $0x10] sm:$0xf] %v1075_v24  ;;  %v1293_v29 = vshrl.u32 %v1025_v25, 16  ;;  %v1296_v30 = vshll.u32 %v1025_v25, 16  ;;  %v1302_v32 = vshll.u32 %v1026_v19, 16  ;;  %v1306_v33 = vshrl.u32 %v1026_v19, 16 }
  0xdd   : > { %v11625_v27 = vld [vmem:[#allocation3 + $0x188] ss:$12 sps:$4 sm:$0xff]   ;;  %v1060_v31 = vrot.slane %v1059_v21, 4  ;;  %v1312_v34 = vshll.u32 %v1027_v22, 16  ;;  %v945_v36 = vld [vmem:[#allocation2 + $0x84] sm:$0xf] }
  0xde   : > { %11253 = vmatmul.mubr.bf16.gmra.mxu1 %v11625_v27  ;;  %v1295_v38 = vrot.slane %v1293_v29, 4  ;;  %v1298_v35 = vrot.slane %v1296_v30, 5  ;;  %v1304_v39 = vrot.slane %v1302_v32, 5  ;;  %v1308_v40 = vrot.slane %v1306_v33, 4  ;;  %v946_v44 = vld [vmem:[#allocation2 + $0x88] sm:$0xf] }
  0xdf   : > { %v1065_v37 = vsel %vm12331_vm14, %v1060_v31, %v12668_v41  ;;  %v1314_v42 = vrot.slane %v1312_v34, 5  ;;  %981 = vst [vmem:[#allocation3 + $0x108] sm:$0xf] %v945_v36  ;;  %982 = vst [vmem:[#allocation3 + $0x114] sm:$0xf] %v946_v44  ;;  %v12075_v22 = vld [vmem:[%s14985_s1 + $0x238] sm:$0xff]  }
  0xe0   : > { %1520 = vst [vmem:[#allocation3 + $0x4] sm:$0xf] %v1065_v37  ;;  %v1299_v45 = vor.u32 %v1298_v35, %v1295_v38  ;;  %v1028_v46 = vld [vmem:[#allocation2 + $0x84] sm:$0xf]  ;;  %v1029_v47 = vld [vmem:[#allocation2 + $0x88] sm:$0xf]  ;;  %v1309_v50 = vor.u32 %v1308_v40, %v1304_v39 }
  0xe1   : > { %v1030_v49 = vld [vmem:[#allocation2 + $0x8c] sm:$0x1]  ;;  %v1317_v48 = vshrl.u32 %v1028_v46, 16  ;;  %v1320_v51 = vshll.u32 %v1028_v46, 16  ;;  %v1326_v52 = vshll.u32 %v1029_v47, 16  ;;  %v1330_v61 = vshrl.u32 %v1029_v47, 16 }
  0xe2   : > { %v12690_v53 = vld [vmem:[#allocation3 + $0xdc] ss:$12 sps:$4 sm:$0xff]   ;;  %v12692_v55 = vld [vmem:[#allocation3 + $0xd8] ss:$12 sps:$4 sm:$0xff]   ;;  %v1300_v41 = vrot.slane %v1299_v45, 4  ;;  %v1310_v56 = vrot.slane %v1309_v50, 4 }
  0xe3   : > { %v1319_v57 = vrot.slane %v1317_v48, 4  ;;  %v1322_v58 = vrot.slane %v1320_v51, 5  ;;  %v1328_v59 = vrot.slane %v1326_v52, 5  ;;  %2587 = vmatprep.mubr.bf16.mxu0 %v12690_v53  ;;  %v1336_v62 = vshll.u32 %v1030_v49, 16  ;;  %v11639_v63 = vld [vmem:[#allocation3 + $0x1c] ss:$12 sps:$4 sm:$0xff]  }
  0xe4   : > { %v1305_v60 = vsel %vm12331_vm14, %v1300_v41, %v1304_v39  ;;  %2588 = vmatmul.mubr.bf16.gmra.mxu0 %v12692_v55  ;;  %v1315_v3 = vsel %vm12331_vm14, %v1310_v56, %v1314_v42  ;;  %v1332_v5 = vrot.slane %v1330_v61, 4  ;;  %v947_v8 = vld [vmem:[#allocation2 + $0x90] sm:$0xf]  ;;  %v948_v9 = vld [vmem:[#allocation2 + $0x94] sm:$0xf]  ;;  %v11666_v32 = vld [vmem:[%s14985_s1 + $0x228] sm:$0xff]  }
  0xe5   : > { %1540 = vst [vmem:[#allocation3 + $0xf4] sm:$0xf] %v1305_v60  ;;  %v1323_v4 = vor.u32 %v1322_v58, %v1319_v57  ;;  %1541 = vst [vmem:[#allocation3 + $0x100] sm:$0xf] %v1315_v3  ;;  %v1338_v6 = vrot.slane %v1336_v62, 5  ;;  %v11680_v49 = vld [vmem:[%s14985_s1 + $0x220] sm:$0xff]  }
  0xe6   : > { %v11631_v10 = vld [vmem:[#allocation3] ss:$12 sps:$4 sm:$0xff]   ;;  %983 = vst [vmem:[#allocation3 + $0x120] sm:$0xf] %v947_v8  ;;  %984 = vst [vmem:[#allocation3 + $0x12c] sm:$0xf] %v948_v9  ;;  %v1333_v13 = vor.u32 %v1332_v5, %v1328_v59 }
  0xe7   : > { %v11633_v11 = vld [vmem:[#allocation3 + $0x4] ss:$12 sps:$4 sm:$0xff]   ;;  %v1324_v12 = vrot.slane %v1323_v4, 4  ;;  %v1031_v14 = vld [vmem:[#allocation2 + $0x90] sm:$0xf] }
  0xe8   : > { %v1032_v15 = vld [vmem:[#allocation2 + $0x94] sm:$0xf]  ;;  %v1033_v16 = vld [vmem:[#allocation2 + $0x98] sm:$0x1]  ;;  %3245 = vmatprep.mubr.bf16.mxu1 %v11633_v11  ;;  %v1341_v18 = vshrl.u32 %v1031_v14, 16  ;;  %v1344_v20 = vshll.u32 %v1031_v14, 16 }
  0xe9   : > { %v1329_v17 = vsel %vm12331_vm14, %v1324_v12, %v1328_v59  ;;  %v1350_v21 = vshll.u32 %v1032_v15, 16  ;;  %3246 = vmatmul.mubr.bf16.vlgmr.msra.gmra.mxu1 %v11631_v10  ;;  %v1334_v24 = vrot.slane %v1333_v13, 4  ;;  %v1354_v25 = vshrl.u32 %v1032_v15, 16  ;;  %v949_v31 = vld [vmem:[#allocation2 + $0x9c] sm:$0xf] }
  0xea   : > { %1542 = vst [vmem:[#allocation3 + $0x10c] sm:$0xf] %v1329_v17  ;;  %v1360_v19 = vshll.u32 %v1033_v16, 16  ;;  %11305 = vmatpush3.bf16.msra.mxu1 %v12075_v22  ;;  %3253 = vmatprep.mubr.bf16.mxu1 %v11639_v63  ;;  %v1343_v27 = vrot.slane %v1341_v18, 4  ;;  %v1346_v29 = vrot.slane %v1344_v20, 5  ;;  %v11697_v22 = vld [vmem:[%s14985_s1 + $0x210] sm:$0xff]  }
  0xeb   : > { %v1352_v30 = vrot.slane %v1350_v21, 5  ;;  %v11641_v33 = vld [vmem:[#allocation3 + $0x18] ss:$12 sps:$4 sm:$0xff]   ;;  %v1339_v34 = vsel %vm12331_vm14, %v1334_v24, %v1338_v6  ;;  %11306 = vmatprep.subr.bf16.mxu1 %v11652_v7  ;;  %v1356_v38 = vrot.slane %v1354_v25, 4  ;;  %v950_v35 = vld [vmem:[#allocation2 + $0xa0] sm:$0xf] }
  0xec   : > { %985 = vst [vmem:[#allocation3 + $0x138] sm:$0xf] %v949_v31  ;;  %v12713_v36 = vld [vmem:[#allocation3 + $0xf4] ss:$12 sps:$4 sm:$0xff]   ;;  %v12715_v37 = vld [vmem:[#allocation3 + $0xf0] ss:$12 sps:$4 sm:$0xff]   ;;  %v1347_v40 = vor.u32 %v1346_v29, %v1343_v27 }
  0xed   : > { %v11645_v39 = vld [vmem:[#allocation3 + $0x34] ss:$12 sps:$4 sm:$0xff]   ;;  %1543 = vst [vmem:[#allocation3 + $0x118] sm:$0xf] %v1339_v34  ;;  %v1362_v42 = vrot.slane %v1360_v19, 5  ;;  %v1357_v44 = vor.u32 %v1356_v38, %v1352_v30  ;;  %2595 = vmatprep.mubr.bf16.mxu0 %v12713_v36 }
  0xee   : > { %986 = vst [vmem:[#allocation3 + $0x144] sm:$0xf] %v950_v35  ;;  %v1034_v45 = vld [vmem:[#allocation2 + $0x9c] sm:$0xf]  ;;  %v1035_v46 = vld [vmem:[#allocation2 + $0xa0] sm:$0xf]  ;;  %11307 = vmatpush3.bf16.msra.mxu1 %v11652_v7  ;;  %2596 = vmatmul.mubr.bf16.gmra.mxu0 %v12715_v37 }
  0xef   : > { %v1036_v47 = vld [vmem:[#allocation2 + $0xa4] sm:$0x1]  ;;  %v1348_v50 = vrot.slane %v1347_v40, 4  ;;  %v1365_v48 = vshrl.u32 %v1034_v45, 16  ;;  %v1368_v51 = vshll.u32 %v1034_v45, 16  ;;  %v1374_v52 = vshll.u32 %v1035_v46, 16  ;;  %11308 = vmatprep.subr.bf16.mxu1 %v11666_v32 }
  0xf0   : > { %v1358_v41 = vrot.slane %v1357_v44, 4  ;;  %v1378_v56 = vshrl.u32 %v1035_v46, 16  ;;  %v1384_v57 = vshll.u32 %v1036_v47, 16  ;;  %v951_v4 = vld [vmem:[#allocation2 + $0xa8] sm:$0xf]  ;;  %v11688_v6 = vld [vmem:[%s14985_s1 + $0x218] sm:$0xff]  }
  0xf1   : > { %v1353_v58 = vsel %vm12331_vm14, %v1348_v50, %v1352_v30  ;;  %v1367_v59 = vrot.slane %v1365_v48, 4  ;;  %v1370_v60 = vrot.slane %v1368_v51, 5  ;;  %v1376_v61 = vrot.slane %v1374_v52, 5  ;;  %3254 = vmatmul.mubr.bf16.gmra.mxu1 %v11641_v33  ;;  %v952_v5 = vld [vmem:[#allocation2 + $0xac] sm:$0xf] }
  0xf2   : > { %v1363_v62 = vsel %vm12331_vm14, %v1358_v41, %v1362_v42  ;;  %1544 = vst [vmem:[#allocation3 + $0x124] sm:$0xf] %v1353_v58  ;;  %v1380_v63 = vrot.slane %v1378_v56, 4  ;;  %3261 = vmatprep.mubr.bf16.mxu1 %v11645_v39  ;;  %11309 = vmatpush3.bf16.msra.mxu1 %v11666_v32  ;;  %v11647_v7 = vld [vmem:[#allocation3 + $0x30] ss:$12 sps:$4 sm:$0xff]   ;;  %v1386_v11 = vrot.slane %v1384_v57, 5 }
  0xf3   : > { %1545 = vst [vmem:[#allocation3 + $0x130] sm:$0xf] %v1363_v62  ;;  %v1371_v3 = vor.u32 %v1370_v60, %v1367_v59  ;;  %v12731_v9 = vld [vmem:[#allocation3 + $0x108] ss:$12 sps:$4 sm:$0xff]   ;;  %987 = vst [vmem:[#allocation3 + $0x150] sm:$0xf] %v951_v4  ;;  %11310 = vmatprep.subr.bf16.mxu1 %v11680_v49 }
  0xf4   : > { %v12729_v8 = vld [vmem:[#allocation3 + $0x10c] ss:$12 sps:$4 sm:$0xff]   ;;  %v1381_v10 = vor.u32 %v1380_v63, %v1376_v61  ;;  %988 = vst [vmem:[#allocation3 + $0x15c] sm:$0xf] %v952_v5  ;;  %v1037_v13 = vld [vmem:[#allocation2 + $0xa8] sm:$0xf] }
  0xf5   : > { %v1372_v12 = vrot.slane %v1371_v3, 4  ;;  %v1038_v14 = vld [vmem:[#allocation2 + $0xac] sm:$0xf]  ;;  %2603 = vmatprep.mubr.bf16.mxu0 %v12729_v8  ;;  %v1039_v16 = vld [vmem:[#allocation2 + $0xb0] sm:$0x1]  ;;  %v1389_v17 = vshrl.u32 %v1037_v13, 16 }
  0xf6   : > { %v1382_v15 = vrot.slane %v1381_v10, 4  ;;  %v1392_v18 = vshll.u32 %v1037_v13, 16  ;;  %v1398_v20 = vshll.u32 %v1038_v14, 16  ;;  %v11653_v21 = vld [vmem:[#allocation3 + $0x4c] ss:$12 sps:$4 sm:$0xff]   ;;  %v1402_v25 = vshrl.u32 %v1038_v14, 16  ;;  %11311 = vmatpush3.bf16.msra.mxu1 %v11680_v49  ;;  %2604 = vmatmul.mubr.bf16.gmra.mxu0 %v12731_v9 }
  0xf7   : > { %v1377_v24 = vsel %vm12331_vm14, %v1372_v12, %v1376_v61  ;;  %v1408_v19 = vshll.u32 %v1039_v16, 16  ;;  %v1391_v29 = vrot.slane %v1389_v17, 4  ;;  %v953_v32 = vld [vmem:[#allocation2 + $0xb4] sm:$0xf]  ;;  %11312 = vmatprep.subr.bf16.mxu1 %v11688_v6  ;;  %v954_v34 = vld [vmem:[#allocation2 + $0xb8] sm:$0xf] }
  0xf8   : > { %v1387_v27 = vsel %vm12331_vm14, %v1382_v15, %v1386_v11  ;;  %1546 = vst [vmem:[#allocation3 + $0x13c] sm:$0xf] %v1377_v24  ;;  %v1394_v30 = vrot.slane %v1392_v18, 5  ;;  %v1400_v31 = vrot.slane %v1398_v20, 5  ;;  %v1404_v33 = vrot.slane %v1402_v25, 4  ;;  %v11706_v42 = vld [vmem:[%s14985_s1 + $0x208] sm:$0xff]  }
  0xf9   : > { %1547 = vst [vmem:[#allocation3 + $0x148] sm:$0xf] %v1387_v27  ;;  %989 = vst [vmem:[#allocation3 + $0x168] sm:$0xf] %v953_v32  ;;  %3262 = vmatmul.mubr.bf16.gmra.mxu1 %v11647_v7  ;;  %v12744_v35 = vld [vmem:[#allocation3 + $0x120] ss:$12 sps:$4 sm:$0xff]  }
  0xfa   : > { %v12742_v38 = vld [vmem:[#allocation3 + $0x124] ss:$12 sps:$4 sm:$0xff]   ;;  %v1395_v39 = vor.u32 %v1394_v30, %v1391_v29  ;;  %v1410_v40 = vrot.slane %v1408_v19, 5  ;;  %990 = vst [vmem:[#allocation3 + $0x174] sm:$0xf] %v954_v34  ;;  %3269 = vmatprep.mubr.bf16.mxu1 %v11653_v21  ;;  %v1405_v44 = vor.u32 %v1404_v33, %v1400_v31  ;;  %11313 = vmatpush3.bf16.msra.mxu1 %v11688_v6  ;;  %v11715_v7 = vld [vmem:[%s14985_s1 + $0x200] sm:$0xff]  }
  0xfb   : > { %v1040_v45 = vld [vmem:[#allocation2 + $0xb4] sm:$0xf]  ;;  %v1041_v46 = vld [vmem:[#allocation2 + $0xb8] sm:$0xf]  ;;  %v1042_v47 = vld [vmem:[#allocation2 + $0xbc] sm:$0x1]  ;;  %2611 = vmatprep.mubr.bf16.mxu0 %v12742_v38  ;;  %11314 = vmatprep.subr.bf16.mxu1 %v11697_v22 }
  0xfc   : > { %v11655_v49 = vld [vmem:[#allocation3 + $0x48] ss:$12 sps:$4 sm:$0xff]   ;;  %v1396_v50 = vrot.slane %v1395_v39, 4  ;;  %v1413_v48 = vshrl.u32 %v1040_v45, 16  ;;  %v1416_v51 = vshll.u32 %v1040_v45, 16  ;;  %v1422_v52 = vshll.u32 %v1041_v46, 16 }
  0xfd   : > { %v11659_v41 = vld [vmem:[#allocation3 + $0x64] ss:$12 sps:$4 sm:$0xff]   ;;  %v1406_v56 = vrot.slane %v1405_v44, 4  ;;  %v1426_v57 = vshrl.u32 %v1041_v46, 16  ;;  %v1432_v58 = vshll.u32 %v1042_v47, 16 }
  0xfe   : > { %v1401_v59 = vsel %vm12331_vm14, %v1396_v50, %v1400_v31  ;;  %v1415_v60 = vrot.slane %v1413_v48, 4  ;;  %v1418_v61 = vrot.slane %v1416_v51, 5  ;;  %v1424_v62 = vrot.slane %v1422_v52, 5  ;;  %11315 = vmatpush3.bf16.msra.mxu1 %v11697_v22  ;;  %2612 = vmatmul.mubr.bf16.gmra.mxu0 %v12744_v35  ;;  %v955_v11 = vld [vmem:[#allocation2 + $0xc0] sm:$0xf] }
  0xff   : > { %v1411_v63 = vsel %vm12331_vm14, %v1406_v56, %v1410_v40  ;;  %1548 = vst [vmem:[#allocation3 + $0x154] sm:$0xf] %v1401_v59  ;;  %v1428_v3 = vrot.slane %v1426_v57, 4  ;;  %v1434_v6 = vrot.slane %v1432_v58, 5  ;;  %11316 = vmatprep.subr.bf16.mxu1 %v11706_v42  ;;  %v956_v12 = vld [vmem:[#allocation2 + $0xc4] sm:$0xf] }
 0x100   : > { %v12755_v4 = vld [vmem:[#allocation3 + $0x13c] ss:$12 sps:$4 sm:$0xff]   ;;  %1549 = vst [vmem:[#allocation3 + $0x160] sm:$0xf] %v1411_v63  ;;  %v1419_v5 = vor.u32 %v1418_v61, %v1415_v60  ;;  %v12761_v14 = vld [vmem:[#allocation3 + $0x138] ss:$12 sps:$4 sm:$0xff]  }
 0x101   : > { %v1429_v10 = vor.u32 %v1428_v3, %v1424_v62  ;;  %v1043_v13 = vld [vmem:[#allocation2 + $0xc0] sm:$0xf]  ;;  %3270 = vmatmul.mubr.bf16.gmra.mxu1 %v11655_v49  ;;  %2619 = vmatprep.mubr.bf16.mxu0 %v12755_v4  ;;  %991 = vst [vmem:[#allocation3 + $0x180] sm:$0xf] %v955_v11  ;;  %992 = vst [vmem:[#allocation3 + $0x18c] sm:$0xf] %v956_v12  ;;  %v11226_v3 = vpop.f32.mrf.mxu1 }
 0x102   : > { %v1420_v15 = vrot.slane %v1419_v5, 4  ;;  %v1044_v16 = vld [vmem:[#allocation2 + $0xc4] sm:$0xf]  ;;  %v1045_v17 = vld [vmem:[#allocation2 + $0xc8] sm:$0x1]  ;;  %v1437_v18 = vshrl.u32 %v1043_v13, 16  ;;  %3277 = vmatprep.mubr.bf16.mxu1 %v11659_v41  ;;  %11317 = vmatpush3.bf16.msra.mxu1 %v11706_v42  ;;  %v10390_v5 = vpop.f32.mrf.mxu0 }
 0x103   : > { %v1430_v20 = vrot.slane %v1429_v10, 4  ;;  %v1440_v21 = vshll.u32 %v1043_v13, 16  ;;  %v1446_v24 = vshll.u32 %v1044_v16, 16  ;;  %v1450_v25 = vshrl.u32 %v1044_v16, 16  ;;  %v1556_v19 = vld [vmem:[#allocation2] sm:$0xe]  ;;  %11318 = vmatprep.subr.bf16.mxu1 %v11715_v7  ;;  %v2686_v13 = vpop.f32.mrf.mxu1 }
 0x104   : > { %v12763_v22 = vld [vmem:[#allocation3 + $0x60] ss:$12 sps:$4 sm:$0xff]   ;;  %v1425_v27 = vsel %vm12331_vm14, %v1420_v15, %v1424_v62  ;;  %v1439_v29 = vrot.slane %v1437_v18, 4  ;;  %v1456_v30 = vshll.u32 %v1045_v17, 16  ;;  %v1558_v32 = vld [vmem:[#allocation2 + $0x8] sm:$0x1]  ;;  %v10391_v11 = vpop.f32.mrf.mxu0 }
 0x105   : > { %v1557_v31 = vld [vmem:[#allocation2 + $0x4] sm:$0xf]  ;;  %v1435_v33 = vsel %vm12331_vm14, %v1430_v20, %v1434_v6  ;;  %1550 = vst [vmem:[#allocation3 + $0x16c] sm:$0xf] %v1425_v27  ;;  %v1442_v34 = vrot.slane %v1440_v21, 5  ;;  %v1448_v39 = vrot.slane %v1446_v24, 5  ;;  %v10392_v12 = vadd.f32 %v10391_v11, %v10390_v5 }
 0x106   : > { %v1452_v40 = vrot.slane %v1450_v25, 4  ;;  %1551 = vst [vmem:[#allocation3 + $0x178] sm:$0xf] %v1435_v33  ;;  %v9468_v44 = vrot.slane %v1556_v19, 9  ;;  %v1669_v42 = vrot.slane %v1557_v31, 5  ;;  %v1672_v45 = vrot.slane %v1558_v32, 5  ;;  %11319 = vmatpush3.bf16.msra.mxu1 %v11715_v7  ;;  %2620 = vmatmul.mubr.bf16.gmra.mxu0 %v12761_v14  ;;  %v12801_v15 = vpop.f32.mrf.mxu0 }
 0x107   : > { %v12769_v46 = vld [vmem:[#allocation3 + $0x7c] ss:$12 sps:$4 sm:$0xff]   ;;  %v12771_v47 = vld [vmem:[#allocation3 + $0x154] ss:$12 sps:$4 sm:$0xff]   ;;  %v1443_v49 = vor.u32 %v1442_v34, %v1439_v29  ;;  %v1458_v48 = vrot.slane %v1456_v30, 5  ;;  %v12803_v16 = vadd.f32 %v10392_v12, %v2686_v13 }
 0x108   : > { %v1453_v50 = vor.u32 %v1452_v40, %v1448_v39  ;;  %v1670_v51 = vsel %vm12315_vm13, %v9468_v44, %v1669_v42  ;;  %v1671_v52 = vrot.slane %v1669_v42, 4  ;;  %2627 = vmatprep.mubr.bf16.mxu0 %v12771_v47  ;;  %v12785_v60 = vld [vmem:[#allocation3 + $0x150] ss:$12 sps:$4 sm:$0xff]   ;;  %v12787_v61 = vld [vmem:[#allocation3 + $0x78] ss:$12 sps:$4 sm:$0xff]   ;;  %v12807_v17 = vpop.f32.mrf.mxu0  ;;  %v11227_v44 = vpop.f32.mrf.mxu1 }
 0x109   : > { %v1444_v41 = vrot.slane %v1443_v49, 4  ;;  %1829 = vst [vmem:[#allocation3 + $0x8] sm:$0xf] %v1670_v51  ;;  %3278 = vmatmul.mubr.bf16.gmra.mxu1 %v12763_v22  ;;  %v12791_v63 = vld [vmem:[#allocation3 + $0x94] ss:$12 sps:$4 sm:$0xff]   ;;  %v11690_v33 = vld [vmem:[%s14985_s1 + $0x1f0] sm:$0xff]  }
 0x10a   : > { %v1454_v56 = vrot.slane %v1453_v50, 4  ;;  %v1673_v57 = vsel %vm12315_vm13, %v1671_v52, %v1672_v45  ;;  %3285 = vmatprep.mubr.bf16.mxu1 %v12769_v46  ;;  %v12797_v6 = vld [vmem:[#allocation3 + $0x90] ss:$12 sps:$4 sm:$0xff]   ;;  %v12799_v7 = vld [vmem:[#allocation3 + $0x168] ss:$12 sps:$4 sm:$0xff]   ;;  %v11687_v31 = vld [vmem:[%s14985_s1 + $0x1b8] sm:$0xff]   ;;  %v12831_v51 = vpop.f32.mrf.mxu1 }
 0x10b   : > { %v1449_v58 = vsel %vm12331_vm14, %v1444_v41, %v1448_v39  ;;  %1830 = vst [vmem:[#allocation3 + $0x14] sm:$0xf] %v1673_v57  ;;  %v12076_v18 = vld [vmem:[#allocation3 + $0xac] ss:$12 sps:$4 sm:$0xff]   ;;  %v12077_v27 = vld [vmem:[#allocation3 + $0xa8] ss:$12 sps:$4 sm:$0xff]  }
 0x10c   : > { %v1459_v59 = vsel %vm12331_vm14, %v1454_v56, %v1458_v48  ;;  %1552 = vst [vmem:[#allocation3 + $0x184] sm:$0xf] %v1449_v58  ;;  %v11683_v21 = vld [vmem:[#allocation3 + $0x180] ss:$12 sps:$4 sm:$0xff]   ;;  %v11689_v39 = vld [vmem:[#allocation3 + $0x38] ss:$12 sps:$4 sm:$0xff]  }
 0x10d   : > { %1553 = vst [vmem:[#allocation3 + $0x190] sm:$0xf] %v1459_v59  ;;  %v12789_v62 = vld [vmem:[#allocation3 + $0x16c] ss:$12 sps:$4 sm:$0xff]   ;;  %v10396_v24 = vpop.f32.mrf.mxu0  ;;  %v11694_v45 = vld [vmem:[%s14985_s1 + $0x1e8] sm:$0xff]   ;;  %v11703_v56 = vld [vmem:[%s14985_s1 + $0x1d8] sm:$0xff]  }
 0x10e   : > { %2628 = vmatmul.mubr.bf16.gmra.mxu0 %v12785_v60  ;;  %v11686_v30 = vld [vmem:[#allocation3 + $0x20] ss:$12 sps:$4 sm:$0xff]   ;;  %v11696_v49 = vld [vmem:[%s14985_s1 + $0x1a8] sm:$0xff]   ;;  %v11698_v5 = vld [vmem:[#allocation3 + $0x98] ss:$12 sps:$4 sm:$0xff]  }
 0x10f   : > { %2635 = vmatprep.mubr.bf16.mxu0 %v12789_v62  ;;  %v10397_v25 = vpop.f32.mrf.mxu0  ;;  %v11691_v50 = vld [vmem:[#allocation3 + $0x50] ss:$12 sps:$4 sm:$0xff]   ;;  %v11693_v48 = vld [vmem:[#allocation3 + $0x68] ss:$12 sps:$4 sm:$0xff]   ;;  %v11695_v58 = vld [vmem:[#allocation3 + $0x80] ss:$12 sps:$4 sm:$0xff]  }
 0x110   : > { %v10398_v19 = vadd.f32 %v10397_v25, %v10396_v24  ;;  %v11705_v59 = vld [vmem:[%s14985_s1 + $0x198] sm:$0xff]   ;;  %v11712_v12 = vld [vmem:[%s14985_s1 + $0x1c8] sm:$0xff]   ;;  %v11719_v24 = vld [vmem:[%s14985_s1 + $0x180] sm:$0xff]  }
 0x111   : > { %3286 = vmatmul.mubr.bf16.gmra.mxu1 %v12787_v61  ;;  %v10399_v29 = vpop.f32.mrf.mxu0  ;;  %v11700_v13 = vld [vmem:[#allocation3 + $0xb0] ss:$12 sps:$4 sm:$0xff]   ;;  %v11707_v25 = vld [vmem:[#allocation3 + $0xf8] ss:$12 sps:$4 sm:$0xff]  }
 0x112   : > { %3293 = vmatprep.mubr.bf16.mxu1 %v12791_v63  ;;  %v11684_v20 = vld [vmem:[#allocation3 + $0x8] ss:$12 sps:$4 sm:$0xff]   ;;  %v12813_v32 = vadd.f32 %v11226_v3, %v10398_v19  ;;  %v11230_v52 = vpop.f32.mrf.mxu1 }
 0x113   : > { %v10400_v34 = vpop.f32.mrf.mxu0  ;;  %v11752_v26 = vld [vmem:[#allocation3 + $0x13c] ss:$12 sps:$4 sm:$0xff]  }
 0x114   : > { %v11681_v10 = vld [vmem:[#allocation3 + $0x184] ss:$12 sps:$4 sm:$0xff]   ;;  %v10401_v40 = vadd.f32 %v10400_v34, %v10399_v29 }
 0x116   : > { %2636 = vmatmul.mubr.bf16.gmra.mxu0 %v12799_v7  ;;  %v12818_v42 = vadd.f32 %v11227_v44, %v10401_v40  ;;  %v1608_v44 = vld [vmem:[#allocation2 + $0xd0] sm:$0xf] }
 0x117   : > { %2643 = vmatprep.mubr.bf16.mxu0 %v11681_v10  ;;  %v2702_v10 = vpop.f32.mrf.mxu1 }
 0x119   : > { %3294 = vmatmul.mubr.bf16.gmra.mxu1 %v12797_v6 }
 0x11a   : > { %3301 = vmatprep.mubr.bf16.mxu1 %v12076_v18  ;;  %v11714_v18 = vld [vmem:[%s14985_s1 + $0x188] sm:$0xff]  }
 0x11e   : > { %2644 = vmatmul.mubr.bf16.gmra.mxu0 %v11683_v21  ;;  %v11717_v21 = vld [vmem:[%s14985_s1 + $0x1c0] sm:$0xff]  }
 0x11f   : > { %11272 = vmatprep.mubr.bf16.mxu0 %v11684_v20  ;;  %v11702_v20 = vld [vmem:[#allocation3 + $0xc8] ss:$12 sps:$4 sm:$0xff]  }
 0x121   : > { %3302 = vmatmul.mubr.bf16.gmra.mxu1 %v12077_v27  ;;  %v451_v27 = vld [vmem:[#allocation2 + $0xd4] sm:$0x1] }
 0x122   : > { %3309 = vmatprep.mubr.bf16.mxu1 %v12675_v0  ;;  %v11692_v0 = vld [vmem:[%s14985_s1 + $0x1b0] sm:$0xff]   ;;  %v452_v29 = vsel %vm12250_vm6, 0, %v451_v27 }
 0x123   : > { %453 = vst [vmem:[#allocation2 + $0xd4] sm:$0x1] %v452_v29 }
 0x125   : > { %v10402_v41 = vpop.f32.mrf.mxu0 }
 0x126   : > { %11273 = vmatmul.mubr.bf16.vlgmr.msra.gmra.mxu0 %v11686_v30  ;;  %v11231_v30 = vpop.f32.mrf.mxu1 }
 0x127   : > { %10647 = vmatpush3.bf16.msra.mxu0 %v11687_v31  ;;  %11276 = vmatprep.mubr.bf16.mxu0 %v11689_v39  ;;  %v10403_v57 = vpop.f32.mrf.mxu0  ;;  %v11709_v39 = vld [vmem:[#allocation3 + $0x110] ss:$12 sps:$4 sm:$0xff]  }
 0x128   : > { %10648 = vmatprep.subr.bf16.mxu0 %v11690_v33  ;;  %v10404_v3 = vadd.f32 %v10403_v57, %v10402_v41  ;;  %v395_v33 = vld [vmem:[#allocation2 + $0xcc] sm:$0x1] }
 0x129   : > { %3310 = vmatmul.mubr.bf16.gmra.mxu1 %v12677_v2  ;;  %v11699_v2 = vld [vmem:[%s14985_s1 + $0x1e0] sm:$0xff]   ;;  %v396_v34 = vsel %vm12238_vm4, 0, %v395_v33 }
 0x12a   : > { %3317 = vmatprep.mubr.bf16.mxu1 %v12690_v53  ;;  %v11701_v53 = vld [vmem:[%s14985_s1 + $0x1a0] sm:$0xff]   ;;  %v12850_v11 = vadd.f32 %v10404_v3, %v2702_v10  ;;  %397 = vst [vmem:[#allocation2 + $0xcc] sm:$0x1] %v396_v34  ;;  %v1048_v29 = vld [vmem:[#allocation2 + $0xd4] sm:$0x1] }
 0x12b   : > { %10649 = vmatpush3.bf16.msra.mxu0 %v11692_v0  ;;  %v11711_v0 = vld [vmem:[#allocation3 + $0x128] ss:$12 sps:$4 sm:$0xff]   ;;  %v11713_v10 = vld [vmem:[#allocation3 + $0x140] ss:$12 sps:$4 sm:$0xff]  }
 0x12c   : > { %10650 = vmatprep.subr.bf16.mxu0 %v11694_v45 }
 0x12e   : > { %11277 = vmatmul.mubr.bf16.gmra.mxu0 %v11691_v50 }
 0x12f   : > { %11280 = vmatprep.mubr.bf16.mxu0 %v11693_v48  ;;  %10651 = vmatpush3.bf16.msra.mxu0 %v11696_v49  ;;  %v1788_v49 = vrot.slane %v1608_v44, 5  ;;  %v1607_v48 = vld [vmem:[#allocation2 + $0xcc] sm:$0xe] }
 0x130   : > { %10652 = vmatprep.subr.bf16.mxu0 %v11699_v2  ;;  %v1609_v2 = vld [vmem:[#allocation2 + $0xd4] sm:$0x1]  ;;  %v9485_v41 = vrot.slane %v1607_v48, 9 }
 0x131   : > { %3318 = vmatmul.mubr.bf16.gmra.mxu1 %v12692_v55  ;;  %v11708_v55 = vld [vmem:[%s14985_s1 + $0x1d0] sm:$0xff]   ;;  %v1791_v57 = vrot.slane %v1609_v2, 5 }
 0x132   : > { %3325 = vmatprep.mubr.bf16.mxu1 %v12713_v36  ;;  %v11710_v36 = vld [vmem:[%s14985_s1 + $0x190] sm:$0xff]  }
 0x133   : > { %10653 = vmatpush3.bf16.msra.mxu0 %v11701_v53 }
 0x134   : > { %10654 = vmatprep.subr.bf16.mxu0 %v11703_v56  ;;  %v1790_v56 = vrot.slane %v1788_v49, 4 }
 0x136   : > { %11281 = vmatmul.mubr.bf16.gmra.mxu0 %v11695_v58 }
 0x137   : > { %11284 = vmatprep.mubr.bf16.mxu0 %v11698_v5  ;;  %10655 = vmatpush3.bf16.msra.mxu0 %v11705_v59  ;;  %v1792_v59 = vsel %vm12315_vm13, %v1790_v56, %v1791_v57  ;;  %v1046_v5 = vld [vmem:[#allocation2 + $0xcc] sm:$0xf]  ;;  %v11721_v57 = vld [vmem:[#allocation3 + $0x50] ss:$12 sps:$4 sm:$0xff]  }
 0x138   : > { %10656 = vmatprep.subr.bf16.mxu0 %v11708_v55  ;;  %1864 = vst [vmem:[#allocation3 + $0x1ac] sm:$0xf] %v1792_v59  ;;  %v1047_v55 = vld [vmem:[#allocation2 + $0xd0] sm:$0xf]  ;;  %v12079_v59 = vld [vmem:[#allocation3 + $0x30] ss:$12 sps:$4 sm:$0xff]  }
 0x139   : > { %3326 = vmatmul.mubr.bf16.gmra.mxu1 %v12715_v37  ;;  %v12869_v37 = vpop.f32.mrf.mxu0 }
 0x13a   : > { %3333 = vmatprep.mubr.bf16.mxu1 %v12729_v8  ;;  %v11704_v8 = vld [vmem:[#allocation3 + $0xe0] ss:$12 sps:$4 sm:$0xff]  }
 0x13b   : > { %10657 = vmatpush3.bf16.msra.mxu0 %v11710_v36  ;;  %v12873_v19 = vpop.f32.mrf.mxu0  ;;  %v1461_v36 = vshrl.u32 %v1046_v5, 16 }
 0x13c   : > { %10658 = vmatprep.subr.bf16.mxu0 %v11712_v12  ;;  %v1464_v12 = vshll.u32 %v1046_v5, 16  ;;  %v12080_v5 = vld [vmem:[#allocation3 + $0x4c] ss:$12 sps:$4 sm:$0xff]  }
 0x13e   : > { %11285 = vmatmul.mubr.bf16.gmra.mxu0 %v11700_v13  ;;  %v1470_v13 = vshll.u32 %v1047_v55, 16 }
 0x13f   : > { %11288 = vmatprep.mubr.bf16.mxu0 %v11702_v20  ;;  %10659 = vmatpush3.bf16.msra.mxu0 %v11714_v18  ;;  %v1474_v18 = vshrl.u32 %v1047_v55, 16  ;;  %v11716_v20 = vld [vmem:[#allocation3 + $0x158] ss:$12 sps:$4 sm:$0xff]  }
 0x140   : > { %10660 = vmatprep.subr.bf16.mxu0 %v11717_v21  ;;  %v10408_v31 = vpop.f32.mrf.mxu0  ;;  %v1463_v21 = vrot.slane %v1461_v36, 4  ;;  %v11723_v36 = vld [vmem:[#allocation3 + $0x80] ss:$12 sps:$4 sm:$0xff]  }
 0x141   : > { %3334 = vmatmul.mubr.bf16.gmra.mxu1 %v12731_v9  ;;  %v12878_v9 = vpop.f32.mrf.mxu1 }
 0x142   : > { %3341 = vmatprep.mubr.bf16.mxu1 %v12742_v38  ;;  %v10409_v38 = vpop.f32.mrf.mxu0 }
 0x143   : > { %10661 = vmatpush3.bf16.msra.mxu0 %v11719_v24  ;;  %v10410_v40 = vadd.f32 %v10409_v38, %v10408_v31  ;;  %v1466_v24 = vrot.slane %v1464_v12, 5  ;;  %v1480_v31 = vshll.u32 %v1048_v29, 16  ;;  %v11729_v29 = vld [vmem:[#allocation3 + $0xc8] ss:$12 sps:$4 sm:$0xff]  }
 0x144   : > { %v10411_v45 = vpop.f32.mrf.mxu0 }
 0x145   : > { %v12883_v50 = vadd.f32 %v11230_v52, %v10410_v40  ;;  %v1482_v38 = vrot.slane %v1480_v31, 5  ;;  %v958_v40 = vld [vmem:[#allocation2 + $0xd0] sm:$0xf] }
 0x146   : > { %11289 = vmatmul.mubr.bf16.gmra.mxu0 %v11704_v8  ;;  %v10412_v53 = vpop.f32.mrf.mxu0  ;;  %v1472_v8 = vrot.slane %v1470_v13, 5  ;;  %994 = vst [vmem:[#allocation3 + $0x1a4] sm:$0xf] %v958_v40  ;;  %v12081_v13 = vld [vmem:[#allocation3 + $0x48] ss:$12 sps:$4 sm:$0xff]  }
 0x147   : > { %11292 = vmatprep.mubr.bf16.mxu0 %v11707_v25  ;;  %v10413_v58 = vadd.f32 %v10412_v53, %v10411_v45  ;;  %v1476_v25 = vrot.slane %v1474_v18, 4  ;;  %v11718_v45 = vld [vmem:[#allocation3 + $0x170] ss:$12 sps:$4 sm:$0xff]   ;;  %v12078_v53 = vld [vmem:[#allocation3 + $0x34] ss:$12 sps:$4 sm:$0xff]  }
 0x148   : > { %v12082_v18 = vld [vmem:[#allocation3 + $0x64] ss:$12 sps:$4 sm:$0xff]   ;;  %v11730_v40 = vld [vmem:[#allocation3 + $0xe0] ss:$12 sps:$4 sm:$0xff]  }
 0x149   : > { %3342 = vmatmul.mubr.bf16.gmra.mxu1 %v12744_v35  ;;  %v12885_v35 = vpop.f32.mrf.mxu1  ;;  %v12891_v3 = vadd.f32 %v11231_v30, %v10413_v58  ;;  %v1467_v30 = vor.u32 %v1466_v24, %v1463_v21  ;;  %v11722_v58 = vld [vmem:[#allocation3 + $0x68] ss:$12 sps:$4 sm:$0xff]  }
 0x14a   : > { %3349 = vmatprep.mubr.bf16.mxu1 %v12755_v4  ;;  %v1789_v4 = vsel %vm12315_vm13, %v9485_v41, %v1788_v49  ;;  %v11720_v49 = vld [vmem:[#allocation3 + $0x38] ss:$12 sps:$4 sm:$0xff]  }
 0x14b   : > { %1863 = vst [vmem:[#allocation3 + $0x1a0] sm:$0xf] %v1789_v4  ;;  %v2718_v52 = vpop.f32.mrf.mxu1  ;;  %v1468_v33 = vrot.slane %v1467_v30, 4 }
 0x14d   : > { %v12895_v27 = vpop.f32.mrf.mxu1  ;;  %v1473_v44 = vsel %vm12331_vm14, %v1468_v33, %v1472_v8 }
 0x14e   : > { %11293 = vmatmul.mubr.bf16.gmra.mxu0 %v11709_v39  ;;  %v957_v39 = vld [vmem:[#allocation2 + $0xcc] sm:$0xf]  ;;  %1554 = vst [vmem:[#allocation3 + $0x19c] sm:$0xf] %v1473_v44  ;;  %v11737_v44 = vld [vmem:[#allocation3 + $0xf8] ss:$12 sps:$4 sm:$0xff]  }
 0x14f   : > { %11296 = vmatprep.mubr.bf16.mxu0 %v11711_v0  ;;  %v12898_v34 = vpop.f32.mrf.mxu1  ;;  %993 = vst [vmem:[#allocation3 + $0x198] sm:$0xf] %v957_v39 }
 0x151   : > { %3350 = vmatmul.mubr.bf16.gmra.mxu1 %v12761_v14  ;;  %v1477_v14 = vor.u32 %v1476_v25, %v1472_v8  ;;  %v11725_v8 = vld [vmem:[#allocation3 + $0xb0] ss:$12 sps:$4 sm:$0xff]  }
 0x152   : > { %3357 = vmatprep.mubr.bf16.mxu1 %v12771_v47 }
 0x153   : > { %v1478_v47 = vrot.slane %v1477_v14, 4 }
 0x155   : > { %v1483_v0 = vsel %vm12331_vm14, %v1478_v47, %v1482_v38 }
 0x156   : > { %11297 = vmatmul.mubr.bf16.gmra.mxu0 %v11713_v10  ;;  %1555 = vst [vmem:[#allocation3 + $0x1a8] sm:$0xf] %v1483_v0  ;;  %v10414_v48 = vpop.f32.mrf.mxu0 }
 0x157   : > { %11300 = vmatprep.mubr.bf16.mxu0 %v11716_v20 }
 0x158   : > { %v10415_v2 = vpop.f32.mrf.mxu0 }
 0x159   : > { %3358 = vmatmul.mubr.bf16.gmra.mxu1 %v12785_v60  ;;  %v12905_v60 = vpop.f32.mrf.mxu1 }
 0x15a   : > { %3365 = vmatprep.mubr.bf16.mxu1 %v12789_v62  ;;  %v10416_v62 = vadd.f32 %v10415_v2, %v10414_v48  ;;  %v12912_v55 = vpop.f32.mrf.mxu0 }
 0x15b   : > { %v2734_v41 = vpop.f32.mrf.mxu1 }
 0x15c   : > { %v12908_v56 = vadd.f32 %v10416_v62, %v2718_v52  ;;  %v12916_v12 = vpop.f32.mrf.mxu0  ;;  %v11738_v62 = vld [vmem:[#allocation3 + $0x110] ss:$12 sps:$4 sm:$0xff]  }
 0x15d   : > { %v12910_v4 = vpop.f32.mrf.mxu1 }
 0x15e   : > { %11301 = vmatmul.mubr.bf16.gmra.mxu0 %v11718_v45 }
 0x15f   : > { %4081 = vmatprep.mubr.bf16.mxu0 %v12078_v53  ;;  %v12914_v10 = vpop.f32.mrf.mxu1 }
 0x161   : > { %3366 = vmatmul.mubr.bf16.gmra.mxu1 %v12799_v7  ;;  %v11724_v7 = vld [vmem:[#allocation3 + $0x98] ss:$12 sps:$4 sm:$0xff]   ;;  %v12918_v52 = vpop.f32.mrf.mxu1 }
 0x162   : > { %11320 = vmatprep.mubr.bf16.mxu1 %v11720_v49  ;;  %v11728_v49 = vld [vmem:[#allocation3 + $0xac] ss:$12 sps:$4 sm:$0xff]  }
 0x163   : > { %v12920_v21 = vpop.f32.mrf.mxu1 }
 0x165   : > { %v12922_v14 = vpop.f32.mrf.mxu1 }
 0x166   : > { %4082 = vmatmul.mubr.bf16.vlgmr.msra.gmra.mxu0 %v12079_v59  ;;  %v11733_v59 = vld [vmem:[#allocation3 + $0xc4] ss:$12 sps:$4 sm:$0xff]  }
 0x167   : > { %4089 = vmatprep.mubr.bf16.mxu0 %v12080_v5  ;;  %v12929_v38 = vpop.f32.mrf.mxu1 }
 0x169   : > { %11321 = vmatmul.mubr.bf16.vlgmr.msra.gmra.mxu1 %v11721_v57  ;;  %v11745_v57 = vld [vmem:[#allocation3 + $0x128] ss:$12 sps:$4 sm:$0xff]  }
 0x16a   : > { %11324 = vmatprep.mubr.bf16.mxu1 %v11722_v58  ;;  %v11726_v58 = vld [vmem:[#allocation3 + $0xa8] ss:$12 sps:$4 sm:$0xff]  }
 0x16e   : > { %4090 = vmatmul.mubr.bf16.gmra.mxu0 %v12081_v13  ;;  %v10420_v20 = vpop.f32.mrf.mxu0  ;;  %v11736_v13 = vld [vmem:[#allocation3 + $0xdc] ss:$12 sps:$4 sm:$0xff]  }
 0x16f   : > { %4097 = vmatprep.mubr.bf16.mxu0 %v12082_v18  ;;  %v12934_v0 = vpop.f32.mrf.mxu1 }
 0x170   : > { %v10421_v24 = vpop.f32.mrf.mxu0 }
 0x171   : > { %11325 = vmatmul.mubr.bf16.gmra.mxu1 %v11723_v36  ;;  %v10422_v25 = vadd.f32 %v10421_v24, %v10420_v20  ;;  %v11746_v36 = vld [vmem:[#allocation3 + $0x140] ss:$12 sps:$4 sm:$0xff]   ;;  %v11754_v20 = vld [vmem:[#allocation3 + $0x170] ss:$12 sps:$4 sm:$0xff]   ;;  %v11761_v24 = vld [vmem:[#allocation3 + $0x188] ss:$12 sps:$4 sm:$0xff]  }
 0x172   : > { %11328 = vmatprep.mubr.bf16.mxu1 %v11724_v7  ;;  %v10423_v30 = vpop.f32.mrf.mxu0  ;;  %v11753_v7 = vld [vmem:[#allocation3 + $0x158] ss:$12 sps:$4 sm:$0xff]  }
 0x173   : > { %v12925_v31 = vadd.f32 %v12885_v35, %v10422_v25 }
 0x174   : > { %v10424_v33 = vpop.f32.mrf.mxu0 }
 0x175   : > { %v10425_v47 = vadd.f32 %v10424_v33, %v10423_v30  ;;  %v11734_v33 = vld [vmem:[#allocation3 + $0xd8] ss:$12 sps:$4 sm:$0xff]  }
 0x176   : > { %4098 = vmatmul.mubr.bf16.gmra.mxu0 %v12763_v22  ;;  %v12938_v22 = vpop.f32.mrf.mxu1 }
 0x177   : > { %4105 = vmatprep.mubr.bf16.mxu0 %v12769_v46  ;;  %v12932_v39 = vadd.f32 %v12895_v27, %v10425_v47 }
 0x178   : > { %v12940_v27 = vpop.f32.mrf.mxu1 }
 0x179   : > { %11329 = vmatmul.mubr.bf16.gmra.mxu1 %v11725_v8 }
 0x17a   : > { %11332 = vmatprep.mubr.bf16.mxu1 %v11729_v29 }
 0x17e   : > { %4106 = vmatmul.mubr.bf16.gmra.mxu0 %v12787_v61  ;;  %v10426_v35 = vpop.f32.mrf.mxu0 }
 0x17f   : > { %4113 = vmatprep.mubr.bf16.mxu0 %v12791_v63  ;;  %v12947_v63 = vpop.f32.mrf.mxu1 }
 0x180   : > { %v10427_v46 = vpop.f32.mrf.mxu0 }
 0x181   : > { %11333 = vmatmul.mubr.bf16.gmra.mxu1 %v11730_v40  ;;  %v10428_v45 = vadd.f32 %v10427_v46, %v10426_v35  ;;  %v11741_v40 = vld [vmem:[#allocation3 + $0xf4] ss:$12 sps:$4 sm:$0xff]  }
 0x182   : > { %11336 = vmatprep.mubr.bf16.mxu1 %v11737_v44  ;;  %v10429_v48 = vpop.f32.mrf.mxu0  ;;  %v11762_v46 = vld [vmem:[#allocation3 + $0x1a0] ss:$12 sps:$4 sm:$0xff]  }
 0x183   : > { %v12942_v2 = vadd.f32 %v10428_v45, %v2734_v41 }
 0x184   : > { %v10430_v53 = vpop.f32.mrf.mxu0 }
 0x185   : > { %v12945_v61 = vadd.f32 %v10430_v53, %v10429_v48 }
 0x186   : > { %4114 = vmatmul.mubr.bf16.gmra.mxu0 %v12797_v6  ;;  %v11731_v6 = vld [vmem:[#allocation3 + $0xc0] ss:$12 sps:$4 sm:$0xff]  }
 0x187   : > { %4121 = vmatprep.mubr.bf16.mxu0 %v11728_v49  ;;  %v12949_v5 = vpop.f32.mrf.mxu1 }
 0x189   : > { %11337 = vmatmul.mubr.bf16.gmra.mxu1 %v11738_v62  ;;  %v12951_v41 = vpop.f32.mrf.mxu1  ;;  %v11739_v62 = vld [vmem:[#allocation3 + $0xf0] ss:$12 sps:$4 sm:$0xff]  }
 0x18a   : > { %11340 = vmatprep.mubr.bf16.mxu1 %v11745_v57  ;;  %v11744_v57 = vld [vmem:[#allocation3 + $0x10c] ss:$12 sps:$4 sm:$0xff]  }
 0x18b   : > { %v12953_v18 = vpop.f32.mrf.mxu1 }
 0x18d   : > { %v12955_v25 = vpop.f32.mrf.mxu1 }
 0x18e   : > { %4122 = vmatmul.mubr.bf16.gmra.mxu0 %v11726_v58 }
 0x18f   : > { %4129 = vmatprep.mubr.bf16.mxu0 %v11733_v59 }
 0x191   : > { %11341 = vmatmul.mubr.bf16.gmra.mxu1 %v11746_v36 }
 0x192   : > { %11344 = vmatprep.mubr.bf16.mxu1 %v11753_v7 }
 0x196   : > { %4130 = vmatmul.mubr.bf16.gmra.mxu0 %v11731_v6 }
 0x197   : > { %v10432_v8 = vpop.f32.mrf.mxu0  ;;  %4137 = vmatprep.mubr.bf16.mxu0 %v11736_v13 }
 0x199   : > { %v10433_v29 = vpop.f32.mrf.mxu0  ;;  %11345 = vmatmul.mubr.bf16.gmra.mxu1 %v11754_v20 }
 0x19a   : > { %v12957_v30 = vadd.f32 %v10433_v29, %v10432_v8  ;;  %11348 = vmatprep.mubr.bf16.mxu1 %v11761_v24  ;;  %v11742_v8 = vld [vmem:[#allocation3 + $0x108] ss:$12 sps:$4 sm:$0xff]   ;;  %v10395_v29 = vadd.f32 %v12807_v17, %v12801_v15 }
 0x19b   : > { %v10435_v47 = vpop.f32.mrf.mxu0 }
 0x19d   : > { %v10436_v35 = vpop.f32.mrf.mxu0 }
 0x19e   : > { %v12959_v44 = vpop.f32.mrf.mxu1  ;;  %v12961_v45 = vadd.f32 %v10436_v35, %v10435_v47  ;;  %4138 = vmatmul.mubr.bf16.gmra.mxu0 %v11734_v33  ;;  %v11749_v47 = vld [vmem:[#allocation3 + $0x124] ss:$12 sps:$4 sm:$0xff]  }
 0x19f   : > { %4145 = vmatprep.mubr.bf16.mxu0 %v11741_v40 }
 0x1a0   : > { %v12963_v49 = vpop.f32.mrf.mxu1 }
 0x1a1   : > { %11349 = vmatmul.mubr.bf16.gmra.mxu1 %v11762_v46 }
 0x1a2   : > { %v12965_v48 = vpop.f32.mrf.mxu1 }
 0x1a3   : > { %15020 = vst [vmem:[#allocation11_spill] sm:$0xff] %v12965_v48 }
 0x1a4   : > { %v10438_v53 = vpop.f32.mrf.mxu0  ;;  %v12967_v58 = vpop.f32.mrf.mxu1 }
 0x1a6   : > { %v10439_v59 = vpop.f32.mrf.mxu0  ;;  %4146 = vmatmul.mubr.bf16.gmra.mxu0 %v11739_v62 }
 0x1a7   : > { %v12969_v36 = vadd.f32 %v10439_v59, %v10438_v53  ;;  %4153 = vmatprep.mubr.bf16.mxu0 %v11744_v57  ;;  %v2690_v53 = vadd.f32 %v10395_v29, %v12831_v51 }
 0x1a8   : > { %v10441_v7 = vpop.f32.mrf.mxu0 }
 0x1a9   : > { %v10526_v6 = vpop.f32.mrf.mxu1 }
 0x1aa   : > { %v10442_v13 = vpop.f32.mrf.mxu0 }
 0x1ab   : > { %v10527_v20 = vpop.f32.mrf.mxu1  ;;  %v12971_v24 = vadd.f32 %v10442_v13, %v10441_v7 }
 0x1ac   : > { %v10528_v33 = vadd.f32 %v10527_v20, %v10526_v6  ;;  %v11747_v6 = vld [vmem:[#allocation3 + $0x120] ss:$12 sps:$4 sm:$0xff]  }
 0x1ad   : > { %v10529_v40 = vpop.f32.mrf.mxu1 }
 0x1ae   : > { %v12976_v35 = vadd.f32 %v10528_v33, %v12803_v16  ;;  %v10444_v62 = vpop.f32.mrf.mxu0  ;;  %4154 = vmatmul.mubr.bf16.gmra.mxu0 %v11742_v8 }
 0x1af   : > { %v10530_v46 = vpop.f32.mrf.mxu1  ;;  %4161 = vmatprep.mubr.bf16.mxu0 %v11749_v47 }
 0x1b0   : > { %v10531_v57 = vadd.f32 %v10530_v46, %v10529_v40  ;;  %v10445_v7 = vpop.f32.mrf.mxu0 }
 0x1b1   : > { %v10532_v59 = vpop.f32.mrf.mxu1  ;;  %v12979_v13 = vadd.f32 %v10445_v7, %v10444_v62  ;;  %v11750_v7 = vld [vmem:[#allocation3 + $0x138] ss:$12 sps:$4 sm:$0xff]  }
 0x1b2   : > { %v12981_v1 = vadd.f32 %v10531_v57, %v2690_v53  ;;  %v10447_v17 = vpop.f32.mrf.mxu0 }
 0x1b3   : > { %v10533_v15 = vpop.f32.mrf.mxu1 }
 0x1b4   : > { %15021 = vst [vmem:[#allocation12_spill] sm:$0xff] %v12981_v1  ;;  %v10534_v20 = vadd.f32 %v10533_v15, %v10532_v59  ;;  %v10448_v33 = vpop.f32.mrf.mxu0  ;;  %v10407_v15 = vadd.f32 %v12873_v19, %v12869_v37 }
 0x1b5   : > { %v10535_v16 = vpop.f32.mrf.mxu1  ;;  %v12983_v43 = vadd.f32 %v10448_v33, %v10447_v17  ;;  %v11757_v17 = vld [vmem:[#allocation3 + $0x154] ss:$12 sps:$4 sm:$0xff]  }
 0x1b6   : > { %v12986_v8 = vadd.f32 %v10534_v20, %v12813_v32  ;;  %v10450_v29 = vpop.f32.mrf.mxu0  ;;  %4162 = vmatmul.mubr.bf16.gmra.mxu0 %v11747_v6 }
 0x1b7   : > { %v10536_v51 = vpop.f32.mrf.mxu1  ;;  %4169 = vmatprep.mubr.bf16.mxu0 %v11752_v26 }
 0x1b8   : > { %v10537_v47 = vadd.f32 %v10536_v51, %v10535_v16  ;;  %v10451_v46 = vpop.f32.mrf.mxu0 }
 0x1b9   : > { %v10538_v40 = vpop.f32.mrf.mxu1  ;;  %v12988_v62 = vadd.f32 %v10451_v46, %v10450_v29 }
 0x1ba   : > { %v12991_v53 = vadd.f32 %v10537_v47, %v12818_v42  ;;  %v10453_v59 = vpop.f32.mrf.mxu0  ;;  %v2706_v42 = vadd.f32 %v10407_v15, %v12878_v9 }
 0x1bb   : > { %v10539_v57 = vpop.f32.mrf.mxu1 }
 0x1bc   : > { %v10540_v32 = vadd.f32 %v10539_v57, %v10538_v40  ;;  %v10454_v33 = vpop.f32.mrf.mxu0  ;;  %v11755_v57 = vld [vmem:[#allocation3 + $0x150] ss:$12 sps:$4 sm:$0xff]  }
 0x1bd   : > { %v10541_v20 = vpop.f32.mrf.mxu1  ;;  %v12995_v6 = vadd.f32 %v10454_v33, %v10453_v59  ;;  %v11760_v33 = vld [vmem:[#allocation3 + $0x16c] ss:$12 sps:$4 sm:$0xff]  }
 0x1be   : > { %v12998_v26 = vadd.f32 %v10540_v32, %v12850_v11  ;;  %v10456_v51 = vpop.f32.mrf.mxu0  ;;  %4170 = vmatmul.mubr.bf16.gmra.mxu0 %v11750_v7 }
 0x1bf   : > { %v10542_v16 = vpop.f32.mrf.mxu1  ;;  %4177 = vmatprep.mubr.bf16.mxu0 %v11757_v17 }
 0x1c0   : > { %v10543_v29 = vadd.f32 %v10542_v16, %v10541_v20  ;;  %v10457_v46 = vpop.f32.mrf.mxu0 }
 0x1c1   : > { %v10544_v47 = vpop.f32.mrf.mxu1  ;;  %v13001_v54 = vadd.f32 %v10457_v46, %v10456_v51  ;;  %v11758_v46 = vld [vmem:[#allocation3 + $0x168] ss:$12 sps:$4 sm:$0xff]  }
 0x1c2   : > { %v13003_v37 = vadd.f32 %v10543_v29, %v2706_v42  ;;  %v10459_v40 = vpop.f32.mrf.mxu0 }
 0x1c3   : > { %v10545_v19 = vpop.f32.mrf.mxu1 }
 0x1c4   : > { %15022 = vst [vmem:[#allocation13_spill] sm:$0xff] %v13003_v37  ;;  %v10546_v59 = vadd.f32 %v10545_v19, %v10544_v47  ;;  %v10460_v32 = vpop.f32.mrf.mxu0  ;;  %v10419_v19 = vadd.f32 %v12916_v12, %v12912_v55 }
 0x1c5   : > { %v10547_v11 = vpop.f32.mrf.mxu1  ;;  %v13005_v1 = vadd.f32 %v10460_v32, %v10459_v40 }
 0x1c6   : > { %v13008_v7 = vadd.f32 %v10546_v59, %v12883_v50  ;;  %v10462_v15 = vpop.f32.mrf.mxu0  ;;  %4178 = vmatmul.mubr.bf16.gmra.mxu0 %v11755_v57  ;;  %v11765_v57 = vld [vmem:[#allocation3 + $0x184] ss:$12 sps:$4 sm:$0xff]   ;;  %v2722_v55 = vadd.f32 %v10419_v19, %v12898_v34 }
 0x1c7   : > { %v10548_v9 = vpop.f32.mrf.mxu1  ;;  %4185 = vmatprep.mubr.bf16.mxu0 %v11760_v33 }
 0x1c8   : > { %v10549_v17 = vadd.f32 %v10548_v9, %v10547_v11  ;;  %v10463_v16 = vpop.f32.mrf.mxu0 }
 0x1c9   : > { %v10550_v20 = vpop.f32.mrf.mxu1  ;;  %v10464_v51 = vadd.f32 %v10463_v16, %v10462_v15 }
 0x1ca   : > { %v13011_v42 = vadd.f32 %v10549_v17, %v12891_v3  ;;  %v13013_v47 = vpop.f32.mrf.mxu0  ;;  %v4740_v3 = vld [vmem:[#allocation4 + $0xc] sm:$0x1] }
 0x1cb   : > { %v10551_v29 = vpop.f32.mrf.mxu1  ;;  %v13018_v40 = vadd.f32 %v10464_v51, %v12951_v41  ;;  %v4741_v15 = vsel %vm12238_vm4, 0, %v4740_v3  ;;  %v4794_v3 = vld [vmem:[#allocation4 + $0x14] sm:$0x1] }
 0x1cc   : > { %v10552_v50 = vadd.f32 %v10551_v29, %v10550_v20  ;;  %v13020_v33 = vpop.f32.mrf.mxu0  ;;  %4742 = vst [vmem:[#allocation4 + $0xc] sm:$0x1] %v4741_v15  ;;  %v11763_v29 = vld [vmem:[#allocation3 + $0x180] ss:$12 sps:$4 sm:$0xff]   ;;  %v4795_v15 = vsel %vm12250_vm6, 0, %v4794_v3 }
 0x1cd   : > { %v10553_v59 = vpop.f32.mrf.mxu1  ;;  %4796 = vst [vmem:[#allocation4 + $0x14] sm:$0x1] %v4795_v15 }
 0x1ce   : > { %v13023_v11 = vadd.f32 %v10552_v50, %v12908_v56  ;;  %v10468_v9 = vpop.f32.mrf.mxu0  ;;  %4186 = vmatmul.mubr.bf16.gmra.mxu0 %v11758_v46  ;;  %v11768_v46 = vld [vmem:[#allocation3 + $0x19c] ss:$12 sps:$4 sm:$0xff]  }
 0x1cf   : > { %v10554_v32 = vpop.f32.mrf.mxu1  ;;  %4193 = vmatprep.mubr.bf16.mxu0 %v11765_v57 }
 0x1d0   : > { %v10555_v12 = vadd.f32 %v10554_v32, %v10553_v59  ;;  %v10469_v17 = vpop.f32.mrf.mxu0 }
 0x1d1   : > { %v10556_v41 = vpop.f32.mrf.mxu1  ;;  %v13028_v20 = vadd.f32 %v10469_v17, %v10468_v9 }
 0x1d2   : > { %v13030_v16 = vadd.f32 %v10555_v12, %v2722_v55  ;;  %v13032_v51 = vpop.f32.mrf.mxu0 }
 0x1d3   : > { %v10557_v56 = vpop.f32.mrf.mxu1 }
 0x1d4   : > { %v10558_v50 = vadd.f32 %v10557_v56, %v10556_v41  ;;  %v13034_v48 = vpop.f32.mrf.mxu0 }
 0x1d5   : > { %v10559_v37 = vpop.f32.mrf.mxu1 }
 0x1d6   : > { %v13037_v34 = vadd.f32 %v10558_v50, %v12925_v31  ;;  %v10474_v57 = vpop.f32.mrf.mxu0  ;;  %4194 = vmatmul.mubr.bf16.gmra.mxu0 %v11763_v29  ;;  %v11766_v31 = vld [vmem:[#allocation3 + $0x198] ss:$12 sps:$4 sm:$0xff]  }
 0x1d7   : > { %v10560_v19 = vpop.f32.mrf.mxu1  ;;  %4201 = vmatprep.mubr.bf16.mxu0 %v11768_v46  ;;  %v11770_v50 = vld [vmem:[%s14987_s3 + $0x138] sm:$0xff]  }
 0x1d8   : > { %v10561_v59 = vadd.f32 %v10560_v19, %v10559_v37  ;;  %v10475_v9 = vpop.f32.mrf.mxu0  ;;  %v4743_v37 = vld [vmem:[#allocation4 + $0x18] sm:$0x1]  ;;  %10782 = vmatprep.subr.bf16.mxu1 %v11770_v50 }
 0x1d9   : > { %v10562_v32 = vpop.f32.mrf.mxu1  ;;  %v10476_v55 = vadd.f32 %v10475_v9, %v10474_v57  ;;  %v11771_v57 = vld [vmem:[%s14987_s3 + $0xf8] sm:$0xff]   ;;  %v2738_v9 = vadd.f32 %v12945_v61, %v12914_v10 }
 0x1da   : > { %v13042_v12 = vadd.f32 %v10561_v59, %v12932_v39  ;;  %v13044_v17 = vpop.f32.mrf.mxu0  ;;  %v4744_v39 = vsel %vm12238_vm4, 0, %v4743_v37  ;;  %10783 = vmatpush3.bf16.msra.mxu1 %v11771_v57  ;;  %v2743_v57 = vadd.f32 %v12905_v60, %v12957_v30 }
 0x1db   : > { %v10563_v41 = vpop.f32.mrf.mxu1  ;;  %v13047_v29 = vadd.f32 %v10476_v55, %v12963_v49  ;;  %4745 = vst [vmem:[#allocation4 + $0x18] sm:$0x1] %v4744_v39  ;;  %v4797_v55 = vld [vmem:[#allocation4 + $0x20] sm:$0x1] }
 0x1dc   : > { %v10564_v56 = vadd.f32 %v10563_v41, %v10562_v32  ;;  %v13052_v19 = vpop.f32.mrf.mxu0  ;;  %v11769_v32 = vld [vmem:[%s14987_s3 + $0x178] sm:$0xff]   ;;  %v4798_v37 = vsel %vm12250_vm6, 0, %v4797_v55  ;;  %v4746_v55 = vld [vmem:[#allocation4 + $0x24] sm:$0x1] }
 0x1dd   : > { %v10565_v46 = vpop.f32.mrf.mxu1  ;;  %11352 = vmatprep.subr.bf16.mxu0 %v11769_v32  ;;  %4799 = vst [vmem:[#allocation4 + $0x20] sm:$0x1] %v4798_v37 }
 0x1de   : > { %v13060_v59 = vadd.f32 %v10564_v56, %v12942_v2  ;;  %v10480_v3 = vpop.f32.mrf.mxu0  ;;  %4202 = vmatmul.mubr.bf16.gmra.mxu0 %v11766_v31  ;;  %v11772_v2 = vld [vmem:[%s14987_s3 + $0x130] sm:$0xff]  }
 0x1df   : > { %v10566_v49 = vpop.f32.mrf.mxu1  ;;  %v11773_v31 = vld [vmem:[%s14987_s3 + $0xf0] sm:$0xff]   ;;  %11353 = vmatpush3.bf16.msra.mxu0 %v11769_v32  ;;  %10784 = vmatprep.subr.bf16.mxu1 %v11772_v2  ;;  %v11776_v2 = vld [vmem:[%s14987_s3 + $0xe8] sm:$0xff]  }
 0x1e0   : > { %v10567_v15 = vadd.f32 %v10566_v49, %v10565_v46  ;;  %v10481_v56 = vpop.f32.mrf.mxu0  ;;  %10785 = vmatpush3.bf16.msra.mxu1 %v11773_v31  ;;  %v11774_v46 = vld [vmem:[%s14987_s3 + $0x170] sm:$0xff]  }
 0x1e1   : > { %v10568_v41 = vpop.f32.mrf.mxu1  ;;  %v13075_v50 = vadd.f32 %v10481_v56, %v10480_v3  ;;  %v11775_v3 = vld [vmem:[%s14987_s3 + $0x128] sm:$0xff]   ;;  %11354 = vmatprep.subr.bf16.mxu0 %v11774_v46 }
 0x1e2   : > { %v13077_v39 = vadd.f32 %v10567_v15, %v2738_v9  ;;  %v13079_v61 = vpop.f32.mrf.mxu0  ;;  %v4747_v15 = vsel %vm12238_vm4, 0, %v4746_v55  ;;  %10786 = vmatprep.subr.bf16.mxu1 %v11775_v3  ;;  %v11777_v55 = vld [vmem:[%s14987_s3 + $0x120] sm:$0xff]  }
 0x1e3   : > { %v10569_v10 = vpop.f32.mrf.mxu1  ;;  %4748 = vst [vmem:[#allocation4 + $0x24] sm:$0x1] %v4747_v15  ;;  %11355 = vmatpush3.bf16.msra.mxu0 %v11774_v46 }
 0x1e4   : > { %v10570_v49 = vadd.f32 %v10569_v10, %v10568_v41  ;;  %v13089_v32 = vpop.f32.mrf.mxu0  ;;  %10787 = vmatpush3.bf16.msra.mxu1 %v11776_v2  ;;  %v2746_v41 = vadd.f32 %v12910_v4, %v12961_v45  ;;  %v4800_v10 = vld [vmem:[#allocation4 + $0x2c] sm:$0x1]  ;;  %v11778_v4 = vld [vmem:[%s14987_s3 + $0xe0] sm:$0xff]   ;;  %v2751_v2 = vadd.f32 %v12969_v36, %v12920_v21  ;;  %v2754_v21 = vadd.f32 %v12971_v24, %v12929_v38 }
 0x1e5   : > { %v10571_v9 = vpop.f32.mrf.mxu1  ;;  %v4801_v46 = vsel %vm12250_vm6, 0, %v4800_v10  ;;  %10788 = vmatprep.subr.bf16.mxu1 %v11777_v55 }
 0x1e6   : > { %v13096_v56 = vadd.f32 %v10570_v49, %v2743_v57  ;;  %v11274_v30 = vpop.f32.mrf.mxu0  ;;  %4802 = vst [vmem:[#allocation4 + $0x2c] sm:$0x1] %v4801_v46 }
 0x1e7   : > { %v10572_v60 = vpop.f32.mrf.mxu1  ;;  %v13101_v31 = vadd.f32 %v11274_v30, %v12986_v8  ;;  %v4749_v30 = vld [vmem:[#allocation4 + $0x30] sm:$0x1] }
 0x1e8   : > { %v10573_v37 = vadd.f32 %v10572_v60, %v10571_v9  ;;  %v3408_v49 = vpop.f32.mrf.mxu0  ;;  %v11779_v9 = vld [vmem:[%s14987_s3 + $0x168] sm:$0xff]   ;;  %10789 = vmatpush3.bf16.msra.mxu1 %v11778_v4  ;;  %v4750_v10 = vsel %vm12238_vm4, 0, %v4749_v30  ;;  %v11780_v4 = vld [vmem:[%s14987_s3 + $0x118] sm:$0xff]  }
 0x1e9   : > { %v10574_v57 = vpop.f32.mrf.mxu1  ;;  %v13109_v3 = vadd.f32 %v3408_v49, %v12976_v35  ;;  %11356 = vmatprep.subr.bf16.mxu0 %v11779_v9  ;;  %4751 = vst [vmem:[#allocation4 + $0x30] sm:$0x1] %v4750_v10  ;;  %10790 = vmatprep.subr.bf16.mxu1 %v11780_v4  ;;  %v4752_v10 = vld [vmem:[#allocation4 + $0x3c] sm:$0x1] }
 0x1ea   : > { %v13111_v15 = vadd.f32 %v10573_v37, %v2746_v41  ;;  %v11275_v8 = vpop.f32.mrf.mxu0  ;;  %11357 = vmatpush3.bf16.msra.mxu0 %v11779_v9 }
 0x1eb   : > { %v10575_v45 = vpop.f32.mrf.mxu1  ;;  %v13122_v35 = vadd.f32 %v11275_v8, %v12991_v53 }
 0x1ec   : > { %v10576_v60 = vadd.f32 %v10575_v45, %v10574_v57  ;;  %v13124_v37 = vpop.f32.mrf.mxu0  ;;  %v4803_v57 = vld [vmem:[#allocation4 + $0x38] sm:$0x1] }
 0x1ed   : > { %v10577_v41 = vpop.f32.mrf.mxu1 }
 0x1ee   : > { %v13128_v55 = vadd.f32 %v10576_v60, %v2751_v2  ;;  %v11278_v46 = vpop.f32.mrf.mxu0  ;;  %v4804_v2 = vsel %vm12250_vm6, 0, %v4803_v57  ;;  %v2762_v57 = vadd.f32 %v12922_v14, %v12983_v43  ;;  %v11787_v43 = vld [vmem:[%s14987_s3 + $0x158] sm:$0xff]  }
 0x1ef   : > { %v10578_v49 = vpop.f32.mrf.mxu1  ;;  %v13133_v53 = vadd.f32 %v11278_v46, %v13008_v7  ;;  %4805 = vst [vmem:[#allocation4 + $0x38] sm:$0x1] %v4804_v2  ;;  %v2759_v7 = vadd.f32 %v12918_v52, %v12979_v13  ;;  %v11784_v52 = vld [vmem:[%s14987_s3 + $0x160] sm:$0xff]  }
 0x1f0   : > { %v10579_v36 = vadd.f32 %v10578_v49, %v10577_v41  ;;  %v3424_v8 = vpop.f32.mrf.mxu0  ;;  %v11781_v49 = vld [vmem:[%s14987_s3 + $0xd8] sm:$0xff]   ;;  %11358 = vmatprep.subr.bf16.mxu0 %v11784_v52 }
 0x1f1   : > { %v10580_v45 = vpop.f32.mrf.mxu1  ;;  %v13141_v9 = vadd.f32 %v3424_v8, %v12998_v26  ;;  %10791 = vmatpush3.bf16.msra.mxu1 %v11781_v49  ;;  %v4806_v8 = vld [vmem:[#allocation4 + $0x44] sm:$0x1]  ;;  %11359 = vmatpush3.bf16.msra.mxu0 %v11784_v52  ;;  %v2767_v49 = vadd.f32 %v12988_v62, %v12938_v22  ;;  %v11789_v62 = vld [vmem:[%s14987_s3 + $0x150] sm:$0xff]  }
 0x1f2   : > { %v13143_v60 = vadd.f32 %v10579_v36, %v2754_v21  ;;  %v11279_v24 = vpop.f32.mrf.mxu0  ;;  %v4753_v21 = vsel %vm12238_vm4, 0, %v4752_v10  ;;  %v11782_v10 = vld [vmem:[%s14987_s3 + $0x110] sm:$0xff]   ;;  %11360 = vmatprep.subr.bf16.mxu0 %v11787_v43 }
 0x1f3   : > { %v10581_v38 = vpop.f32.mrf.mxu1  ;;  %v13148_v41 = vadd.f32 %v11279_v24, %v13011_v42  ;;  %4754 = vst [vmem:[#allocation4 + $0x3c] sm:$0x1] %v4753_v21  ;;  %v4807_v24 = vsel %vm12250_vm6, 0, %v4806_v8  ;;  %v11783_v21 = vld [vmem:[%s14987_s3 + $0xd0] sm:$0xff]   ;;  %10792 = vmatprep.subr.bf16.mxu1 %v11782_v10  ;;  %v11785_v8 = vld [vmem:[%s14987_s3 + $0x108] sm:$0xff]  }
 0x1f4   : > { %v10582_v30 = vadd.f32 %v10581_v38, %v10580_v45  ;;  %v13153_v46 = vpop.f32.mrf.mxu0  ;;  %4808 = vst [vmem:[#allocation4 + $0x44] sm:$0x1] %v4807_v24 }
 0x1f5   : > { %v10583_v26 = vpop.f32.mrf.mxu1  ;;  %11361 = vmatpush3.bf16.msra.mxu0 %v11787_v43  ;;  %10793 = vmatpush3.bf16.msra.mxu1 %v11783_v21  ;;  %v11786_v43 = vld [vmem:[%s14987_s3 + $0xc8] sm:$0xff]   ;;  %v2775_v21 = vadd.f32 %v12934_v0, %v13001_v54 }
 0x1f6   : > { %v13157_v36 = vadd.f32 %v10582_v30, %v2759_v7  ;;  %v11282_v42 = vpop.f32.mrf.mxu0  ;;  %11362 = vmatprep.subr.bf16.mxu0 %v11789_v62  ;;  %10794 = vmatprep.subr.bf16.mxu1 %v11785_v8 }
 0x1f7   : > { %v10584_v13 = vpop.f32.mrf.mxu1  ;;  %v13165_v45 = vadd.f32 %v11282_v42, %v13037_v34  ;;  %v4755_v42 = vld [vmem:[#allocation4 + $0x48] sm:$0x1] }
 0x1f8   : > { %v10585_v4 = vadd.f32 %v10584_v13, %v10583_v26  ;;  %v3440_v38 = vpop.f32.mrf.mxu0  ;;  %v4756_v22 = vsel %vm12238_vm4, 0, %v4755_v42  ;;  %v4809_v42 = vld [vmem:[#allocation4 + $0x50] sm:$0x1] }
 0x1f9   : > { %v10586_v2 = vpop.f32.mrf.mxu1  ;;  %v13170_v7 = vadd.f32 %v3440_v38, %v13023_v11  ;;  %4757 = vst [vmem:[#allocation4 + $0x48] sm:$0x1] %v4756_v22  ;;  %11363 = vmatpush3.bf16.msra.mxu0 %v11789_v62  ;;  %10795 = vmatpush3.bf16.msra.mxu1 %v11786_v43  ;;  %v11790_v22 = vld [vmem:[%s14987_s3 + $0xc0] sm:$0xff]  }
 0x1fa   : > { %v13172_v30 = vadd.f32 %v10585_v4, %v2762_v57  ;;  %v11283_v34 = vpop.f32.mrf.mxu0 }
 0x1fb   : > { %v10587_v14 = vpop.f32.mrf.mxu1  ;;  %v13183_v11 = vadd.f32 %v11283_v34, %v13042_v12 }
 0x1fc   : > { %v10588_v26 = vadd.f32 %v10587_v14, %v10586_v2  ;;  %v13188_v13 = vpop.f32.mrf.mxu0  ;;  %v2770_v2 = vadd.f32 %v12995_v6, %v12947_v63  ;;  %v11791_v63 = vld [vmem:[%s14987_s3 + $0x148] sm:$0xff]  }
 0x1fd   : > { %v10589_v52 = vpop.f32.mrf.mxu1  ;;  %11364 = vmatprep.subr.bf16.mxu0 %v11791_v63 }
 0x1fe   : > { %v13190_v57 = vadd.f32 %v10588_v26, %v2767_v49  ;;  %v11286_v4 = vpop.f32.mrf.mxu0  ;;  %v11788_v26 = vld [vmem:[%s14987_s3 + $0x100] sm:$0xff]   ;;  %11365 = vmatpush3.bf16.msra.mxu0 %v11791_v63 }
 0x1ff   : > { %v10590_v12 = vpop.f32.mrf.mxu1  ;;  %v13203_v24 = vadd.f32 %v11286_v4, %v13096_v56  ;;  %v4810_v4 = vsel %vm12250_vm6, 0, %v4809_v42  ;;  %10796 = vmatprep.subr.bf16.mxu1 %v11788_v26  ;;  %v4758_v26 = vld [vmem:[#allocation4 + $0x54] sm:$0x1] }
 0x200   : > { %v10591_v38 = vadd.f32 %v10590_v12, %v10589_v52  ;;  %v3456_v34 = vpop.f32.mrf.mxu0  ;;  %4811 = vst [vmem:[#allocation4 + $0x50] sm:$0x1] %v4810_v4  ;;  %10797 = vmatpush3.bf16.msra.mxu1 %v11790_v22 }
 0x201   : > { %v10592_v14 = vpop.f32.mrf.mxu1  ;;  %v13209_v10 = vadd.f32 %v3456_v34, %v13060_v59 }
 0x202   : > { %v13211_v49 = vadd.f32 %v10591_v38, %v2770_v2  ;;  %v11287_v56 = vpop.f32.mrf.mxu0 }
 0x203   : > { %v10593_v6 = vpop.f32.mrf.mxu1  ;;  %v13222_v59 = vadd.f32 %v11287_v56, %v13111_v15  ;;  %v2778_v15 = vadd.f32 %v12940_v27, %v13005_v1  ;;  %v4759_v1 = vsel %vm12238_vm4, 0, %v4758_v26 }
 0x204   : > { %v10594_v52 = vadd.f32 %v10593_v6, %v10592_v14  ;;  %v13227_v12 = vpop.f32.mrf.mxu0  ;;  %4760 = vst [vmem:[#allocation4 + $0x54] sm:$0x1] %v4759_v1 }
 0x205   : > { %v10595_v62 = vpop.f32.mrf.mxu1 }
 0x206   : > { %v3336_v8 = vadd.f32 %v10594_v52, %v2775_v21  ;;  %v11290_v0 = vpop.f32.mrf.mxu0  ;;  %v10467_v21 = vadd.f32 %v13020_v33, %v13013_v47 }
 0x207   : > { %v10596_v54 = vpop.f32.mrf.mxu1  ;;  %v13234_v38 = vadd.f32 %v11290_v0, %v13157_v36 }
 0x208   : > { %v10597_v2 = vadd.f32 %v10596_v54, %v10595_v62  ;;  %v3472_v14 = vpop.f32.mrf.mxu0  ;;  %v2786_v4 = vadd.f32 %v10467_v21, %v12955_v25 }
 0x209   : > { %v10598_v43 = vpop.f32.mrf.mxu1  ;;  %v13237_v34 = vadd.f32 %v3472_v14, %v13128_v55 }
 0x20a   : > { %v3339_v6 = vadd.f32 %v10597_v2, %v2778_v15  ;;  %v11291_v63 = vpop.f32.mrf.mxu0  ;;  %v2791_v2 = vadd.f32 %v12949_v5, %v13028_v20  ;;  %v4761_v5 = vld [vmem:[#allocation4 + $0x60] sm:$0x1] }
 0x20b   : > { %v10599_v56 = vpop.f32.mrf.mxu1  ;;  %v13242_v42 = vadd.f32 %v11291_v63, %v13172_v30 }
 0x20c   : > { %v10600_v52 = vadd.f32 %v10599_v56, %v10598_v43  ;;  %v13246_v36 = vpop.f32.mrf.mxu0  ;;  %v10473_v56 = vadd.f32 %v13034_v48, %v13032_v51  ;;  %v4762_v48 = vsel %vm12238_vm4, 0, %v4761_v5 }
 0x20d   : > { %v10601_v27 = vpop.f32.mrf.mxu1  ;;  %4763 = vst [vmem:[#allocation4 + $0x60] sm:$0x1] %v4762_v48 }
 0x20e   : > { %v3344_v55 = vadd.f32 %v10600_v52, %v13018_v40  ;;  %v11294_v62 = vpop.f32.mrf.mxu0  ;;  %v4812_v40 = vld [vmem:[#allocation4 + $0x5c] sm:$0x1]  ;;  %v2794_v20 = vadd.f32 %v12953_v18, %v10473_v56 }
 0x20f   : > { %v10602_v22 = vpop.f32.mrf.mxu1  ;;  %v13250_v0 = vadd.f32 %v11294_v62, %v3336_v8  ;;  %v4813_v8 = vsel %vm12250_vm6, 0, %v4812_v40 }
 0x210   : > { %v10603_v54 = vadd.f32 %v10602_v22, %v10601_v27  ;;  %v3488_v33 = vpop.f32.mrf.mxu0  ;;  %4814 = vst [vmem:[#allocation4 + $0x5c] sm:$0x1] %v4813_v8 }
 0x211   : > { %v10604_v47 = vpop.f32.mrf.mxu1  ;;  %v13253_v30 = vadd.f32 %v3488_v33, %v13190_v57  ;;  %v4815_v33 = vld [vmem:[#allocation4 + $0x68] sm:$0x1] }
 0x212   : > { %v13255_v15 = vadd.f32 %v10603_v54, %v2786_v4  ;;  %v11295_v14 = vpop.f32.mrf.mxu0 }
 0x213   : > { %v10605_v43 = vpop.f32.mrf.mxu1  ;;  %v13261_v63 = vadd.f32 %v11295_v14, %v3339_v6  ;;  %v4816_v14 = vsel %vm12250_vm6, 0, %v4815_v33 }
 0x214   : > { %v10606_v25 = vadd.f32 %v10605_v43, %v10604_v47  ;;  %v13265_v57 = vpop.f32.mrf.mxu0  ;;  %4817 = vst [vmem:[#allocation4 + $0x68] sm:$0x1] %v4816_v14  ;;  %v4767_v14 = vld [vmem:[#allocation4 + $0x78] sm:$0x1] }
 0x215   : > { %v10607_v26 = vpop.f32.mrf.mxu1 }
 0x216   : > { %v3352_v21 = vadd.f32 %v10606_v25, %v2791_v2  ;;  %v11298_v1 = vpop.f32.mrf.mxu0  ;;  %v10479_v2 = vadd.f32 %v13052_v19, %v13044_v17 }
 0x217   : > { %v10608_v52 = vpop.f32.mrf.mxu1 }
 0x218   : > { %v10609_v27 = vadd.f32 %v10608_v52, %v10607_v26  ;;  %v13268_v22 = vadd.f32 %v11298_v1, %v3352_v21  ;;  %v3504_v6 = vpop.f32.mrf.mxu0  ;;  %v4764_v26 = vld [vmem:[#allocation4 + $0x6c] sm:$0x1]  ;;  %v2802_v21 = vadd.f32 %v10479_v2, %v12967_v58  ;;  %v10485_v58 = vadd.f32 %v13089_v32, %v13079_v61 }
 0x219   : > { %v10610_v51 = vpop.f32.mrf.mxu1  ;;  %v13272_v62 = vadd.f32 %v3504_v6, %v3344_v55  ;;  %v4765_v17 = vsel %vm12238_vm4, 0, %v4764_v26  ;;  %v4768_v32 = vsel %vm12238_vm4, 0, %v4767_v14  ;;  %v4821_v14 = vld [vmem:[#allocation4 + $0x80] sm:$0x1] }
 0x21a   : > { %v3355_v4 = vadd.f32 %v10609_v27, %v2794_v20  ;;  %v11299_v47 = vpop.f32.mrf.mxu0  ;;  %4766 = vst [vmem:[#allocation4 + $0x6c] sm:$0x1] %v4765_v17  ;;  %4769 = vst [vmem:[#allocation4 + $0x78] sm:$0x1] %v4768_v32 }
 0x21b   : > { %v10611_v54 = vpop.f32.mrf.mxu1 }
 0x21c   : > { %v10612_v43 = vadd.f32 %v10611_v54, %v10610_v51  ;;  %v13276_v18 = vadd.f32 %v11299_v47, %v3355_v4  ;;  %v13280_v56 = vpop.f32.mrf.mxu0  ;;  %v4818_v51 = vld [vmem:[#allocation4 + $0x74] sm:$0x1] }
 0x21d   : > { %v10613_v40 = vpop.f32.mrf.mxu1  ;;  %v4819_v4 = vsel %vm12250_vm6, 0, %v4818_v51 }
 0x21e   : > { %v3360_v55 = vadd.f32 %v10612_v43, %v13047_v29  ;;  %v11302_v8 = vpop.f32.mrf.mxu0  ;;  %v2807_v29 = vadd.f32 %v12959_v44, %v13075_v50  ;;  %4820 = vst [vmem:[#allocation4 + $0x74] sm:$0x1] %v4819_v4  ;;  %v15023_v44 = vld [vmem:[#allocation11_spill] sm:$0xff] }
 0x21f   : > { %v10614_v25 = vpop.f32.mrf.mxu1  ;;  %v2810_v50 = vadd.f32 %v15023_v44, %v10485_v58  ;;  %v4822_v44 = vsel %vm12250_vm6, 0, %v4821_v14 }
 0x220   : > { %v10615_v52 = vadd.f32 %v10614_v25, %v10613_v40  ;;  %v3520_v1 = vpop.f32.mrf.mxu0  ;;  %v11796_v40 = vld [vmem:[%s14987_s3 + $0x140] sm:$0xff]   ;;  %4823 = vst [vmem:[#allocation4 + $0x80] sm:$0x1] %v4822_v44 }
 0x221   : > { %v10616_v19 = vpop.f32.mrf.mxu1  ;;  %v13286_v5 = vadd.f32 %v3520_v1, %v3360_v55  ;;  %11366 = vmatprep.subr.bf16.mxu0 %v11796_v40 }
 0x222   : > { %v13288_v20 = vadd.f32 %v10615_v52, %v2802_v21  ;;  %v11303_v48 = vpop.f32.mrf.mxu0  ;;  %11367 = vmatpush3.bf16.msra.mxu0 %v11796_v40 }
 0x223   : > { %v10617_v27 = vpop.f32.mrf.mxu1 }
 0x224   : > { %v10618_v6 = vadd.f32 %v10617_v27, %v10616_v19  ;;  %v13296_v47 = vpop.f32.mrf.mxu0 }
 0x225   : > { %v10619_v54 = vpop.f32.mrf.mxu1 }
 0x226   : > { %v3368_v33 = vadd.f32 %v10618_v6, %v2807_v29  ;;  %v10662_v43 = vpop.f32.mrf.mxu0 }
 0x227   : > { %v10620_v2 = vpop.f32.mrf.mxu1 }
 0x228   : > { %v13302_v55 = vadd.f32 %v11302_v8, %v3368_v33  ;;  %v10621_v61 = vadd.f32 %v10620_v2, %v10619_v54  ;;  %v10663_v26 = vpop.f32.mrf.mxu0  ;;  %v13311_v8 = vld [vmem:[%s14986_s2] ss:$0 sm:$0xff]  ;;  %v15024_v33 = vld [vmem:[#allocation12_spill] sm:$0xff] }
 0x229   : > { %v11322_v25 = vpop.f32.mrf.mxu1  ;;  %v10664_v52 = vadd.f32 %v10663_v26, %v10662_v43  ;;  %v3412_v2 = vadd.f32 %v13124_v37, %v15024_v33 }
 0x22a   : > { %v3371_v21 = vadd.f32 %v10621_v61, %v2810_v50  ;;  %v10665_v19 = vpop.f32.mrf.mxu0 }
 0x22b   : > { %v4244_v17 = vpop.f32.mrf.mxu1 }
 0x22c   : > { %v13306_v1 = vadd.f32 %v11303_v48, %v3371_v21  ;;  %v4245_v27 = vadd.f32 %v10664_v52, %v4244_v17  ;;  %v10666_v29 = vpop.f32.mrf.mxu0 }
 0x22d   : > { %v11323_v51 = vpop.f32.mrf.mxu1  ;;  %v10667_v6 = vadd.f32 %v10666_v29, %v10665_v19 }
 0x22e   : > { %v4371_v58 = vadd.f32 %v4245_v27, %v13109_v3  ;;  %v10668_v54 = vpop.f32.mrf.mxu0 }
 0x22f   : > { %v4247_v4 = vpop.f32.mrf.mxu1 }
 0x230   : > { %v13317_v43 = vadd.f32 %v13311_v8, %v4371_v58  ;;  %v4248_v48 = vadd.f32 %v10667_v6, %v4247_v4  ;;  %v10669_v40 = vpop.f32.mrf.mxu0 }
 0x231   : > { %v10670_v3 = vadd.f32 %v10669_v40, %v10668_v54  ;;  %v11326_v26 = vpop.f32.mrf.mxu1 }
 0x232   : > { %v4442_v50 = vmul.f32 %v13317_v43, %v13317_v43  ;;  %v4372_v61 = vadd.f32 %v4248_v48, %v3412_v2  ;;  %v10671_v32 = vpop.f32.mrf.mxu0 }
 0x233   : > { %v4253_v52 = vadd.f32 %v11322_v25, %v10670_v3  ;;  %v4260_v6 = vpop.f32.mrf.mxu1 }
 0x234   : > { %v4474_v21 = vmul.f32 %v4442_v50, %v13317_v43  ;;  %v13325_v37 = vadd.f32 %v13311_v8, %v4372_v61  ;;  %v10672_v17 = vpop.f32.mrf.mxu0 }
 0x235   : > { %v4373_v29 = vadd.f32 %v4253_v52, %v13101_v31  ;;  %v10673_v58 = vadd.f32 %v10672_v17, %v10671_v32  ;;  %v11327_v31 = vpop.f32.mrf.mxu1  ;;  %v11797_v32 = vld [vmem:[%s14987_s3 + $0xb8] sm:$0xff]  }
 0x236   : > { %v4506_v19 = vmul.f32 0.044715, %v4474_v21  ;;  %v4443_v27 = vmul.f32 %v13325_v37, %v13325_v37  ;;  %v10674_v4 = vpop.f32.mrf.mxu0  ;;  %11400 = vmatprep.subr.bf16.mxu1 %v11797_v32 }
 0x237   : > { %v13333_v2 = vadd.f32 %v13311_v8, %v4373_v29  ;;  %v4256_v48 = vadd.f32 %v11323_v51, %v10673_v58 }
 0x238   : > { %v4538_v54 = vadd.f32 %v4506_v19, %v13317_v43  ;;  %v4475_v33 = vmul.f32 %v4443_v27, %v13325_v37  ;;  %v10675_v14 = vpop.f32.mrf.mxu0  ;;  %v4770_v27 = vld [vmem:[#allocation4 + $0x84] sm:$0x1] }
 0x239   : > { %v4444_v44 = vmul.f32 %v13333_v2, %v13333_v2  ;;  %v4374_v50 = vadd.f32 %v4256_v48, %v13122_v35  ;;  %v10676_v61 = vadd.f32 %v10675_v14, %v10674_v4  ;;  %v4263_v14 = vpop.f32.mrf.mxu1 }
 0x23a   : > { %v4570_v25 = vmul.f32 0.7978846, %v4538_v54  ;;  %v4507_v40 = vmul.f32 0.044715, %v4475_v33  ;;  %v10677_v3 = vpop.f32.mrf.mxu0  ;;  %v15025_v54 = vld [vmem:[#allocation13_spill] sm:$0xff] }
 0x23b   : > { %v4476_v51 = vmul.f32 %v4444_v44, %v13333_v2  ;;  %v13344_v52 = vadd.f32 %v13311_v8, %v4374_v50  ;;  %v4261_v17 = vadd.f32 %v10676_v61, %v4260_v6  ;;  %v3428_v33 = vadd.f32 %v13153_v46, %v15025_v54 }
 0x23c   : > { %12007 = vtanh.f32 %v4570_v25  ;;  %v4539_v21 = vadd.f32 %v4507_v40, %v13325_v37  ;;  %v10678_v19 = vpop.f32.mrf.mxu0  ;;  %v4771_v40 = vsel %vm12238_vm4, 0, %v4770_v27 }
 0x23d   : > { %v4508_v29 = vmul.f32 0.044715, %v4476_v51  ;;  %v4445_v58 = vmul.f32 %v13344_v52, %v13344_v52  ;;  %v10679_v4 = vadd.f32 %v10678_v19, %v10677_v3  ;;  %v4375_v48 = vadd.f32 %v4261_v17, %v13141_v9  ;;  %4772 = vst [vmem:[#allocation4 + $0x84] sm:$0x1] %v4771_v40 }
 0x23e   : > { %v4571_v35 = vmul.f32 0.7978846, %v4539_v21  ;;  %v10680_v25 = vpop.f32.mrf.mxu0 }
 0x23f   : > { %v4540_v6 = vadd.f32 %v4508_v29, %v13333_v2  ;;  %v4477_v44 = vmul.f32 %v4445_v58, %v13344_v52  ;;  %v4264_v50 = vadd.f32 %v10679_v4, %v4263_v14  ;;  %v13356_v61 = vadd.f32 %v13311_v8, %v4375_v48  ;;  %v13364_v29 = vpop.f32.mrf.mxu1 }
 0x240   : > { %12009 = vtanh.f32 %v4571_v35  ;;  %v10681_v3 = vpop.f32.mrf.mxu0 }
 0x241   : > { %v4572_v32 = vmul.f32 0.7978846, %v4540_v6  ;;  %v4509_v46 = vmul.f32 0.044715, %v4477_v44  ;;  %v4376_v21 = vadd.f32 %v4264_v50, %v3428_v33  ;;  %v10682_v9 = vadd.f32 %v10681_v3, %v10680_v25  ;;  %v4276_v50 = vpop.f32.mrf.mxu1 }
 0x242   : > { %v4446_v51 = vmul.f32 %v13356_v61, %v13356_v61  ;;  %v10683_v17 = vpop.f32.mrf.mxu0 }
 0x243   : > { %12011 = vtanh.f32 %v4572_v32  ;;  %v4541_v19 = vadd.f32 %v4509_v46, %v13344_v52  ;;  %v13362_v27 = vadd.f32 %v13311_v8, %v4376_v21  ;;  %v4269_v35 = vadd.f32 %v11326_v26, %v10682_v9 }
 0x244   : > { %v4478_v58 = vmul.f32 %v4446_v51, %v13356_v61  ;;  %v10684_v4 = vpop.f32.mrf.mxu0  ;;  %v3444_v32 = vadd.f32 %v13188_v13, %v13030_v16 }
 0x245   : > { %v4573_v54 = vmul.f32 0.7978846, %v4541_v19  ;;  %v4447_v33 = vmul.f32 %v13362_v27, %v13362_v27  ;;  %v4377_v48 = vadd.f32 %v4269_v35, %v13133_v53  ;;  %v10685_v14 = vadd.f32 %v10684_v4, %v10683_v17  ;;  %v4824_v19 = vld [vmem:[#allocation4 + $0x8c] sm:$0x1] }
 0x246   : > { %v4510_v25 = vmul.f32 0.044715, %v4478_v58  ;;  %v10686_v40 = vpop.f32.mrf.mxu0  ;;  %v13382_v35 = vadd.f32 %v13227_v12, %v13077_v39  ;;  %v4825_v16 = vsel %vm12250_vm6, 0, %v4824_v19  ;;  %v13395_v39 = vadd.f32 %v13246_v36, %v13143_v60 }
 0x247   : > { %12013 = vtanh.f32 %v4573_v54  ;;  %v4479_v6 = vmul.f32 %v4447_v33, %v13362_v27  ;;  %v13372_v44 = vadd.f32 %v13311_v8, %v4377_v48  ;;  %v4272_v26 = vadd.f32 %v11327_v31, %v10685_v14  ;;  %4826 = vst [vmem:[#allocation4 + $0x8c] sm:$0x1] %v4825_v16 }
 0x248   : > { %v4542_v46 = vadd.f32 %v4510_v25, %v13356_v61  ;;  %v10687_v21 = vpop.f32.mrf.mxu0  ;;  %v13399_v12 = vadd.f32 %v13265_v57, %v13211_v49 }
 0x249   : > { %v12008_v3 = vpop.eup %12007  ;;  %v4511_v53 = vmul.f32 0.044715, %v4479_v6  ;;  %v4448_v51 = vmul.f32 %v13372_v44, %v13372_v44  ;;  %v4378_v17 = vadd.f32 %v4272_v26, %v13148_v41  ;;  %v10688_v58 = vadd.f32 %v10687_v21, %v10686_v40  ;;  %v13391_v41 = vpop.f32.mrf.mxu1 }
 0x24a   : > { %v4634_v9 = vadd.f32 1.0, %v12008_v3  ;;  %v4574_v31 = vmul.f32 0.7978846, %v4542_v46  ;;  %v10689_v4 = vpop.f32.mrf.mxu0  ;;  %v13404_v21 = vadd.f32 %v13280_v56, %v13255_v15 }
 0x24b   : > { %v4543_v54 = vadd.f32 %v4511_v53, %v13362_v27  ;;  %v4480_v33 = vmul.f32 %v4448_v51, %v13372_v44  ;;  %v13389_v48 = vadd.f32 %v13311_v8, %v4378_v17  ;;  %v4277_v25 = vadd.f32 %v10688_v58, %v4276_v50 }
 0x24c   : > { %v4666_v13 = vmul.f32 0.5, %v4634_v9  ;;  %12015 = vtanh.f32 %v4574_v31  ;;  %v10690_v40 = vpop.f32.mrf.mxu0  ;;  %v13412_v17 = vadd.f32 %v13296_v47, %v13288_v20 }
 0x24d   : > { %v12010_v14 = vpop.eup %12009  ;;  %v4575_v3 = vmul.f32 0.7978846, %v4543_v54  ;;  %v4512_v46 = vmul.f32 0.044715, %v4480_v33  ;;  %v4449_v60 = vmul.f32 %v13389_v48, %v13389_v48  ;;  %v4379_v36 = vadd.f32 %v4277_v25, %v13170_v7 }
 0x24e   : > { %v4698_v6 = vmul.f32 %v4666_v13, %v13317_v43  ;;  %v4635_v26 = vadd.f32 1.0, %v12010_v14  ;;  %v10691_v9 = vadd.f32 %v10690_v40, %v10689_v4  ;;  %v10692_v49 = vpop.f32.mrf.mxu0  ;;  %v4279_v43 = vpop.f32.mrf.mxu1 }
 0x24f   : > { %12017 = vtanh.f32 %v4575_v3  ;;  %v4544_v50 = vadd.f32 %v4512_v46, %v13372_v44  ;;  %v4481_v15 = vmul.f32 %v4449_v60, %v13389_v48  ;;  %v13416_v56 = vadd.f32 %v13311_v8, %v4379_v36  ;;  %v5262_v3 = vld [vmem:[#allocation4 + $0xc] sm:$0xf] }
 0x250   : > { %v10215_v57 = vpack.c.bf16 %v4698_v6, %v4698_v6  ;;  %v4667_v53 = vmul.f32 0.5, %v4635_v26  ;;  %v12012_v51 = vpop.eup %12011  ;;  %v4280_v19 = vadd.f32 %v10691_v9, %v4279_v43  ;;  %v10693_v7 = vpop.f32.mrf.mxu0 }
 0x251   : > { %v4636_v16 = vadd.f32 1.0, %v12012_v51  ;;  %v4576_v13 = vmul.f32 0.7978846, %v4544_v50  ;;  %v4513_v54 = vmul.f32 0.044715, %v4481_v15  ;;  %v4450_v33 = vmul.f32 %v13416_v56, %v13416_v56 }
 0x252   : > { %v4942_v31 = vshrl.u32 %v10215_v57, 16  ;;  %v4945_v58 = vshll.u32 %v10215_v57, 16  ;;  %v4699_v4 = vmul.f32 %v4667_v53, %v13325_v37  ;;  %v4380_v14 = vadd.f32 %v4280_v19, %v3444_v32  ;;  %v10695_v20 = vpop.f32.mrf.mxu0 }
 0x253   : > { %v4668_v40 = vmul.f32 0.5, %v4636_v16  ;;  %v10694_v6 = vadd.f32 %v10693_v7, %v10692_v49  ;;  %12019 = vtanh.f32 %v4576_v13  ;;  %v4545_v46 = vadd.f32 %v4513_v54, %v13389_v48 }
 0x254   : > { %v4944_v47 = vrot.slane %v4942_v31, 7  ;;  %v10216_v25 = vpack.c.bf16 %v4699_v4, %v4699_v4  ;;  %v12014_v26 = vpop.eup %12013  ;;  %v4482_v60 = vmul.f32 %v4450_v33, %v13416_v56  ;;  %v13424_v37 = vadd.f32 %v13311_v8, %v4380_v14  ;;  %v10696_v36 = vpop.f32.mrf.mxu0 }
 0x255   : > { %v4700_v50 = vmul.f32 %v4668_v40, %v13333_v2  ;;  %v4637_v43 = vadd.f32 1.0, %v12014_v26  ;;  %v4577_v51 = vmul.f32 0.7978846, %v4545_v46  ;;  %v4285_v16 = vadd.f32 %v13364_v29, %v10694_v6 }
 0x256   : > { %v4947_v9 = vor.u32 %v4945_v58, %v4944_v47  ;;  %v4948_v57 = vrot.slane %v4944_v47, 4  ;;  %v4950_v53 = vshrl.u32 %v10216_v25, 16  ;;  %v4953_v32 = vshll.u32 %v10216_v25, 16  ;;  %v10698_v15 = vpop.f32.mrf.mxu0  ;;  %v5266_v58 = vld [vmem:[#allocation4 + $0x14] sm:$0x1] }
 0x257   : > { %v4514_v49 = vmul.f32 0.044715, %v4482_v60  ;;  %v4451_v4 = vmul.f32 %v13424_v37, %v13424_v37  ;;  %v10217_v13 = vpack.c.bf16 %v4700_v50, %v4700_v50  ;;  %v4669_v54 = vmul.f32 0.5, %v4637_v43 }
 0x258   : > { %v5263_v7 = vsel %vm12282_vm8, %v4947_v9, %v5262_v3  ;;  %v4952_v31 = vrot.slane %v4950_v53, 7  ;;  %12021 = vtanh.f32 %v4577_v51  ;;  %v10699_v33 = vpop.f32.mrf.mxu0  ;;  %v4381_v26 = vadd.f32 %v4285_v16, %v13165_v45 }
 0x259   : > { %5264 = vst [vmem:[#allocation4 + $0xc] sm:$0xf] %v5263_v7  ;;  %v4546_v2 = vadd.f32 %v4514_v49, %v13416_v56  ;;  %v12016_v14 = vpop.eup %12015  ;;  %v4483_v40 = vmul.f32 %v4451_v4, %v13424_v37  ;;  %v4959_v3 = vshrl.u32 %v10217_v13, 16  ;;  %v4962_v46 = vshll.u32 %v10217_v13, 16  ;;  %v5269_v4 = vld [vmem:[#allocation4 + $0x18] sm:$0xf] }
 0x25a   : > { %v4955_v47 = vor.u32 %v4953_v32, %v4952_v31  ;;  %v4957_v25 = vrot.slane %v4952_v31, 4  ;;  %v4701_v60 = vmul.f32 %v4669_v54, %v13344_v52  ;;  %v4638_v29 = vadd.f32 1.0, %v12016_v14  ;;  %v13436_v6 = vpop.f32.mrf.mxu0 }
 0x25b   : > { %v4578_v43 = vmul.f32 0.7978846, %v4546_v2  ;;  %v4515_v32 = vmul.f32 0.044715, %v4483_v40  ;;  %v4961_v49 = vrot.slane %v4959_v3, 7  ;;  %v13443_v31 = vadd.f32 %v13311_v8, %v4381_v26 }
 0x25c   : > { %v4956_v53 = vsel %vm12270_vm7, %v4948_v57, %v4955_v47  ;;  %v5267_v50 = vsel %vm12238_vm4, %v4957_v25, %v5266_v58  ;;  %v12018_v51 = vpop.eup %12017  ;;  %v10218_v45 = vpack.c.bf16 %v4701_v60, %v4701_v60  ;;  %v4670_v7 = vmul.f32 0.5, %v4638_v29  ;;  %v13445_v52 = vpop.f32.mrf.mxu0 }
 0x25d   : > { %5265 = vst [vmem:[#allocation4 + $0x10] sm:$0xf] %v4956_v53  ;;  %5268 = vst [vmem:[#allocation4 + $0x14] sm:$0x1] %v5267_v50  ;;  %v4639_v16 = vadd.f32 1.0, %v12018_v51  ;;  %12023 = vtanh.f32 %v4578_v43  ;;  %v4547_v57 = vadd.f32 %v4515_v32, %v13424_v37  ;;  %v10697_v13 = vadd.f32 %v10696_v36, %v10695_v20  ;;  %v13453_v60 = vpop.f32.mrf.mxu1 }
 0x25e   : > { %v4964_v58 = vor.u32 %v4962_v46, %v4961_v49  ;;  %v4965_v54 = vrot.slane %v4961_v49, 4  ;;  %v4967_v2 = vshrl.u32 %v10218_v45, 16  ;;  %v4970_v14 = vshll.u32 %v10218_v45, 16  ;;  %v13448_v47 = vpop.f32.mrf.mxu0 }
 0x25f   : > { %v4702_v25 = vmul.f32 %v4670_v7, %v13356_v61  ;;  %v4671_v40 = vmul.f32 0.5, %v4639_v16  ;;  %v4579_v3 = vmul.f32 0.7978846, %v4547_v57  ;;  %v4452_v26 = vmul.f32 %v13443_v31, %v13443_v31  ;;  %v5273_v61 = vld [vmem:[#allocation4 + $0x20] sm:$0x1] }
 0x260   : > { %v5270_v29 = vsel %vm12282_vm8, %v4964_v58, %v5269_v4  ;;  %v4969_v53 = vrot.slane %v4967_v2, 7  ;;  %v4288_v20 = vadd.f32 %v13391_v41, %v10697_v13  ;;  %v10700_v36 = vadd.f32 %v10699_v33, %v10698_v15  ;;  %v13458_v46 = vpop.f32.mrf.mxu0  ;;  %v5376_v50 = vld [vmem:[#allocation4 + $0xc] sm:$0xf]  ;;  %v12020_v43 = vpop.eup %12019 }
 0x261   : > { %5271 = vst [vmem:[#allocation4 + $0x18] sm:$0xf] %v5270_v29  ;;  %v10219_v32 = vpack.c.bf16 %v4702_v25, %v4702_v25  ;;  %v4703_v51 = vmul.f32 %v4671_v40, %v13362_v27  ;;  %12025 = vtanh.f32 %v4579_v3  ;;  %v4484_v49 = vmul.f32 %v4452_v26, %v13443_v31  ;;  %5412 = vst [vmem:[#allocation5 + $0x18] sm:$0xf] %v5376_v50  ;;  %v4292_v58 = vpop.f32.mrf.mxu1  ;;  %v5276_v50 = vld [vmem:[#allocation4 + $0x24] sm:$0xf] }
 0x262   : > { %v4972_v45 = vor.u32 %v4970_v14, %v4969_v53  ;;  %v4974_v7 = vrot.slane %v4969_v53, 4  ;;  %v4640_v4 = vadd.f32 1.0, %v12020_v43  ;;  %v4382_v16 = vadd.f32 %v4288_v20, %v13183_v11  ;;  %v13463_v41 = vpop.f32.mrf.mxu0 }
 0x263   : > { %v4976_v15 = vshrl.u32 %v10219_v32, 16  ;;  %v4979_v33 = vshll.u32 %v10219_v32, 16  ;;  %v10220_v57 = vpack.c.bf16 %v4703_v51, %v4703_v51  ;;  %v4516_v13 = vmul.f32 0.044715, %v4484_v49 }
 0x264   : > { %v4973_v2 = vsel %vm12270_vm7, %v4965_v54, %v4972_v45  ;;  %v5274_v27 = vsel %vm12238_vm4, %v4974_v7, %v5273_v61  ;;  %v4672_v25 = vmul.f32 0.5, %v4640_v4  ;;  %v13470_v14 = vadd.f32 %v13311_v8, %v4382_v16  ;;  %v10708_v40 = vpop.f32.mrf.mxu0  ;;  %v5377_v3 = vld [vmem:[#allocation4 + $0x10] sm:$0xf]  ;;  %v13478_v16 = vpop.f32.mrf.mxu1 }
 0x265   : > { %v12022_v11 = vpop.eup %12021  ;;  %5272 = vst [vmem:[#allocation4 + $0x1c] sm:$0xf] %v4973_v2  ;;  %5275 = vst [vmem:[#allocation4 + $0x20] sm:$0x1] %v5274_v27  ;;  %v4978_v26 = vrot.slane %v4976_v15, 7  ;;  %v4984_v29 = vshrl.u32 %v10220_v57, 16  ;;  %v4548_v20 = vadd.f32 %v4516_v13, %v13443_v31  ;;  %v4293_v32 = vadd.f32 %v10700_v36, %v4292_v58 }
 0x266   : > { %v4987_v53 = vshll.u32 %v10220_v57, 16  ;;  %5413 = vst [vmem:[#allocation5 + $0x24] sm:$0xf] %v5377_v3  ;;  %v4704_v54 = vmul.f32 %v4672_v25, %v13372_v44  ;;  %v4641_v43 = vadd.f32 1.0, %v12022_v11  ;;  %v4453_v61 = vmul.f32 %v13470_v14, %v13470_v14  ;;  %v13476_v51 = vpop.f32.mrf.mxu0  ;;  %v5280_v15 = vld [vmem:[#allocation4 + $0x2c] sm:$0x1] }
 0x267   : > { %v4981_v49 = vor.u32 %v4979_v33, %v4978_v26  ;;  %v4982_v45 = vrot.slane %v4978_v26, 4  ;;  %v4986_v7 = vrot.slane %v4984_v29, 7  ;;  %v4580_v4 = vmul.f32 0.7978846, %v4548_v20 }
 0x268   : > { %v10221_v57 = vpack.c.bf16 %v4704_v54, %v4704_v54  ;;  %v4673_v13 = vmul.f32 0.5, %v4641_v43  ;;  %v4485_v2 = vmul.f32 %v4453_v61, %v13470_v14  ;;  %v4383_v44 = vadd.f32 %v4293_v32, %v13209_v10  ;;  %v13482_v27 = vpop.f32.mrf.mxu0  ;;  %v5378_v25 = vld [vmem:[#allocation4 + $0x18] sm:$0xf]  ;;  %v4295_v61 = vpop.f32.mrf.mxu1 }
 0x269   : > { %v5277_v36 = vsel %vm12282_vm8, %v4981_v49, %v5276_v50  ;;  %v4989_v58 = vor.u32 %v4987_v53, %v4986_v7  ;;  %v4991_v33 = vrot.slane %v4986_v7, 4  ;;  %12027 = vtanh.f32 %v4580_v4  ;;  %5414 = vst [vmem:[#allocation5 + $0x30] sm:$0xf] %v5378_v25  ;;  %v5283_v4 = vld [vmem:[#allocation4 + $0x30] sm:$0xf] }
 0x26a   : > { %v12024_v3 = vpop.eup %12023  ;;  %5278 = vst [vmem:[#allocation4 + $0x24] sm:$0xf] %v5277_v36  ;;  %v4993_v11 = vshrl.u32 %v10221_v57, 16  ;;  %v4996_v26 = vshll.u32 %v10221_v57, 16  ;;  %v4705_v29 = vmul.f32 %v4673_v13, %v13389_v48  ;;  %v4517_v20 = vmul.f32 0.044715, %v4485_v2  ;;  %v13487_v54 = vpop.f32.mrf.mxu0 }
 0x26b   : > { %v4990_v10 = vsel %vm12270_vm7, %v4982_v45, %v4989_v58  ;;  %v5281_v43 = vsel %vm12238_vm4, %v4991_v33, %v5280_v15  ;;  %v4642_v50 = vadd.f32 1.0, %v12024_v3  ;;  %v13494_v53 = vadd.f32 %v13311_v8, %v4383_v44  ;;  %v13503_v13 = vpop.f32.mrf.mxu1 }
 0x26c   : > { %5279 = vst [vmem:[#allocation4 + $0x28] sm:$0xf] %v4990_v10  ;;  %5282 = vst [vmem:[#allocation4 + $0x2c] sm:$0x1] %v5281_v43  ;;  %v4995_v32 = vrot.slane %v4993_v11, 7  ;;  %v10222_v49 = vpack.c.bf16 %v4705_v29, %v4705_v29  ;;  %v4549_v48 = vadd.f32 %v4517_v20, %v13470_v14  ;;  %v10703_v7 = vadd.f32 %v13445_v52, %v13436_v6  ;;  %v10714_v44 = vpop.f32.mrf.mxu0 }
 0x26d   : > { %v4674_v57 = vmul.f32 0.5, %v4642_v50  ;;  %v4454_v45 = vmul.f32 %v13494_v53, %v13494_v53  ;;  %v10706_v15 = vadd.f32 %v13458_v46, %v13448_v47  ;;  %v10709_v2 = vadd.f32 %v10708_v40, %v13463_v41  ;;  %v5379_v25 = vld [vmem:[#allocation4 + $0x1c] sm:$0xf]  ;;  %v5287_v40 = vld [vmem:[#allocation4 + $0x38] sm:$0x1] }
 0x26e   : > { %v12026_v36 = vpop.eup %12025  ;;  %v4998_v58 = vor.u32 %v4996_v26, %v4995_v32  ;;  %v4999_v33 = vrot.slane %v4995_v32, 4  ;;  %v5001_v3 = vshrl.u32 %v10222_v49, 16  ;;  %v5004_v11 = vshll.u32 %v10222_v49, 16  ;;  %5415 = vst [vmem:[#allocation5 + $0x3c] sm:$0xf] %v5379_v25  ;;  %v4308_v32 = vpop.f32.mrf.mxu1 }
 0x26f   : > { %v4706_v6 = vmul.f32 %v4674_v57, %v13416_v56  ;;  %v4643_v52 = vadd.f32 1.0, %v12026_v36  ;;  %v4581_v29 = vmul.f32 0.7978846, %v4549_v48  ;;  %v4486_v20 = vmul.f32 %v4454_v45, %v13494_v53  ;;  %v13511_v49 = vpop.f32.mrf.mxu0 }
 0x270   : > { %v5284_v47 = vsel %vm12282_vm8, %v4998_v58, %v5283_v4  ;;  %v5003_v46 = vrot.slane %v5001_v3, 7  ;;  %v4296_v10 = vadd.f32 %v10703_v7, %v4295_v61  ;;  %v4301_v41 = vadd.f32 %v13453_v60, %v10706_v15 }
 0x271   : > { %5285 = vst [vmem:[#allocation4 + $0x30] sm:$0xf] %v5284_v47  ;;  %v10223_v26 = vpack.c.bf16 %v4706_v6, %v4706_v6  ;;  %v4675_v43 = vmul.f32 0.5, %v4643_v52  ;;  %12029 = vtanh.f32 %v4581_v29  ;;  %v4518_v50 = vmul.f32 0.044715, %v4486_v20  ;;  %v13528_v52 = vpop.f32.mrf.mxu1 }
 0x272   : > { %v5006_v56 = vor.u32 %v5004_v11, %v5003_v46  ;;  %v5008_v48 = vrot.slane %v5003_v46, 4  ;;  %v4384_v57 = vadd.f32 %v4296_v10, %v13382_v35  ;;  %v4385_v45 = vadd.f32 %v4301_v41, %v13203_v24  ;;  %v5380_v4 = vld [vmem:[#allocation4 + $0x24] sm:$0xf]  ;;  %v5290_v20 = vld [vmem:[#allocation4 + $0x3c] sm:$0xf] }
 0x273   : > { %v5010_v25 = vshrl.u32 %v10223_v26, 16  ;;  %v5013_v61 = vshll.u32 %v10223_v26, 16  ;;  %v4707_v60 = vmul.f32 %v4675_v43, %v13424_v37  ;;  %v4550_v7 = vadd.f32 %v4518_v50, %v13494_v53  ;;  %5416 = vst [vmem:[#allocation5 + $0x48] sm:$0xf] %v5380_v4  ;;  %v5381_v24 = vld [vmem:[#allocation4 + $0x28] sm:$0xf] }
 0x274   : > { %v5007_v15 = vsel %vm12270_vm7, %v4999_v33, %v5006_v56  ;;  %v5288_v36 = vsel %vm12238_vm4, %v5008_v48, %v5287_v40  ;;  %v13522_v58 = vadd.f32 %v13311_v8, %v4384_v57  ;;  %v13525_v35 = vadd.f32 %v13311_v8, %v4385_v45  ;;  %v10717_v33 = vpop.f32.mrf.mxu0  ;;  %5417 = vst [vmem:[#allocation5 + $0x54] sm:$0xf] %v5381_v24  ;;  %v5294_v4 = vld [vmem:[#allocation4 + $0x44] sm:$0x1] }
 0x275   : > { %5286 = vst [vmem:[#allocation4 + $0x34] sm:$0xf] %v5007_v15  ;;  %5289 = vst [vmem:[#allocation4 + $0x38] sm:$0x1] %v5288_v36  ;;  %v5012_v3 = vrot.slane %v5010_v25, 7  ;;  %v10224_v37 = vpack.c.bf16 %v4707_v60, %v4707_v60  ;;  %v4304_v6 = vadd.f32 %v13478_v16, %v10709_v2  ;;  %v10712_v10 = vadd.f32 %v13482_v27, %v13476_v51 }
 0x276   : > { %v4582_v11 = vmul.f32 0.7978846, %v4550_v7  ;;  %v12028_v29 = vpop.eup %12027  ;;  %v4455_v47 = vmul.f32 %v13522_v58, %v13522_v58  ;;  %v4456_v46 = vmul.f32 %v13525_v35, %v13525_v35  ;;  %v10715_v41 = vadd.f32 %v10714_v44, %v13487_v54  ;;  %v4311_v54 = vpop.f32.mrf.mxu1 }
 0x277   : > { %v5015_v40 = vor.u32 %v5013_v61, %v5012_v3  ;;  %v5016_v26 = vrot.slane %v5012_v3, 4  ;;  %v5018_v16 = vshrl.u32 %v10224_v37, 16  ;;  %v5021_v2 = vshll.u32 %v10224_v37, 16  ;;  %v13542_v44 = vpop.f32.mrf.mxu0 }
 0x278   : > { %v4644_v43 = vadd.f32 1.0, %v12028_v29  ;;  %12031 = vtanh.f32 %v4582_v11  ;;  %v4487_v50 = vmul.f32 %v4455_v47, %v13522_v58  ;;  %v4488_v56 = vmul.f32 %v4456_v46, %v13525_v35  ;;  %v5382_v48 = vld [vmem:[#allocation4 + $0x30] sm:$0xf] }
 0x279   : > { %v5291_v57 = vsel %vm12282_vm8, %v5015_v40, %v5290_v20  ;;  %v5020_v45 = vrot.slane %v5018_v16, 7  ;;  %v4386_v51 = vadd.f32 %v4304_v6, %v13222_v59  ;;  %v4309_v27 = vadd.f32 %v10712_v10, %v4308_v32  ;;  %5418 = vst [vmem:[#allocation5 + $0x60] sm:$0xf] %v5382_v48 }
 0x27a   : > { %5292 = vst [vmem:[#allocation4 + $0x3c] sm:$0xf] %v5291_v57  ;;  %v4676_v25 = vmul.f32 0.5, %v4644_v43  ;;  %v4519_v61 = vmul.f32 0.044715, %v4487_v50  ;;  %v4312_v7 = vadd.f32 %v10715_v41, %v4311_v54  ;;  %v10718_v43 = vadd.f32 %v10717_v33, %v13511_v49 }
 0x27b   : > { %v4520_v60 = vmul.f32 0.044715, %v4488_v56  ;;  %v5023_v15 = vor.u32 %v5021_v2, %v5020_v45  ;;  %v5025_v36 = vrot.slane %v5020_v45, 4  ;;  %v13545_v24 = vadd.f32 %v13311_v8, %v4386_v51  ;;  %v6007_v50 = vld [vmem:[#allocation4 + $0xc] sm:$0xe] }
 0x27c   : > { %v4387_v3 = vadd.f32 %v4309_v27, %v13237_v34  ;;  %v4708_v37 = vmul.f32 %v4676_v25, %v13443_v31  ;;  %v4551_v59 = vadd.f32 %v4519_v61, %v13522_v58  ;;  %v4388_v11 = vadd.f32 %v4312_v7, %v13395_v39  ;;  %v5383_v6 = vld [vmem:[#allocation4 + $0x34] sm:$0xf]  ;;  %v13561_v31 = vpop.f32.mrf.mxu0  ;;  %v6008_v45 = vld [vmem:[#allocation4 + $0x10] sm:$0xf]  ;;  %v5297_v7 = vld [vmem:[#allocation4 + $0x48] sm:$0xf] }
 0x27d   : > { %v4552_v32 = vadd.f32 %v4520_v60, %v13525_v35  ;;  %v5024_v29 = vsel %vm12270_vm7, %v5016_v26, %v5023_v15  ;;  %v5295_v20 = vsel %vm12238_vm4, %v5025_v36, %v5294_v4  ;;  %v4457_v47 = vmul.f32 %v13545_v24, %v13545_v24  ;;  %5419 = vst [vmem:[#allocation5 + $0x6c] sm:$0xf] %v5383_v6 }
 0x27e   : > { %v13559_v34 = vadd.f32 %v13311_v8, %v4387_v3  ;;  %v12030_v46 = vpop.eup %12029  ;;  %5293 = vst [vmem:[#allocation4 + $0x40] sm:$0xf] %v5024_v29  ;;  %5296 = vst [vmem:[#allocation4 + $0x44] sm:$0x1] %v5295_v20  ;;  %v10225_v39 = vpack.c.bf16 %v4708_v37, %v4708_v37  ;;  %v4583_v10 = vmul.f32 0.7978846, %v4551_v59  ;;  %v13564_v40 = vadd.f32 %v13311_v8, %v4388_v11  ;;  %v13573_v54 = vpop.f32.mrf.mxu0 }
 0x27f   : > { %v4584_v41 = vmul.f32 0.7978846, %v4552_v32  ;;  %v4645_v26 = vadd.f32 1.0, %v12030_v46  ;;  %v4489_v16 = vmul.f32 %v4457_v47, %v13545_v24  ;;  %v4317_v49 = vadd.f32 %v13503_v13, %v10718_v43 }
 0x280   : > { %v4458_v2 = vmul.f32 %v13559_v34, %v13559_v34  ;;  %v5027_v56 = vshrl.u32 %v10225_v39, 16  ;;  %v5030_v48 = vshll.u32 %v10225_v39, 16  ;;  %12033 = vtanh.f32 %v4583_v10  ;;  %v13583_v10 = vpop.f32.mrf.mxu0 }
 0x281   : > { %v4459_v57 = vmul.f32 %v13564_v40, %v13564_v40  ;;  %v4677_v4 = vmul.f32 0.5, %v4645_v26  ;;  %12035 = vtanh.f32 %v4584_v41  ;;  %v4521_v51 = vmul.f32 0.044715, %v4489_v16  ;;  %v5384_v60 = vld [vmem:[#allocation4 + $0x3c] sm:$0xf] }
 0x282   : > { %v4490_v27 = vmul.f32 %v4458_v2, %v13559_v34  ;;  %v5029_v25 = vrot.slane %v5027_v56, 7  ;;  %v9832_v33 = vrot.slane %v6007_v50, 9  ;;  %v6121_v37 = vrot.slane %v6008_v45, 5  ;;  %5420 = vst [vmem:[#allocation5 + $0x78] sm:$0xf] %v5384_v60 }
 0x283   : > { %v4491_v61 = vmul.f32 %v4459_v57, %v13564_v40  ;;  %v4709_v15 = vmul.f32 %v4677_v4, %v13470_v14  ;;  %v4553_v36 = vadd.f32 %v4521_v51, %v13545_v24  ;;  %v4389_v6 = vadd.f32 %v4317_v49, %v13234_v38  ;;  %v6009_v38 = vld [vmem:[#allocation4 + $0x14] sm:$0x1]  ;;  %v13595_v49 = vpop.f32.mrf.mxu0 }
 0x284   : > { %v4522_v3 = vmul.f32 0.044715, %v4490_v27  ;;  %v5032_v59 = vor.u32 %v5030_v48, %v5029_v25  ;;  %v5033_v32 = vrot.slane %v5029_v25, 4  ;;  %v6122_v39 = vsel %vm12315_vm13, %v9832_v33, %v6121_v37  ;;  %v5449_v48 = vld [vmem:[#allocation4 + $0xc] sm:$0xf] }
 0x285   : > { %v4523_v11 = vmul.f32 0.044715, %v4491_v61  ;;  %v12032_v29 = vpop.eup %12031  ;;  %v10226_v20 = vpack.c.bf16 %v4709_v15, %v4709_v15  ;;  %v4585_v47 = vmul.f32 0.7978846, %v4553_v36  ;;  %v13589_v16 = vadd.f32 %v13311_v8, %v4389_v6  ;;  %6276 = vst [vmem:[#allocation5 + $0x20] sm:$0xf] %v6122_v39 }
 0x286   : > { %v4554_v13 = vadd.f32 %v4522_v3, %v13559_v34  ;;  %v5298_v14 = vsel %vm12282_vm8, %v5032_v59, %v5297_v7  ;;  %v4646_v41 = vadd.f32 1.0, %v12032_v29  ;;  %v5385_v2 = vld [vmem:[#allocation4 + $0x40] sm:$0xf]  ;;  %v6123_v51 = vrot.slane %v6121_v37, 4  ;;  %v5301_v33 = vld [vmem:[#allocation4 + $0x50] sm:$0x1] }
 0x287   : > { %v4555_v26 = vadd.f32 %v4523_v11, %v13564_v40  ;;  %5299 = vst [vmem:[#allocation4 + $0x48] sm:$0xf] %v5298_v14  ;;  %v5035_v43 = vshrl.u32 %v10226_v20, 16  ;;  %v5038_v50 = vshll.u32 %v10226_v20, 16  ;;  %12037 = vtanh.f32 %v4585_v47  ;;  %5421 = vst [vmem:[#allocation5 + $0x84] sm:$0xf] %v5385_v2  ;;  %v13607_v14 = vpop.f32.mrf.mxu0 }
 0x288   : > { %v4586_v56 = vmul.f32 0.7978846, %v4554_v13  ;;  %v4678_v57 = vmul.f32 0.5, %v4646_v41  ;;  %v4460_v4 = vmul.f32 %v13589_v16, %v13589_v16  ;;  %v6124_v25 = vrot.slane %v6009_v38, 5  ;;  %v5450_v15 = vld [vmem:[#allocation4 + $0x10] sm:$0xf] }
 0x289   : > { %v4587_v45 = vmul.f32 0.7978846, %v4555_v26  ;;  %v5037_v27 = vrot.slane %v5035_v43, 7  ;;  %v10721_v61 = vadd.f32 %v13561_v31, %v13542_v44  ;;  %v5525_v36 = vshrl.u32 %v5449_v48, 16  ;;  %v5451_v43 = vld [vmem:[#allocation4 + $0x14] sm:$0x1] }
 0x28a   : > { %12039 = vtanh.f32 %v4586_v56  ;;  %v4710_v60 = vmul.f32 %v4678_v57, %v13494_v53  ;;  %v4492_v7 = vmul.f32 %v4460_v4, %v13589_v16  ;;  %v6125_v37 = vsel %vm12315_vm13, %v6123_v51, %v6124_v25 }
 0x28b   : > { %12041 = vtanh.f32 %v4587_v45  ;;  %v5040_v3 = vor.u32 %v5038_v50, %v5037_v27  ;;  %v5042_v59 = vrot.slane %v5037_v27, 4  ;;  %v4320_v11 = vadd.f32 %v13528_v52, %v10721_v61  ;;  %6277 = vst [vmem:[#allocation5 + $0x2c] sm:$0xf] %v6125_v37  ;;  %v5304_v27 = vld [vmem:[#allocation4 + $0x54] sm:$0xf]  ;;  %v13615_v61 = vpop.f32.mrf.mxu1 }
 0x28c   : > { %v10227_v6 = vpack.c.bf16 %v4710_v60, %v4710_v60  ;;  %v4524_v29 = vmul.f32 0.044715, %v4492_v7  ;;  %v5527_v44 = vrot.slane %v5525_v36, 4  ;;  %v5528_v31 = vshll.u32 %v5449_v48, 16 }
 0x28d   : > { %v12034_v20 = vpop.eup %12033  ;;  %v5041_v53 = vsel %vm12270_vm7, %v5033_v32, %v5040_v3  ;;  %v5302_v47 = vsel %vm12238_vm4, %v5042_v59, %v5301_v33  ;;  %v4390_v13 = vadd.f32 %v4320_v11, %v13242_v42  ;;  %v5534_v39 = vshll.u32 %v5450_v15, 16 }
 0x28e   : > { %v12036_v41 = vpop.eup %12035  ;;  %5300 = vst [vmem:[#allocation4 + $0x4c] sm:$0xf] %v5041_v53  ;;  %5303 = vst [vmem:[#allocation4 + $0x50] sm:$0x1] %v5302_v47  ;;  %v5044_v52 = vshrl.u32 %v10227_v6, 16  ;;  %v5047_v26 = vshll.u32 %v10227_v6, 16  ;;  %v4556_v2 = vadd.f32 %v4524_v29, %v13589_v16  ;;  %v10724_v47 = vadd.f32 %v13583_v10, %v13573_v54 }
 0x28f   : > { %v4647_v38 = vadd.f32 1.0, %v12034_v20  ;;  %v4648_v50 = vadd.f32 1.0, %v12036_v41  ;;  %v13611_v32 = vadd.f32 %v13311_v8, %v4390_v13  ;;  %v5530_v56 = vrot.slane %v5528_v31, 5  ;;  %v5386_v57 = vld [vmem:[#allocation4 + $0x48] sm:$0xf]  ;;  %v13619_v8 = vpop.f32.mrf.mxu0 }
 0x290   : > { %v5536_v48 = vrot.slane %v5534_v39, 5  ;;  %v13613_v42 = vrot.slane %v5044_v52, 7  ;;  %v4588_v4 = vmul.f32 0.7978846, %v4556_v2  ;;  %v5538_v51 = vshrl.u32 %v5450_v15, 16  ;;  %v4324_v39 = vpop.f32.mrf.mxu1 }
 0x291   : > { %v4679_v45 = vmul.f32 0.5, %v4647_v38  ;;  %5422 = vst [vmem:[#allocation5 + $0x90] sm:$0xf] %v5386_v57  ;;  %v4680_v25 = vmul.f32 0.5, %v4648_v50  ;;  %v4461_v33 = vmul.f32 %v13611_v32, %v13611_v32  ;;  %v5531_v60 = vor.u32 %v5530_v56, %v5527_v44 }
 0x292   : > { %v5544_v7 = vshll.u32 %v5451_v43, 16  ;;  %v5049_v36 = vor.u32 %v5047_v26, %v13613_v42  ;;  %v5050_v3 = vrot.slane %v13613_v42, 4  ;;  %12043 = vtanh.f32 %v4588_v4  ;;  %v11792_v37 = vld [vmem:[#allocation5 + $0x20] ss:$12 sps:$4 sm:$0xff]   ;;  %v13634_v26 = vpop.f32.mrf.mxu0 }
 0x293   : > { %v4711_v59 = vmul.f32 %v4679_v45, %v13522_v58  ;;  %v4712_v15 = vmul.f32 %v4680_v25, %v13525_v35  ;;  %v4493_v11 = vmul.f32 %v4461_v33, %v13611_v32  ;;  %v5532_v6 = vrot.slane %v5531_v60, 4  ;;  %11368 = vmatprep.mubr.bf16.mxu0 %v11792_v37  ;;  %v5308_v60 = vld [vmem:[#allocation4 + $0x5c] sm:$0x1] }
 0x294   : > { %v5540_v29 = vrot.slane %v5538_v51, 4  ;;  %v12038_v31 = vpop.eup %12037  ;;  %v5305_v44 = vsel %vm12282_vm8, %v5049_v36, %v5304_v27  ;;  %v13628_v53 = vrot.slane %v5544_v7, 5  ;;  %v4325_v56 = vadd.f32 %v10724_v47, %v4324_v39  ;;  %v6011_v39 = vld [vmem:[#allocation4 + $0x1c] sm:$0xf] }
 0x295   : > { %v10228_v20 = vpack.c.bf16 %v4711_v59, %v4711_v59  ;;  %5306 = vst [vmem:[#allocation4 + $0x54] sm:$0xf] %v5305_v44  ;;  %v10229_v58 = vpack.c.bf16 %v4712_v15, %v4712_v15  ;;  %v4649_v13 = vadd.f32 1.0, %v12038_v31  ;;  %v4525_v35 = vmul.f32 0.044715, %v4493_v11  ;;  %v13641_v15 = vpop.f32.mrf.mxu0 }
 0x296   : > { %v5537_v52 = vsel %vm12331_vm14, %v5532_v6, %v5536_v48  ;;  %v5541_v50 = vor.u32 %v5540_v29, %v5536_v48  ;;  %v5387_v57 = vld [vmem:[#allocation4 + $0x4c] sm:$0xf]  ;;  %v4391_v59 = vadd.f32 %v4325_v56, %v13253_v30  ;;  %v5311_v6 = vld [vmem:[#allocation4 + $0x60] sm:$0xf]  ;;  %v13661_v56 = vld [vmem:[%s14986_s2] ss:$0 sm:$0xff] }
 0x297   : > { %v12040_v38 = vpop.eup %12039  ;;  %v5052_v2 = vshrl.u32 %v10228_v20, 16  ;;  %v5055_v43 = vshll.u32 %v10228_v20, 16  ;;  %5970 = vst [vmem:[#allocation5 + $0x1c] sm:$0xf] %v5537_v52  ;;  %v5061_v54 = vshrl.u32 %v10229_v58, 16  ;;  %v5064_v10 = vshll.u32 %v10229_v58, 16 }
 0x298   : > { %v12042_v42 = vpop.eup %12041  ;;  %v4681_v45 = vmul.f32 0.5, %v4649_v13  ;;  %v4650_v4 = vadd.f32 1.0, %v12040_v38  ;;  %5423 = vst [vmem:[#allocation5 + $0x9c] sm:$0xf] %v5387_v57  ;;  %v4557_v25 = vadd.f32 %v4525_v35, %v13611_v32  ;;  %v5542_v33 = vrot.slane %v5541_v50, 4  ;;  %v13653_v50 = vpop.f32.mrf.mxu0 }
 0x299   : > { %v5054_v51 = vrot.slane %v5052_v2, 7  ;;  %v4651_v27 = vadd.f32 1.0, %v12042_v42  ;;  %v13637_v7 = vrot.slane %v5061_v54, 7  ;;  %v6010_v13 = vld [vmem:[#allocation4 + $0x18] sm:$0xe]  ;;  %v13664_v57 = vadd.f32 %v13661_v56, %v4391_v59 }
 0x29a   : > { %v4713_v36 = vmul.f32 %v4681_v45, %v13545_v24  ;;  %v4682_v48 = vmul.f32 0.5, %v4650_v4  ;;  %v4589_v31 = vmul.f32 0.7978846, %v4557_v25  ;;  %v9833_v42 = vrot.slane %v6010_v13, 9  ;;  %v6012_v13 = vld [vmem:[#allocation4 + $0x20] sm:$0x1] }
 0x29b   : > { %v5057_v37 = vor.u32 %v5055_v43, %v5054_v51  ;;  %v5059_v11 = vrot.slane %v5054_v51, 4  ;;  %v4683_v29 = vmul.f32 0.5, %v4651_v27  ;;  %v5066_v44 = vor.u32 %v5064_v10, %v13637_v7  ;;  %v11830_v27 = vld [vmem:[%s14987_s3 + $0x78] sm:$0xff]  }
 0x29c   : > { %v5067_v20 = vrot.slane %v13637_v7, 4  ;;  %v10230_v47 = vpack.c.bf16 %v4713_v36, %v4713_v36  ;;  %v4714_v58 = vmul.f32 %v4682_v48, %v13559_v34  ;;  %12045 = vtanh.f32 %v4589_v31  ;;  %v5388_v52 = vld [vmem:[#allocation4 + $0x54] sm:$0xf]  ;;  %10918 = vmatprep.subr.bf16.mxu0 %v11830_v27 }
 0x29d   : > { %v5058_v24 = vsel %vm12270_vm7, %v5050_v3, %v5057_v37  ;;  %v5309_v30 = vsel %vm12238_vm4, %v5059_v11, %v5308_v60  ;;  %v4715_v35 = vmul.f32 %v4683_v29, %v13564_v40  ;;  %v5312_v38 = vsel %vm12282_vm8, %v5066_v44, %v5311_v6  ;;  %5424 = vst [vmem:[#allocation5 + $0xa8] sm:$0xf] %v5388_v52  ;;  %v5318_v37 = vld [vmem:[#allocation4 + $0x6c] sm:$0xf]  ;;  %v5452_v6 = vld [vmem:[#allocation4 + $0x18] sm:$0xf]  ;;  %v13673_v29 = vpop.f32.mrf.mxu0 }
 0x29e   : > { %5307 = vst [vmem:[#allocation4 + $0x58] sm:$0xf] %v5058_v24  ;;  %5310 = vst [vmem:[#allocation4 + $0x5c] sm:$0x1] %v5309_v30  ;;  %v5069_v2 = vshrl.u32 %v10230_v47, 16  ;;  %v5072_v43 = vshll.u32 %v10230_v47, 16  ;;  %v10231_v34 = vpack.c.bf16 %v4714_v58, %v4714_v58  ;;  %v5547_v40 = vsel %vm12331_vm14, %v5542_v33, %v13628_v53  ;;  %v13675_v47 = vpop.f32.mrf.mxu1 }
 0x29f   : > { %5313 = vst [vmem:[#allocation4 + $0x60] sm:$0xf] %v5312_v38  ;;  %v10232_v3 = vpack.c.bf16 %v4715_v35, %v4715_v35  ;;  %v12044_v54 = vpop.eup %12043  ;;  %5971 = vst [vmem:[#allocation5 + $0x28] sm:$0xf] %v5547_v40  ;;  %v6128_v51 = vrot.slane %v6011_v39, 5  ;;  %v4462_v7 = vmul.f32 %v13664_v57, %v13664_v57 }
 0x2a0   : > { %v5071_v10 = vrot.slane %v5069_v2, 7  ;;  %v5078_v45 = vshrl.u32 %v10231_v34, 16  ;;  %v5081_v4 = vshll.u32 %v10231_v34, 16  ;;  %v5315_v53 = vld [vmem:[#allocation4 + $0x68] sm:$0x1]  ;;  %v4652_v60 = vadd.f32 1.0, %v12044_v54 }
 0x2a1   : > { %v5086_v25 = vshrl.u32 %v10232_v3, 16  ;;  %v5089_v33 = vshll.u32 %v10232_v3, 16  ;;  %v6129_v11 = vsel %vm12315_vm13, %v9833_v42, %v6128_v51  ;;  %v4494_v58 = vmul.f32 %v4462_v7, %v13664_v57  ;;  %v5322_v38 = vld [vmem:[#allocation4 + $0x74] sm:$0x1]  ;;  %v5453_v40 = vld [vmem:[#allocation4 + $0x1c] sm:$0xf]  ;;  %v4327_v7 = vpop.f32.mrf.mxu1 }
 0x2a2   : > { %v5074_v36 = vor.u32 %v5072_v43, %v5071_v10  ;;  %v5076_v48 = vrot.slane %v5071_v10, 4  ;;  %v5080_v59 = vrot.slane %v5078_v45, 7  ;;  %v4684_v44 = vmul.f32 0.5, %v4652_v60  ;;  %6278 = vst [vmem:[#allocation5 + $0x38] sm:$0xf] %v6129_v11 }
 0x2a3   : > { %v5088_v31 = vrot.slane %v5086_v25, 7  ;;  %v6130_v24 = vrot.slane %v6128_v51, 4  ;;  %v4526_v3 = vmul.f32 0.044715, %v4494_v58  ;;  %v6131_v54 = vrot.slane %v6012_v13, 5 }
 0x2a4   : > { %v5075_v30 = vsel %vm12270_vm7, %v5067_v20, %v5074_v36  ;;  %v5316_v35 = vsel %vm12238_vm4, %v5076_v48, %v5315_v53  ;;  %v5083_v39 = vor.u32 %v5081_v4, %v5080_v59  ;;  %v5084_v52 = vrot.slane %v5080_v59, 4  ;;  %v5454_v10 = vld [vmem:[#allocation4 + $0x20] sm:$0x1]  ;;  %v13687_v4 = vpop.f32.mrf.mxu0  ;;  %v11793_v25 = vld [vmem:[#allocation5 + $0x18] ss:$12 sps:$4 sm:$0xff]   ;;  %v11806_v59 = vld [vmem:[%s14987_s3 + $0xb0] sm:$0xff]  }
 0x2a5   : > { %5314 = vst [vmem:[#allocation4 + $0x64] sm:$0xf] %v5075_v30  ;;  %5317 = vst [vmem:[#allocation4 + $0x68] sm:$0x1] %v5316_v35  ;;  %v5091_v2 = vor.u32 %v5089_v33, %v5088_v31  ;;  %v5093_v43 = vrot.slane %v5088_v31, 4  ;;  %v4716_v34 = vmul.f32 %v4684_v44, %v13589_v16  ;;  %v10727_v20 = vadd.f32 %v13607_v14, %v13595_v49 }
 0x2a6   : > { %v5319_v42 = vsel %vm12282_vm8, %v5083_v39, %v5318_v37  ;;  %v5549_v45 = vshrl.u32 %v5452_v6, 16  ;;  %v5389_v51 = vld [vmem:[#allocation4 + $0x58] sm:$0xf]  ;;  %v11795_v33 = vld [vmem:[#allocation5 + $0x1c] ss:$12 sps:$4 sm:$0xff]   ;;  %v4558_v60 = vadd.f32 %v4526_v3, %v13664_v57  ;;  %v6132_v49 = vsel %vm12315_vm13, %v6130_v24, %v6131_v54 }
 0x2a7   : > { %5320 = vst [vmem:[#allocation4 + $0x6c] sm:$0xf] %v5319_v42  ;;  %v5092_v27 = vsel %vm12270_vm7, %v5084_v52, %v5091_v2  ;;  %v5323_v16 = vsel %vm12238_vm4, %v5093_v43, %v5322_v38  ;;  %v10233_v53 = vpack.c.bf16 %v4716_v34, %v4716_v34  ;;  %5425 = vst [vmem:[#allocation5 + $0xb4] sm:$0xf] %v5389_v51  ;;  %v5552_v48 = vshll.u32 %v5452_v6, 16  ;;  %v13700_v6 = vpop.f32.mrf.mxu0  ;;  %v12084_v43 = vld [vmem:[%s14987_s3 + $0xb8] sm:$0xff]  }
 0x2a8   : > { %5321 = vst [vmem:[#allocation4 + $0x70] sm:$0xf] %v5092_v27  ;;  %5324 = vst [vmem:[#allocation4 + $0x74] sm:$0x1] %v5323_v16  ;;  %v4328_v14 = vadd.f32 %v10727_v20, %v4327_v7  ;;  %v5551_v36 = vrot.slane %v5549_v45, 4  ;;  %6968 = vmatprep.mubr.bf16.mxu1 %v11795_v33  ;;  %v5558_v44 = vshll.u32 %v5453_v40, 16  ;;  %v10730_v16 = vadd.f32 %v13634_v26, %v13619_v8 }
 0x2a9   : > { %v5095_v37 = vshrl.u32 %v10233_v53, 16  ;;  %v5098_v11 = vshll.u32 %v10233_v53, 16  ;;  %v4590_v31 = vmul.f32 0.7978846, %v4558_v60  ;;  %6279 = vst [vmem:[#allocation5 + $0x44] sm:$0xf] %v6132_v49  ;;  %v12046_v13 = vpop.eup %12045  ;;  %6969 = vmatmul.mubr.bf16.vlgmr.msra.gmra.mxu1 %v11793_v25 }
 0x2aa   : > { %v4773_v58 = vld [vmem:[#allocation4 + $0x90] sm:$0x1]  ;;  %v5325_v30 = vld [vmem:[#allocation4 + $0x78] sm:$0xf]  ;;  %v4392_v35 = vadd.f32 %v4328_v14, %v13399_v12  ;;  %v5554_v24 = vrot.slane %v5552_v48, 5  ;;  %v5562_v39 = vshrl.u32 %v5453_v40, 16  ;;  %11401 = vmatpush3.bf16.msra.mxu1 %v12084_v43  ;;  %v4333_v26 = vadd.f32 %v13615_v61, %v10730_v16 }
 0x2ab   : > { %v5568_v52 = vshll.u32 %v5454_v10, 16  ;;  %v13702_v38 = vrot.slane %v5095_v37, 7  ;;  %v4653_v2 = vadd.f32 1.0, %v12046_v13  ;;  %12047 = vtanh.f32 %v4590_v31  ;;  %v6013_v3 = vld [vmem:[#allocation4 + $0x24] sm:$0xe]  ;;  %11402 = vmatprep.subr.bf16.mxu1 %v11806_v59  ;;  %v11824_v31 = vld [vmem:[%s14987_s3 + $0xa0] sm:$0xff]  }
 0x2ac   : > { %v5560_v34 = vrot.slane %v5558_v44, 5  ;;  %v13708_v42 = vadd.f32 %v13661_v56, %v4392_v35  ;;  %v5555_v12 = vor.u32 %v5554_v24, %v5551_v36  ;;  %v5564_v54 = vrot.slane %v5562_v39, 4  ;;  %v6014_v20 = vld [vmem:[#allocation4 + $0x28] sm:$0xf]  ;;  %v11815_v10 = vld [vmem:[%s14987_s3 + $0xa8] sm:$0xff]   ;;  %v13721_v36 = vpop.f32.mrf.mxu0  ;;  %v11831_v44 = vld [vmem:[%s14987_s3 + $0x38] sm:$0xff]  }
 0x2ad   : > { %v5570_v40 = vrot.slane %v5568_v52, 5  ;;  %v5100_v45 = vor.u32 %v5098_v11, %v13702_v38  ;;  %v5101_v51 = vrot.slane %v13702_v38, 4  ;;  %v4685_v27 = vmul.f32 0.5, %v4653_v2  ;;  %v5390_v53 = vld [vmem:[#allocation4 + $0x60] sm:$0xf] }
 0x2ae   : > { %v5391_v25 = vld [vmem:[#allocation4 + $0x64] sm:$0xf]  ;;  %v4463_v33 = vmul.f32 %v13708_v42, %v13708_v42  ;;  %v5556_v60 = vrot.slane %v5555_v12, 4  ;;  %v5565_v7 = vor.u32 %v5564_v54, %v5560_v34  ;;  %v4774_v49 = vsel %vm12238_vm4, 0, %v4773_v58  ;;  %v6015_v14 = vld [vmem:[#allocation4 + $0x2c] sm:$0x1]  ;;  %11403 = vmatpush3.bf16.msra.mxu1 %v11806_v59 }
 0x2af   : > { %5426 = vst [vmem:[#allocation5 + $0xc0] sm:$0xf] %v5390_v53  ;;  %5427 = vst [vmem:[#allocation5 + $0xcc] sm:$0xf] %v5391_v25  ;;  %v5326_v48 = vsel %vm12282_vm8, %v5100_v45, %v5325_v30  ;;  %v4717_v8 = vmul.f32 %v4685_v27, %v13611_v32  ;;  %v9834_v37 = vrot.slane %v6013_v3, 9  ;;  %v11837_v58 = vld [vmem:[%s14987_s3 + $0x70] sm:$0xff]   ;;  %11404 = vmatprep.subr.bf16.mxu1 %v11815_v10 }
 0x2b0   : > { %4775 = vst [vmem:[#allocation4 + $0x90] sm:$0x1] %v4774_v49  ;;  %v4827_v11 = vld [vmem:[#allocation4 + $0x98] sm:$0x1]  ;;  %5327 = vst [vmem:[#allocation4 + $0x78] sm:$0xf] %v5326_v48  ;;  %v4495_v61 = vmul.f32 %v4463_v33, %v13708_v42  ;;  %v5561_v13 = vsel %vm12331_vm14, %v5556_v60, %v5560_v34  ;;  %v4393_v24 = vadd.f32 %v4333_v26, %v13250_v0 }
 0x2b1   : > { %v11798_v32 = vld [vmem:[#allocation5 + $0x38] ss:$12 sps:$4 sm:$0xff]   ;;  %v5566_v59 = vrot.slane %v5565_v7, 4  ;;  %v6135_v30 = vrot.slane %v6014_v20, 5  ;;  %v10234_v35 = vpack.c.bf16 %v4717_v8, %v4717_v8  ;;  %5972 = vst [vmem:[#allocation5 + $0x34] sm:$0xf] %v5561_v13  ;;  %v10733_v52 = vadd.f32 %v13653_v50, %v13641_v15  ;;  %v13748_v20 = vpop.f32.mrf.mxu0 }
 0x2b2   : > { %v6138_v39 = vrot.slane %v6015_v14, 5  ;;  %v5455_v2 = vld [vmem:[#allocation4 + $0x24] sm:$0xf]  ;;  %v13742_v43 = vld [vmem:[#allocation4 + $0x28] sm:$0xf]  ;;  %11369 = vmatmul.mubr.bf16.vlgmr.msra.gmra.mxu0 %v11798_v32  ;;  %v13751_v15 = vadd.f32 %v13661_v56, %v4393_v24  ;;  %11405 = vmatpush3.bf16.msra.mxu1 %v11815_v10  ;;  %v4828_v33 = vsel %vm12250_vm6, 0, %v4827_v11  ;;  %v13770_v14 = vpop.f32.mrf.mxu1 }
 0x2b3   : > { %v4527_v3 = vmul.f32 0.044715, %v4495_v61  ;;  %v5571_v12 = vsel %vm12331_vm14, %v5566_v59, %v5570_v40  ;;  %v6136_v34 = vsel %vm12315_vm13, %v9834_v37, %v6135_v30  ;;  %v6137_v54 = vrot.slane %v6135_v30, 4  ;;  %v5392_v45 = vld [vmem:[#allocation4 + $0x6c] sm:$0xf]  ;;  %10919 = vmatpush3.bf16.msra.mxu0 %v11831_v44  ;;  %11406 = vmatprep.subr.bf16.mxu1 %v11824_v31  ;;  %v11843_v10 = vld [vmem:[%s14987_s3 + $0x68] sm:$0xff]   ;;  %v13776_v32 = vpop.f32.mrf.mxu0 }
 0x2b4   : > { %v5103_v0 = vshrl.u32 %v10234_v35, 16  ;;  %v5106_v27 = vshll.u32 %v10234_v35, 16  ;;  %5973 = vst [vmem:[#allocation5 + $0x40] sm:$0xf] %v5571_v12  ;;  %6280 = vst [vmem:[#allocation5 + $0x50] sm:$0xf] %v6136_v34  ;;  %v4336_v50 = vadd.f32 %v13675_v47, %v10733_v52  ;;  %10920 = vmatprep.subr.bf16.mxu0 %v11837_v58  ;;  %v4464_v49 = vmul.f32 %v13751_v15, %v13751_v15 }
 0x2b5   : > { %v5393_v16 = vld [vmem:[#allocation4 + $0x70] sm:$0xf]  ;;  %5428 = vst [vmem:[#allocation5 + $0xd8] sm:$0xf] %v5392_v45  ;;  %v11838_v40 = vld [vmem:[%s14987_s3 + $0x30] sm:$0xff]   ;;  %v4559_v53 = vadd.f32 %v4527_v3, %v13708_v42  ;;  %v6139_v25 = vsel %vm12315_vm13, %v6137_v54, %v6138_v39  ;;  %v5573_v60 = vshrl.u32 %v5455_v2, 16  ;;  %v10736_v58 = vadd.f32 %v13687_v4, %v13673_v29  ;;  %v4340_v54 = vpop.f32.mrf.mxu1 }
 0x2b6   : > { %5429 = vst [vmem:[#allocation5 + $0xe4] sm:$0xf] %v5393_v16  ;;  %v11835_v47 = vld [vmem:[%s14987_s3 + $0x98] sm:$0xff]   ;;  %v5105_v7 = vrot.slane %v5103_v0, 7  ;;  %6281 = vst [vmem:[#allocation5 + $0x5c] sm:$0xf] %v6139_v25  ;;  %v4394_v48 = vadd.f32 %v4336_v50, %v13261_v63  ;;  %v4496_v59 = vmul.f32 %v4464_v49, %v13751_v15  ;;  %11407 = vmatpush3.bf16.msra.mxu1 %v11824_v31  ;;  %v13804_v25 = vpop.f32.mrf.mxu0 }
 0x2b7   : > { %4829 = vst [vmem:[#allocation4 + $0x98] sm:$0x1] %v4828_v33  ;;  %v5576_v8 = vshll.u32 %v5455_v2, 16  ;;  %v5329_v26 = vld [vmem:[#allocation4 + $0x80] sm:$0x1]  ;;  %v5575_v11 = vrot.slane %v5573_v60, 4  ;;  %10921 = vmatpush3.bf16.msra.mxu0 %v11838_v40  ;;  %11408 = vmatprep.subr.bf16.mxu1 %v11835_v47  ;;  %v4341_v40 = vadd.f32 %v10736_v58, %v4340_v54 }
 0x2b8   : > { %v4591_v37 = vmul.f32 0.7978846, %v4559_v53  ;;  %v5582_v44 = vshll.u32 %v13742_v43, 16  ;;  %v5108_v61 = vor.u32 %v5106_v27, %v5105_v7  ;;  %v5110_v13 = vrot.slane %v5105_v7, 4  ;;  %v4776_v63 = vld [vmem:[#allocation4 + $0x9c] sm:$0x1]  ;;  %v12048_v39 = vpop.eup %12047  ;;  %10922 = vmatprep.subr.bf16.mxu0 %v11843_v10 }
 0x2b9   : > { %v13780_v30 = vadd.f32 %v13661_v56, %v4394_v48  ;;  %v5394_v35 = vld [vmem:[#allocation4 + $0x78] sm:$0xf]  ;;  %v11844_v24 = vld [vmem:[%s14987_s3 + $0x28] sm:$0xff]   ;;  %v5457_v29 = vld [vmem:[#allocation4 + $0x2c] sm:$0x1]  ;;  %v5578_v4 = vrot.slane %v5576_v8, 5 }
 0x2ba   : > { %12049 = vtanh.f32 %v4591_v37  ;;  %v13785_v52 = vrot.slane %v5582_v44, 5  ;;  %v5586_v2 = vshrl.u32 %v13742_v43, 16  ;;  %5430 = vst [vmem:[#allocation5 + $0xf0] sm:$0xf] %v5394_v35  ;;  %v5109_v31 = vsel %vm12270_vm7, %v5101_v51, %v5108_v61  ;;  %v13794_v45 = vld [vmem:[#allocation4 + $0x30] sm:$0xe]  ;;  %11409 = vmatpush3.bf16.msra.mxu1 %v11835_v47 }
 0x2bb   : > { %v5330_v3 = vsel %vm12238_vm4, %v5110_v13, %v5329_v26  ;;  %v4654_v12 = vadd.f32 1.0, %v12048_v39  ;;  %v4528_v34 = vmul.f32 0.044715, %v4496_v59  ;;  %v11848_v43 = vld [vmem:[%s14987_s3 + $0x90] sm:$0xff]   ;;  %v11850_v0 = vld [vmem:[%s14987_s3 + $0x60] sm:$0xff]   ;;  %v4465_v27 = vmul.f32 %v13780_v30, %v13780_v30  ;;  %10923 = vmatpush3.bf16.msra.mxu0 %v11844_v24  ;;  %v11856_v47 = vld [vmem:[%s14987_s3 + $0x58] sm:$0xff]   ;;  %v13821_v13 = vpop.f32.mrf.mxu1  ;;  %v13830_v39 = vpop.f32.mrf.mxu0 }
 0x2bc   : > { %5328 = vst [vmem:[#allocation4 + $0x7c] sm:$0xf] %v5109_v31  ;;  %5331 = vst [vmem:[#allocation4 + $0x80] sm:$0x1] %v5330_v3  ;;  %v11799_v38 = vld [vmem:[#allocation5 + $0x30] ss:$12 sps:$4 sm:$0xff]   ;;  %v5579_v50 = vor.u32 %v5578_v4, %v5575_v11  ;;  %v4395_v11 = vadd.f32 %v4341_v40, %v13272_v62  ;;  %v10739_v44 = vadd.f32 %v13721_v36, %v13700_v6  ;;  %11410 = vmatprep.subr.bf16.mxu1 %v11848_v43 }
 0x2bd   : > { %v11801_v51 = vld [vmem:[#allocation5 + $0x34] ss:$12 sps:$4 sm:$0xff]   ;;  %v5588_v16 = vrot.slane %v5586_v2, 4  ;;  %v6017_v53 = vld [vmem:[#allocation4 + $0x34] sm:$0xf]  ;;  %v4686_v33 = vmul.f32 0.5, %v4654_v12  ;;  %v4560_v60 = vadd.f32 %v4528_v34, %v13751_v15  ;;  %v4497_v26 = vmul.f32 %v4465_v27, %v13780_v30  ;;  %10924 = vmatprep.subr.bf16.mxu0 %v11850_v0  ;;  %v4343_v0 = vpop.f32.mrf.mxu1 }
 0x2be   : > { %v5592_v10 = vshll.u32 %v5457_v29, 16  ;;  %v4777_v7 = vsel %vm12238_vm4, 0, %v4776_v63  ;;  %v6018_v49 = vld [vmem:[#allocation4 + $0x38] sm:$0x1]  ;;  %6976 = vmatprep.mubr.bf16.mxu1 %v11801_v51  ;;  %v11802_v8 = vld [vmem:[#allocation5 + $0x50] ss:$12 sps:$4 sm:$0xff]   ;;  %v13827_v24 = vadd.f32 %v13661_v56, %v4395_v11  ;;  %11411 = vmatpush3.bf16.msra.mxu1 %v11848_v43 }
 0x2bf   : > { %v11851_v48 = vld [vmem:[%s14987_s3 + $0x20] sm:$0xff]   ;;  %v5589_v37 = vor.u32 %v5588_v16, %v13785_v52  ;;  %4778 = vst [vmem:[#allocation4 + $0x9c] sm:$0x1] %v4777_v7  ;;  %v4718_v58 = vmul.f32 %v4686_v33, %v13664_v57  ;;  %v4592_v61 = vmul.f32 0.7978846, %v4560_v60  ;;  %6977 = vmatmul.mubr.bf16.gmra.mxu1 %v11799_v38  ;;  %v5580_v59 = vrot.slane %v5579_v50, 4  ;;  %11372 = vmatprep.mubr.bf16.mxu0 %v11802_v8  ;;  %v10746_v60 = vpop.f32.mrf.mxu0 }
 0x2c0   : > { %v5594_v63 = vrot.slane %v5592_v10, 5  ;;  %v4830_v35 = vld [vmem:[#allocation4 + $0xa4] sm:$0x1]  ;;  %v4529_v6 = vmul.f32 0.044715, %v4497_v26  ;;  %v9835_v57 = vrot.slane %v13794_v45, 9  ;;  %10925 = vmatpush3.bf16.msra.mxu0 %v11851_v48  ;;  %v4466_v34 = vmul.f32 %v13827_v24, %v13827_v24 }
 0x2c1   : > { %v11861_v62 = vld [vmem:[%s14987_s3 + $0x88] sm:$0xff]   ;;  %v5590_v36 = vrot.slane %v5589_v37, 4  ;;  %v10235_v29 = vpack.c.bf16 %v4718_v58, %v4718_v58  ;;  %12051 = vtanh.f32 %v4592_v61  ;;  %v5585_v4 = vsel %vm12331_vm14, %v5580_v59, %v13785_v52  ;;  %v11857_v31 = vld [vmem:[%s14987_s3 + $0x18] sm:$0xff]   ;;  %10926 = vmatprep.subr.bf16.mxu0 %v11856_v47  ;;  %v11863_v10 = vld [vmem:[%s14987_s3 + $0x50] sm:$0xff]  }
 0x2c2   : > { %v6142_v2 = vrot.slane %v6017_v53, 5  ;;  %v4561_v3 = vadd.f32 %v4529_v6, %v13780_v30  ;;  %5974 = vst [vmem:[#allocation5 + $0x4c] sm:$0xf] %v5585_v4  ;;  %v6145_v54 = vrot.slane %v6018_v49, 5  ;;  %v5458_v45 = vld [vmem:[#allocation4 + $0x30] sm:$0xf]  ;;  %11412 = vmatprep.subr.bf16.mxu1 %v11861_v62  ;;  %v4498_v40 = vmul.f32 %v4466_v34, %v13827_v24 }
 0x2c3   : > { %v5595_v12 = vsel %vm12331_vm14, %v5590_v36, %v5594_v63  ;;  %v5112_v52 = vshrl.u32 %v10235_v29, 16  ;;  %v5115_v43 = vshll.u32 %v10235_v29, 16  ;;  %v5459_v27 = vld [vmem:[#allocation4 + $0x34] sm:$0xf]  ;;  %v5332_v50 = vld [vmem:[#allocation4 + $0x84] sm:$0xf]  ;;  %v4344_v53 = vadd.f32 %v10739_v44, %v4343_v0  ;;  %11413 = vmatpush3.bf16.msra.mxu1 %v11861_v62 }
 0x2c4   : > { %5975 = vst [vmem:[#allocation5 + $0x58] sm:$0xf] %v5595_v12  ;;  %v6143_v38 = vsel %vm12315_vm13, %v9835_v57, %v6142_v2  ;;  %v6144_v51 = vrot.slane %v6142_v2, 4  ;;  %v4593_v16 = vmul.f32 0.7978846, %v4561_v3  ;;  %v4831_v33 = vsel %vm12250_vm6, 0, %v4830_v35  ;;  %10927 = vmatpush3.bf16.msra.mxu0 %v11857_v31 }
 0x2c5   : > { %6282 = vst [vmem:[#allocation5 + $0x68] sm:$0xf] %v6143_v38  ;;  %v13851_v7 = vrot.slane %v5112_v52, 7  ;;  %4832 = vst [vmem:[#allocation4 + $0xa4] sm:$0x1] %v4831_v33  ;;  %v5597_v8 = vshrl.u32 %v5458_v45, 16  ;;  %v4396_v44 = vadd.f32 %v4344_v53, %v13404_v21  ;;  %10928 = vmatprep.subr.bf16.mxu0 %v11863_v10  ;;  %v10747_v21 = vpop.f32.mrf.mxu0  ;;  %v10742_v0 = vadd.f32 %v13776_v32, %v13748_v20 }
 0x2c6   : > { %v6146_v49 = vsel %vm12315_vm13, %v6144_v51, %v6145_v54  ;;  %v5460_v48 = vld [vmem:[#allocation4 + $0x38] sm:$0x1]  ;;  %v5600_v26 = vshll.u32 %v5458_v45, 16  ;;  %v11864_v37 = vld [vmem:[%s14987_s3 + $0x10] sm:$0xff]   ;;  %12053 = vtanh.f32 %v4593_v16  ;;  %v4530_v11 = vmul.f32 0.044715, %v4498_v40 }
 0x2c7   : > { %6283 = vst [vmem:[#allocation5 + $0x74] sm:$0xf] %v6146_v49  ;;  %v5606_v47 = vshll.u32 %v5459_v27, 16  ;;  %v5395_v58 = vld [vmem:[#allocation4 + $0x7c] sm:$0xf]  ;;  %v12050_v61 = vpop.eup %12049  ;;  %v5117_v59 = vor.u32 %v5115_v43, %v13851_v7  ;;  %v5118_v63 = vrot.slane %v13851_v7, 4  ;;  %v13863_v57 = vadd.f32 %v13661_v56, %v4396_v44 }
 0x2c8   : > { %v5599_v35 = vrot.slane %v5597_v8, 4  ;;  %v5602_v6 = vrot.slane %v5600_v26, 5  ;;  %5431 = vst [vmem:[#allocation5 + $0xfc] sm:$0xf] %v5395_v58  ;;  %v4655_v62 = vadd.f32 1.0, %v12050_v61  ;;  %v4562_v36 = vadd.f32 %v4530_v11, %v13827_v24  ;;  %10929 = vmatpush3.bf16.msra.mxu0 %v11864_v37  ;;  %v11869_v20 = vld [vmem:[%s14987_s3 + $0x48] sm:$0xff]  }
 0x2c9   : > { %v5608_v29 = vrot.slane %v5606_v47, 5  ;;  %v4779_v4 = vld [vmem:[#allocation4 + $0xa8] sm:$0x1]  ;;  %v5333_v2 = vsel %vm12282_vm8, %v5117_v59, %v5332_v50  ;;  %v5610_v3 = vshrl.u32 %v5459_v27, 16  ;;  %v5616_v12 = vshll.u32 %v5460_v48, 16  ;;  %v11870_v32 = vld [vmem:[%s14987_s3 + $0x8] sm:$0xff]   ;;  %10930 = vmatprep.subr.bf16.mxu0 %v11869_v20 }
 0x2ca   : > { %v5603_v31 = vor.u32 %v5602_v6, %v5599_v35  ;;  %v6019_v34 = vld [vmem:[#allocation4 + $0x3c] sm:$0xe]  ;;  %5334 = vst [vmem:[#allocation4 + $0x84] sm:$0xf] %v5333_v2  ;;  %v4687_v54 = vmul.f32 0.5, %v4655_v62  ;;  %v4467_v43 = vmul.f32 %v13863_v57, %v13863_v57  ;;  %v10745_v51 = vadd.f32 %v13830_v39, %v13804_v25 }
 0x2cb   : > { %v11803_v45 = vld [vmem:[#allocation5 + $0x48] ss:$12 sps:$4 sm:$0xff]   ;;  %v11805_v52 = vld [vmem:[#allocation5 + $0x4c] ss:$12 sps:$4 sm:$0xff]   ;;  %v4594_v50 = vmul.f32 0.7978846, %v4562_v36  ;;  %v13873_v40 = vadd.f32 %v10747_v21, %v10746_v60  ;;  %v4349_v49 = vadd.f32 %v13770_v14, %v10742_v0 }
 0x2cc   : > { %v6020_v38 = vld [vmem:[#allocation4 + $0x40] sm:$0xf]  ;;  %v5604_v16 = vrot.slane %v5603_v31, 4  ;;  %v5612_v27 = vrot.slane %v5610_v3, 4  ;;  %v4719_v53 = vmul.f32 %v4687_v54, %v13708_v42  ;;  %6984 = vmatprep.mubr.bf16.mxu1 %v11805_v52  ;;  %v4499_v33 = vmul.f32 %v4467_v43, %v13863_v57  ;;  %v6021_v48 = vld [vmem:[#allocation4 + $0x44] sm:$0x1]  ;;  %10931 = vmatpush3.bf16.msra.mxu0 %v11870_v32 }
 0x2cd   : > { %v5618_v10 = vrot.slane %v5616_v12, 5  ;;  %12055 = vtanh.f32 %v4594_v50  ;;  %6985 = vmatmul.mubr.bf16.gmra.mxu1 %v11803_v45  ;;  %v4780_v60 = vsel %vm12238_vm4, 0, %v4779_v4  ;;  %v11874_v14 = vld [vmem:[%s14987_s3 + $0x80] sm:$0xff]   ;;  %v4397_v11 = vadd.f32 %v4349_v49, %v13268_v22  ;;  %v4833_v47 = vld [vmem:[#allocation4 + $0xb0] sm:$0x1] }
 0x2ce   : > { %v11807_v25 = vld [vmem:[#allocation5 + $0x68] ss:$12 sps:$4 sm:$0xff]   ;;  %v5609_v42 = vsel %vm12331_vm14, %v5604_v16, %v5608_v29  ;;  %v5613_v39 = vor.u32 %v5612_v27, %v5608_v29  ;;  %v12052_v8 = vpop.eup %12051  ;;  %v10236_v26 = vpack.c.bf16 %v4719_v53, %v4719_v53  ;;  %v4531_v37 = vmul.f32 0.044715, %v4499_v33  ;;  %4781 = vst [vmem:[#allocation4 + $0xa8] sm:$0x1] %v4780_v60  ;;  %11414 = vmatprep.subr.bf16.mxu1 %v11874_v14 }
 0x2cf   : > { %5976 = vst [vmem:[#allocation5 + $0x64] sm:$0xf] %v5609_v42  ;;  %v9836_v44 = vrot.slane %v6019_v34, 9  ;;  %v4656_v58 = vadd.f32 1.0, %v12052_v8  ;;  %11373 = vmatmul.mubr.bf16.gmra.mxu0 %v11807_v25  ;;  %v6149_v59 = vrot.slane %v6020_v38, 5  ;;  %v6152_v35 = vrot.slane %v6021_v48, 5  ;;  %11415 = vmatpush3.bf16.msra.mxu1 %v11874_v14 }
 0x2d0   : > { %v5614_v61 = vrot.slane %v5613_v39, 4  ;;  %v5120_v6 = vshrl.u32 %v10236_v26, 16  ;;  %v5123_v62 = vshll.u32 %v10236_v26, 16  ;;  %v4563_v36 = vadd.f32 %v4531_v37, %v13863_v57  ;;  %v5461_v4 = vld [vmem:[#allocation4 + $0x3c] sm:$0xf] }
 0x2d1   : > { %v13894_v29 = vadd.f32 %v13661_v56, %v4397_v11  ;;  %v4688_v22 = vmul.f32 0.5, %v4656_v58  ;;  %v6150_v2 = vsel %vm12315_vm13, %v9836_v44, %v6149_v59  ;;  %v6151_v31 = vrot.slane %v6149_v59, 4  ;;  %v5396_v3 = vld [vmem:[#allocation4 + $0x84] sm:$0xf]  ;;  %v5336_v34 = vld [vmem:[#allocation4 + $0x8c] sm:$0x1] }
 0x2d2   : > { %v5619_v21 = vsel %vm12331_vm14, %v5614_v61, %v5618_v10  ;;  %v5122_v12 = vrot.slane %v5120_v6, 7  ;;  %v4595_v54 = vmul.f32 0.7978846, %v4563_v36  ;;  %6284 = vst [vmem:[#allocation5 + $0x80] sm:$0xf] %v6150_v2  ;;  %v4352_v52 = vadd.f32 %v13821_v13, %v10745_v51  ;;  %v13908_v10 = vpop.f32.mrf.mxu1  ;;  %v13910_v13 = vpop.f32.mrf.mxu0  ;;  %v11877_v51 = vld [vmem:[%s14987_s3] sm:$0xff]  }
 0x2d3   : > { %5977 = vst [vmem:[#allocation5 + $0x70] sm:$0xf] %v5619_v21  ;;  %v4468_v45 = vmul.f32 %v13894_v29, %v13894_v29  ;;  %5432 = vst [vmem:[#allocation5 + $0x108] sm:$0xf] %v5396_v3  ;;  %v12054_v43 = vpop.eup %12053  ;;  %v4720_v0 = vmul.f32 %v4688_v22, %v13751_v15  ;;  %v6153_v38 = vsel %vm12315_vm13, %v6151_v31, %v6152_v35  ;;  %v4834_v50 = vsel %vm12250_vm6, 0, %v4833_v47  ;;  %v11876_v15 = vld [vmem:[%s14987_s3 + $0x40] sm:$0xff]  }
 0x2d4   : > { %v5621_v16 = vshrl.u32 %v5461_v4, 16  ;;  %v5125_v27 = vor.u32 %v5123_v62, %v5122_v12  ;;  %v5127_v53 = vrot.slane %v5122_v12, 4  ;;  %v4657_v33 = vadd.f32 1.0, %v12054_v43  ;;  %6285 = vst [vmem:[#allocation5 + $0x8c] sm:$0xf] %v6153_v38  ;;  %10932 = vmatprep.subr.bf16.mxu0 %v11876_v15  ;;  %v4356_v44 = vpop.f32.mrf.mxu1  ;;  %v13930_v61 = vpop.f32.mrf.mxu0 }
 0x2d5   : > { %12057 = vtanh.f32 %v4595_v54  ;;  %4835 = vst [vmem:[#allocation4 + $0xb0] sm:$0x1] %v4834_v50  ;;  %v10237_v49 = vpack.c.bf16 %v4720_v0, %v4720_v0  ;;  %v4500_v48 = vmul.f32 %v4468_v45, %v13894_v29  ;;  %v4398_v20 = vadd.f32 %v4352_v52, %v13276_v18  ;;  %v5462_v32 = vld [vmem:[#allocation4 + $0x40] sm:$0xf]  ;;  %10933 = vmatpush3.bf16.msra.mxu0 %v11877_v51  ;;  %v5375_v11 = vld [vmem:[#allocation4 + $0x4] sm:$0xf] }
 0x2d6   : > { %v5623_v25 = vrot.slane %v5621_v16, 4  ;;  %v5126_v42 = vsel %vm12270_vm7, %v5118_v63, %v5125_v27  ;;  %v5337_v39 = vsel %vm12238_vm4, %v5127_v53, %v5336_v34  ;;  %v4689_v60 = vmul.f32 0.5, %v4657_v33  ;;  %5411 = vst [vmem:[#allocation5 + $0xc] sm:$0xf] %v5375_v11  ;;  %v11808_v35 = vld [vmem:[#allocation5 + $0x60] ss:$12 sps:$4 sm:$0xff]   ;;  %v13937_v33 = vpop.f32.mrf.mxu0 }
 0x2d7   : > { %v5624_v14 = vshll.u32 %v5461_v4, 16  ;;  %5335 = vst [vmem:[#allocation4 + $0x88] sm:$0xf] %v5126_v42  ;;  %5338 = vst [vmem:[#allocation4 + $0x8c] sm:$0x1] %v5337_v39  ;;  %v5129_v8 = vshrl.u32 %v10237_v49, 16  ;;  %v13927_v18 = vadd.f32 %v13661_v56, %v4398_v20  ;;  %v4357_v22 = vadd.f32 %v13873_v40, %v4356_v44 }
 0x2d8   : > { %v5132_v26 = vshll.u32 %v10237_v49, 16  ;;  %v4532_v37 = vmul.f32 0.044715, %v4500_v48  ;;  %v4721_v7 = vmul.f32 %v4689_v60, %v13780_v30  ;;  %v5630_v47 = vshll.u32 %v5462_v32, 16  ;;  %v5463_v4 = vld [vmem:[#allocation4 + $0x44] sm:$0x1] }
 0x2d9   : > { %v5626_v63 = vrot.slane %v5624_v14, 5  ;;  %v5634_v58 = vshrl.u32 %v5462_v32, 16  ;;  %v5131_v59 = vrot.slane %v5129_v8, 7  ;;  %v4469_v36 = vmul.f32 %v13927_v18, %v13927_v18  ;;  %v5339_v30 = vld [vmem:[#allocation4 + $0x90] sm:$0xf] }
 0x2da   : > { %v11810_v6 = vld [vmem:[#allocation5 + $0x64] ss:$12 sps:$4 sm:$0xff]   ;;  %v4564_v62 = vadd.f32 %v4532_v37, %v13894_v29  ;;  %v12056_v21 = vpop.eup %12055  ;;  %v10238_v2 = vpack.c.bf16 %v4721_v7, %v4721_v7  ;;  %v5632_v3 = vrot.slane %v5630_v47, 5  ;;  %v4782_v34 = vld [vmem:[#allocation4 + $0xb4] sm:$0x1]  ;;  %v4399_v14 = vadd.f32 %v4357_v22, %v13286_v5 }
 0x2db   : > { %v5627_v31 = vor.u32 %v5626_v63, %v5623_v25  ;;  %v5636_v12 = vrot.slane %v5634_v58, 4  ;;  %v5134_v54 = vor.u32 %v5132_v26, %v5131_v59  ;;  %v5135_v45 = vrot.slane %v5131_v59, 4  ;;  %6992 = vmatprep.mubr.bf16.mxu1 %v11810_v6  ;;  %v11811_v50 = vld [vmem:[#allocation5 + $0x80] ss:$12 sps:$4 sm:$0xff]   ;;  %v6022_v40 = vld [vmem:[#allocation4 + $0x48] sm:$0xe] }
 0x2dc   : > { %v4658_v52 = vadd.f32 1.0, %v12056_v21  ;;  %v4596_v43 = vmul.f32 0.7978846, %v4564_v62  ;;  %v5137_v0 = vshrl.u32 %v10238_v2, 16  ;;  %v5140_v38 = vshll.u32 %v10238_v2, 16  ;;  %6993 = vmatmul.mubr.bf16.gmra.mxu1 %v11808_v35  ;;  %11376 = vmatprep.mubr.bf16.mxu0 %v11811_v50  ;;  %v11887_v26 = vld [vmem:[%s14987_s3 + $0x238] sm:$0xff]   ;;  %v13963_v2 = vpop.f32.mrf.mxu1 }
 0x2dd   : > { %v4501_v16 = vmul.f32 %v4469_v36, %v13927_v18  ;;  %v5637_v27 = vor.u32 %v5636_v12, %v5632_v3  ;;  %v6023_v53 = vld [vmem:[#allocation4 + $0x4c] sm:$0xf]  ;;  %v5340_v15 = vsel %vm12282_vm8, %v5134_v54, %v5339_v30  ;;  %v5628_v49 = vrot.slane %v5627_v31, 4  ;;  %v5343_v42 = vld [vmem:[#allocation4 + $0x98] sm:$0x1]  ;;  %11448 = vmatprep.subr.bf16.mxu0 %v11887_v26  ;;  %v11889_v6 = vld [vmem:[%s14987_s3 + $0x1f8] sm:$0xff]  }
 0x2de   : > { %v4690_v51 = vmul.f32 0.5, %v4658_v52  ;;  %12059 = vtanh.f32 %v4596_v43  ;;  %5341 = vst [vmem:[#allocation4 + $0x90] sm:$0xf] %v5340_v15  ;;  %v5139_v48 = vrot.slane %v5137_v0, 7  ;;  %v5640_v25 = vshll.u32 %v5463_v4, 16  ;;  %11054 = vmatprep.subr.bf16.mxu1 %v11889_v6 }
 0x2df   : > { %v4533_v20 = vmul.f32 0.044715, %v4501_v16  ;;  %v5638_v32 = vrot.slane %v5637_v27, 4  ;;  %v5633_v60 = vsel %vm12331_vm14, %v5628_v49, %v5632_v3  ;;  %v4783_v8 = vsel %vm12238_vm4, 0, %v4782_v34  ;;  %v5397_v63 = vld [vmem:[#allocation4 + $0x88] sm:$0xf] }
 0x2e0   : > { %v4722_v39 = vmul.f32 %v4690_v51, %v13827_v24  ;;  %v5142_v37 = vor.u32 %v5140_v38, %v5139_v48  ;;  %v5144_v11 = vrot.slane %v5139_v48, 4  ;;  %v5642_v44 = vrot.slane %v5640_v25, 5  ;;  %5978 = vst [vmem:[#allocation5 + $0x7c] sm:$0xf] %v5633_v60  ;;  %4784 = vst [vmem:[#allocation4 + $0xb4] sm:$0x1] %v4783_v8  ;;  %v13951_v24 = vpop.f32.mrf.mxu0 }
 0x2e1   : > { %v4565_v7 = vadd.f32 %v4533_v20, %v13927_v18  ;;  %v13954_v5 = vadd.f32 %v13661_v56, %v4399_v14  ;;  %v9837_v59 = vrot.slane %v6022_v40, 9  ;;  %v6156_v35 = vrot.slane %v6023_v53, 5  ;;  %5433 = vst [vmem:[#allocation5 + $0x114] sm:$0xf] %v5397_v63  ;;  %v6024_v21 = vld [vmem:[#allocation4 + $0x50] sm:$0x1] }
 0x2e2   : > { %v12058_v47 = vpop.eup %12057  ;;  %v10239_v58 = vpack.c.bf16 %v4722_v39, %v4722_v39  ;;  %v5143_v62 = vsel %vm12270_vm7, %v5135_v45, %v5142_v37  ;;  %v5344_v36 = vsel %vm12238_vm4, %v5144_v11, %v5343_v42  ;;  %v5643_v31 = vsel %vm12331_vm14, %v5638_v32, %v5642_v44  ;;  %v4836_v12 = vld [vmem:[#allocation4 + $0xbc] sm:$0x1]  ;;  %v5464_v34 = vld [vmem:[#allocation4 + $0x48] sm:$0xf]  ;;  %v10755_v43 = vpop.f32.mrf.mxu0  ;;  %v5465_v27 = vld [vmem:[#allocation4 + $0x4c] sm:$0xf] }
 0x2e3   : > { %v4659_v4 = vadd.f32 1.0, %v12058_v47  ;;  %v4597_v22 = vmul.f32 0.7978846, %v4565_v7  ;;  %5342 = vst [vmem:[#allocation4 + $0x94] sm:$0xf] %v5143_v62  ;;  %v4470_v3 = vmul.f32 %v13954_v5, %v13954_v5  ;;  %v6157_v45 = vsel %vm12315_vm13, %v9837_v59, %v6156_v35  ;;  %v4359_v42 = vpop.f32.mrf.mxu1 }
 0x2e4   : > { %5345 = vst [vmem:[#allocation4 + $0x98] sm:$0x1] %v5344_v36  ;;  %v5146_v56 = vshrl.u32 %v10239_v58, 16  ;;  %v5149_v30 = vshll.u32 %v10239_v58, 16  ;;  %5979 = vst [vmem:[#allocation5 + $0x88] sm:$0xf] %v5643_v31  ;;  %v10751_v16 = vadd.f32 %v13930_v61, %v13910_v13  ;;  %v10756_v14 = vpop.f32.mrf.mxu0 }
 0x2e5   : > { %v4691_v54 = vmul.f32 0.5, %v4659_v4  ;;  %12061 = vtanh.f32 %v4597_v22  ;;  %v6158_v52 = vrot.slane %v6156_v35, 4  ;;  %v4502_v38 = vmul.f32 %v4470_v3, %v13954_v5  ;;  %6286 = vst [vmem:[#allocation5 + $0x98] sm:$0xf] %v6157_v45  ;;  %v5398_v40 = vld [vmem:[#allocation4 + $0x90] sm:$0xf] }
 0x2e6   : > { %v13971_v0 = vrot.slane %v5146_v56, 7  ;;  %v6159_v50 = vrot.slane %v6024_v21, 5  ;;  %v5346_v53 = vld [vmem:[#allocation4 + $0x9c] sm:$0xf]  ;;  %v4837_v51 = vsel %vm12250_vm6, 0, %v4836_v12  ;;  %v5645_v49 = vshrl.u32 %v5464_v34, 16 }
 0x2e7   : > { %v4723_v15 = vmul.f32 %v4691_v54, %v13863_v57  ;;  %v5648_v48 = vshll.u32 %v5464_v34, 16  ;;  %5434 = vst [vmem:[#allocation5 + $0x120] sm:$0xf] %v5398_v40  ;;  %v4534_v25 = vmul.f32 0.044715, %v4502_v38  ;;  %v4360_v39 = vadd.f32 %v10751_v16, %v4359_v42 }
 0x2e8   : > { %v5151_v20 = vor.u32 %v5149_v30, %v13971_v0  ;;  %v5152_v32 = vrot.slane %v13971_v0, 4  ;;  %v6160_v13 = vsel %vm12315_vm13, %v6158_v52, %v6159_v50  ;;  %4838 = vst [vmem:[#allocation4 + $0xbc] sm:$0x1] %v4837_v51  ;;  %v5647_v57 = vrot.slane %v5645_v49, 4  ;;  %v5466_v58 = vld [vmem:[#allocation4 + $0x50] sm:$0x1] }
 0x2e9   : > { %v10240_v61 = vpack.c.bf16 %v4723_v15, %v4723_v15  ;;  %6287 = vst [vmem:[#allocation5 + $0xa4] sm:$0xf] %v6160_v13  ;;  %v5650_v60 = vrot.slane %v5648_v48, 5  ;;  %v4566_v26 = vadd.f32 %v4534_v25, %v13954_v5  ;;  %v5654_v37 = vshll.u32 %v5465_v27, 16  ;;  %v5350_v35 = vld [vmem:[#allocation4 + $0xa4] sm:$0x1] }
 0x2ea   : > { %v5347_v8 = vsel %vm12282_vm8, %v5151_v20, %v5346_v53  ;;  %v5658_v11 = vshrl.u32 %v5465_v27, 16  ;;  %v4400_v47 = vadd.f32 %v4360_v39, %v13412_v17  ;;  %v11812_v62 = vld [vmem:[#allocation5 + $0x78] ss:$12 sps:$4 sm:$0xff]   ;;  %v10754_v4 = vadd.f32 %v13951_v24, %v13937_v33  ;;  %v13992_v30 = vld [vmem:[%s14986_s2] ss:$0 sm:$0xff] }
 0x2eb   : > { %v12060_v7 = vpop.eup %12059  ;;  %5348 = vst [vmem:[#allocation4 + $0x9c] sm:$0xf] %v5347_v8  ;;  %v5154_v44 = vshrl.u32 %v10240_v61, 16  ;;  %v5157_v63 = vshll.u32 %v10240_v61, 16  ;;  %v5651_v59 = vor.u32 %v5650_v60, %v5647_v57  ;;  %v11814_v36 = vld [vmem:[#allocation5 + $0x7c] ss:$12 sps:$4 sm:$0xff]   ;;  %v10757_v22 = vadd.f32 %v10756_v14, %v10755_v43 }
 0x2ec   : > { %v4660_v6 = vadd.f32 1.0, %v12060_v7  ;;  %v4598_v56 = vmul.f32 0.7978846, %v4566_v26  ;;  %v13995_v31 = vadd.f32 %v13992_v30, %v4400_v47  ;;  %v4785_v3 = vld [vmem:[#allocation4 + $0xc0] sm:$0x1]  ;;  %7000 = vmatprep.mubr.bf16.mxu1 %v11814_v36  ;;  %v5656_v34 = vrot.slane %v5654_v37, 5 }
 0x2ed   : > { %v5156_v21 = vrot.slane %v5154_v44, 7  ;;  %v5652_v17 = vrot.slane %v5651_v59, 4  ;;  %v5660_v54 = vrot.slane %v5658_v11, 4  ;;  %v5664_v45 = vshll.u32 %v5466_v58, 16  ;;  %v5399_v52 = vld [vmem:[#allocation4 + $0x94] sm:$0xf]  ;;  %7001 = vmatmul.mubr.bf16.gmra.mxu1 %v11812_v62 }
 0x2ee   : > { %v4692_v12 = vmul.f32 0.5, %v4660_v6  ;;  %12063 = vtanh.f32 %v4598_v56  ;;  %v4471_v43 = vmul.f32 %v13995_v31, %v13995_v31  ;;  %v6025_v0 = vld [vmem:[#allocation4 + $0x54] sm:$0xe]  ;;  %v6026_v38 = vld [vmem:[#allocation4 + $0x58] sm:$0xf]  ;;  %v4365_v48 = vadd.f32 %v13908_v10, %v10754_v4 }
 0x2ef   : > { %v5159_v33 = vor.u32 %v5157_v63, %v5156_v21  ;;  %v5161_v24 = vrot.slane %v5156_v21, 4  ;;  %5435 = vst [vmem:[#allocation5 + $0x12c] sm:$0xf] %v5399_v52  ;;  %v5657_v27 = vsel %vm12331_vm14, %v5652_v17, %v5656_v34  ;;  %v5661_v40 = vor.u32 %v5660_v54, %v5656_v34  ;;  %v6027_v20 = vld [vmem:[#allocation4 + $0x5c] sm:$0x1] }
 0x2f0   : > { %v4724_v50 = vmul.f32 %v4692_v12, %v13894_v29  ;;  %v11816_v16 = vld [vmem:[#allocation5 + $0x98] ss:$12 sps:$4 sm:$0xff]   ;;  %v5666_v53 = vrot.slane %v5664_v45, 5  ;;  %v4503_v49 = vmul.f32 %v4471_v43, %v13995_v31  ;;  %5980 = vst [vmem:[#allocation5 + $0x94] sm:$0xf] %v5657_v27  ;;  %v4786_v13 = vsel %vm12238_vm4, 0, %v4785_v3 }
 0x2f1   : > { %v5160_v15 = vsel %vm12270_vm7, %v5152_v32, %v5159_v33  ;;  %v5351_v51 = vsel %vm12238_vm4, %v5161_v24, %v5350_v35  ;;  %11377 = vmatmul.mubr.bf16.gmra.mxu0 %v11816_v16  ;;  %v5662_v42 = vrot.slane %v5661_v40, 4  ;;  %v9838_v61 = vrot.slane %v6025_v0, 9  ;;  %v4839_v32 = vld [vmem:[#allocation4 + $0xc8] sm:$0x1]  ;;  %4787 = vst [vmem:[#allocation4 + $0xc0] sm:$0x1] %v4786_v13 }
 0x2f2   : > { %v12062_v25 = vpop.eup %12061  ;;  %5349 = vst [vmem:[#allocation4 + $0xa0] sm:$0xf] %v5160_v15  ;;  %5352 = vst [vmem:[#allocation4 + $0xa4] sm:$0x1] %v5351_v51  ;;  %v10241_v29 = vpack.c.bf16 %v4724_v50, %v4724_v50  ;;  %v4535_v57 = vmul.f32 0.044715, %v4503_v49  ;;  %v4401_v60 = vadd.f32 %v4365_v48, %v13302_v55  ;;  %v4368_v35 = vadd.f32 %v13963_v2, %v10757_v22 }
 0x2f3   : > { %v4661_v39 = vadd.f32 1.0, %v12062_v25  ;;  %v6163_v14 = vrot.slane %v6026_v38, 5  ;;  %v5400_v8 = vld [vmem:[#allocation4 + $0x9c] sm:$0xf]  ;;  %v5667_v37 = vsel %vm12331_vm14, %v5662_v42, %v5666_v53  ;;  %v6166_v11 = vrot.slane %v6027_v20, 5 }
 0x2f4   : > { %v5163_v10 = vshrl.u32 %v10241_v29, 16  ;;  %v5166_v26 = vshll.u32 %v10241_v29, 16  ;;  %v5467_v7 = vld [vmem:[#allocation4 + $0x54] sm:$0xf]  ;;  %5436 = vst [vmem:[#allocation5 + $0x138] sm:$0xf] %v5400_v8  ;;  %v4567_v63 = vadd.f32 %v4535_v57, %v13995_v31  ;;  %v14015_v47 = vadd.f32 %v13992_v30, %v4401_v60 }
 0x2f5   : > { %v4693_v44 = vmul.f32 0.5, %v4661_v39  ;;  %5981 = vst [vmem:[#allocation5 + $0xa0] sm:$0xf] %v5667_v37  ;;  %v6164_v55 = vsel %vm12315_vm13, %v9838_v61, %v6163_v14  ;;  %v6165_v59 = vrot.slane %v6163_v14, 4  ;;  %v4840_v6 = vsel %vm12250_vm6, 0, %v4839_v32 }
 0x2f6   : > { %v5165_v58 = vrot.slane %v5163_v10, 7  ;;  %6288 = vst [vmem:[#allocation5 + $0xb0] sm:$0xf] %v6164_v55  ;;  %v5468_v62 = vld [vmem:[#allocation4 + $0x58] sm:$0xf]  ;;  %v4472_v56 = vmul.f32 %v14015_v47, %v14015_v47  ;;  %v5669_v17 = vshrl.u32 %v5467_v7, 16  ;;  %v4402_v2 = vadd.f32 %v4368_v35, %v13306_v1 }
 0x2f7   : > { %v5353_v36 = vld [vmem:[#allocation4 + $0xa8] sm:$0xf]  ;;  %v4725_v4 = vmul.f32 %v4693_v44, %v13927_v18  ;;  %v4599_v21 = vmul.f32 0.7978846, %v4567_v63  ;;  %4841 = vst [vmem:[#allocation4 + $0xc8] sm:$0x1] %v4840_v6  ;;  %v6167_v34 = vsel %vm12315_vm13, %v6165_v59, %v6166_v11 }
 0x2f8   : > { %v5168_v3 = vor.u32 %v5166_v26, %v5165_v58  ;;  %v5169_v12 = vrot.slane %v5165_v58, 4  ;;  %v4504_v54 = vmul.f32 %v4472_v56, %v14015_v47  ;;  %6289 = vst [vmem:[#allocation5 + $0xbc] sm:$0xf] %v6167_v34  ;;  %v5671_v45 = vrot.slane %v5669_v17, 4  ;;  %v5469_v33 = vld [vmem:[#allocation4 + $0x5c] sm:$0x1] }
 0x2f9   : > { %v10242_v22 = vpack.c.bf16 %v4725_v4, %v4725_v4  ;;  %12065 = vtanh.f32 %v4599_v21  ;;  %v14032_v52 = vadd.f32 %v13992_v30, %v4402_v2  ;;  %v5672_v24 = vshll.u32 %v5467_v7, 16  ;;  %v5401_v0 = vld [vmem:[#allocation4 + $0xa0] sm:$0xf]  ;;  %v11817_v40 = vld [vmem:[#allocation5 + $0x90] ss:$12 sps:$4 sm:$0xff]  }
 0x2fa   : > { %v5354_v18 = vsel %vm12282_vm8, %v5168_v3, %v5353_v36  ;;  %v5678_v43 = vshll.u32 %v5468_v62, 16  ;;  %v4536_v1 = vmul.f32 0.044715, %v4504_v54  ;;  %v5682_v16 = vshrl.u32 %v5468_v62, 16  ;;  %5437 = vst [vmem:[#allocation5 + $0x144] sm:$0xf] %v5401_v0 }
 0x2fb   : > { %5355 = vst [vmem:[#allocation4 + $0xa8] sm:$0xf] %v5354_v18  ;;  %v5171_v38 = vshrl.u32 %v10242_v22, 16  ;;  %v5174_v50 = vshll.u32 %v10242_v22, 16  ;;  %v12064_v27 = vpop.eup %12063  ;;  %v4473_v15 = vmul.f32 %v14032_v52, %v14032_v52  ;;  %v5674_v51 = vrot.slane %v5672_v24, 5 }
 0x2fc   : > { %v11819_v53 = vld [vmem:[#allocation5 + $0x94] ss:$12 sps:$4 sm:$0xff]   ;;  %v4662_v30 = vadd.f32 1.0, %v12064_v27  ;;  %v4568_v48 = vadd.f32 %v4536_v1, %v14015_v47  ;;  %v5680_v20 = vrot.slane %v5678_v43, 5  ;;  %v5357_v25 = vld [vmem:[#allocation4 + $0xb0] sm:$0x1] }
 0x2fd   : > { %v5173_v49 = vrot.slane %v5171_v38, 7  ;;  %7008 = vmatprep.mubr.bf16.mxu1 %v11819_v53  ;;  %v4505_v29 = vmul.f32 %v4473_v15, %v14032_v52  ;;  %v5675_v42 = vor.u32 %v5674_v51, %v5671_v45  ;;  %v5684_v13 = vrot.slane %v5682_v16, 4  ;;  %v6028_v32 = vld [vmem:[#allocation4 + $0x60] sm:$0xe]  ;;  %v6029_v39 = vld [vmem:[#allocation4 + $0x64] sm:$0xf] }
 0x2fe   : > { %v5688_v61 = vshll.u32 %v5469_v33, 16  ;;  %v4694_v14 = vmul.f32 0.5, %v4662_v30  ;;  %v4600_v8 = vmul.f32 0.7978846, %v4568_v48  ;;  %7009 = vmatmul.mubr.bf16.gmra.mxu1 %v11817_v40  ;;  %v6030_v10 = vld [vmem:[#allocation4 + $0x68] sm:$0x1] }
 0x2ff   : > { %v5176_v57 = vor.u32 %v5174_v50, %v5173_v49  ;;  %v5178_v60 = vrot.slane %v5173_v49, 4  ;;  %v11820_v26 = vld [vmem:[#allocation5 + $0xb0] ss:$12 sps:$4 sm:$0xff]   ;;  %v4537_v37 = vmul.f32 0.044715, %v4505_v29  ;;  %v5685_v11 = vor.u32 %v5684_v13, %v5680_v20 }
 0x300   : > { %v4726_v63 = vmul.f32 %v4694_v14, %v13954_v5  ;;  %12067 = vtanh.f32 %v4600_v8  ;;  %v5470_v55 = vld [vmem:[#allocation4 + $0x60] sm:$0xf]  ;;  %11380 = vmatprep.mubr.bf16.mxu0 %v11820_v26  ;;  %v5676_v59 = vrot.slane %v5675_v42, 4  ;;  %v5690_v6 = vrot.slane %v5688_v61, 5  ;;  %v5471_v62 = vld [vmem:[#allocation4 + $0x64] sm:$0xf] }
 0x301   : > { %v5177_v7 = vsel %vm12270_vm7, %v5169_v12, %v5176_v57  ;;  %v5358_v44 = vsel %vm12238_vm4, %v5178_v60, %v5357_v25  ;;  %v4569_v58 = vadd.f32 %v4537_v37, %v14032_v52  ;;  %v5686_v35 = vrot.slane %v5685_v11, 4  ;;  %v5472_v17 = vld [vmem:[#allocation4 + $0x68] sm:$0x1]  ;;  %v6031_v22 = vld [vmem:[#allocation4 + $0x6c] sm:$0xe] }
 0x302   : > { %5356 = vst [vmem:[#allocation4 + $0xac] sm:$0xf] %v5177_v7  ;;  %5359 = vst [vmem:[#allocation4 + $0xb0] sm:$0x1] %v5358_v44  ;;  %v10243_v36 = vpack.c.bf16 %v4726_v63, %v4726_v63  ;;  %v9839_v4 = vrot.slane %v6028_v32, 9  ;;  %v6170_v21 = vrot.slane %v6029_v39, 5  ;;  %v5681_v5 = vsel %vm12331_vm14, %v5676_v59, %v5680_v20 }
 0x303   : > { %v6173_v56 = vrot.slane %v6030_v10, 5  ;;  %v5402_v3 = vld [vmem:[#allocation4 + $0xa8] sm:$0xf]  ;;  %v4601_v12 = vmul.f32 0.7978846, %v4569_v58  ;;  %v5691_v34 = vsel %vm12331_vm14, %v5686_v35, %v5690_v6  ;;  %v5693_v2 = vshrl.u32 %v5470_v55, 16 }
 0x304   : > { %5438 = vst [vmem:[#allocation5 + $0x150] sm:$0xf] %v5402_v3  ;;  %v5180_v54 = vshrl.u32 %v10243_v36, 16  ;;  %v5183_v45 = vshll.u32 %v10243_v36, 16  ;;  %5982 = vst [vmem:[#allocation5 + $0xac] sm:$0xf] %v5681_v5  ;;  %v6171_v18 = vsel %vm12315_vm13, %v9839_v4, %v6170_v21 }
 0x305   : > { %5983 = vst [vmem:[#allocation5 + $0xb8] sm:$0xf] %v5691_v34  ;;  %v6172_v33 = vrot.slane %v6170_v21, 4  ;;  %v6032_v24 = vld [vmem:[#allocation4 + $0x70] sm:$0xf]  ;;  %12069 = vtanh.f32 %v4601_v12  ;;  %v5695_v38 = vrot.slane %v5693_v2, 4 }
 0x306   : > { %v6033_v43 = vld [vmem:[#allocation4 + $0x74] sm:$0x1]  ;;  %v12066_v0 = vpop.eup %12065  ;;  %6290 = vst [vmem:[#allocation5 + $0xc8] sm:$0xf] %v6171_v18  ;;  %v5696_v50 = vshll.u32 %v5470_v55, 16  ;;  %v5702_v1 = vshll.u32 %v5471_v62, 16 }
 0x307   : > { %v5473_v16 = vld [vmem:[#allocation4 + $0x6c] sm:$0xf]  ;;  %v14050_v27 = vrot.slane %v5180_v54, 7  ;;  %v4663_v40 = vadd.f32 1.0, %v12066_v0  ;;  %v6174_v53 = vsel %vm12315_vm13, %v6172_v33, %v6173_v56  ;;  %v5706_v15 = vshrl.u32 %v5471_v62, 16 }
 0x308   : > { %v5360_v51 = vld [vmem:[#allocation4 + $0xb4] sm:$0xf]  ;;  %6291 = vst [vmem:[#allocation5 + $0xd4] sm:$0xf] %v6174_v53  ;;  %v5698_v49 = vrot.slane %v5696_v50, 5  ;;  %v5704_v30 = vrot.slane %v5702_v1, 5 }
 0x309   : > { %v5712_v48 = vshll.u32 %v5472_v17, 16  ;;  %v9840_v20 = vrot.slane %v6031_v22, 9  ;;  %v5185_v25 = vor.u32 %v5183_v45, %v14050_v27  ;;  %v5186_v29 = vrot.slane %v14050_v27, 4  ;;  %v5474_v60 = vld [vmem:[#allocation4 + $0x70] sm:$0xf] }
 0x30a   : > { %v4695_v42 = vmul.f32 0.5, %v4663_v40  ;;  %v5708_v13 = vrot.slane %v5706_v15, 4  ;;  %v5699_v61 = vor.u32 %v5698_v49, %v5695_v38  ;;  %v6177_v39 = vrot.slane %v6032_v24, 5  ;;  %v5475_v26 = vld [vmem:[#allocation4 + $0x74] sm:$0x1] }
 0x30b   : > { %v5714_v32 = vrot.slane %v5712_v48, 5  ;;  %v6180_v57 = vrot.slane %v6033_v43, 5  ;;  %v5361_v14 = vsel %vm12282_vm8, %v5185_v25, %v5360_v51  ;;  %v5717_v37 = vshrl.u32 %v5473_v16, 16  ;;  %v5403_v11 = vld [vmem:[#allocation4 + $0xac] sm:$0xf] }
 0x30c   : > { %v4727_v8 = vmul.f32 %v4695_v42, %v13995_v31  ;;  %v5709_v10 = vor.u32 %v5708_v13, %v5704_v30  ;;  %5362 = vst [vmem:[#allocation4 + $0xb4] sm:$0xf] %v5361_v14  ;;  %v11821_v7 = vld [vmem:[#allocation5 + $0xa8] ss:$12 sps:$4 sm:$0xff]   ;;  %v5700_v44 = vrot.slane %v5699_v61, 4  ;;  %v6178_v63 = vsel %vm12315_vm13, %v9840_v20, %v6177_v39 }
 0x30d   : > { %v6179_v55 = vrot.slane %v6177_v39, 4  ;;  %v6034_v58 = vld [vmem:[#allocation4 + $0x78] sm:$0xe]  ;;  %v6035_v59 = vld [vmem:[#allocation4 + $0x7c] sm:$0xf]  ;;  %v5719_v36 = vrot.slane %v5717_v37, 4  ;;  %v12068_v31 = vpop.eup %12067 }
 0x30e   : > { %5439 = vst [vmem:[#allocation5 + $0x15c] sm:$0xf] %v5403_v11  ;;  %v10244_v35 = vpack.c.bf16 %v4727_v8, %v4727_v8  ;;  %v11823_v6 = vld [vmem:[#allocation5 + $0xac] ss:$12 sps:$4 sm:$0xff]   ;;  %v5710_v62 = vrot.slane %v5709_v10, 4  ;;  %v5705_v4 = vsel %vm12331_vm14, %v5700_v44, %v5704_v30  ;;  %v5720_v56 = vshll.u32 %v5473_v16, 16 }
 0x30f   : > { %6292 = vst [vmem:[#allocation5 + $0xe0] sm:$0xf] %v6178_v63  ;;  %v6181_v21 = vsel %vm12315_vm13, %v6179_v55, %v6180_v57  ;;  %v5726_v17 = vshll.u32 %v5474_v60, 16  ;;  %v6036_v3 = vld [vmem:[#allocation4 + $0x80] sm:$0x1]  ;;  %v4664_v34 = vadd.f32 1.0, %v12068_v31  ;;  %7016 = vmatprep.mubr.bf16.mxu1 %v11823_v6 }
 0x310   : > { %v5188_v12 = vshrl.u32 %v10244_v35, 16  ;;  %v5191_v5 = vshll.u32 %v10244_v35, 16  ;;  %v5715_v2 = vsel %vm12331_vm14, %v5710_v62, %v5714_v32  ;;  %5984 = vst [vmem:[#allocation5 + $0xc4] sm:$0xf] %v5705_v4  ;;  %6293 = vst [vmem:[#allocation5 + $0xec] sm:$0xf] %v6181_v21  ;;  %7017 = vmatmul.mubr.bf16.gmra.mxu1 %v11821_v7 }
 0x311   : > { %v11825_v22 = vld [vmem:[#allocation5 + $0xc8] ss:$12 sps:$4 sm:$0xff]   ;;  %5985 = vst [vmem:[#allocation5 + $0xd0] sm:$0xf] %v5715_v2  ;;  %v5722_v54 = vrot.slane %v5720_v56, 5  ;;  %v5728_v45 = vrot.slane %v5726_v17, 5 }
 0x312   : > { %v5730_v18 = vshrl.u32 %v5474_v60, 16  ;;  %v5736_v33 = vshll.u32 %v5475_v26, 16  ;;  %v5476_v24 = vld [vmem:[#allocation4 + $0x78] sm:$0xf]  ;;  %v5190_v43 = vrot.slane %v5188_v12, 7  ;;  %v4696_v0 = vmul.f32 0.5, %v4664_v34  ;;  %11381 = vmatmul.mubr.bf16.gmra.mxu0 %v11825_v22  ;;  %v12070_v51 = vpop.eup %12069 }
 0x313   : > { %v9841_v38 = vrot.slane %v6034_v58, 9  ;;  %v6184_v50 = vrot.slane %v6035_v59, 5  ;;  %v5364_v1 = vld [vmem:[#allocation4 + $0xbc] sm:$0x1]  ;;  %v5723_v16 = vor.u32 %v5722_v54, %v5719_v36  ;;  %v6187_v15 = vrot.slane %v6036_v3, 5 }
 0x314   : > { %v5732_v40 = vrot.slane %v5730_v18, 4  ;;  %v5738_v53 = vrot.slane %v5736_v33, 5  ;;  %v5193_v49 = vor.u32 %v5191_v5, %v5190_v43  ;;  %v5195_v30 = vrot.slane %v5190_v43, 4  ;;  %v5477_v25 = vld [vmem:[#allocation4 + $0x7c] sm:$0xf] }
 0x315   : > { %v4728_v48 = vmul.f32 %v4696_v0, %v14015_v47  ;;  %v6185_v20 = vsel %vm12315_vm13, %v9841_v38, %v6184_v50  ;;  %v5404_v42 = vld [vmem:[#allocation4 + $0xb4] sm:$0xf]  ;;  %v4665_v13 = vadd.f32 1.0, %v12070_v51  ;;  %v5724_v61 = vrot.slane %v5723_v16, 4  ;;  %v5478_v57 = vld [vmem:[#allocation4 + $0x80] sm:$0x1] }
 0x316   : > { %v5733_v32 = vor.u32 %v5732_v40, %v5728_v45  ;;  %v6186_v39 = vrot.slane %v6184_v50, 4  ;;  %6294 = vst [vmem:[#allocation5 + $0xf8] sm:$0xf] %v6185_v20  ;;  %5440 = vst [vmem:[#allocation5 + $0x168] sm:$0xf] %v5404_v42  ;;  %v5194_v60 = vsel %vm12270_vm7, %v5186_v29, %v5193_v49  ;;  %v5365_v47 = vsel %vm12238_vm4, %v5195_v30, %v5364_v1 }
 0x317   : > { %v10245_v14 = vpack.c.bf16 %v4728_v48, %v4728_v48  ;;  %v5741_v8 = vshrl.u32 %v5476_v24, 16  ;;  %v6037_v10 = vld [vmem:[#allocation4 + $0x84] sm:$0xe]  ;;  %5363 = vst [vmem:[#allocation4 + $0xb8] sm:$0xf] %v5194_v60  ;;  %v4697_v26 = vmul.f32 0.5, %v4665_v13  ;;  %v5729_v11 = vsel %vm12331_vm14, %v5724_v61, %v5728_v45 }
 0x318   : > { %5366 = vst [vmem:[#allocation4 + $0xbc] sm:$0x1] %v5365_v47  ;;  %v11829_v37 = vld [vmem:[#allocation5 + $0xe0] ss:$12 sps:$4 sm:$0xff]   ;;  %v6188_v7 = vsel %vm12315_vm13, %v6186_v39, %v6187_v15  ;;  %v5734_v29 = vrot.slane %v5733_v32, 4  ;;  %v5744_v6 = vshll.u32 %v5476_v24, 16 }
 0x319   : > { %v5197_v27 = vshrl.u32 %v10245_v14, 16  ;;  %v5200_v44 = vshll.u32 %v10245_v14, 16  ;;  %v11826_v63 = vld [vmem:[#allocation5 + $0xc0] ss:$12 sps:$4 sm:$0xff]   ;;  %5986 = vst [vmem:[#allocation5 + $0xdc] sm:$0xf] %v5729_v11  ;;  %v4729_v58 = vmul.f32 %v4697_v26, %v14032_v52  ;;  %11384 = vmatprep.mubr.bf16.mxu0 %v11829_v37 }
 0x31a   : > { %6295 = vst [vmem:[#allocation5 + $0x104] sm:$0xf] %v6188_v7  ;;  %v6038_v55 = vld [vmem:[#allocation4 + $0x88] sm:$0xf]  ;;  %v5743_v35 = vrot.slane %v5741_v8, 4  ;;  %v5750_v62 = vshll.u32 %v5477_v25, 16  ;;  %v5739_v21 = vsel %vm12331_vm14, %v5734_v29, %v5738_v53 }
 0x31b   : > { %v11828_v59 = vld [vmem:[#allocation5 + $0xc4] ss:$12 sps:$4 sm:$0xff]   ;;  %v6039_v36 = vld [vmem:[#allocation4 + $0x8c] sm:$0x1]  ;;  %v5479_v31 = vld [vmem:[#allocation4 + $0x84] sm:$0xf]  ;;  %v10246_v12 = vpack.c.bf16 %v4729_v58, %v4729_v58 }
 0x31c   : > { %v5199_v4 = vrot.slane %v5197_v27, 7  ;;  %v5754_v56 = vshrl.u32 %v5477_v25, 16  ;;  %v5760_v17 = vshll.u32 %v5478_v57, 16  ;;  %v5367_v3 = vld [vmem:[#allocation4 + $0xc0] sm:$0xf]  ;;  %7024 = vmatprep.mubr.bf16.mxu1 %v11828_v59  ;;  %v5746_v5 = vrot.slane %v5744_v6, 5 }
 0x31d   : > { %5987 = vst [vmem:[#allocation5 + $0xe8] sm:$0xf] %v5739_v21  ;;  %v5752_v34 = vrot.slane %v5750_v62, 5  ;;  %v9842_v52 = vrot.slane %v6037_v10, 9  ;;  %7025 = vmatmul.mubr.bf16.gmra.mxu1 %v11826_v63  ;;  %v5205_v18 = vshrl.u32 %v10246_v12, 16  ;;  %v5208_v33 = vshll.u32 %v10246_v12, 16 }
 0x31e   : > { %v5202_v2 = vor.u32 %v5200_v44, %v5199_v4  ;;  %v5203_v22 = vrot.slane %v5199_v4, 4  ;;  %v5756_v54 = vrot.slane %v5754_v56, 4  ;;  %v5762_v45 = vrot.slane %v5760_v17, 5  ;;  %v5371_v38 = vld [vmem:[#allocation4 + $0xc8] sm:$0x1] }
 0x31f   : > { %v5747_v24 = vor.u32 %v5746_v5, %v5743_v35  ;;  %v6191_v43 = vrot.slane %v6038_v55, 5  ;;  %v6194_v1 = vrot.slane %v6039_v36, 5  ;;  %v5480_v16 = vld [vmem:[#allocation4 + $0x88] sm:$0xf]  ;;  %v5765_v40 = vshrl.u32 %v5479_v31, 16 }
 0x320   : > { %v5368_v0 = vsel %vm12282_vm8, %v5202_v2, %v5367_v3  ;;  %v5757_v50 = vor.u32 %v5756_v54, %v5752_v34  ;;  %v5207_v53 = vrot.slane %v5205_v18, 7  ;;  %v5481_v49 = vld [vmem:[#allocation4 + $0x8c] sm:$0x1]  ;;  %v6040_v30 = vld [vmem:[#allocation4 + $0x90] sm:$0xe]  ;;  %v5768_v57 = vshll.u32 %v5479_v31, 16 }
 0x321   : > { %5369 = vst [vmem:[#allocation4 + $0xc0] sm:$0xf] %v5368_v0  ;;  %v11836_v15 = vld [vmem:[#allocation5 + $0xf8] ss:$12 sps:$4 sm:$0xff]   ;;  %v6192_v51 = vsel %vm12315_vm13, %v9842_v52, %v6191_v43  ;;  %v6041_v48 = vld [vmem:[#allocation4 + $0x94] sm:$0xf] }
 0x322   : > { %v5748_v20 = vrot.slane %v5747_v24, 4  ;;  %v5758_v25 = vrot.slane %v5757_v50, 4  ;;  %v6193_v42 = vrot.slane %v6191_v43, 4  ;;  %6296 = vst [vmem:[#allocation5 + $0x110] sm:$0xf] %v6192_v51  ;;  %v5767_v19 = vrot.slane %v5765_v40, 4  ;;  %11385 = vmatmul.mubr.bf16.gmra.mxu0 %v11836_v15 }
 0x323   : > { %v5482_v13 = vld [vmem:[#allocation4 + $0x90] sm:$0xf]  ;;  %v5405_v61 = vld [vmem:[#allocation4 + $0xb8] sm:$0xf]  ;;  %v5210_v32 = vor.u32 %v5208_v33, %v5207_v53  ;;  %v5212_v39 = vrot.slane %v5207_v53, 4  ;;  %v5774_v60 = vshll.u32 %v5480_v16, 16 }
 0x324   : > { %v6042_v47 = vld [vmem:[#allocation4 + $0x98] sm:$0x1]  ;;  %5441 = vst [vmem:[#allocation5 + $0x174] sm:$0xf] %v5405_v61  ;;  %v11832_v14 = vld [vmem:[#allocation5 + $0xd8] ss:$12 sps:$4 sm:$0xff]   ;;  %v5753_v10 = vsel %vm12331_vm14, %v5748_v20, %v5752_v34  ;;  %v5763_v26 = vsel %vm12331_vm14, %v5758_v25, %v5762_v45  ;;  %v6195_v37 = vsel %vm12315_vm13, %v6193_v42, %v6194_v1 }
 0x325   : > { %v11834_v8 = vld [vmem:[#allocation5 + $0xdc] ss:$12 sps:$4 sm:$0xff]   ;;  %v5778_v11 = vshrl.u32 %v5480_v16, 16  ;;  %v5211_v7 = vsel %vm12270_vm7, %v5203_v22, %v5210_v32  ;;  %v5372_v27 = vsel %vm12238_vm4, %v5212_v39, %v5371_v38  ;;  %5988 = vst [vmem:[#allocation5 + $0xf4] sm:$0xf] %v5753_v10  ;;  %v5770_v44 = vrot.slane %v5768_v57, 5 }
 0x326   : > { %5989 = vst [vmem:[#allocation5 + $0x100] sm:$0xf] %v5763_v26  ;;  %6297 = vst [vmem:[#allocation5 + $0x11c] sm:$0xf] %v6195_v37  ;;  %v5776_v63 = vrot.slane %v5774_v60, 5  ;;  %7032 = vmatprep.mubr.bf16.mxu1 %v11834_v8  ;;  %v5784_v55 = vshll.u32 %v5481_v49, 16 }
 0x327   : > { %5370 = vst [vmem:[#allocation4 + $0xc4] sm:$0xf] %v5211_v7  ;;  %5373 = vst [vmem:[#allocation4 + $0xc8] sm:$0x1] %v5372_v27  ;;  %v5780_v29 = vrot.slane %v5778_v11, 4  ;;  %v9843_v58 = vrot.slane %v6040_v30, 9  ;;  %7033 = vmatmul.mubr.bf16.gmra.mxu1 %v11832_v14  ;;  %v5771_v6 = vor.u32 %v5770_v44, %v5767_v19 }
 0x328   : > { %v6198_v59 = vrot.slane %v6041_v48, 5  ;;  %v5483_v35 = vld [vmem:[#allocation4 + $0x94] sm:$0xf]  ;;  %v6201_v9 = vrot.slane %v6042_v47, 5  ;;  %v5484_v62 = vld [vmem:[#allocation4 + $0x98] sm:$0x1] }
 0x329   : > { %v5789_v36 = vshrl.u32 %v5482_v13, 16  ;;  %v5792_v31 = vshll.u32 %v5482_v13, 16  ;;  %v5781_v4 = vor.u32 %v5780_v29, %v5776_v63  ;;  %v5786_v21 = vrot.slane %v5784_v55, 5  ;;  %v6043_v3 = vld [vmem:[#allocation4 + $0x9c] sm:$0xe] }
 0x32a   : > { %v6199_v56 = vsel %vm12315_vm13, %v9843_v58, %v6198_v59  ;;  %v6200_v17 = vrot.slane %v6198_v59, 4  ;;  %v5406_v12 = vld [vmem:[#allocation4 + $0xc0] sm:$0xf]  ;;  %v5772_v5 = vrot.slane %v5771_v6, 4  ;;  %v5798_v2 = vshll.u32 %v5483_v35, 16 }
 0x32b   : > { %6298 = vst [vmem:[#allocation5 + $0x128] sm:$0xf] %v6199_v56  ;;  %v5791_v34 = vrot.slane %v5789_v36, 4  ;;  %v5794_v52 = vrot.slane %v5792_v31, 5  ;;  %v6044_v22 = vld [vmem:[#allocation4 + $0xa0] sm:$0xf] }
 0x32c   : > { %5442 = vst [vmem:[#allocation5 + $0x180] sm:$0xf] %v5406_v12  ;;  %v5782_v54 = vrot.slane %v5781_v4, 4  ;;  %v6202_v45 = vsel %vm12315_vm13, %v6200_v17, %v6201_v9  ;;  %v5802_v18 = vshrl.u32 %v5483_v35, 16  ;;  %v5808_v33 = vshll.u32 %v5484_v62, 16 }
 0x32d   : > { %v6045_v24 = vld [vmem:[#allocation4 + $0xa4] sm:$0x1]  ;;  %v5485_v43 = vld [vmem:[#allocation4 + $0x9c] sm:$0xf]  ;;  %v5777_v0 = vsel %vm12331_vm14, %v5772_v5, %v5776_v63  ;;  %6299 = vst [vmem:[#allocation5 + $0x134] sm:$0xf] %v6202_v45  ;;  %v5795_v38 = vor.u32 %v5794_v52, %v5791_v34 }
 0x32e   : > { %v5800_v50 = vrot.slane %v5798_v2, 5  ;;  %v9844_v1 = vrot.slane %v6043_v3, 9  ;;  %v5486_v16 = vld [vmem:[#allocation4 + $0xa0] sm:$0xf]  ;;  %v11839_v40 = vld [vmem:[#allocation5 + $0xf0] ss:$12 sps:$4 sm:$0xff]   ;;  %v5787_v53 = vsel %vm12331_vm14, %v5782_v54, %v5786_v21 }
 0x32f   : > { %5990 = vst [vmem:[#allocation5 + $0x10c] sm:$0xf] %v5777_v0  ;;  %v5804_v15 = vrot.slane %v5802_v18, 4  ;;  %v5810_v51 = vrot.slane %v5808_v33, 5  ;;  %v11841_v49 = vld [vmem:[#allocation5 + $0xf4] ss:$12 sps:$4 sm:$0xff]  }
 0x330   : > { %v11842_v30 = vld [vmem:[#allocation5 + $0x110] ss:$12 sps:$4 sm:$0xff]   ;;  %5991 = vst [vmem:[#allocation5 + $0x118] sm:$0xf] %v5787_v53  ;;  %v5487_v48 = vld [vmem:[#allocation4 + $0xa4] sm:$0x1]  ;;  %7040 = vmatprep.mubr.bf16.mxu1 %v11841_v49 }
 0x331   : > { %v6046_v20 = vld [vmem:[#allocation4 + $0xa8] sm:$0xe]  ;;  %v5796_v25 = vrot.slane %v5795_v38, 4  ;;  %v5805_v42 = vor.u32 %v5804_v15, %v5800_v50  ;;  %v6205_v19 = vrot.slane %v6044_v22, 5  ;;  %v6208_v13 = vrot.slane %v6045_v24, 5  ;;  %11388 = vmatprep.mubr.bf16.mxu0 %v11842_v30  ;;  %7041 = vmatmul.mubr.bf16.gmra.mxu1 %v11839_v40 }
 0x332   : > { %v6047_v61 = vld [vmem:[#allocation4 + $0xac] sm:$0xf]  ;;  %v5813_v32 = vshrl.u32 %v5485_v43, 16  ;;  %v5816_v39 = vshll.u32 %v5485_v43, 16  ;;  %v5822_v57 = vshll.u32 %v5486_v16, 16  ;;  %v5826_v60 = vshrl.u32 %v5486_v16, 16 }
 0x333   : > { %v6048_v47 = vld [vmem:[#allocation4 + $0xb0] sm:$0x1]  ;;  %v5801_v14 = vsel %vm12331_vm14, %v5796_v25, %v5800_v50  ;;  %v5806_v8 = vrot.slane %v5805_v42, 4  ;;  %v6206_v10 = vsel %vm12315_vm13, %v9844_v1, %v6205_v19  ;;  %v6207_v26 = vrot.slane %v6205_v19, 4  ;;  %v5407_v37 = vld [vmem:[#allocation4 + $0xc4] sm:$0xf] }
 0x334   : > { %5992 = vst [vmem:[#allocation5 + $0x124] sm:$0xf] %v5801_v14  ;;  %6300 = vst [vmem:[#allocation5 + $0x140] sm:$0xf] %v6206_v10  ;;  %v5815_v11 = vrot.slane %v5813_v32, 4  ;;  %v5818_v7 = vrot.slane %v5816_v39, 5 }
 0x335   : > { %v5824_v27 = vrot.slane %v5822_v57, 5  ;;  %v5828_v44 = vrot.slane %v5826_v60, 4  ;;  %v5488_v63 = vld [vmem:[#allocation4 + $0xa8] sm:$0xf]  ;;  %v5489_v29 = vld [vmem:[#allocation4 + $0xac] sm:$0xf]  ;;  %v5811_v58 = vsel %vm12331_vm14, %v5806_v8, %v5810_v51  ;;  %v6209_v59 = vsel %vm12315_vm13, %v6207_v26, %v6208_v13 }
 0x336   : > { %5443 = vst [vmem:[#allocation5 + $0x18c] sm:$0xf] %v5407_v37  ;;  %v11849_v55 = vld [vmem:[#allocation5 + $0x128] ss:$12 sps:$4 sm:$0xff]   ;;  %v5832_v35 = vshll.u32 %v5487_v48, 16  ;;  %v9845_v6 = vrot.slane %v6046_v20, 9  ;;  %v5819_v9 = vor.u32 %v5818_v7, %v5815_v11 }
 0x337   : > { %5993 = vst [vmem:[#allocation5 + $0x130] sm:$0xf] %v5811_v58  ;;  %6301 = vst [vmem:[#allocation5 + $0x14c] sm:$0xf] %v6209_v59  ;;  %v5829_v62 = vor.u32 %v5828_v44, %v5824_v27  ;;  %v6212_v36 = vrot.slane %v6047_v61, 5  ;;  %v6215_v31 = vrot.slane %v6048_v47, 5  ;;  %11389 = vmatmul.mubr.bf16.gmra.mxu0 %v11849_v55 }
 0x338   : > { %v5490_v4 = vld [vmem:[#allocation4 + $0xb0] sm:$0x1]  ;;  %v11845_v21 = vld [vmem:[#allocation5 + $0x108] ss:$12 sps:$4 sm:$0xff]   ;;  %v5834_v17 = vrot.slane %v5832_v35, 5  ;;  %v5820_v5 = vrot.slane %v5819_v9, 4 }
 0x339   : > { %v11847_v56 = vld [vmem:[#allocation5 + $0x10c] ss:$12 sps:$4 sm:$0xff]   ;;  %v6049_v3 = vld [vmem:[#allocation4 + $0xb4] sm:$0xe]  ;;  %v6050_v12 = vld [vmem:[#allocation4 + $0xb8] sm:$0xf]  ;;  %v6213_v52 = vsel %vm12315_vm13, %v9845_v6, %v6212_v36 }
 0x33a   : > { %v5830_v34 = vrot.slane %v5829_v62, 4  ;;  %v6214_v2 = vrot.slane %v6212_v36, 4  ;;  %7048 = vmatprep.mubr.bf16.mxu1 %v11847_v56  ;;  %6302 = vst [vmem:[#allocation5 + $0x158] sm:$0xf] %v6213_v52  ;;  %v5837_v22 = vshrl.u32 %v5488_v63, 16  ;;  %v5840_v54 = vshll.u32 %v5488_v63, 16 }
 0x33b   : > { %v5846_v45 = vshll.u32 %v5489_v29, 16  ;;  %v5850_v18 = vshrl.u32 %v5489_v29, 16  ;;  %v6051_v33 = vld [vmem:[#allocation4 + $0xbc] sm:$0x1]  ;;  %v5491_v24 = vld [vmem:[#allocation4 + $0xb4] sm:$0xf]  ;;  %v5825_v43 = vsel %vm12331_vm14, %v5820_v5, %v5824_v27  ;;  %7049 = vmatmul.mubr.bf16.gmra.mxu1 %v11845_v21 }
 0x33c   : > { %v5835_v0 = vsel %vm12331_vm14, %v5830_v34, %v5834_v17  ;;  %v6216_v38 = vsel %vm12315_vm13, %v6214_v2, %v6215_v31  ;;  %v5856_v50 = vshll.u32 %v5490_v4, 16  ;;  %v5492_v1 = vld [vmem:[#allocation4 + $0xb8] sm:$0xf]  ;;  %5994 = vst [vmem:[#allocation5 + $0x13c] sm:$0xf] %v5825_v43  ;;  %v5839_v16 = vrot.slane %v5837_v22, 4 }
 0x33d   : > { %5995 = vst [vmem:[#allocation5 + $0x148] sm:$0xf] %v5835_v0  ;;  %6303 = vst [vmem:[#allocation5 + $0x164] sm:$0xf] %v6216_v38  ;;  %v5842_v40 = vrot.slane %v5840_v54, 5  ;;  %v5848_v53 = vrot.slane %v5846_v45, 5 }
 0x33e   : > { %v5852_v15 = vrot.slane %v5850_v18, 4  ;;  %v5858_v51 = vrot.slane %v5856_v50, 5  ;;  %v9846_v49 = vrot.slane %v6049_v3, 9  ;;  %v6219_v30 = vrot.slane %v6050_v12, 5  ;;  %v5493_v48 = vld [vmem:[#allocation4 + $0xbc] sm:$0x1] }
 0x33f   : > { %v11852_v20 = vld [vmem:[#allocation5 + $0x120] ss:$12 sps:$4 sm:$0xff]   ;;  %v11854_v25 = vld [vmem:[#allocation5 + $0x124] ss:$12 sps:$4 sm:$0xff]   ;;  %v5843_v42 = vor.u32 %v5842_v40, %v5839_v16  ;;  %v6222_v19 = vrot.slane %v6051_v33, 5  ;;  %v5861_v60 = vshrl.u32 %v5491_v24, 16 }
 0x340   : > { %v6052_v13 = vld [vmem:[#allocation4 + $0xc0] sm:$0xe]  ;;  %v11855_v61 = vld [vmem:[#allocation5 + $0x140] ss:$12 sps:$4 sm:$0xff]   ;;  %v5853_v32 = vor.u32 %v5852_v15, %v5848_v53  ;;  %v6220_v39 = vsel %vm12315_vm13, %v9846_v49, %v6219_v30  ;;  %v6221_v57 = vrot.slane %v6219_v30, 4  ;;  %7056 = vmatprep.mubr.bf16.mxu1 %v11854_v25  ;;  %v5864_v14 = vshll.u32 %v5491_v24, 16 }
 0x341   : > { %v5844_v47 = vrot.slane %v5843_v42, 4  ;;  %6304 = vst [vmem:[#allocation5 + $0x170] sm:$0xf] %v6220_v39  ;;  %v5870_v8 = vshll.u32 %v5492_v1, 16  ;;  %v5874_v10 = vshrl.u32 %v5492_v1, 16  ;;  %11392 = vmatprep.mubr.bf16.mxu0 %v11855_v61  ;;  %v5863_v44 = vrot.slane %v5861_v60, 4 }
 0x342   : > { %v6053_v26 = vld [vmem:[#allocation4 + $0xc4] sm:$0xf]  ;;  %v6054_v37 = vld [vmem:[#allocation4 + $0xc8] sm:$0x1]  ;;  %v5494_v11 = vld [vmem:[#allocation4 + $0xc0] sm:$0xf]  ;;  %v6223_v27 = vsel %vm12315_vm13, %v6221_v57, %v6222_v19 }
 0x343   : > { %v5854_v7 = vrot.slane %v5853_v32, 4  ;;  %v5880_v63 = vshll.u32 %v5493_v48, 16  ;;  %v5849_v29 = vsel %vm12331_vm14, %v5844_v47, %v5848_v53  ;;  %6305 = vst [vmem:[#allocation5 + $0x17c] sm:$0xf] %v6223_v27  ;;  %v5866_v55 = vrot.slane %v5864_v14, 5  ;;  %7057 = vmatmul.mubr.bf16.gmra.mxu1 %v11852_v20 }
 0x344   : > { %v5872_v58 = vrot.slane %v5870_v8, 5  ;;  %v5876_v59 = vrot.slane %v5874_v10, 4  ;;  %5996 = vst [vmem:[#allocation5 + $0x154] sm:$0xf] %v5849_v29  ;;  %v9847_v9 = vrot.slane %v6052_v13, 9  ;;  %v6226_v17 = vrot.slane %v6053_v26, 5 }
 0x345   : > { %v5859_v35 = vsel %vm12331_vm14, %v5854_v7, %v5858_v51  ;;  %v5882_v6 = vrot.slane %v5880_v63, 5  ;;  %v5495_v62 = vld [vmem:[#allocation4 + $0xc4] sm:$0xf]  ;;  %v11860_v36 = vld [vmem:[#allocation5 + $0x13c] ss:$12 sps:$4 sm:$0xff]   ;;  %v5867_v4 = vor.u32 %v5866_v55, %v5863_v44  ;;  %v6229_v3 = vrot.slane %v6054_v37, 5 }
 0x346   : > { %v11862_v31 = vld [vmem:[#allocation5 + $0x158] ss:$12 sps:$4 sm:$0xff]   ;;  %5997 = vst [vmem:[#allocation5 + $0x160] sm:$0xf] %v5859_v35  ;;  %v5877_v21 = vor.u32 %v5876_v59, %v5872_v58  ;;  %v4737_v56 = vld [vmem:[#allocation4] sm:$0x1]  ;;  %7064 = vmatprep.mubr.bf16.mxu1 %v11860_v36  ;;  %v6227_v33 = vsel %vm12315_vm13, %v9847_v9, %v6226_v17 }
 0x347   : > { %v5496_v12 = vld [vmem:[#allocation4 + $0xc8] sm:$0x1]  ;;  %v5885_v5 = vshrl.u32 %v5494_v11, 16  ;;  %v5888_v34 = vshll.u32 %v5494_v11, 16  ;;  %v5447_v2 = vld [vmem:[#allocation4 + $0x4] sm:$0xf]  ;;  %11393 = vmatmul.mubr.bf16.gmra.mxu0 %v11862_v31 }
 0x348   : > { %v4791_v52 = vld [vmem:[#allocation4 + $0x8] sm:$0x1]  ;;  %v5868_v22 = vrot.slane %v5867_v4, 4  ;;  %v5878_v54 = vrot.slane %v5877_v21, 4  ;;  %v5894_v45 = vshll.u32 %v5495_v62, 16  ;;  %v5898_v18 = vshrl.u32 %v5495_v62, 16 }
 0x349   : > { %v6228_v24 = vrot.slane %v6226_v17, 4  ;;  %v5887_v43 = vrot.slane %v5885_v5, 4  ;;  %v5890_v0 = vrot.slane %v5888_v34, 5  ;;  %v11858_v38 = vld [vmem:[#allocation5 + $0x138] ss:$12 sps:$4 sm:$0xff]   ;;  %v5904_v30 = vshll.u32 %v5496_v12, 16 }
 0x34a   : > { %v5873_v50 = vsel %vm12331_vm14, %v5868_v22, %v5872_v58  ;;  %v5883_v1 = vsel %vm12331_vm14, %v5878_v54, %v5882_v6  ;;  %6306 = vst [vmem:[#allocation5 + $0x188] sm:$0xf] %v6227_v33  ;;  %v5896_v16 = vrot.slane %v5894_v45, 5  ;;  %v5900_v40 = vrot.slane %v5898_v18, 4  ;;  %v6005_v53 = vld [vmem:[#allocation4 + $0x4] sm:$0xf] }
 0x34b   : > { %v11868_v15 = vld [vmem:[#allocation5 + $0x170] ss:$12 sps:$4 sm:$0xff]   ;;  %5998 = vst [vmem:[#allocation5 + $0x16c] sm:$0xf] %v5873_v50  ;;  %5999 = vst [vmem:[#allocation5 + $0x178] sm:$0xf] %v5883_v1  ;;  %v6230_v51 = vsel %vm12315_vm13, %v6228_v24, %v6229_v3  ;;  %v5891_v49 = vor.u32 %v5890_v0, %v5887_v43  ;;  %7065 = vmatmul.mubr.bf16.gmra.mxu1 %v11858_v38 }
 0x34c   : > { %v4738_v48 = vsel %vm12238_vm4, 0, %v4737_v56  ;;  %6307 = vst [vmem:[#allocation5 + $0x194] sm:$0xf] %v6230_v51  ;;  %v5901_v20 = vor.u32 %v5900_v40, %v5896_v16  ;;  %v4792_v25 = vsel %vm12250_vm6, 0, %v4791_v52  ;;  %v5510_v42 = vshll.u32 %v5447_v2, 16  ;;  %11396 = vmatprep.mubr.bf16.mxu0 %v11868_v15  ;;  %v11903_v18 = vld [vmem:[%s14987_s3 + $0x230] sm:$0xff]  }
 0x34d   : > { %4739 = vst [vmem:[#allocation4] sm:$0x1] %v4738_v48  ;;  %v5514_v19 = vshrl.u32 %v5447_v2, 16  ;;  %v6004_v13 = vld [vmem:[#allocation4] sm:$0xe]  ;;  %v5892_v32 = vrot.slane %v5891_v49, 4 }
 0x34e   : > { %v14141_v61 = vld [vmem:[#allocation5 + $0x154] ss:$12 sps:$4 sm:$0xff]   ;;  %4793 = vst [vmem:[#allocation4 + $0x8] sm:$0x1] %v4792_v25  ;;  %v5902_v39 = vrot.slane %v5901_v20, 4  ;;  %v5906_v57 = vrot.slane %v5904_v30, 5 }
 0x34f   : > { %v5512_v60 = vrot.slane %v5510_v42, 5  ;;  %v5516_v47 = vrot.slane %v5514_v19, 4  ;;  %7072 = vmatprep.mubr.bf16.mxu1 %v14141_v61  ;;  %v5897_v14 = vsel %vm12331_vm14, %v5892_v32, %v5896_v16  ;;  %v9831_v8 = vrot.slane %v6004_v13, 9  ;;  %v14150_v7 = vld [vmem:[#allocation5 + $0x150] ss:$12 sps:$4 sm:$0xff]   ;;  %v11918_v43 = vld [vmem:[%s14987_s3 + $0x228] sm:$0xff]  }
 0x350   : > { %v6114_v10 = vrot.slane %v6005_v53, 5  ;;  %v5907_v26 = vsel %vm12331_vm14, %v5902_v39, %v5906_v57  ;;  %6000 = vst [vmem:[#allocation5 + $0x184] sm:$0xf] %v5897_v14  ;;  %v14160_v12 = vld [vmem:[#allocation5 + $0x168] ss:$12 sps:$4 sm:$0xff]   ;;  %v12086_v24 = vld [vmem:[%s14987_s3 + $0x238] sm:$0xff]  }
 0x351   : > { %v5517_v37 = vor.u32 %v5516_v47, %v5512_v60  ;;  %6001 = vst [vmem:[#allocation5 + $0x190] sm:$0xf] %v5907_v26  ;;  %v11878_v2 = vld [vmem:[#allocation5 + $0x180] ss:$12 sps:$4 sm:$0xff]   ;;  %v11886_v33 = vld [vmem:[#allocation5 + $0x1c] ss:$12 sps:$4 sm:$0xff]  }
 0x352   : > { %v6115_v11 = vsel %vm12315_vm13, %v9831_v8, %v6114_v10  ;;  %v6116_v44 = vrot.slane %v6114_v10, 4  ;;  %v14152_v63 = vld [vmem:[#allocation5 + $0x16c] ss:$12 sps:$4 sm:$0xff]   ;;  %v11896_v50 = vld [vmem:[%s14987_s3 + $0x1f0] sm:$0xff]   ;;  %v11933_v40 = vld [vmem:[%s14987_s3 + $0x220] sm:$0xff]  }
 0x353   : > { %v5518_v27 = vrot.slane %v5517_v37, 4  ;;  %6274 = vst [vmem:[#allocation5 + $0x8] sm:$0xf] %v6115_v11  ;;  %v11875_v29 = vld [vmem:[#allocation5 + $0x188] ss:$12 sps:$4 sm:$0xff]   ;;  %7073 = vmatmul.mubr.bf16.gmra.mxu1 %v14150_v7  ;;  %v11891_v0 = vld [vmem:[%s14987_s3 + $0x1b8] sm:$0xff]  }
 0x354   : > { %v5374_v55 = vld [vmem:[#allocation4] sm:$0xf]  ;;  %11397 = vmatmul.mubr.bf16.gmra.mxu0 %v11875_v29  ;;  %7080 = vmatprep.mubr.bf16.mxu1 %v14152_v63  ;;  %v11890_v38 = vld [vmem:[#allocation5 + $0x20] ss:$12 sps:$4 sm:$0xff]   ;;  %v11892_v1 = vld [vmem:[#allocation5 + $0x38] ss:$12 sps:$4 sm:$0xff]  }
 0x355   : > { %v5446_v58 = vld [vmem:[#allocation4] sm:$0xf]  ;;  %v5448_v59 = vld [vmem:[#allocation4 + $0x8] sm:$0x1]  ;;  %5410 = vst [vmem:[#allocation5] sm:$0xf] %v5374_v55 }
 0x356   : > { %v5501_v35 = vshrl.u32 %v5446_v58, 16  ;;  %v5504_v6 = vshll.u32 %v5446_v58, 16  ;;  %v5520_v9 = vshll.u32 %v5448_v59, 16  ;;  %v6006_v62 = vld [vmem:[#allocation4 + $0x8] sm:$0x1]  ;;  %v11904_v51 = vld [vmem:[%s14987_s3 + $0x1e8] sm:$0xff]  }
 0x357   : > { %v6117_v36 = vrot.slane %v6006_v62, 5  ;;  %v11884_v16 = vld [vmem:[#allocation5 + $0x18] ss:$12 sps:$4 sm:$0xff]   ;;  %v14183_v53 = vld [vmem:[#allocation5 + $0x34] ss:$12 sps:$4 sm:$0xff]   ;;  %v11906_v30 = vld [vmem:[%s14987_s3 + $0x1a8] sm:$0xff]  }
 0x358   : > { %v5503_v31 = vrot.slane %v5501_v35, 4  ;;  %v5506_v4 = vrot.slane %v5504_v6, 5  ;;  %v5522_v21 = vrot.slane %v5520_v9, 5  ;;  %v11880_v5 = vld [vmem:[#allocation5 + $0x184] ss:$12 sps:$4 sm:$0xff]   ;;  %v11947_v49 = vld [vmem:[%s14987_s3 + $0x218] sm:$0xff]  }
 0x359   : > { %v6118_v56 = vsel %vm12315_vm13, %v6116_v44, %v6117_v36  ;;  %v11898_v15 = vld [vmem:[%s14987_s3 + $0x1b0] sm:$0xff]   ;;  %v11911_v20 = vld [vmem:[%s14987_s3 + $0x1e0] sm:$0xff]   ;;  %v14206_v32 = vld [vmem:[#allocation5 + $0x4c] ss:$12 sps:$4 sm:$0xff]  }
 0x35a   : > { %v5507_v17 = vor.u32 %v5506_v4, %v5503_v31  ;;  %v5523_v3 = vsel %vm12331_vm14, %v5518_v27, %v5522_v21  ;;  %6275 = vst [vmem:[#allocation5 + $0x14] sm:$0xf] %v6118_v56  ;;  %v11897_v48 = vld [vmem:[#allocation5 + $0x50] ss:$12 sps:$4 sm:$0xff]   ;;  %v11899_v25 = vld [vmem:[#allocation5 + $0x68] ss:$12 sps:$4 sm:$0xff]  }
 0x35b   : > { %5969 = vst [vmem:[#allocation5 + $0x10] sm:$0xf] %v5523_v3  ;;  %7081 = vmatmul.mubr.bf16.gmra.mxu1 %v14160_v12  ;;  %v14201_v42 = vld [vmem:[#allocation5 + $0x30] ss:$12 sps:$4 sm:$0xff]   ;;  %v11913_v39 = vld [vmem:[%s14987_s3 + $0x1a0] sm:$0xff]   ;;  %v11961_v14 = vld [vmem:[%s14987_s3 + $0x208] sm:$0xff]  }
 0x35c   : > { %v5508_v34 = vrot.slane %v5507_v17, 4  ;;  %7088 = vmatprep.mubr.bf16.mxu1 %v11880_v5  ;;  %v11881_v54 = vld [vmem:[#allocation5] ss:$12 sps:$4 sm:$0xff]   ;;  %v11954_v13 = vld [vmem:[%s14987_s3 + $0x210] sm:$0xff]   ;;  %v11919_v57 = vld [vmem:[%s14987_s3 + $0x1d8] sm:$0xff]  }
 0x35d   : > { %v11921_v8 = vld [vmem:[%s14987_s3 + $0x198] sm:$0xff]   ;;  %v11905_v10 = vld [vmem:[#allocation5 + $0x80] ss:$12 sps:$4 sm:$0xff]   ;;  %v11926_v26 = vld [vmem:[%s14987_s3 + $0x1d0] sm:$0xff]  }
 0x35e   : > { %v5513_v52 = vsel %vm12331_vm14, %v5508_v34, %v5512_v60  ;;  %v11907_v37 = vld [vmem:[#allocation5 + $0x98] ss:$12 sps:$4 sm:$0xff]   ;;  %v14225_v11 = vld [vmem:[#allocation5 + $0x48] ss:$12 sps:$4 sm:$0xff]   ;;  %v11912_v62 = vld [vmem:[#allocation5 + $0xb0] ss:$12 sps:$4 sm:$0xff]  }
 0x35f   : > { %5968 = vst [vmem:[#allocation5 + $0x4] sm:$0xf] %v5513_v52  ;;  %v11962_v44 = vld [vmem:[%s14987_s3 + $0x200] sm:$0xff]   ;;  %v11928_v55 = vld [vmem:[%s14987_s3 + $0x190] sm:$0xff]   ;;  %v11934_v58 = vld [vmem:[%s14987_s3 + $0x1c8] sm:$0xff]  }
 0x360   : > { %v14230_v29 = vld [vmem:[#allocation5 + $0x64] ss:$12 sps:$4 sm:$0xff]   ;;  %v11936_v9 = vld [vmem:[%s14987_s3 + $0x188] sm:$0xff]  }
 0x361   : > { %v11888_v22 = vld [vmem:[#allocation5 + $0x8] ss:$12 sps:$4 sm:$0xff]   ;;  %v11941_v36 = vld [vmem:[%s14987_s3 + $0x1c0] sm:$0xff]  }
 0x362   : > { %v11914_v31 = vld [vmem:[#allocation5 + $0xc8] ss:$12 sps:$4 sm:$0xff]   ;;  %v14252_v21 = vld [vmem:[#allocation5 + $0x60] ss:$12 sps:$4 sm:$0xff]  }
 0x363   : > { %7089 = vmatmul.mubr.bf16.gmra.mxu1 %v11878_v2  ;;  %v14254_v56 = vld [vmem:[#allocation5 + $0x7c] ss:$12 sps:$4 sm:$0xff]   ;;  %v11943_v17 = vld [vmem:[%s14987_s3 + $0x180] sm:$0xff]  }
 0x364   : > { %11416 = vmatprep.mubr.bf16.mxu1 %v11888_v22  ;;  %v11920_v34 = vld [vmem:[#allocation5 + $0xe0] ss:$12 sps:$4 sm:$0xff]   ;;  %v11922_v2 = vld [vmem:[#allocation5 + $0xf8] ss:$12 sps:$4 sm:$0xff]  }
 0x366   : > { %v11883_v45 = vld [vmem:[#allocation5 + $0x4] ss:$12 sps:$4 sm:$0xff]  }
 0x367   : > { %7690 = vmatprep.mubr.bf16.mxu0 %v11883_v45 }
 0x368   : > { %7691 = vmatmul.mubr.bf16.vlgmr.msra.gmra.mxu0 %v11881_v54  ;;  %v14261_v54 = vld [vmem:[#allocation5 + $0x78] ss:$12 sps:$4 sm:$0xff]  }
 0x369   : > { %7698 = vmatprep.mubr.bf16.mxu0 %v11886_v33  ;;  %11449 = vmatpush3.bf16.msra.mxu0 %v12086_v24  ;;  %v10798_v19 = vpop.f32.mrf.mxu1 }
 0x36a   : > { %11450 = vmatprep.subr.bf16.mxu0 %v11903_v18 }
 0x36b   : > { %11417 = vmatmul.mubr.bf16.vlgmr.msra.gmra.mxu1 %v11890_v38  ;;  %v10799_v60 = vpop.f32.mrf.mxu1  ;;  %v11927_v38 = vld [vmem:[#allocation5 + $0x110] ss:$12 sps:$4 sm:$0xff]  }
 0x36c   : > { %11055 = vmatpush3.bf16.msra.mxu1 %v11891_v0  ;;  %11420 = vmatprep.mubr.bf16.mxu1 %v11892_v1  ;;  %v10800_v47 = vadd.f32 %v10799_v60, %v10798_v19  ;;  %v14271_v1 = vld [vmem:[#allocation5 + $0x90] ss:$12 sps:$4 sm:$0xff]  }
 0x36d   : > { %11451 = vmatpush3.bf16.msra.mxu0 %v11903_v18  ;;  %11056 = vmatprep.subr.bf16.mxu1 %v11896_v50  ;;  %v14240_v35 = vpop.f32.mrf.mxu1  ;;  %v14265_v18 = vld [vmem:[#allocation5 + $0x94] ss:$12 sps:$4 sm:$0xff]  }
 0x36e   : > { %11452 = vmatprep.subr.bf16.mxu0 %v11918_v43  ;;  %v11929_v50 = vld [vmem:[#allocation5 + $0x128] ss:$12 sps:$4 sm:$0xff]  }
 0x36f   : > { %v14250_v4 = vpop.f32.mrf.mxu1 }
 0x370   : > { %7699 = vmatmul.mubr.bf16.gmra.mxu0 %v11884_v16  ;;  %11057 = vmatpush3.bf16.msra.mxu1 %v11898_v15  ;;  %v14273_v16 = vld [vmem:[#allocation5 + $0xac] ss:$12 sps:$4 sm:$0xff]  }
 0x371   : > { %7706 = vmatprep.mubr.bf16.mxu0 %v14183_v53  ;;  %11453 = vmatpush3.bf16.msra.mxu0 %v11918_v43 }
 0x372   : > { %11454 = vmatprep.subr.bf16.mxu0 %v11933_v40  ;;  %11058 = vmatprep.subr.bf16.mxu1 %v11904_v51  ;;  %v11370_v27 = vpop.f32.mrf.mxu0 }
 0x373   : > { %11421 = vmatmul.mubr.bf16.gmra.mxu1 %v11897_v48 }
 0x374   : > { %11424 = vmatprep.mubr.bf16.mxu1 %v11899_v25  ;;  %11059 = vmatpush3.bf16.msra.mxu1 %v11906_v30  ;;  %v7131_v59 = vpop.f32.mrf.mxu0  ;;  %v11935_v25 = vld [vmem:[#allocation5 + $0x140] ss:$12 sps:$4 sm:$0xff]  }
 0x375   : > { %11455 = vmatpush3.bf16.msra.mxu0 %v11933_v40  ;;  %11060 = vmatprep.subr.bf16.mxu1 %v11911_v20  ;;  %v14242_v6 = vadd.f32 %v10800_v47, %v7131_v59  ;;  %v14285_v47 = vld [vmem:[#allocation5 + $0xc4] ss:$12 sps:$4 sm:$0xff]   ;;  %v5409_v59 = vld [vmem:[#allocation4 + $0xd0] sm:$0xf] }
 0x376   : > { %11456 = vmatprep.subr.bf16.mxu0 %v11947_v49  ;;  %v11371_v43 = vpop.f32.mrf.mxu0  ;;  %5445 = vst [vmem:[#allocation5 + $0x1a4] sm:$0xf] %v5409_v59 }
 0x378   : > { %7707 = vmatmul.mubr.bf16.gmra.mxu0 %v14201_v42  ;;  %11061 = vmatpush3.bf16.msra.mxu1 %v11913_v39  ;;  %v14275_v40 = vpop.f32.mrf.mxu0 }
 0x379   : > { %7714 = vmatprep.mubr.bf16.mxu0 %v14206_v32  ;;  %11457 = vmatpush3.bf16.msra.mxu0 %v11947_v49 }
 0x37a   : > { %11458 = vmatprep.subr.bf16.mxu0 %v11954_v13  ;;  %11062 = vmatprep.subr.bf16.mxu1 %v11919_v57  ;;  %v14281_v57 = vld [vmem:[#allocation5 + $0xa8] ss:$12 sps:$4 sm:$0xff]  }
 0x37b   : > { %11425 = vmatmul.mubr.bf16.gmra.mxu1 %v11905_v10  ;;  %v6056_v10 = vld [vmem:[#allocation4 + $0xd0] sm:$0xf] }
 0x37c   : > { %11428 = vmatprep.mubr.bf16.mxu1 %v11907_v37  ;;  %11063 = vmatpush3.bf16.msra.mxu1 %v11921_v8  ;;  %v6055_v8 = vld [vmem:[#allocation4 + $0xcc] sm:$0xe] }
 0x37d   : > { %11459 = vmatpush3.bf16.msra.mxu0 %v11954_v13  ;;  %11064 = vmatprep.subr.bf16.mxu1 %v11926_v26  ;;  %v11937_v13 = vld [vmem:[#allocation5 + $0x158] ss:$12 sps:$4 sm:$0xff]   ;;  %v9848_v37 = vrot.slane %v6055_v8, 9 }
 0x37e   : > { %11460 = vmatprep.subr.bf16.mxu0 %v11961_v14 }
 0x37f   : > { %v10804_v3 = vpop.f32.mrf.mxu1 }
 0x380   : > { %7715 = vmatmul.mubr.bf16.gmra.mxu0 %v14225_v11  ;;  %11065 = vmatpush3.bf16.msra.mxu1 %v11928_v55 }
 0x381   : > { %7722 = vmatprep.mubr.bf16.mxu0 %v14230_v29  ;;  %11461 = vmatpush3.bf16.msra.mxu0 %v11961_v14  ;;  %v10805_v5 = vpop.f32.mrf.mxu1  ;;  %v4842_v14 = vld [vmem:[#allocation4 + $0xd4] sm:$0x1] }
 0x382   : > { %11462 = vmatprep.subr.bf16.mxu0 %v11962_v44  ;;  %11066 = vmatprep.subr.bf16.mxu1 %v11934_v58  ;;  %v10806_v52 = vadd.f32 %v10805_v5, %v10804_v3  ;;  %v4843_v26 = vsel %vm12250_vm6, 0, %v4842_v14  ;;  %v4788_v58 = vld [vmem:[#allocation4 + $0xcc] sm:$0x1]  ;;  %v14298_v3 = vld [vmem:[#allocation5 + $0xdc] ss:$12 sps:$4 sm:$0xff]  }
 0x383   : > { %11429 = vmatmul.mubr.bf16.gmra.mxu1 %v11912_v62  ;;  %v10807_v22 = vpop.f32.mrf.mxu1  ;;  %4844 = vst [vmem:[#allocation4 + $0xd4] sm:$0x1] %v4843_v26  ;;  %v14293_v62 = vld [vmem:[#allocation5 + $0xc0] ss:$12 sps:$4 sm:$0xff]  }
 0x384   : > { %11432 = vmatprep.mubr.bf16.mxu1 %v11914_v31  ;;  %11067 = vmatpush3.bf16.msra.mxu1 %v11936_v9  ;;  %v14263_v45 = vadd.f32 %v11370_v27, %v10806_v52  ;;  %v6233_v27 = vrot.slane %v6056_v10, 5  ;;  %v5498_v9 = vld [vmem:[#allocation4 + $0xd0] sm:$0xf]  ;;  %v4789_v31 = vsel %vm12238_vm4, 0, %v4788_v58 }
 0x385   : > { %11463 = vmatpush3.bf16.msra.mxu0 %v11962_v44  ;;  %11068 = vmatprep.subr.bf16.mxu1 %v11941_v36  ;;  %v10808_v33 = vpop.f32.mrf.mxu1  ;;  %v11942_v44 = vld [vmem:[#allocation5 + $0x170] ss:$12 sps:$4 sm:$0xff]   ;;  %v5918_v28 = vshll.u32 %v5498_v9, 16  ;;  %4790 = vst [vmem:[#allocation4 + $0xcc] sm:$0x1] %v4789_v31 }
 0x386   : > { %v10809_v24 = vadd.f32 %v10808_v33, %v10807_v22  ;;  %v6234_v55 = vsel %vm12315_vm13, %v9848_v37, %v6233_v27  ;;  %v6235_v22 = vrot.slane %v6233_v27, 4 }
 0x387   : > { %6308 = vst [vmem:[#allocation5 + $0x1a0] sm:$0xf] %v6234_v55  ;;  %v14322_v55 = vld [vmem:[#allocation5 + $0x10c] ss:$12 sps:$4 sm:$0xff]  }
 0x388   : > { %7723 = vmatmul.mubr.bf16.gmra.mxu0 %v14252_v21  ;;  %11069 = vmatpush3.bf16.msra.mxu1 %v11943_v17  ;;  %v14269_v0 = vadd.f32 %v11371_v43, %v10809_v24  ;;  %v5922_v17 = vshrl.u32 %v5498_v9, 16 }
 0x389   : > { %7730 = vmatprep.mubr.bf16.mxu0 %v14254_v56 }
 0x38a   : > { %v5924_v52 = vrot.slane %v5922_v17, 4  ;;  %v6057_v23 = vld [vmem:[#allocation4 + $0xd4] sm:$0x1] }
 0x38b   : > { %11433 = vmatmul.mubr.bf16.gmra.mxu1 %v11920_v34  ;;  %v5920_v34 = vrot.slane %v5918_v28, 5  ;;  %v5499_v24 = vld [vmem:[#allocation4 + $0xd4] sm:$0x1] }
 0x38c   : > { %11436 = vmatprep.mubr.bf16.mxu1 %v11922_v2  ;;  %v5497_v14 = vld [vmem:[#allocation4 + $0xcc] sm:$0xf] }
 0x38d   : > { %v10810_v15 = vpop.f32.mrf.mxu1  ;;  %v5925_v43 = vor.u32 %v5924_v52, %v5920_v34  ;;  %v5909_v10 = vshrl.u32 %v5497_v14, 16  ;;  %v5912_v26 = vshll.u32 %v5497_v14, 16 }
 0x38f   : > { %v10811_v51 = vpop.f32.mrf.mxu1  ;;  %v11374_v49 = vpop.f32.mrf.mxu0  ;;  %v5914_v37 = vrot.slane %v5912_v26, 5  ;;  %v11964_v26 = vld [vmem:[#allocation5 + $0x50] ss:$12 sps:$4 sm:$0xff]  }
 0x390   : > { %7731 = vmatmul.mubr.bf16.gmra.mxu0 %v14261_v54  ;;  %v10812_v30 = vadd.f32 %v10811_v51, %v10810_v15  ;;  %v5926_v51 = vrot.slane %v5925_v43, 4  ;;  %v14352_v43 = vld [vmem:[#allocation5 + $0x138] ss:$12 sps:$4 sm:$0xff]  }
 0x391   : > { %7738 = vmatprep.mubr.bf16.mxu0 %v14265_v18  ;;  %v10813_v48 = vpop.f32.mrf.mxu1  ;;  %v7147_v20 = vpop.f32.mrf.mxu0 }
 0x392   : > { %v14279_v19 = vadd.f32 %v10812_v30, %v7147_v20 }
 0x393   : > { %11437 = vmatmul.mubr.bf16.gmra.mxu1 %v11927_v38  ;;  %v10814_v39 = vpop.f32.mrf.mxu1 }
 0x394   : > { %11440 = vmatprep.mubr.bf16.mxu1 %v11929_v50  ;;  %v14283_v60 = vadd.f32 %v10814_v39, %v10813_v48  ;;  %v6236_v50 = vrot.slane %v6057_v23, 5  ;;  %v5408_v39 = vld [vmem:[#allocation4 + $0xcc] sm:$0xf] }
 0x395   : > { %5444 = vst [vmem:[#allocation5 + $0x198] sm:$0xf] %v5408_v39 }
 0x396   : > { %v6237_v48 = vsel %vm12315_vm13, %v6235_v22, %v6236_v50 }
 0x397   : > { %6309 = vst [vmem:[#allocation5 + $0x1ac] sm:$0xf] %v6237_v48 }
 0x398   : > { %7739 = vmatmul.mubr.bf16.gmra.mxu0 %v14271_v1 }
 0x399   : > { %7746 = vmatprep.mubr.bf16.mxu0 %v14273_v16 }
 0x39b   : > { %11441 = vmatmul.mubr.bf16.gmra.mxu1 %v11935_v25  ;;  %v14306_v25 = vld [vmem:[#allocation5 + $0xd8] ss:$12 sps:$4 sm:$0xff]  }
 0x39c   : > { %11444 = vmatprep.mubr.bf16.mxu1 %v11937_v13  ;;  %v10816_v36 = vpop.f32.mrf.mxu1  ;;  %v11375_v13 = vpop.f32.mrf.mxu0 }
 0x39e   : > { %v10817_v5 = vpop.f32.mrf.mxu1  ;;  %v14328_v9 = vpop.f32.mrf.mxu0 }
 0x39f   : > { %v10818_v2 = vadd.f32 %v10817_v5, %v10816_v36  ;;  %v14330_v5 = vld [vmem:[#allocation5 + $0x108] ss:$12 sps:$4 sm:$0xff]  }
 0x3a0   : > { %7747 = vmatmul.mubr.bf16.gmra.mxu0 %v14281_v57  ;;  %v10819_v33 = vpop.f32.mrf.mxu1 }
 0x3a1   : > { %7754 = vmatprep.mubr.bf16.mxu0 %v14285_v47  ;;  %v14302_v38 = vadd.f32 %v11374_v49, %v10818_v2  ;;  %v14310_v49 = vld [vmem:[#allocation5 + $0xf4] ss:$12 sps:$4 sm:$0xff]  }
 0x3a2   : > { %v10820_v15 = vpop.f32.mrf.mxu1  ;;  %v14342_v2 = vld [vmem:[#allocation5 + $0x120] ss:$12 sps:$4 sm:$0xff]  }
 0x3a3   : > { %11445 = vmatmul.mubr.bf16.gmra.mxu1 %v11942_v44  ;;  %v10821_v30 = vadd.f32 %v10820_v15, %v10819_v33 }
 0x3a4   : > { %8526 = vmatprep.mubr.bf16.mxu1 %v14183_v53  ;;  %v5928_v53 = vshll.u32 %v5499_v24, 16 }
 0x3a5   : > { %v14312_v8 = vadd.f32 %v11375_v13, %v10821_v30 }
 0x3a6   : > { %v5930_v20 = vrot.slane %v5928_v53, 5 }
 0x3a8   : > { %7755 = vmatmul.mubr.bf16.gmra.mxu0 %v14293_v62  ;;  %v5931_v46 = vsel %vm12331_vm14, %v5926_v51, %v5930_v20 }
 0x3a9   : > { %7762 = vmatprep.mubr.bf16.mxu0 %v14298_v3  ;;  %6003 = vst [vmem:[#allocation5 + $0x1a8] sm:$0xf] %v5931_v46  ;;  %v11965_v46 = vld [vmem:[#allocation5 + $0x68] ss:$12 sps:$4 sm:$0xff]  }
 0x3ab   : > { %8527 = vmatmul.mubr.bf16.vlgmr.msra.gmra.mxu1 %v14201_v42  ;;  %v5911_v42 = vrot.slane %v5909_v10, 4 }
 0x3ac   : > { %8534 = vmatprep.mubr.bf16.mxu1 %v14206_v32  ;;  %v14318_v32 = vld [vmem:[#allocation5 + $0xf0] ss:$12 sps:$4 sm:$0xff]  }
 0x3ad   : > { %v5915_v27 = vor.u32 %v5914_v37, %v5911_v42  ;;  %v10822_v59 = vpop.f32.mrf.mxu1 }
 0x3af   : > { %v5916_v44 = vrot.slane %v5915_v27, 4  ;;  %v10823_v36 = vpop.f32.mrf.mxu1 }
 0x3b0   : > { %7763 = vmatmul.mubr.bf16.gmra.mxu0 %v14306_v25  ;;  %v10824_v31 = vadd.f32 %v10823_v36, %v10822_v59 }
 0x3b1   : > { %7770 = vmatprep.mubr.bf16.mxu0 %v14310_v49  ;;  %v5921_v58 = vsel %vm12331_vm14, %v5916_v44, %v5920_v34  ;;  %v11378_v28 = vpop.f32.mrf.mxu0  ;;  %v10825_v17 = vpop.f32.mrf.mxu1  ;;  %v14336_v34 = vld [vmem:[#allocation5 + $0x124] ss:$12 sps:$4 sm:$0xff]  }
 0x3b2   : > { %6002 = vst [vmem:[#allocation5 + $0x19c] sm:$0xf] %v5921_v58 }
 0x3b3   : > { %8535 = vmatmul.mubr.bf16.gmra.mxu1 %v14225_v11  ;;  %v7163_v11 = vpop.f32.mrf.mxu0  ;;  %v10826_v41 = vpop.f32.mrf.mxu1 }
 0x3b4   : > { %8542 = vmatprep.mubr.bf16.mxu1 %v14230_v29  ;;  %v14333_v29 = vadd.f32 %v10824_v31, %v7163_v11  ;;  %v14338_v52 = vadd.f32 %v10826_v41, %v10825_v17 }
 0x3b8   : > { %7771 = vmatmul.mubr.bf16.gmra.mxu0 %v14318_v32 }
 0x3b9   : > { %7778 = vmatprep.mubr.bf16.mxu0 %v14322_v55 }
 0x3bb   : > { %8543 = vmatmul.mubr.bf16.gmra.mxu1 %v14252_v21  ;;  %v14346_v21 = vld [vmem:[#allocation5 + $0x13c] ss:$12 sps:$4 sm:$0xff]  }
 0x3bc   : > { %8550 = vmatprep.mubr.bf16.mxu1 %v14254_v56 }
 0x3be   : > { %v10828_v22 = vpop.f32.mrf.mxu1 }
 0x3c0   : > { %7779 = vmatmul.mubr.bf16.gmra.mxu0 %v14330_v5  ;;  %v10829_v56 = vpop.f32.mrf.mxu1 }
 0x3c1   : > { %7786 = vmatprep.mubr.bf16.mxu0 %v14336_v34  ;;  %v10830_v33 = vadd.f32 %v10829_v56, %v10828_v22 }
 0x3c2   : > { %v10831_v23 = vpop.f32.mrf.mxu1 }
 0x3c3   : > { %8551 = vmatmul.mubr.bf16.gmra.mxu1 %v14261_v54  ;;  %v14350_v24 = vadd.f32 %v11378_v28, %v10830_v33 }
 0x3c4   : > { %8558 = vmatprep.mubr.bf16.mxu1 %v14265_v18  ;;  %v10832_v50 = vpop.f32.mrf.mxu1  ;;  %v11379_v18 = vpop.f32.mrf.mxu0 }
 0x3c5   : > { %v10833_v54 = vadd.f32 %v10832_v50, %v10831_v23 }
 0x3c6   : > { %v14363_v15 = vpop.f32.mrf.mxu0 }
 0x3c7   : > { %v14358_v53 = vadd.f32 %v11379_v18, %v10833_v54 }
 0x3c8   : > { %7787 = vmatmul.mubr.bf16.gmra.mxu0 %v14342_v2 }
 0x3c9   : > { %7794 = vmatprep.mubr.bf16.mxu0 %v14346_v21 }
 0x3cb   : > { %8559 = vmatmul.mubr.bf16.gmra.mxu1 %v14271_v1 }
 0x3cc   : > { %8566 = vmatprep.mubr.bf16.mxu1 %v14273_v16 }
 0x3d0   : > { %7795 = vmatmul.mubr.bf16.gmra.mxu0 %v14352_v43  ;;  %v10834_v1 = vpop.f32.mrf.mxu1 }
 0x3d1   : > { %7802 = vmatprep.mubr.bf16.mxu0 %v14141_v61 }
 0x3d2   : > { %v10835_v16 = vpop.f32.mrf.mxu1  ;;  %v11382_v51 = vpop.f32.mrf.mxu0 }
 0x3d3   : > { %8567 = vmatmul.mubr.bf16.gmra.mxu1 %v14281_v57  ;;  %v10836_v30 = vadd.f32 %v10835_v16, %v10834_v1  ;;  %v11963_v57 = vld [vmem:[#allocation5 + $0x38] ss:$12 sps:$4 sm:$0xff]  }
 0x3d4   : > { %8574 = vmatprep.mubr.bf16.mxu1 %v14285_v47  ;;  %v10837_v48 = vpop.f32.mrf.mxu1  ;;  %v7179_v20 = vpop.f32.mrf.mxu0 }
 0x3d5   : > { %v14367_v61 = vadd.f32 %v10836_v30, %v7179_v20 }
 0x3d6   : > { %v10838_v47 = vpop.f32.mrf.mxu1  ;;  %v11383_v13 = vpop.f32.mrf.mxu0 }
 0x3d8   : > { %7803 = vmatmul.mubr.bf16.gmra.mxu0 %v14150_v7  ;;  %v10839_v7 = vadd.f32 %v10838_v47, %v10837_v48 }
 0x3d9   : > { %7810 = vmatprep.mubr.bf16.mxu0 %v14152_v63  ;;  %v7182_v63 = vpop.f32.mrf.mxu0 }
 0x3da   : > { %v14371_v39 = vadd.f32 %v10839_v7, %v7182_v63 }
 0x3db   : > { %8575 = vmatmul.mubr.bf16.gmra.mxu1 %v14293_v62 }
 0x3dc   : > { %8582 = vmatprep.mubr.bf16.mxu1 %v14298_v3 }
 0x3dd   : > { %v10840_v14 = vpop.f32.mrf.mxu1 }
 0x3df   : > { %v10841_v10 = vpop.f32.mrf.mxu1 }
 0x3e0   : > { %7811 = vmatmul.mubr.bf16.gmra.mxu0 %v14160_v12  ;;  %v10842_v62 = vadd.f32 %v10841_v10, %v10840_v14 }
 0x3e1   : > { %11464 = vmatprep.mubr.bf16.mxu0 %v11963_v57  ;;  %v10843_v3 = vpop.f32.mrf.mxu1 }
 0x3e2   : > { %v14375_v42 = vadd.f32 %v11382_v51, %v10842_v62  ;;  %v11386_v27 = vpop.f32.mrf.mxu0  ;;  %v11974_v62 = vld [vmem:[#allocation5 + $0x154] ss:$12 sps:$4 sm:$0xff]  }
 0x3e3   : > { %8583 = vmatmul.mubr.bf16.gmra.mxu1 %v14306_v25  ;;  %v10844_v12 = vpop.f32.mrf.mxu1  ;;  %v11966_v25 = vld [vmem:[#allocation5 + $0x80] ss:$12 sps:$4 sm:$0xff]  }
 0x3e4   : > { %8590 = vmatprep.mubr.bf16.mxu1 %v14310_v49  ;;  %v10845_v37 = vadd.f32 %v10844_v12, %v10843_v3  ;;  %v11967_v49 = vld [vmem:[#allocation5 + $0x98] ss:$12 sps:$4 sm:$0xff]   ;;  %v7195_v36 = vpop.f32.mrf.mxu0 }
 0x3e6   : > { %v14377_v44 = vadd.f32 %v11383_v13, %v10845_v37  ;;  %v11387_v22 = vpop.f32.mrf.mxu0 }
 0x3e7   : > { %v10846_v58 = vpop.f32.mrf.mxu1 }
 0x3e8   : > { %11465 = vmatmul.mubr.bf16.vlgmr.msra.gmra.mxu0 %v11964_v26  ;;  %v14387_v33 = vpop.f32.mrf.mxu0 }
 0x3e9   : > { %11468 = vmatprep.mubr.bf16.mxu0 %v11965_v46  ;;  %v10847_v59 = vpop.f32.mrf.mxu1 }
 0x3ea   : > { %v10848_v31 = vadd.f32 %v10847_v59, %v10846_v58  ;;  %v11972_v59 = vld [vmem:[#allocation5 + $0x150] ss:$12 sps:$4 sm:$0xff]  }
 0x3eb   : > { %8591 = vmatmul.mubr.bf16.gmra.mxu1 %v14318_v32  ;;  %v10849_v28 = vpop.f32.mrf.mxu1  ;;  %v11968_v32 = vld [vmem:[#allocation5 + $0xb0] ss:$12 sps:$4 sm:$0xff]  }
 0x3ec   : > { %8598 = vmatprep.mubr.bf16.mxu1 %v14322_v55  ;;  %v14381_v17 = vadd.f32 %v10848_v31, %v7195_v36  ;;  %v11969_v55 = vld [vmem:[#allocation5 + $0xc8] ss:$12 sps:$4 sm:$0xff]  }
 0x3ed   : > { %v10850_v11 = vpop.f32.mrf.mxu1 }
 0x3ee   : > { %v14383_v41 = vadd.f32 %v10850_v11, %v10849_v28  ;;  %v11979_v28 = vld [vmem:[#allocation5 + $0x16c] ss:$12 sps:$4 sm:$0xff]  }
 0x3f0   : > { %11469 = vmatmul.mubr.bf16.gmra.mxu0 %v11966_v25 }
 0x3f1   : > { %11472 = vmatprep.mubr.bf16.mxu0 %v11967_v49  ;;  %v10852_v56 = vpop.f32.mrf.mxu1 }
 0x3f3   : > { %8599 = vmatmul.mubr.bf16.gmra.mxu1 %v14330_v5  ;;  %v10853_v23 = vpop.f32.mrf.mxu1  ;;  %v11970_v5 = vld [vmem:[#allocation5 + $0xe0] ss:$12 sps:$4 sm:$0xff]  }
 0x3f4   : > { %8606 = vmatprep.mubr.bf16.mxu1 %v14336_v34  ;;  %v10854_v50 = vadd.f32 %v10853_v23, %v10852_v56  ;;  %v11971_v34 = vld [vmem:[#allocation5 + $0xf8] ss:$12 sps:$4 sm:$0xff]  }
 0x3f5   : > { %v10855_v54 = vpop.f32.mrf.mxu1  ;;  %v11981_v56 = vld [vmem:[#allocation5 + $0x158] ss:$12 sps:$4 sm:$0xff]  }
 0x3f6   : > { %v14389_v1 = vadd.f32 %v11386_v27, %v10854_v50 }
 0x3f7   : > { %v11390_v18 = vpop.f32.mrf.mxu0  ;;  %v10856_v16 = vpop.f32.mrf.mxu1 }
 0x3f8   : > { %11473 = vmatmul.mubr.bf16.gmra.mxu0 %v11968_v32  ;;  %v10857_v30 = vadd.f32 %v10856_v16, %v10855_v54 }
 0x3f9   : > { %11476 = vmatprep.mubr.bf16.mxu0 %v11969_v55  ;;  %v7211_v51 = vpop.f32.mrf.mxu0 }
 0x3fa   : > { %v14392_v20 = vadd.f32 %v11387_v22, %v10857_v30 }
 0x3fb   : > { %v10858_v48 = vpop.f32.mrf.mxu1  ;;  %8607 = vmatmul.mubr.bf16.gmra.mxu1 %v14342_v2  ;;  %v11391_v47 = vpop.f32.mrf.mxu0  ;;  %v11975_v2 = vld [vmem:[#allocation5 + $0x110] ss:$12 sps:$4 sm:$0xff]  }
 0x3fc   : > { %8614 = vmatprep.mubr.bf16.mxu1 %v14346_v21  ;;  %v11976_v21 = vld [vmem:[#allocation5 + $0x128] ss:$12 sps:$4 sm:$0xff]  }
 0x3fd   : > { %v10859_v57 = vpop.f32.mrf.mxu1  ;;  %v7214_v10 = vpop.f32.mrf.mxu0 }
 0x3fe   : > { %v10860_v13 = vadd.f32 %v10859_v57, %v10858_v48  ;;  %v11984_v48 = vld [vmem:[#allocation5 + $0x184] ss:$12 sps:$4 sm:$0xff]  }
 0x3ff   : > { %v10861_v7 = vpop.f32.mrf.mxu1 }
 0x400   : > { %11477 = vmatmul.mubr.bf16.gmra.mxu0 %v11970_v5  ;;  %v14395_v63 = vadd.f32 %v10860_v13, %v7211_v51 }
 0x401   : > { %11480 = vmatprep.mubr.bf16.mxu0 %v11971_v34  ;;  %v10862_v14 = vpop.f32.mrf.mxu1  ;;  %v11985_v34 = vld [vmem:[#allocation5 + $0x170] ss:$12 sps:$4 sm:$0xff]  }
 0x402   : > { %v10863_v26 = vadd.f32 %v10862_v14, %v10861_v7 }
 0x403   : > { %v10864_v46 = vpop.f32.mrf.mxu1  ;;  %8615 = vmatmul.mubr.bf16.gmra.mxu1 %v14352_v43  ;;  %v11980_v43 = vld [vmem:[#allocation5 + $0x140] ss:$12 sps:$4 sm:$0xff]  }
 0x404   : > { %v14398_v3 = vadd.f32 %v10863_v26, %v7214_v10  ;;  %8622 = vmatprep.mubr.bf16.mxu1 %v11974_v62  ;;  %v11990_v62 = vld [vmem:[#allocation5 + $0x19c] ss:$12 sps:$4 sm:$0xff]  }
 0x405   : > { %v10865_v12 = vpop.f32.mrf.mxu1 }
 0x406   : > { %v10866_v27 = vadd.f32 %v10865_v12, %v10864_v46  ;;  %v11982_v46 = vld [vmem:[#allocation5 + $0x180] ss:$12 sps:$4 sm:$0xff]  }
 0x407   : > { %v11394_v37 = vpop.f32.mrf.mxu0  ;;  %v10867_v58 = vpop.f32.mrf.mxu1 }
 0x408   : > { %11481 = vmatmul.mubr.bf16.gmra.mxu0 %v11975_v2  ;;  %v14400_v25 = vadd.f32 %v11390_v18, %v10866_v27  ;;  %v11977_v18 = vld [vmem:[#allocation5 + $0x168] ss:$12 sps:$4 sm:$0xff]  }
 0x409   : > { %11484 = vmatprep.mubr.bf16.mxu0 %v11976_v21  ;;  %v10868_v49 = vpop.f32.mrf.mxu1  ;;  %v7227_v36 = vpop.f32.mrf.mxu0  ;;  %v11987_v21 = vld [vmem:[#allocation5 + $0x1a0] ss:$12 sps:$4 sm:$0xff]  }
 0x40a   : > { %v10869_v31 = vadd.f32 %v10868_v49, %v10867_v58 }
 0x40b   : > { %v10870_v11 = vpop.f32.mrf.mxu1  ;;  %8623 = vmatmul.mubr.bf16.gmra.mxu1 %v11972_v59  ;;  %v11395_v55 = vpop.f32.mrf.mxu0 }
 0x40c   : > { %v14402_v22 = vadd.f32 %v11391_v47, %v10869_v31  ;;  %8630 = vmatprep.mubr.bf16.mxu1 %v11979_v28  ;;  %v11986_v47 = vld [vmem:[#allocation5 + $0x188] ss:$12 sps:$4 sm:$0xff]  }
 0x40d   : > { %v10871_v32 = vpop.f32.mrf.mxu1  ;;  %v7230_v51 = vpop.f32.mrf.mxu0 }
 0x40e   : > { %v10872_v23 = vadd.f32 %v10871_v32, %v10870_v11  ;;  %v11988_v11 = vld [vmem:[#allocation5 + $0x198] ss:$12 sps:$4 sm:$0xff]  }
 0x40f   : > { %v10873_v50 = vpop.f32.mrf.mxu1 }
 0x410   : > { %11485 = vmatmul.mubr.bf16.gmra.mxu0 %v11980_v43  ;;  %v14404_v54 = vadd.f32 %v10872_v23, %v7227_v36 }
 0x411   : > { %11488 = vmatprep.mubr.bf16.mxu0 %v11981_v56  ;;  %v10874_v16 = vpop.f32.mrf.mxu1 }
 0x412   : > { %v10875_v30 = vadd.f32 %v10874_v16, %v10873_v50 }
 0x413   : > { %v10876_v5 = vpop.f32.mrf.mxu1  ;;  %8631 = vmatmul.mubr.bf16.gmra.mxu1 %v11977_v18 }
 0x414   : > { %v14406_v57 = vadd.f32 %v10875_v30, %v7230_v51  ;;  %8638 = vmatprep.mubr.bf16.mxu1 %v11984_v48  ;;  %v11398_v7 = vpop.f32.mrf.mxu0  ;;  %v10803_v48 = vadd.f32 %v14250_v4, %v14240_v35 }
 0x415   : > { %v10877_v13 = vpop.f32.mrf.mxu1 }
 0x416   : > { %v10878_v14 = vadd.f32 %v10877_v13, %v10876_v5  ;;  %v7243_v12 = vpop.f32.mrf.mxu0 }
 0x417   : > { %v10879_v10 = vpop.f32.mrf.mxu1 }
 0x418   : > { %11489 = vmatmul.mubr.bf16.gmra.mxu0 %v11985_v34  ;;  %v14408_v26 = vadd.f32 %v11394_v37, %v10878_v14  ;;  %v11399_v36 = vpop.f32.mrf.mxu0 }
 0x419   : > { %11492 = vmatprep.mubr.bf16.mxu0 %v11986_v47  ;;  %v10880_v2 = vpop.f32.mrf.mxu1 }
 0x41a   : > { %v10881_v27 = vadd.f32 %v10880_v2, %v10879_v10  ;;  %v7246_v56 = vpop.f32.mrf.mxu0  ;;  %v7135_v2 = vadd.f32 %v10803_v48, %v14275_v40 }
 0x41b   : > { %v10882_v58 = vpop.f32.mrf.mxu1  ;;  %8639 = vmatmul.mubr.bf16.gmra.mxu1 %v11982_v46 }
 0x41c   : > { %v14410_v59 = vadd.f32 %v11395_v55, %v10881_v27  ;;  %8646 = vmatprep.mubr.bf16.mxu1 %v11990_v62 }
 0x41d   : > { %v10883_v49 = vpop.f32.mrf.mxu1 }
 0x41e   : > { %v10884_v31 = vadd.f32 %v10883_v49, %v10882_v58 }
 0x41f   : > { %v10885_v28 = vpop.f32.mrf.mxu1 }
 0x420   : > { %11493 = vmatmul.mubr.bf16.gmra.mxu0 %v11987_v21  ;;  %v14412_v43 = vadd.f32 %v10884_v31, %v7243_v12 }
 0x421   : > { %v10886_v37 = vpop.f32.mrf.mxu1 }
 0x422   : > { %v10887_v32 = vadd.f32 %v10886_v37, %v10885_v28 }
 0x423   : > { %v10888_v23 = vpop.f32.mrf.mxu1  ;;  %8647 = vmatmul.mubr.bf16.gmra.mxu1 %v11988_v11 }
 0x424   : > { %v14414_v50 = vadd.f32 %v10887_v32, %v7246_v56 }
 0x425   : > { %v10889_v18 = vpop.f32.mrf.mxu1 }
 0x426   : > { %v10890_v55 = vadd.f32 %v10889_v18, %v10888_v23 }
 0x427   : > { %v10891_v51 = vpop.f32.mrf.mxu1 }
 0x428   : > { %v10934_v16 = vpop.f32.mrf.mxu0  ;;  %v14418_v5 = vadd.f32 %v11398_v7, %v10890_v55 }
 0x429   : > { %v10892_v47 = vpop.f32.mrf.mxu1 }
 0x42a   : > { %v10935_v30 = vpop.f32.mrf.mxu0  ;;  %v10893_v14 = vadd.f32 %v10892_v47, %v10891_v51 }
 0x42b   : > { %v10936_v34 = vadd.f32 %v10935_v30, %v10934_v16  ;;  %v11418_v62 = vpop.f32.mrf.mxu1 }
 0x42c   : > { %v10937_v13 = vpop.f32.mrf.mxu0  ;;  %v14422_v21 = vadd.f32 %v11399_v36, %v10893_v14 }
 0x42d   : > { %v7693_v10 = vadd.f32 %v10936_v34, %v14242_v6  ;;  %v7853_v27 = vpop.f32.mrf.mxu1 }
 0x42e   : > { %v10938_v46 = vpop.f32.mrf.mxu0 }
 0x42f   : > { %v10939_v12 = vadd.f32 %v10938_v46, %v10937_v13  ;;  %v14424_v49 = vadd.f32 %v7853_v27, %v7693_v10  ;;  %v11419_v4 = vpop.f32.mrf.mxu1  ;;  %v7151_v10 = vadd.f32 %v14283_v60, %v14328_v9 }
 0x430   : > { %v10940_v58 = vpop.f32.mrf.mxu0 }
 0x431   : > { %v7696_v35 = vadd.f32 %v10939_v12, %v7135_v2  ;;  %v7856_v28 = vpop.f32.mrf.mxu1 }
 0x432   : > { %v10941_v7 = vpop.f32.mrf.mxu0 }
 0x433   : > { %v10942_v31 = vadd.f32 %v10941_v7, %v10940_v58  ;;  %v14427_v6 = vadd.f32 %v7856_v28, %v7696_v35  ;;  %v11422_v56 = vpop.f32.mrf.mxu1 }
 0x434   : > { %v10943_v11 = vpop.f32.mrf.mxu0 }
 0x435   : > { %v7701_v37 = vadd.f32 %v10942_v31, %v14263_v45  ;;  %v7869_v23 = vpop.f32.mrf.mxu1 }
 0x436   : > { %v10944_v32 = vpop.f32.mrf.mxu0 }
 0x437   : > { %v10945_v40 = vadd.f32 %v10944_v32, %v10943_v11  ;;  %v14429_v36 = vadd.f32 %v11418_v62, %v7701_v37  ;;  %v11423_v55 = vpop.f32.mrf.mxu1 }
 0x438   : > { %v10946_v18 = vpop.f32.mrf.mxu0 }
 0x439   : > { %v7704_v16 = vadd.f32 %v10945_v40, %v14269_v0  ;;  %v7872_v34 = vpop.f32.mrf.mxu1 }
 0x43a   : > { %v10947_v51 = vpop.f32.mrf.mxu0 }
 0x43b   : > { %v10948_v30 = vadd.f32 %v10947_v51, %v10946_v18  ;;  %v14432_v48 = vadd.f32 %v11419_v4, %v7704_v16  ;;  %v11426_v13 = vpop.f32.mrf.mxu1 }
 0x43c   : > { %v10949_v47 = vpop.f32.mrf.mxu0 }
 0x43d   : > { %v7709_v45 = vadd.f32 %v10948_v30, %v14279_v19  ;;  %v7885_v2 = vpop.f32.mrf.mxu1 }
 0x43e   : > { %v10950_v14 = vpop.f32.mrf.mxu0 }
 0x43f   : > { %v10951_v62 = vadd.f32 %v10950_v14, %v10949_v47  ;;  %v14437_v46 = vadd.f32 %v7869_v23, %v7709_v45  ;;  %v11427_v27 = vpop.f32.mrf.mxu1  ;;  %v15002_v47 = vmov 0.0  }
 0x440   : > { %v10952_v12 = vpop.f32.mrf.mxu0  ;;  %11496 = vmatprep.subr.bf16.mxu0 %v15002_v47  ;;  %11516 = vmatprep.subr.bf16.mxu1 %v15002_v47 }
 0x441   : > { %v7712_v0 = vadd.f32 %v10951_v62, %v7151_v10  ;;  %v7888_v7 = vpop.f32.mrf.mxu1 }
 0x442   : > { %v10953_v58 = vpop.f32.mrf.mxu0 }
 0x443   : > { %v10954_v35 = vadd.f32 %v10953_v58, %v10952_v12  ;;  %v14439_v4 = vadd.f32 %v7872_v34, %v7712_v0  ;;  %v14442_v28 = vpop.f32.mrf.mxu1 }
 0x444   : > { %v10955_v31 = vpop.f32.mrf.mxu0 }
 0x445   : > { %v7717_v19 = vadd.f32 %v10954_v35, %v14302_v38  ;;  %v7901_v9 = vpop.f32.mrf.mxu1 }
 0x446   : > { %v10956_v11 = vpop.f32.mrf.mxu0 }
 0x447   : > { %v10957_v37 = vadd.f32 %v10956_v11, %v10955_v31  ;;  %v14444_v60 = vadd.f32 %v11422_v56, %v7717_v19  ;;  %v14447_v23 = vpop.f32.mrf.mxu1 }
 0x448   : > { %v10958_v32 = vpop.f32.mrf.mxu0 }
 0x449   : > { %v7720_v40 = vadd.f32 %v10957_v37, %v14312_v8  ;;  %v7904_v30 = vpop.f32.mrf.mxu1  ;;  %v7167_v8 = vadd.f32 %v14338_v52, %v14363_v15 }
 0x44a   : > { %v10959_v18 = vpop.f32.mrf.mxu0 }
 0x44b   : > { %v10960_v16 = vadd.f32 %v10959_v18, %v10958_v32  ;;  %v14449_v51 = vadd.f32 %v11423_v55, %v7720_v40  ;;  %v14454_v56 = vpop.f32.mrf.mxu1  ;;  %v11991_v55 = vld [vmem:[%s14989_s5 + $0x38] sm:$0xff]   ;;  %v11992_v40 = vld [vmem:[%s14989_s5 + $0x30] sm:$0xff]  }
 0x44c   : > { %v10961_v34 = vpop.f32.mrf.mxu0  ;;  %11497 = vmatpush3.bf16.msra.mxu0 %v11991_v55 }
 0x44d   : > { %v7725_v38 = vadd.f32 %v10960_v16, %v14333_v29  ;;  %v14463_v62 = vpop.f32.mrf.mxu1  ;;  %11498 = vmatprep.subr.bf16.mxu0 %v15002_v47 }
 0x44e   : > { %v10962_v45 = vpop.f32.mrf.mxu0 }
 0x44f   : > { %v10963_v14 = vadd.f32 %v10962_v45, %v10961_v34  ;;  %v14458_v10 = vadd.f32 %v7885_v2, %v7725_v38  ;;  %v14465_v58 = vpop.f32.mrf.mxu1 }
 0x450   : > { %v10964_v12 = vpop.f32.mrf.mxu0  ;;  %11499 = vmatpush3.bf16.msra.mxu0 %v11992_v40 }
 0x451   : > { %v7728_v0 = vadd.f32 %v10963_v14, %v7167_v8  ;;  %v14470_v52 = vpop.f32.mrf.mxu1  ;;  %11500 = vmatprep.subr.bf16.mxu0 %v15002_v47 }
 0x452   : > { %v10965_v29 = vpop.f32.mrf.mxu0 }
 0x453   : > { %v10966_v35 = vadd.f32 %v10965_v29, %v10964_v12  ;;  %v14468_v31 = vadd.f32 %v7888_v7, %v7728_v0  ;;  %v14473_v19 = vpop.f32.mrf.mxu1 }
 0x454   : > { %v10967_v15 = vpop.f32.mrf.mxu0 }
 0x455   : > { %v7733_v2 = vadd.f32 %v10966_v35, %v14350_v24  ;;  %v14480_v18 = vpop.f32.mrf.mxu1 }
 0x456   : > { %v10968_v11 = vpop.f32.mrf.mxu0 }
 0x457   : > { %v10969_v37 = vadd.f32 %v10968_v11, %v10967_v15  ;;  %v14475_v32 = vadd.f32 %v11426_v13, %v7733_v2  ;;  %v14483_v34 = vpop.f32.mrf.mxu1 }
 0x458   : > { %v10970_v16 = vpop.f32.mrf.mxu0 }
 0x459   : > { %v7736_v7 = vadd.f32 %v10969_v37, %v14358_v53  ;;  %v14488_v13 = vpop.f32.mrf.mxu1  ;;  %v11993_v53 = vld [vmem:[%s14989_s5 + $0x28] sm:$0xff]  }
 0x45a   : > { %v10971_v38 = vpop.f32.mrf.mxu0  ;;  %11501 = vmatpush3.bf16.msra.mxu0 %v11993_v53 }
 0x45b   : > { %v10972_v24 = vadd.f32 %v10971_v38, %v10970_v16  ;;  %v14486_v45 = vadd.f32 %v11427_v27, %v7736_v7  ;;  %v14491_v55 = vpop.f32.mrf.mxu1  ;;  %11502 = vmatprep.subr.bf16.mxu0 %v15002_v47 }
 0x45c   : > { %v10973_v8 = vpop.f32.mrf.mxu0 }
 0x45d   : > { %v7741_v14 = vadd.f32 %v10972_v24, %v14367_v61  ;;  %v14498_v35 = vpop.f32.mrf.mxu1 }
 0x45e   : > { %v10974_v12 = vpop.f32.mrf.mxu0 }
 0x45f   : > { %v10975_v0 = vadd.f32 %v10974_v12, %v10973_v8  ;;  %v14493_v29 = vadd.f32 %v7901_v9, %v7741_v14  ;;  %v14501_v2 = vpop.f32.mrf.mxu1 }
 0x460   : > { %v10976_v15 = vpop.f32.mrf.mxu0 }
 0x461   : > { %v7744_v27 = vadd.f32 %v10975_v0, %v14371_v39  ;;  %v14506_v9 = vpop.f32.mrf.mxu1 }
 0x462   : > { %v10977_v11 = vpop.f32.mrf.mxu0 }
 0x463   : > { %v10978_v61 = vadd.f32 %v10977_v11, %v10976_v15  ;;  %v14504_v37 = vadd.f32 %v7904_v30, %v7744_v27  ;;  %v14509_v7 = vpop.f32.mrf.mxu1  ;;  %v11994_v30 = vld [vmem:[%s14989_s5 + $0x20] sm:$0xff]  }
 0x464   : > { %v10979_v40 = vpop.f32.mrf.mxu0  ;;  %11503 = vmatpush3.bf16.msra.mxu0 %v11994_v30 }
 0x465   : > { %v7749_v16 = vadd.f32 %v10978_v61, %v14375_v42  ;;  %v14514_v8 = vpop.f32.mrf.mxu1  ;;  %11504 = vmatprep.subr.bf16.mxu0 %v15002_v47 }
 0x466   : > { %v10980_v38 = vpop.f32.mrf.mxu0 }
 0x467   : > { %v10981_v24 = vadd.f32 %v10980_v38, %v10979_v40  ;;  %v14512_v39 = vadd.f32 %v14442_v28, %v7749_v16  ;;  %v14520_v0 = vpop.f32.mrf.mxu1  ;;  %v7199_v16 = vadd.f32 %v14383_v41, %v14387_v33 }
 0x468   : > { %v10982_v14 = vpop.f32.mrf.mxu0 }
 0x469   : > { %v7752_v12 = vadd.f32 %v10981_v24, %v14377_v44  ;;  %v14526_v28 = vpop.f32.mrf.mxu1  ;;  %v11995_v44 = vld [vmem:[%s14989_s5 + $0x18] sm:$0xff]  }
 0x46a   : > { %v10983_v53 = vpop.f32.mrf.mxu0  ;;  %11505 = vmatpush3.bf16.msra.mxu0 %v11995_v44 }
 0x46b   : > { %v10984_v42 = vadd.f32 %v10983_v53, %v10982_v14  ;;  %v14523_v15 = vadd.f32 %v14447_v23, %v7752_v12  ;;  %v11070_v61 = vpop.f32.mrf.mxu1  ;;  %11506 = vmatprep.subr.bf16.mxu0 %v15002_v47 }
 0x46c   : > { %v10985_v27 = vpop.f32.mrf.mxu0 }
 0x46d   : > { %15030 = vst [vmem:[#allocation11_spill] sm:$0xff] %v14523_v15  ;;  %v7757_v11 = vadd.f32 %v10984_v42, %v14381_v17  ;;  %v11071_v24 = vpop.f32.mrf.mxu1 }
 0x46e   : > { %v10986_v40 = vpop.f32.mrf.mxu0  ;;  %v14537_v12 = vadd.f32 %v11071_v24, %v11070_v61 }
 0x46f   : > { %v10987_v38 = vadd.f32 %v10986_v40, %v10985_v27  ;;  %v14535_v23 = vadd.f32 %v14463_v62, %v7757_v11  ;;  %v14540_v17 = vpop.f32.mrf.mxu1 }
 0x470   : > { %v10988_v14 = vpop.f32.mrf.mxu0 }
 0x471   : > { %v7760_v30 = vadd.f32 %v10987_v38, %v7199_v16  ;;  %v14545_v41 = vpop.f32.mrf.mxu1 }
 0x472   : > { %v10989_v53 = vpop.f32.mrf.mxu0 }
 0x473   : > { %v10990_v42 = vadd.f32 %v10989_v53, %v10988_v14  ;;  %v14543_v15 = vadd.f32 %v14470_v52, %v7760_v30  ;;  %v14548_v27 = vpop.f32.mrf.mxu1 }
 0x474   : > { %v10991_v33 = vpop.f32.mrf.mxu0 }
 0x475   : > { %v7765_v62 = vadd.f32 %v10990_v42, %v14389_v1  ;;  %v14553_v44 = vpop.f32.mrf.mxu1 }
 0x476   : > { %v10992_v11 = vpop.f32.mrf.mxu0 }
 0x477   : > { %v10993_v40 = vadd.f32 %v10992_v11, %v10991_v33  ;;  %v14551_v61 = vadd.f32 %v14454_v56, %v7765_v62  ;;  %v14556_v24 = vpop.f32.mrf.mxu1 }
 0x478   : > { %v10994_v16 = vpop.f32.mrf.mxu0 }
 0x479   : > { %v7768_v38 = vadd.f32 %v10993_v40, %v14392_v20  ;;  %v14561_v1 = vpop.f32.mrf.mxu1 }
 0x47a   : > { %v10995_v52 = vpop.f32.mrf.mxu0 }
 0x47b   : > { %v10996_v14 = vadd.f32 %v10995_v52, %v10994_v16  ;;  %v14559_v30 = vadd.f32 %v14465_v58, %v7768_v38  ;;  %v14564_v33 = vpop.f32.mrf.mxu1 }
 0x47c   : > { %v10997_v53 = vpop.f32.mrf.mxu0 }
 0x47d   : > { %15031 = vst [vmem:[#allocation12_spill] sm:$0xff] %v14559_v30  ;;  %v7773_v42 = vadd.f32 %v10996_v14, %v14395_v63  ;;  %v14569_v20 = vpop.f32.mrf.mxu1 }
 0x47e   : > { %v10998_v56 = vpop.f32.mrf.mxu0 }
 0x47f   : > { %v10999_v62 = vadd.f32 %v10998_v56, %v10997_v53  ;;  %v14567_v11 = vadd.f32 %v14480_v18, %v7773_v42  ;;  %v14572_v52 = vpop.f32.mrf.mxu1  ;;  %v11996_v18 = vld [vmem:[%s14989_s5 + $0x10] sm:$0xff]  }
 0x480   : > { %v11000_v40 = vpop.f32.mrf.mxu0  ;;  %11507 = vmatpush3.bf16.msra.mxu0 %v11996_v18 }
 0x481   : > { %15032 = vst [vmem:[#allocation13_spill] sm:$0xff] %v14567_v11  ;;  %v7776_v16 = vadd.f32 %v10999_v62, %v14398_v3  ;;  %v14577_v63 = vpop.f32.mrf.mxu1  ;;  %v15034_v3 = vmov 0.0  }
 0x482   : > { %v11001_v58 = vpop.f32.mrf.mxu0  ;;  %11512 = vmatprep.mubr.msk.bf16.mxu0 %vm12097_vm15, %v15034_v3  ;;  %11532 = vmatprep.mubr.msk.bf16.mxu1 %vm12097_vm15, %v15034_v3 }
 0x483   : > { %v11002_v38 = vadd.f32 %v11001_v58, %v11000_v40  ;;  %v14575_v47 = vadd.f32 %v14488_v13, %v7776_v16  ;;  %v14583_v42 = vpop.f32.mrf.mxu1  ;;  %v11999_v40 = vld [vmem:[%s14991_s7 + $0x38] sm:$0xff]   ;;  %11508 = vmatprep.subr.bf16.mxu0 %v15034_v3 }
 0x484   : > { %v11003_v14 = vpop.f32.mrf.mxu0  ;;  %11517 = vmatpush3.bf16.msra.mxu1 %v11999_v40 }
 0x485   : > { %15033 = vst [vmem:[#allocation8_spill] sm:$0xff] %v14575_v47  ;;  %v7781_v53 = vadd.f32 %v11002_v38, %v14400_v25  ;;  %v11997_v25 = vld [vmem:[%s14989_s5 + $0x8] sm:$0xff]   ;;  %v14596_v16 = vpop.f32.mrf.mxu1  ;;  %11518 = vmatprep.subr.bf16.mxu1 %v15034_v3  ;;  %v11998_v47 = vld [vmem:[%s14989_s5] sm:$0xff]  }
 0x486   : > { %v11004_v56 = vpop.f32.mrf.mxu0  ;;  %11509 = vmatpush3.bf16.msra.mxu0 %v11997_v25 }
 0x487   : > { %v11005_v62 = vadd.f32 %v11004_v56, %v11003_v14  ;;  %v14588_v13 = vadd.f32 %v14473_v19, %v7781_v53  ;;  %v12000_v19 = vld [vmem:[%s14991_s7 + $0x30] sm:$0xff]   ;;  %v14603_v14 = vpop.f32.mrf.mxu1  ;;  %11510 = vmatprep.subr.bf16.mxu0 %v15034_v3 }
 0x488   : > { %v11006_v58 = vpop.f32.mrf.mxu0  ;;  %11519 = vmatpush3.bf16.msra.mxu1 %v12000_v19  ;;  %v12002_v19 = vld [vmem:[%s14991_s7 + $0x20] sm:$0xff]  }
 0x489   : > { %15035 = vst [vmem:[#allocation7_spill] sm:$0xff] %v14588_v13  ;;  %v7784_v38 = vadd.f32 %v11005_v62, %v14402_v22  ;;  %v14612_v22 = vpop.f32.mrf.mxu1  ;;  %11520 = vmatprep.subr.bf16.mxu1 %v15034_v3 }
 0x48a   : > { %v11007_v53 = vpop.f32.mrf.mxu0  ;;  %11511 = vmatpush3.bf16.msra.mxu0 %v11998_v47 }
 0x48b   : > { %v11008_v18 = vadd.f32 %v11007_v53, %v11006_v58  ;;  %v14607_v56 = vadd.f32 %v14483_v34, %v7784_v38  ;;  %v12001_v58 = vld [vmem:[%s14991_s7 + $0x28] sm:$0xff]   ;;  %v14619_v53 = vpop.f32.mrf.mxu1 }
 0x48c   : > { %v11009_v62 = vpop.f32.mrf.mxu0  ;;  %11521 = vmatpush3.bf16.msra.mxu1 %v12001_v58 }
 0x48d   : > { %15036 = vst [vmem:[#allocation9_spill] sm:$0xff] %v14607_v56  ;;  %v7789_v40 = vadd.f32 %v11008_v18, %v14404_v54  ;;  %v14625_v56 = vpop.f32.mrf.mxu1  ;;  %11522 = vmatprep.subr.bf16.mxu1 %v15034_v3 }
 0x48e   : > { %v11010_v34 = vpop.f32.mrf.mxu0 }
 0x48f   : > { %v11011_v25 = vadd.f32 %v11010_v34, %v11009_v62  ;;  %v14623_v38 = vadd.f32 %v14498_v35, %v7789_v40  ;;  %v14631_v18 = vpop.f32.mrf.mxu1 }
 0x490   : > { %v11012_v13 = vpop.f32.mrf.mxu0  ;;  %11523 = vmatpush3.bf16.msra.mxu1 %v12002_v19 }
 0x491   : > { %15037 = vst [vmem:[#allocation10_spill] sm:$0xff] %v14623_v38  ;;  %v7792_v54 = vadd.f32 %v11011_v25, %v14406_v57  ;;  %v14637_v47 = vpop.f32.mrf.mxu1  ;;  %v12003_v57 = vld [vmem:[%s14991_s7 + $0x18] sm:$0xff]   ;;  %11524 = vmatprep.subr.bf16.mxu1 %v15034_v3 }
 0x492   : > { %v11013_v11 = vpop.f32.mrf.mxu0 }
 0x493   : > { %v11014_v62 = vadd.f32 %v11013_v11, %v11012_v13  ;;  %v14635_v35 = vadd.f32 %v14506_v9, %v7792_v54  ;;  %v14643_v58 = vpop.f32.mrf.mxu1 }
 0x494   : > { %v11015_v40 = vpop.f32.mrf.mxu0  ;;  %11525 = vmatpush3.bf16.msra.mxu1 %v12003_v57 }
 0x495   : > { %15038 = vst [vmem:[#allocation14_spill] sm:$0xff] %v14635_v35  ;;  %v7797_v34 = vadd.f32 %v11014_v62, %v14408_v26  ;;  %v14649_v9 = vpop.f32.mrf.mxu1  ;;  %v12004_v26 = vld [vmem:[%s14991_s7 + $0x10] sm:$0xff]   ;;  %11526 = vmatprep.subr.bf16.mxu1 %v15034_v3 }
 0x496   : > { %v11016_v25 = vpop.f32.mrf.mxu0 }
 0x497   : > { %v11017_v38 = vadd.f32 %v11016_v25, %v11015_v40  ;;  %v14647_v11 = vadd.f32 %v14491_v55, %v7797_v34  ;;  %v14655_v19 = vpop.f32.mrf.mxu1 }
 0x498   : > { %v11018_v13 = vpop.f32.mrf.mxu0  ;;  %11527 = vmatpush3.bf16.msra.mxu1 %v12004_v26 }
 0x499   : > { %15039 = vst [vmem:[#allocation15_spill] sm:$0xff] %v14647_v11  ;;  %v7800_v54 = vadd.f32 %v11017_v38, %v14410_v59  ;;  %v14661_v55 = vpop.f32.mrf.mxu1  ;;  %v12005_v59 = vld [vmem:[%s14991_s7 + $0x8] sm:$0xff]   ;;  %11528 = vmatprep.subr.bf16.mxu1 %v15034_v3 }
 0x49a   : > { %v11019_v62 = vpop.f32.mrf.mxu0 }
 0x49b   : > { %v11020_v35 = vadd.f32 %v11019_v62, %v11018_v13  ;;  %v14659_v40 = vadd.f32 %v14501_v2, %v7800_v54  ;;  %v14667_v38 = vpop.f32.mrf.mxu1 }
 0x49c   : > { %v11021_v34 = vpop.f32.mrf.mxu0  ;;  %11529 = vmatpush3.bf16.msra.mxu1 %v12005_v59 }
 0x49d   : > { %15040 = vst [vmem:[#allocation16_spill] sm:$0xff] %v14659_v40  ;;  %v7805_v25 = vadd.f32 %v11020_v35, %v14412_v43  ;;  %v14673_v2 = vpop.f32.mrf.mxu1  ;;  %v12006_v43 = vld [vmem:[%s14991_s7] sm:$0xff]   ;;  %11530 = vmatprep.subr.bf16.mxu1 %v15034_v3 }
 0x49e   : > { %v11022_v57 = vpop.f32.mrf.mxu0 }
 0x49f   : > { %v11023_v11 = vadd.f32 %v11022_v57, %v11021_v34  ;;  %v14671_v13 = vadd.f32 %v14514_v8, %v7805_v25  ;;  %v14679_v35 = vpop.f32.mrf.mxu1 }
 0x4a0   : > { %v11024_v54 = vpop.f32.mrf.mxu0  ;;  %11531 = vmatpush3.bf16.msra.mxu1 %v12006_v43 }
 0x4a1   : > { %15041 = vst [vmem:[#allocation17_spill] sm:$0xff] %v14671_v13  ;;  %v7808_v62 = vadd.f32 %v11023_v11, %v14414_v50  ;;  %v14685_v8 = vpop.f32.mrf.mxu1 }
 0x4a2   : > { %v11025_v26 = vpop.f32.mrf.mxu0 }
 0x4a3   : > { %v11026_v40 = vadd.f32 %v11025_v26, %v11024_v54  ;;  %v14683_v34 = vadd.f32 %v14526_v28, %v7808_v62  ;;  %v14688_v50 = vpop.f32.mrf.mxu1  ;;  %v11078_v26 = vadd.f32 %v14553_v44, %v14548_v27 }
 0x4a4   : > { %v11027_v25 = vpop.f32.mrf.mxu0 }
 0x4a5   : > { %v7813_v57 = vadd.f32 %v11026_v40, %v14418_v5  ;;  %v14693_v30 = vpop.f32.mrf.mxu1 }
 0x4a6   : > { %v11028_v11 = vpop.f32.mrf.mxu0 }
 0x4a7   : > { %v14691_v59 = vadd.f32 %v14509_v7, %v7813_v57  ;;  %v11029_v13 = vadd.f32 %v11028_v11, %v11027_v25  ;;  %v14696_v28 = vpop.f32.mrf.mxu1  ;;  %v11075_v25 = vadd.f32 %v14545_v41, %v14540_v17  ;;  %v11090_v41 = vadd.f32 %v14596_v16, %v14583_v42 }
 0x4a8   : > { %v11466_v3 = vpop.f32.mrf.mxu0  ;;  %v11093_v42 = vadd.f32 %v14612_v22, %v14603_v14 }
 0x4a9   : > { %v7816_v54 = vadd.f32 %v11029_v13, %v14422_v21  ;;  %v14704_v43 = vpop.f32.mrf.mxu1  ;;  %v11081_v21 = vadd.f32 %v14561_v1, %v14556_v24  ;;  %v8698_v13 = vadd.f32 %v11466_v3, %v11078_v26 }
 0x4aa   : > { %v8689_v62 = vpop.f32.mrf.mxu0 }
 0x4ab   : > { %v14701_v5 = vadd.f32 %v14520_v0, %v7816_v54  ;;  %v8690_v40 = vadd.f32 %v14537_v12, %v8689_v62  ;;  %v14711_v11 = vpop.f32.mrf.mxu1  ;;  %v11084_v62 = vadd.f32 %v14569_v20, %v14564_v33  ;;  %v11087_v20 = vadd.f32 %v14577_v63, %v14572_v52 }
 0x4ac   : > { %v11467_v7 = vpop.f32.mrf.mxu0 }
 0x4ad   : > { %15042 = vst [vmem:[#allocation18_spill] sm:$0xff] %v14701_v5  ;;  %v8816_v57 = vadd.f32 %v8690_v40, %v14424_v49  ;;  %v8701_v44 = vadd.f32 %v11467_v7, %v11081_v21  ;;  %v14713_v54 = vpop.f32.mrf.mxu1  ;;  %v8818_v5 = vadd.f32 %v8698_v13, %v14429_v36  ;;  %v14724_v49 = vld [vmem:[%s14988_s4] ss:$0 sm:$0xff] }
 0x4ae   : > { %v8692_v27 = vpop.f32.mrf.mxu0 }
 0x4af   : > { %v8693_v0 = vadd.f32 %v11075_v25, %v8692_v27  ;;  %v14726_v24 = vpop.f32.mrf.mxu1  ;;  %v14729_v3 = vadd.f32 %v14724_v49, %v8816_v57  ;;  %v8819_v33 = vadd.f32 %v8701_v44, %v14432_v48  ;;  %v14742_v40 = vadd.f32 %v14724_v49, %v8818_v5 }
 0x4b0   : > { %v11470_v12 = vpop.f32.mrf.mxu0  ;;  %v11096_v5 = vadd.f32 %v14625_v56, %v14619_v53 }
 0x4b1   : > { %v8817_v17 = vadd.f32 %v8693_v0, %v14427_v6  ;;  %v14739_v16 = vpop.f32.mrf.mxu1  ;;  %v8714_v48 = vadd.f32 %v11470_v12, %v11090_v41  ;;  %v14750_v52 = vadd.f32 %v14724_v49, %v8819_v33  ;;  %v11099_v33 = vadd.f32 %v14637_v47, %v14631_v18 }
 0x4b2   : > { %v8705_v1 = vpop.f32.mrf.mxu0 }
 0x4b3   : > { %v14733_v36 = vadd.f32 %v14724_v49, %v8817_v17  ;;  %v8706_v6 = vadd.f32 %v11084_v62, %v8705_v1  ;;  %v14747_v21 = vpop.f32.mrf.mxu1  ;;  %v8822_v44 = vadd.f32 %v8714_v48, %v14444_v60  ;;  %v11102_v62 = vadd.f32 %v14649_v9, %v14643_v58 }
 0x4b4   : > { %v11471_v26 = vpop.f32.mrf.mxu0 }
 0x4b5   : > { %v8951_v7 = vadd.f32 %v14733_v36, %v14729_v3  ;;  %v8820_v25 = vadd.f32 %v8706_v6, %v14437_v46  ;;  %v8717_v14 = vadd.f32 %v11471_v26, %v11093_v42  ;;  %v11125_v57 = vpop.f32.mrf.mxu1  ;;  %v14775_v58 = vadd.f32 %v14724_v49, %v8822_v44 }
 0x4b6   : > { %v8708_v13 = vpop.f32.mrf.mxu0 }
 0x4b7   : > { %v8952_v63 = vadd.f32 %v8951_v7, %v14742_v40  ;;  %v8709_v22 = vadd.f32 %v11087_v20, %v8708_v13  ;;  %v14757_v0 = vadd.f32 %v14724_v49, %v8820_v25  ;;  %v14763_v17 = vpop.f32.mrf.mxu1  ;;  %v8823_v56 = vadd.f32 %v8717_v14, %v14449_v51 }
 0x4b8   : > { %v11474_v27 = vpop.f32.mrf.mxu0 }
 0x4b9   : > { %v8953_v46 = vadd.f32 %v8952_v63, %v14750_v52  ;;  %v8821_v12 = vadd.f32 %v8709_v22, %v14439_v4  ;;  %v11105_v4 = vadd.f32 %v14661_v55, %v14655_v19  ;;  %v11128_v6 = vpop.f32.mrf.mxu1  ;;  %v8730_v42 = vadd.f32 %v11474_v27, %v11102_v62 }
 0x4ba   : > { %v8721_v41 = vpop.f32.mrf.mxu0  ;;  %v14782_v48 = vadd.f32 %v14724_v49, %v8823_v56  ;;  %v11108_v55 = vadd.f32 %v14673_v2, %v14667_v38  ;;  %v11117_v62 = vadd.f32 %v14704_v43, %v14696_v28  ;;  %v11120_v28 = vadd.f32 %v14713_v54, %v14711_v11 }
 0x4bb   : > { %v8954_v1 = vadd.f32 %v8953_v46, %v14757_v0  ;;  %v14768_v53 = vadd.f32 %v14724_v49, %v8821_v12  ;;  %v8722_v60 = vadd.f32 %v11096_v5, %v8721_v41  ;;  %v14779_v26 = vpop.f32.mrf.mxu1  ;;  %v8826_v63 = vadd.f32 %v8730_v42, %v14475_v32 }
 0x4bc   : > { %v11475_v20 = vpop.f32.mrf.mxu0  ;;  %v11114_v5 = vadd.f32 %v14693_v30, %v14688_v50  ;;  %v11111_v12 = vadd.f32 %v14685_v8, %v14679_v35 }
 0x4bd   : > { %v8955_v9 = vadd.f32 %v8954_v1, %v14768_v53  ;;  %v8824_v51 = vadd.f32 %v8722_v60, %v14458_v10  ;;  %v8733_v47 = vadd.f32 %v11475_v20, %v11105_v4  ;;  %v11131_v25 = vpop.f32.mrf.mxu1  ;;  %v14805_v30 = vadd.f32 %v14724_v49, %v8826_v63 }
 0x4be   : > { %v8724_v7 = vpop.f32.mrf.mxu0 }
 0x4bf   : > { %v8956_v18 = vadd.f32 %v8955_v9, %v14775_v58  ;;  %v8725_v19 = vadd.f32 %v11099_v33, %v8724_v7  ;;  %v14789_v14 = vadd.f32 %v14724_v49, %v8824_v51  ;;  %v11133_v27 = vpop.f32.mrf.mxu1  ;;  %v8827_v38 = vadd.f32 %v8733_v47, %v14486_v45 }
 0x4c0   : > { %v11478_v13 = vpop.f32.mrf.mxu0  ;;  %v11126_v7 = vadd.f32 %v11125_v57, %v14747_v21 }
 0x4c1   : > { %v8957_v10 = vadd.f32 %v8956_v18, %v14782_v48  ;;  %v8825_v22 = vadd.f32 %v8725_v19, %v14468_v31  ;;  %v11134_v31 = vpop.f32.mrf.mxu1  ;;  %v8746_v1 = vadd.f32 %v11478_v13, %v11114_v5  ;;  %v14810_v33 = vadd.f32 %v14724_v49, %v8827_v38 }
 0x4c2   : > { %v8737_v44 = vpop.f32.mrf.mxu0 }
 0x4c3   : > { %v8958_v46 = vadd.f32 %v8957_v10, %v14789_v14  ;;  %v14798_v2 = vadd.f32 %v14724_v49, %v8825_v22  ;;  %v8738_v32 = vadd.f32 %v11108_v55, %v8737_v44  ;;  %v11136_v56 = vpop.f32.mrf.mxu1  ;;  %v8830_v9 = vadd.f32 %v8746_v1, %v14512_v39  ;;  %v15043_v55 = vld [vmem:[#allocation11_spill] sm:$0xff] }
 0x4c4   : > { %v11479_v41 = vpop.f32.mrf.mxu0  ;;  %v11123_v39 = vadd.f32 %v14739_v16, %v14726_v24 }
 0x4c5   : > { %v8959_v50 = vadd.f32 %v8958_v46, %v14798_v2  ;;  %v8828_v45 = vadd.f32 %v8738_v32, %v14493_v29  ;;  %v8749_v8 = vadd.f32 %v11479_v41, %v11117_v62  ;;  %v11137_v43 = vpop.f32.mrf.mxu1  ;;  %v14831_v21 = vadd.f32 %v14724_v49, %v8830_v9 }
 0x4c6   : > { %v8740_v60 = vpop.f32.mrf.mxu0  ;;  %v11138_v1 = vadd.f32 %v11137_v43, %v11136_v56  ;;  %v15045_v43 = vld [vmem:[#allocation13_spill] sm:$0xff] }
 0x4c7   : > { %v8960_v35 = vadd.f32 %v8959_v50, %v14805_v30  ;;  %v8741_v4 = vadd.f32 %v11111_v12, %v8740_v60  ;;  %v14817_v42 = vadd.f32 %v14724_v49, %v8828_v45  ;;  %v11139_v18 = vpop.f32.mrf.mxu1  ;;  %v8831_v13 = vadd.f32 %v8749_v8, %v15043_v55  ;;  %v15044_v8 = vld [vmem:[#allocation12_spill] sm:$0xff] }
 0x4c8   : > { %v11482_v20 = vpop.f32.mrf.mxu0 }
 0x4c9   : > { %v8961_v29 = vadd.f32 %v8960_v35, %v14810_v33  ;;  %v8829_v51 = vadd.f32 %v8741_v4, %v14504_v37  ;;  %v8762_v63 = vadd.f32 %v11482_v20, %v11126_v7  ;;  %v11140_v10 = vpop.f32.mrf.mxu1  ;;  %v11129_v37 = vadd.f32 %v11128_v6, %v14763_v17 }
 0x4ca   : > { %v8753_v47 = vpop.f32.mrf.mxu0  ;;  %v14836_v38 = vadd.f32 %v14724_v49, %v8831_v13  ;;  %v11132_v6 = vadd.f32 %v11131_v25, %v14779_v26  ;;  %v11135_v20 = vadd.f32 %v11134_v31, %v11133_v27 }
 0x4cb   : > { %v8962_v19 = vadd.f32 %v8961_v29, %v14817_v42  ;;  %v14825_v11 = vadd.f32 %v14724_v49, %v8829_v51  ;;  %v8754_v54 = vadd.f32 %v11120_v28, %v8753_v47  ;;  %v11142_v44 = vpop.f32.mrf.mxu1  ;;  %v8834_v12 = vadd.f32 %v8762_v63, %v14551_v61  ;;  %v15046_v63 = vld [vmem:[#allocation7_spill] sm:$0xff] }
 0x4cc   : > { %v11483_v22 = vpop.f32.mrf.mxu0  ;;  %v11141_v29 = vadd.f32 %v11140_v10, %v11139_v18 }
 0x4cd   : > { %v8963_v57 = vadd.f32 %v8962_v19, %v14825_v11  ;;  %v8832_v5 = vadd.f32 %v8754_v54, %v14535_v23  ;;  %v8765_v24 = vadd.f32 %v11483_v22, %v11129_v37  ;;  %v11143_v62 = vpop.f32.mrf.mxu1  ;;  %v14852_v26 = vadd.f32 %v14724_v49, %v8834_v12  ;;  %v15047_v37 = vld [vmem:[#allocation8_spill] sm:$0xff] }
 0x4ce   : > { %v8756_v46 = vpop.f32.mrf.mxu0  ;;  %v11144_v31 = vadd.f32 %v11143_v62, %v11142_v44 }
 0x4cf   : > { %v8964_v32 = vadd.f32 %v8963_v57, %v14831_v21  ;;  %v8757_v16 = vadd.f32 %v11123_v39, %v8756_v46  ;;  %v14842_v41 = vadd.f32 %v14724_v49, %v8832_v5  ;;  %v11145_v45 = vpop.f32.mrf.mxu1  ;;  %v8835_v4 = vadd.f32 %v8765_v24, %v15044_v8 }
 0x4d0   : > { %v11486_v17 = vpop.f32.mrf.mxu0 }
 0x4d1   : > { %v8965_v23 = vadd.f32 %v8964_v32, %v14836_v38  ;;  %v8833_v50 = vadd.f32 %v8757_v16, %v14543_v15  ;;  %v11146_v25 = vpop.f32.mrf.mxu1  ;;  %v8778_v56 = vadd.f32 %v11486_v17, %v11138_v1  ;;  %v14857_v19 = vadd.f32 %v14724_v49, %v8835_v4  ;;  %v15048_v16 = vld [vmem:[#allocation9_spill] sm:$0xff]  ;;  %v15049_v1 = vld [vmem:[#allocation10_spill] sm:$0xff] }
 0x4d2   : > { %v8769_v60 = vpop.f32.mrf.mxu0  ;;  %v11147_v8 = vadd.f32 %v11146_v25, %v11145_v45  ;;  %v15051_v25 = vld [vmem:[#allocation14_spill] sm:$0xff] }
 0x4d3   : > { %v8966_v35 = vadd.f32 %v8965_v23, %v14842_v41  ;;  %v14849_v61 = vadd.f32 %v14724_v49, %v8833_v50  ;;  %v8770_v28 = vadd.f32 %v11132_v6, %v8769_v60  ;;  %v11148_v7 = vpop.f32.mrf.mxu1  ;;  %v8838_v22 = vadd.f32 %v8778_v56, %v15046_v63 }
 0x4d4   : > { %v11487_v9 = vpop.f32.mrf.mxu0 }
 0x4d5   : > { %v8967_v15 = vadd.f32 %v8966_v35, %v14849_v61  ;;  %v8836_v51 = vadd.f32 %v8770_v28, %v15045_v43  ;;  %v8781_v13 = vadd.f32 %v11487_v9, %v11141_v29  ;;  %v11149_v54 = vpop.f32.mrf.mxu1  ;;  %v14872_v23 = vadd.f32 %v14724_v49, %v8838_v22  ;;  %v15052_v22 = vld [vmem:[#allocation16_spill] sm:$0xff] }
 0x4d6   : > { %v8772_v47 = vpop.f32.mrf.mxu0  ;;  %v11150_v5 = vadd.f32 %v11149_v54, %v11148_v7 }
 0x4d7   : > { %v8968_v55 = vadd.f32 %v8967_v15, %v14852_v26  ;;  %v8773_v27 = vadd.f32 %v11135_v20, %v8772_v47  ;;  %v14862_v18 = vadd.f32 %v14724_v49, %v8836_v51  ;;  %v11151_v46 = vpop.f32.mrf.mxu1  ;;  %v8839_v12 = vadd.f32 %v8781_v13, %v15048_v16  ;;  %v15050_v13 = vld [vmem:[#allocation15_spill] sm:$0xff]  ;;  %v15053_v16 = vld [vmem:[#allocation17_spill] sm:$0xff] }
 0x4d8   : > { %v11490_v39 = vpop.f32.mrf.mxu0 }
 0x4d9   : > { %v8969_v10 = vadd.f32 %v8968_v55, %v14857_v19  ;;  %v8837_v57 = vadd.f32 %v8773_v27, %v15047_v37  ;;  %v11152_v17 = vpop.f32.mrf.mxu1  ;;  %v8794_v4 = vadd.f32 %v11490_v39, %v11150_v5  ;;  %v14877_v9 = vadd.f32 %v14724_v49, %v8839_v12 }
 0x4da   : > { %v8785_v32 = vpop.f32.mrf.mxu0  ;;  %v11153_v35 = vadd.f32 %v11152_v17, %v11151_v46 }
 0x4db   : > { %v8970_v24 = vadd.f32 %v8969_v10, %v14862_v18  ;;  %v14869_v44 = vadd.f32 %v14724_v49, %v8837_v57  ;;  %v8786_v62 = vadd.f32 %v11144_v31, %v8785_v32  ;;  %v11154_v28 = vpop.f32.mrf.mxu1  ;;  %v8842_v45 = vadd.f32 %v8794_v4, %v15050_v13 }
 0x4dc   : > { %v11491_v6 = vpop.f32.mrf.mxu0 }
 0x4dd   : > { %v8971_v50 = vadd.f32 %v8970_v24, %v14869_v44  ;;  %v8840_v60 = vadd.f32 %v8786_v62, %v15049_v1  ;;  %v8797_v15 = vadd.f32 %v11491_v6, %v11153_v35  ;;  %v11155_v43 = vpop.f32.mrf.mxu1  ;;  %v14892_v32 = vadd.f32 %v14724_v49, %v8842_v45 }
 0x4de   : > { %v8788_v20 = vpop.f32.mrf.mxu0  ;;  %v11156_v55 = vadd.f32 %v11155_v43, %v11154_v28 }
 0x4df   : > { %v8972_v29 = vadd.f32 %v8971_v50, %v14872_v23  ;;  %v8789_v56 = vadd.f32 %v11147_v8, %v8788_v20  ;;  %v14881_v7 = vadd.f32 %v14724_v49, %v8840_v60  ;;  %v11157_v31 = vpop.f32.mrf.mxu1  ;;  %v8843_v10 = vadd.f32 %v8797_v15, %v15052_v22 }
 0x4e0   : > { %v11494_v51 = vpop.f32.mrf.mxu0 }
 0x4e1   : > { %v8973_v47 = vadd.f32 %v8972_v29, %v14877_v9  ;;  %v8841_v27 = vadd.f32 %v8789_v56, %v15051_v25  ;;  %v11158_v57 = vpop.f32.mrf.mxu1  ;;  %v14897_v50 = vadd.f32 %v14724_v49, %v8843_v10  ;;  %v15054_v25 = vld [vmem:[#allocation18_spill] sm:$0xff] }
 0x4e2   : > { %v8801_v54 = vpop.f32.mrf.mxu0  ;;  %v11159_v46 = vadd.f32 %v11158_v57, %v11157_v31 }
 0x4e3   : > { %v8974_v39 = vadd.f32 %v8973_v47, %v14881_v7  ;;  %v8802_v63 = vadd.f32 %v11156_v55, %v8801_v54  ;;  %v14889_v37 = vadd.f32 %v14724_v49, %v8841_v27  ;;  %v11160_v62 = vpop.f32.mrf.mxu1 }
 0x4e4   : > { %v11495_v5 = vpop.f32.mrf.mxu0 }
 0x4e5   : > { %v8975_v24 = vadd.f32 %v8974_v39, %v14889_v37  ;;  %v8844_v12 = vadd.f32 %v8802_v63, %v15053_v16  ;;  %v11161_v60 = vpop.f32.mrf.mxu1 }
 0x4e6   : > { %v8804_v17 = vpop.f32.mrf.mxu0  ;;  %v11162_v8 = vadd.f32 %v11161_v60, %v11160_v62  ;;  %v9113_v60 = vld [vmem:[%s14992_s8] sm:$0x1] }
 0x4e7   : > { %v8805_v6 = vadd.f32 %v11159_v46, %v8804_v17  ;;  %v8976_v1 = vadd.f32 %v8975_v24, %v14892_v32  ;;  %v14902_v4 = vadd.f32 %v14724_v49, %v8844_v12  ;;  %v11163_v20 = vpop.f32.mrf.mxu1 }
 0x4e8   : > { %v8810_v15 = vadd.f32 %v11494_v51, %v11162_v8 }
 0x4e9   : > { %v8845_v35 = vadd.f32 %v8805_v6, %v14683_v34  ;;  %v8977_v28 = vadd.f32 %v8976_v1, %v14897_v50  ;;  %v11164_v43 = vpop.f32.mrf.mxu1 }
 0x4ea   : > { %v8846_v47 = vadd.f32 %v8810_v15, %v14691_v59  ;;  %v11165_v55 = vadd.f32 %v11164_v43, %v11163_v20 }
 0x4eb   : > { %v14906_v29 = vadd.f32 %v14724_v49, %v8845_v35  ;;  %v8978_v56 = vadd.f32 %v8977_v28, %v14902_v4 }
 0x4ec   : > { %v14912_v34 = vadd.f32 %v14724_v49, %v8846_v47  ;;  %v8813_v45 = vadd.f32 %v11495_v5, %v11165_v55  ;;  %v9006_v5 = vld [vmem:[%s14990_s6] sm:$0x1]  ;;  %v9208_v55 = vlaneseq }
 0x4ed   : > { %v8979_v13 = vadd.f32 %v8978_v56, %v14906_v29 }
 0x4ee   : > { %v8847_v27 = vadd.f32 %v8813_v45, %v15054_v25 }
 0x4ef   : > { %v8980_v31 = vadd.f32 %v8979_v13, %v14912_v34  ;;  %v9209_v13 = vshrl.u32 %v9208_v55, 7 }
 0x4f0   : > { %v14917_v54 = vadd.f32 %v14724_v49, %v8847_v27 }
 0x4f1   : > { %v9210_v45 = vsub.s32 0, %v9209_v13 }
 0x4f2   : > { %v8981_v51 = vadd.f32 %v8980_v31, %v14917_v54 }
 0x4f4   : > { %v8982_v39 = vrot.slane %v8981_v51, 4 }
 0x4f6   : > { %v8983_v63 = vadd.f32 %v8982_v39, %v8981_v51 }
 0x4f8   : > { %v8984_v22 = vrot.slane %v8983_v63, 2 }
 0x4fa   : > { %v8985_v59 = vadd.f32 %v8984_v22, %v8983_v63 }
 0x4fc   : > { %v8986_v10 = vrot.slane %v8985_v59, 1 }
 0x4fe   : > { %v8987_v57 = vadd.f32 %v8986_v10, %v8985_v59 }
 0x500   : > { %v8988_v46 = vmul.f32 0.00390625, %v8987_v57 }
 0x502   : > { %v8989_v24 = vpack.c.bf16 %v8988_v46, %v8988_v46 }
 0x504   : > { %11513 = vmatmul.mubr.bf16.vlgmr.msra.gmra.mxu0 %v8989_v24 }
 0x5c4   : > { %v9089_v16 = vpop.f32.mrf.mxu0 }
 0x5c5   : > { %v9090_v12 = vadd.f32 %v9089_v16, %v9006_v5 }
 0x5c6   : > { %v11514_v62 = vpop.f32.mrf.mxu0 }
 0x5c7   : > { %v9095_v49 = vmax.f32 %v9090_v12, 0.0 }
 0x5c8   : > { %v9092_v17 = vpop.f32.mrf.mxu0 }
 0x5c9   : > { %v9096_v6 = vpack.c.bf16 %v9095_v49, %v9095_v49 }
 0x5ca   : > { %v11515_v1 = vpop.f32.mrf.mxu0 }
 0x5cb   : > { %11533 = vmatmul.mubr.bf16.vlgmr.msra.gmra.mxu1 %v9096_v6 }
 0x68b   : > { %v9196_v35 = vpop.f32.mrf.mxu1 }
 0x68c   : > { %v9197_v8 = vadd.f32 %v9196_v35, %v9113_v60 }
 0x68d   : > { %v11534_v28 = vpop.f32.mrf.mxu1 }
 0x68e   : > { %v10178_v20 = vmul.f32 -1.442695, %v9197_v8 }
 0x68f   : > { %v9199_v15 = vpop.f32.mrf.mxu1 }
 0x690   : > { %12071 = vpow2.f32 %v10178_v20 }
 0x691   : > { %v11535_v56 = vpop.f32.mrf.mxu1 }
 0x69d   : > { %v12072_v43 = vpop.eup %12071 }
 0x69e   : > { %v9205_v47 = vadd.f32 1.0, %v12072_v43 }
 0x6a0   : > { %12073 = vrcp.f32 %v9205_v47 }
 0x6ad   : > { %v12074_v25 = vpop.eup %12073 }
 0x6ae   : > { %v9211_v27 = vrot.slane %v12074_v25, %v9210_v45 }
 0x6b0   : > { %v9212_v31 = vmul.f32 %v9211_v27, %v14729_v3  ;;  %v9213_v51 = vmul.f32 %v9211_v27, %v14733_v36  ;;  %v9214_v39 = vmul.f32 %v9211_v27, %v14742_v40  ;;  %v9215_v63 = vmul.f32 %v9211_v27, %v14750_v52 }
 0x6b1   : > { %v9216_v22 = vmul.f32 %v9211_v27, %v14757_v0  ;;  %v9217_v59 = vmul.f32 %v9211_v27, %v14768_v53  ;;  %v9218_v10 = vmul.f32 %v9211_v27, %v14775_v58  ;;  %v9219_v57 = vmul.f32 %v9211_v27, %v14782_v48 }
 0x6b2   : > { %v9220_v46 = vmul.f32 %v9211_v27, %v14789_v14  ;;  %v9221_v24 = vmul.f32 %v9211_v27, %v14798_v2  ;;  %v9222_v3 = vmul.f32 %v9211_v27, %v14805_v30  ;;  %v9223_v36 = vmul.f32 %v9211_v27, %v14810_v33 }
 0x6b3   : > { %v9224_v40 = vmul.f32 %v9211_v27, %v14817_v42  ;;  %v9225_v52 = vmul.f32 %v9211_v27, %v14825_v11  ;;  %v9226_v0 = vmul.f32 %v9211_v27, %v14831_v21  ;;  %v9227_v53 = vmul.f32 %v9211_v27, %v14836_v38 }
 0x6b4   : > { %v9228_v58 = vmul.f32 %v9211_v27, %v14842_v41  ;;  %v9229_v48 = vmul.f32 %v9211_v27, %v14849_v61  ;;  %v9230_v14 = vmul.f32 %v9211_v27, %v14852_v26  ;;  %v9231_v2 = vmul.f32 %v9211_v27, %v14857_v19 }
 0x6b5   : > { %v9232_v30 = vmul.f32 %v9211_v27, %v14862_v18  ;;  %v9233_v33 = vmul.f32 %v9211_v27, %v14869_v44  ;;  %v9234_v42 = vmul.f32 %v9211_v27, %v14872_v23  ;;  %v9235_v11 = vmul.f32 %v9211_v27, %v14877_v9 }
 0x6b6   : > { %v9236_v21 = vmul.f32 %v9211_v27, %v14881_v7  ;;  %v9237_v38 = vmul.f32 %v9211_v27, %v14889_v37  ;;  %v9238_v41 = vmul.f32 %v9211_v27, %v14892_v32  ;;  %v9239_v61 = vmul.f32 %v9211_v27, %v14897_v50 }
 0x6b7   : > { %v9240_v26 = vmul.f32 %v9211_v27, %v14902_v4  ;;  %v9241_v19 = vmul.f32 %v9211_v27, %v14906_v29  ;;  %v9242_v18 = vmul.f32 %v9211_v27, %v14912_v34  ;;  %v9243_v44 = vmul.f32 %v9211_v27, %v14917_v54 }
 0x6b8   : > { %v10282_v23 = vpack.c.bf16 %v9213_v51, %v9212_v31  ;;  %v10287_v9 = vpack.c.bf16 %v9215_v63, %v9214_v39  ;;  %v10292_v7 = vpack.c.bf16 %v9217_v59, %v9216_v22  ;;  %v10297_v37 = vpack.c.bf16 %v9219_v57, %v9218_v10 }
 0x6b9   : > { %v10302_v32 = vpack.c.bf16 %v9221_v24, %v9220_v46  ;;  %v10307_v50 = vpack.c.bf16 %v9223_v36, %v9222_v3  ;;  %v10312_v5 = vpack.c.bf16 %v9225_v52, %v9224_v40  ;;  %v10317_v16 = vpack.c.bf16 %v9227_v53, %v9226_v0 }
 0x6ba   : > { %10283 = vst [vmem:[%s14959_s13] sm:$0xff] %v10282_v23   ;;  %10359 = vst [vmem:[%s14959_s13 + $0x8] sm:$0xff] %v10287_v9   ;;  %v10322_v4 = vpack.c.bf16 %v9229_v48, %v9228_v58  ;;  %v10327_v29 = vpack.c.bf16 %v9231_v2, %v9230_v14  ;;  %v10332_v34 = vpack.c.bf16 %v9233_v33, %v9232_v30 }
 0x6bb   : > { %10360 = vst [vmem:[%s14959_s13 + $0x10] sm:$0xff] %v10292_v7   ;;  %10361 = vst [vmem:[%s14959_s13 + $0x18] sm:$0xff] %v10297_v37   ;;  %v10337_v54 = vpack.c.bf16 %v9235_v11, %v9234_v42  ;;  %v10342_v12 = vpack.c.bf16 %v9237_v38, %v9236_v21  ;;  %v10347_v62 = vpack.c.bf16 %v9239_v61, %v9238_v41 }
 0x6bc   : > { %10362 = vst [vmem:[%s14959_s13 + $0x20] sm:$0xff] %v10302_v32   ;;  %10363 = vst [vmem:[%s14959_s13 + $0x28] sm:$0xff] %v10307_v50   ;;  %v10352_v49 = vpack.c.bf16 %v9241_v19, %v9240_v26  ;;  %v10357_v17 = vpack.c.bf16 %v9243_v44, %v9242_v18 }
 0x6bd   : > { %10364 = vst [vmem:[%s14959_s13 + $0x30] sm:$0xff] %v10312_v5   ;;  %10365 = vst [vmem:[%s14959_s13 + $0x38] sm:$0xff] %v10317_v16  }
 0x6be   : > { %10366 = vst [vmem:[%s14959_s13 + $0x40] sm:$0xff] %v10322_v4   ;;  %10367 = vst [vmem:[%s14959_s13 + $0x48] sm:$0xff] %v10327_v29  }
 0x6bf   : > { %10368 = vst [vmem:[%s14959_s13 + $0x50] sm:$0xff] %v10332_v34   ;;  %10369 = vst [vmem:[%s14959_s13 + $0x58] sm:$0xff] %v10337_v54  }
 0x6c0   : > { %10370 = vst [vmem:[%s14959_s13 + $0x60] sm:$0xff] %v10342_v12   ;;  %10371 = vst [vmem:[%s14959_s13 + $0x68] sm:$0xff] %v10347_v62  }
 0x6c1   : > { %10372 = vst [vmem:[%s14959_s13 + $0x70] sm:$0xff] %v10352_v49   ;;  %10373 = vst [vmem:[%s14959_s13 + $0x78] sm:$0xff] %v10357_v17  }
 0x6c2 PF: > { %s19_s30 = sadd.s32 1, %s12093_s30  }
 0x6c3   : > { %p16_p4 = scmp.ge.s32.totalorder %s19_s30, 4  }
 0x6c5   :  { %18 = sbr.rel (!%p16_p4) target bundleno = 1 (0x1), region = 98 }

</bundles_post_ra>
